<compile_context>
chip_gen: v6e
topology: v6e:2x2x1
jax: 0.10.0
libtpu: 0.0.40
codegen_flags: <defaults>
</compile_context>

<pallas_src>
import functools

import jax
import jax.numpy as jnp
from jax import lax
from jax.experimental import pallas as pl
from jax.experimental.pallas import tpu as pltpu


COMPRESSED_LEN = 8


# ----------------------------------------------------------------------------
# Fused kernel: bidirectional GRU + flip/stride/flatten + MLP head.
# PyTorch GRU gate order [r, z, n]:
#   r = sigmoid(x W_ir + b_ir + h W_hr + b_hr)
#   z = sigmoid(x W_iz + b_iz + h W_hz + b_hz)
#   n = tanh   (x W_in + b_in + r * (h W_hn + b_hn))
#   h = (1 - z) * n + z * h
# ----------------------------------------------------------------------------
def q_model_kernel(x2d_ref, wih_ref, bih_ref,
                   whh_f_ref, bhh_f_ref, whh_b_ref, bhh_b_ref,
                   w1_ref, b1_ref, w2_ref, b2_ref,
                   out_ref, flat_scr,
                   *, T, B, stride, n_sel):
    H = whh_f_ref.shape[0]
    G = 3 * H

    # ---- hoisted input projection: both directions in one MXU pass -------
    # x2d rows are ordered (t, b) -> row t*B + b, so each per-timestep slice
    # below is a contiguous static sublane window.
    gi_all = (jnp.dot(x2d_ref[...], wih_ref[...],
                      preferred_element_type=jnp.float32) + bih_ref[...])

    # ---- hoist recurrent weights / biases out of the loop -----------------
    whh_f = whh_f_ref[...]
    whh_b = whh_b_ref[...]
    bhh_f = bhh_f_ref[...]
    bhh_b = bhh_b_ref[...]

    def gru_gates(gi, gh, h):
        r = jax.nn.sigmoid(gi[:, 0:H] + gh[:, 0:H])
        z = jax.nn.sigmoid(gi[:, H:2 * H] + gh[:, H:2 * H])
        n = jnp.tanh(gi[:, 2 * H:3 * H] + r * gh[:, 2 * H:3 * H])
        return (1.0 - z) * n + z * h

    h_f = jnp.zeros((B, H), jnp.float32)
    h_b = jnp.zeros((B, H), jnp.float32)

    # Fully-unrolled recurrence (T is small & static), both directions
    # interleaved in the same body.
    for i in range(T):
        tf = i            # forward direction consumes time index i
        tb = T - 1 - i    # backward direction consumes time index T-1-i
        gi_f = gi_all[tf * B:(tf + 1) * B, 0:G]
        gi_b = gi_all[tb * B:(tb + 1) * B, G:2 * G]
        gh_f = jnp.dot(h_f, whh_f, preferred_element_type=jnp.float32) + bhh_f
        gh_b = jnp.dot(h_b, whh_b, preferred_element_type=jnp.float32) + bhh_b
        h_f = gru_gates(gi_f, gh_f, h_f)
        h_b = gru_gates(gi_b, gh_b, h_b)

        # torch.flip(out, [1]) + out[:, ::stride] + Flatten(), fused:
        # subsample column j corresponds to original time index T-1-j*stride;
        # forward features land in lanes [j*2H, j*2H+H), backward features in
        # [j*2H+H, (j+1)*2H). All indices are static Python ints ->
        # lane-aligned 128-wide stores into the MLP-input slab.
        if (T - 1 - tf) % stride == 0 and (T - 1 - tf) // stride < n_sel:
            j = (T - 1 - tf) // stride
            flat_scr[:, j * 2 * H: j * 2 * H + H] = h_f
        if i % stride == 0 and i // stride < n_sel:
            j = i // stride
            flat_scr[:, j * 2 * H + H: (j + 1) * 2 * H] = h_b

    # ---- MLP head: Linear(2*n_sel*H -> 512) + ReLU + Linear(512 -> A) -----
    hidden = jnp.maximum(
        jnp.dot(flat_scr[...], w1_ref[...],
                preferred_element_type=jnp.float32) + b1_ref[...], 0.0)
    out_ref[...] = (jnp.dot(hidden, w2_ref[...],
                            preferred_element_type=jnp.float32)
                    + b2_ref[...]).astype(out_ref.dtype)


# ----------------------------------------------------------------------------
# Wrapper: one fused pallas_call.
# ----------------------------------------------------------------------------
def q_model_forward(x, params):
    """x: (B, T, C) float32 -> (B, n_actions)."""
    B, T, C = x.shape
    H = params["whh_f"].shape[0]
    A = params["w2"].shape[1]

    # Mirrors the PyTorch module: stride = T // compressed_len. The PyTorch
    # source shape-errors when T < 8 or T % 8 != 0; we require the consistent
    # case explicitly instead of silently diverging.
    assert T >= COMPRESSED_LEN, "sequence_len must be >= compressed_len (8)"
    stride = T // COMPRESSED_LEN
    n_sel = -(-T // stride)                       # = ceil(T / stride)
    assert params["w1"].shape[0] == 2 * n_sel * H, (
        "Linear input dim mismatch (PyTorch spec only consistent when "
        "sequence_len is a multiple of 8)")

    # Tiny (T*B*C-element) host-side relayout so per-timestep rows of the
    # hoisted input projection are contiguous sublane windows in-kernel.
    x2d = jnp.transpose(x, (1, 0, 2)).reshape(T * B, C)

    vmem = pl.BlockSpec(memory_space=pltpu.MemorySpace.VMEM)
    kernel = functools.partial(q_model_kernel, T=T, B=B,
                               stride=stride, n_sel=n_sel)
    return pl.pallas_call(
        kernel,
        out_shape=jax.ShapeDtypeStruct((B, A), jnp.float32),
        in_specs=[vmem] * 11,
        out_specs=vmem,
        scratch_shapes=[pltpu.VMEM((B, 2 * n_sel * H), jnp.float32)],
    )(x2d, params["wih"], params["bih"],
      params["whh_f"], params["bhh_f"], params["whh_b"], params["bhh_b"],
      params["w1"], params["b1"], params["w2"], params["b2"])


# ----------------------------------------------------------------------------
# Pure-JAX reference (for correctness check)
# ----------------------------------------------------------------------------
def gru_ref_dir(x_tm, wih, whh, bih, bhh):
    H = whh.shape[0]

    def step(h, x_t):
        gi = x_t @ wih + bih
        gh = h @ whh + bhh
        r = jax.nn.sigmoid(gi[:, 0:H] + gh[:, 0:H])
        z = jax.nn.sigmoid(gi[:, H:2 * H] + gh[:, H:2 * H])
        n = jnp.tanh(gi[:, 2 * H:3 * H] + r * gh[:, 2 * H:3 * H])
        h_new = (1.0 - z) * n + z * h
        return h_new, h_new

    h0 = jnp.zeros((x_tm.shape[1], H), jnp.float32)
    _, outs = lax.scan(step, h0, x_tm)
    return outs


def q_model_ref(x, params):
    B, T, _ = x.shape
    H = params["whh_f"].shape[0]
    G = 3 * H
    x_tm = jnp.transpose(x, (1, 0, 2))
    wih_f, wih_b = params["wih"][:, :G], params["wih"][:, G:]
    bih_f, bih_b = params["bih"][:, :G], params["bih"][:, G:]
    out_f = gru_ref_dir(x_tm, wih_f, params["whh_f"], bih_f, params["bhh_f"])
    out_b = gru_ref_dir(x_tm[::-1], wih_b, params["whh_b"],
                        bih_b, params["bhh_b"])[::-1]
    out = jnp.concatenate([out_f, out_b], axis=-1)
    out = jnp.transpose(out, (1, 0, 2))[:, ::-1, :]
    stride = T // COMPRESSED_LEN
    flat = out[:, ::stride, :].reshape(B, -1)
    h = jnp.maximum(flat @ params["w1"] + params["b1"], 0.0)
    return h @ params["w2"] + params["b2"]


# ----------------------------------------------------------------------------
def init_params(key, in_channels, sequence_len, n_actions, hidden=128):
    flatten_len = COMPRESSED_LEN + int(sequence_len % COMPRESSED_LEN != 0)
    lin_in_dim = 2 * flatten_len * hidden
    k = float(hidden) ** -0.5
    keys = jax.random.split(key, 12)

    def u(kk, shape):
        return jax.random.uniform(kk, shape, jnp.float32, -k, k)

    # GRU input-projection weights for BOTH directions concatenated along the
    # gate axis: (C, 6H) -> the hoisted projection issues as full MXU N-tiles.
    wih_f = u(keys[0], (in_channels, 3 * hidden))
    wih_b = u(keys[1], (in_channels, 3 * hidden))
    bih_f = u(keys[2], (1, 3 * hidden))
    bih_b = u(keys[3], (1, 3 * hidden))

    return {
        "wih": jnp.concatenate([wih_f, wih_b], axis=1),     # (C, 6H)
        "bih": jnp.concatenate([bih_f, bih_b], axis=1),     # (1, 6H)
        "whh_f": u(keys[4], (hidden, 3 * hidden)),
        "bhh_f": u(keys[5], (1, 3 * hidden)),
        "whh_b": u(keys[6], (hidden, 3 * hidden)),
        "bhh_b": u(keys[7], (1, 3 * hidden)),
        # MLP head
        "w1": u(keys[8], (lin_in_dim, 512)),
        "b1": u(keys[9], (1, 512)),
        "w2": u(keys[10], (512, n_actions)),
        "b2": u(keys[11], (1, n_actions)),
    }


if __name__ == "__main__":
    B, T, C = 2, 8, 4          # batch, sequence_len, inChannels
    N_ACTIONS = 3

    key = jax.random.PRNGKey(0)
    kx, kp = jax.random.split(key)
    x = jax.random.normal(kx, (B, T, C), jnp.float32)
    params = init_params(kp, C, T, N_ACTIONS)

    q = jax.jit(q_model_forward)(x, params)
    q = jax.block_until_ready(q)

    q_ref = q_model_ref(x, params)
    assert q.shape == (B, N_ACTIONS)
    assert jnp.allclose(q, q_ref, rtol=1e-3, atol=1e-3), (q, q_ref)

    print("KERNEL_OK")
</pallas_src>

<mosaic_0001>
module attributes {stable_mosaic.version = 11 : i64} {
  func.func @q_model_kernel(%arg0: memref<16x4xf32, #tpu.memory_space<vmem>>, %arg1: memref<4x768xf32, #tpu.memory_space<vmem>>, %arg2: memref<1x768xf32, #tpu.memory_space<vmem>>, %arg3: memref<128x384xf32, #tpu.memory_space<vmem>>, %arg4: memref<1x384xf32, #tpu.memory_space<vmem>>, %arg5: memref<128x384xf32, #tpu.memory_space<vmem>>, %arg6: memref<1x384xf32, #tpu.memory_space<vmem>>, %arg7: memref<2048x512xf32, #tpu.memory_space<vmem>>, %arg8: memref<1x512xf32, #tpu.memory_space<vmem>>, %arg9: memref<512x3xf32, #tpu.memory_space<vmem>>, %arg10: memref<1x3xf32, #tpu.memory_space<vmem>>, %arg11: memref<2x3xf32, #tpu.memory_space<vmem>>, %arg12: memref<2x2048xf32, #tpu.memory_space<vmem>>) attributes {dimension_semantics = [], scalar_prefetch = 0 : i64, scratch_operands = 1 : i64, tpu.core_type = #tpu.core_type<tc>} {
    %c0 = arith.constant 0 : index
    %c0_0 = arith.constant 0 : index
    %0 = vector.load %arg0[%c0, %c0_0] : memref<16x4xf32, #tpu.memory_space<vmem>>, vector<16x4xf32>
    %c0_1 = arith.constant 0 : index
    %c0_2 = arith.constant 0 : index
    %1 = vector.load %arg1[%c0_1, %c0_2] : memref<4x768xf32, #tpu.memory_space<vmem>>, vector<4x768xf32>
    %cst = arith.constant dense<0.000000e+00> : vector<16x768xf32>
    %2 = tpu.matmul %0, %1, %cst {dimension_numbers = #tpu.dot_dimension_numbers<[1], [0], [0], [1], [0, 0, 1, 1], [], []>} : vector<16x4xf32>, vector<4x768xf32>, vector<16x768xf32> -> vector<16x768xf32>
    %c0_3 = arith.constant 0 : index
    %c0_4 = arith.constant 0 : index
    %3 = vector.load %arg2[%c0_3, %c0_4] : memref<1x768xf32, #tpu.memory_space<vmem>>, vector<1x768xf32>
    %4 = vector.broadcast %3 : vector<1x768xf32> to vector<16x768xf32>
    %5 = arith.addf %2, %4 : vector<16x768xf32>
    %c0_5 = arith.constant 0 : index
    %c0_6 = arith.constant 0 : index
    %6 = vector.load %arg3[%c0_5, %c0_6] : memref<128x384xf32, #tpu.memory_space<vmem>>, vector<128x384xf32>
    %c0_7 = arith.constant 0 : index
    %c0_8 = arith.constant 0 : index
    %7 = vector.load %arg5[%c0_7, %c0_8] : memref<128x384xf32, #tpu.memory_space<vmem>>, vector<128x384xf32>
    %c0_9 = arith.constant 0 : index
    %c0_10 = arith.constant 0 : index
    %8 = vector.load %arg4[%c0_9, %c0_10] : memref<1x384xf32, #tpu.memory_space<vmem>>, vector<1x384xf32>
    %c0_11 = arith.constant 0 : index
    %c0_12 = arith.constant 0 : index
    %9 = vector.load %arg6[%c0_11, %c0_12] : memref<1x384xf32, #tpu.memory_space<vmem>>, vector<1x384xf32>
    %cst_13 = arith.constant 0.000000e+00 : f32
    %10 = vector.broadcast %cst_13 : f32 to vector<2x128xf32>
    %cst_14 = arith.constant 0.000000e+00 : f32
    %11 = vector.broadcast %cst_14 : f32 to vector<2x128xf32>
    %12 = vector.extract_strided_slice %5 {offsets = [0, 0], sizes = [2, 384], strides = [1, 1]} : vector<16x768xf32> to vector<2x384xf32>
    %13 = vector.extract_strided_slice %5 {offsets = [14, 384], sizes = [2, 384], strides = [1, 1]} : vector<16x768xf32> to vector<2x384xf32>
    %cst_15 = arith.constant dense<0.000000e+00> : vector<2x384xf32>
    %14 = tpu.matmul %10, %6, %cst_15 {dimension_numbers = #tpu.dot_dimension_numbers<[1], [0], [0], [1], [0, 0, 1, 1], [], []>} : vector<2x128xf32>, vector<128x384xf32>, vector<2x384xf32> -> vector<2x384xf32>
    %15 = vector.broadcast %8 : vector<1x384xf32> to vector<2x384xf32>
    %16 = arith.addf %14, %15 : vector<2x384xf32>
    %cst_16 = arith.constant dense<0.000000e+00> : vector<2x384xf32>
    %17 = tpu.matmul %11, %7, %cst_16 {dimension_numbers = #tpu.dot_dimension_numbers<[1], [0], [0], [1], [0, 0, 1, 1], [], []>} : vector<2x128xf32>, vector<128x384xf32>, vector<2x384xf32> -> vector<2x384xf32>
    %18 = vector.broadcast %9 : vector<1x384xf32> to vector<2x384xf32>
    %19 = arith.addf %17, %18 : vector<2x384xf32>
    %20 = vector.extract_strided_slice %12 {offsets = [0, 0], sizes = [2, 128], strides = [1, 1]} : vector<2x384xf32> to vector<2x128xf32>
    %21 = vector.extract_strided_slice %16 {offsets = [0, 0], sizes = [2, 128], strides = [1, 1]} : vector<2x384xf32> to vector<2x128xf32>
    %22 = arith.addf %20, %21 : vector<2x128xf32>
    %23 = arith.negf %22 : vector<2x128xf32>
    %24 = math.exp %23 : vector<2x128xf32>
    %cst_17 = arith.constant 1.000000e+00 : f32
    %25 = vector.broadcast %cst_17 : f32 to vector<2x128xf32>
    %26 = arith.addf %25, %24 : vector<2x128xf32>
    %27 = arith.divf %25, %26 : vector<2x128xf32>
    %28 = vector.extract_strided_slice %12 {offsets = [0, 128], sizes = [2, 128], strides = [1, 1]} : vector<2x384xf32> to vector<2x128xf32>
    %29 = vector.extract_strided_slice %16 {offsets = [0, 128], sizes = [2, 128], strides = [1, 1]} : vector<2x384xf32> to vector<2x128xf32>
    %30 = arith.addf %28, %29 : vector<2x128xf32>
    %31 = arith.negf %30 : vector<2x128xf32>
    %32 = math.exp %31 : vector<2x128xf32>
    %cst_18 = arith.constant 1.000000e+00 : f32
    %33 = vector.broadcast %cst_18 : f32 to vector<2x128xf32>
    %34 = arith.addf %33, %32 : vector<2x128xf32>
    %35 = arith.divf %33, %34 : vector<2x128xf32>
    %36 = vector.extract_strided_slice %12 {offsets = [0, 256], sizes = [2, 128], strides = [1, 1]} : vector<2x384xf32> to vector<2x128xf32>
    %37 = vector.extract_strided_slice %16 {offsets = [0, 256], sizes = [2, 128], strides = [1, 1]} : vector<2x384xf32> to vector<2x128xf32>
    %38 = arith.mulf %27, %37 : vector<2x128xf32>
    %39 = arith.addf %36, %38 : vector<2x128xf32>
    %40 = math.tanh %39 : vector<2x128xf32>
    %cst_19 = arith.constant 1.000000e+00 : f32
    %41 = vector.broadcast %cst_19 : f32 to vector<2x128xf32>
    %42 = arith.subf %41, %35 : vector<2x128xf32>
    %43 = arith.mulf %42, %40 : vector<2x128xf32>
    %44 = arith.mulf %35, %10 : vector<2x128xf32>
    %45 = arith.addf %43, %44 : vector<2x128xf32>
    %46 = vector.extract_strided_slice %13 {offsets = [0, 0], sizes = [2, 128], strides = [1, 1]} : vector<2x384xf32> to vector<2x128xf32>
    %47 = vector.extract_strided_slice %19 {offsets = [0, 0], sizes = [2, 128], strides = [1, 1]} : vector<2x384xf32> to vector<2x128xf32>
    %48 = arith.addf %46, %47 : vector<2x128xf32>
    %49 = arith.negf %48 : vector<2x128xf32>
    %50 = math.exp %49 : vector<2x128xf32>
    %cst_20 = arith.constant 1.000000e+00 : f32
    %51 = vector.broadcast %cst_20 : f32 to vector<2x128xf32>
    %52 = arith.addf %51, %50 : vector<2x128xf32>
    %53 = arith.divf %51, %52 : vector<2x128xf32>
    %54 = vector.extract_strided_slice %13 {offsets = [0, 128], sizes = [2, 128], strides = [1, 1]} : vector<2x384xf32> to vector<2x128xf32>
    %55 = vector.extract_strided_slice %19 {offsets = [0, 128], sizes = [2, 128], strides = [1, 1]} : vector<2x384xf32> to vector<2x128xf32>
    %56 = arith.addf %54, %55 : vector<2x128xf32>
    %57 = arith.negf %56 : vector<2x128xf32>
    %58 = math.exp %57 : vector<2x128xf32>
    %cst_21 = arith.constant 1.000000e+00 : f32
    %59 = vector.broadcast %cst_21 : f32 to vector<2x128xf32>
    %60 = arith.addf %59, %58 : vector<2x128xf32>
    %61 = arith.divf %59, %60 : vector<2x128xf32>
    %62 = vector.extract_strided_slice %13 {offsets = [0, 256], sizes = [2, 128], strides = [1, 1]} : vector<2x384xf32> to vector<2x128xf32>
    %63 = vector.extract_strided_slice %19 {offsets = [0, 256], sizes = [2, 128], strides = [1, 1]} : vector<2x384xf32> to vector<2x128xf32>
    %64 = arith.mulf %53, %63 : vector<2x128xf32>
    %65 = arith.addf %62, %64 : vector<2x128xf32>
    %66 = math.tanh %65 : vector<2x128xf32>
    %cst_22 = arith.constant 1.000000e+00 : f32
    %67 = vector.broadcast %cst_22 : f32 to vector<2x128xf32>
    %68 = arith.subf %67, %61 : vector<2x128xf32>
    %69 = arith.mulf %68, %66 : vector<2x128xf32>
    %70 = arith.mulf %61, %11 : vector<2x128xf32>
    %71 = arith.addf %69, %70 : vector<2x128xf32>
    %c0_23 = arith.constant 0 : index
    %c1792 = arith.constant 1792 : index
    %72 = vector.load %arg12[%c0_23, %c1792] : memref<2x2048xf32, #tpu.memory_space<vmem>>, vector<2x128xf32>
    tpu.vector_store %arg12[%c0_23, %c1792], %45 {strides = array<i32>} : memref<2x2048xf32, #tpu.memory_space<vmem>>, vector<2x128xf32>,
    %c0_24 = arith.constant 0 : index
    %c128 = arith.constant 128 : index
    %73 = vector.load %arg12[%c0_24, %c128] : memref<2x2048xf32, #tpu.memory_space<vmem>>, vector<2x128xf32>
    tpu.vector_store %arg12[%c0_24, %c128], %71 {strides = array<i32>} : memref<2x2048xf32, #tpu.memory_space<vmem>>, vector<2x128xf32>,
    %74 = vector.extract_strided_slice %5 {offsets = [2, 0], sizes = [2, 384], strides = [1, 1]} : vector<16x768xf32> to vector<2x384xf32>
    %75 = vector.extract_strided_slice %5 {offsets = [12, 384], sizes = [2, 384], strides = [1, 1]} : vector<16x768xf32> to vector<2x384xf32>
    %cst_25 = arith.constant dense<0.000000e+00> : vector<2x384xf32>
    %76 = tpu.matmul %45, %6, %cst_25 {dimension_numbers = #tpu.dot_dimension_numbers<[1], [0], [0], [1], [0, 0, 1, 1], [], []>} : vector<2x128xf32>, vector<128x384xf32>, vector<2x384xf32> -> vector<2x384xf32>
    %77 = vector.broadcast %8 : vector<1x384xf32> to vector<2x384xf32>
    %78 = arith.addf %76, %77 : vector<2x384xf32>
    %cst_26 = arith.constant dense<0.000000e+00> : vector<2x384xf32>
    %79 = tpu.matmul %71, %7, %cst_26 {dimension_numbers = #tpu.dot_dimension_numbers<[1], [0], [0], [1], [0, 0, 1, 1], [], []>} : vector<2x128xf32>, vector<128x384xf32>, vector<2x384xf32> -> vector<2x384xf32>
    %80 = vector.broadcast %9 : vector<1x384xf32> to vector<2x384xf32>
    %81 = arith.addf %79, %80 : vector<2x384xf32>
    %82 = vector.extract_strided_slice %74 {offsets = [0, 0], sizes = [2, 128], strides = [1, 1]} : vector<2x384xf32> to vector<2x128xf32>
    %83 = vector.extract_strided_slice %78 {offsets = [0, 0], sizes = [2, 128], strides = [1, 1]} : vector<2x384xf32> to vector<2x128xf32>
    %84 = arith.addf %82, %83 : vector<2x128xf32>
    %85 = arith.negf %84 : vector<2x128xf32>
    %86 = math.exp %85 : vector<2x128xf32>
    %cst_27 = arith.constant 1.000000e+00 : f32
    %87 = vector.broadcast %cst_27 : f32 to vector<2x128xf32>
    %88 = arith.addf %87, %86 : vector<2x128xf32>
    %89 = arith.divf %87, %88 : vector<2x128xf32>
    %90 = vector.extract_strided_slice %74 {offsets = [0, 128], sizes = [2, 128], strides = [1, 1]} : vector<2x384xf32> to vector<2x128xf32>
    %91 = vector.extract_strided_slice %78 {offsets = [0, 128], sizes = [2, 128], strides = [1, 1]} : vector<2x384xf32> to vector<2x128xf32>
    %92 = arith.addf %90, %91 : vector<2x128xf32>
    %93 = arith.negf %92 : vector<2x128xf32>
    %94 = math.exp %93 : vector<2x128xf32>
    %cst_28 = arith.constant 1.000000e+00 : f32
    %95 = vector.broadcast %cst_28 : f32 to vector<2x128xf32>
    %96 = arith.addf %95, %94 : vector<2x128xf32>
    %97 = arith.divf %95, %96 : vector<2x128xf32>
    %98 = vector.extract_strided_slice %74 {offsets = [0, 256], sizes = [2, 128], strides = [1, 1]} : vector<2x384xf32> to vector<2x128xf32>
    %99 = vector.extract_strided_slice %78 {offsets = [0, 256], sizes = [2, 128], strides = [1, 1]} : vector<2x384xf32> to vector<2x128xf32>
    %100 = arith.mulf %89, %99 : vector<2x128xf32>
    %101 = arith.addf %98, %100 : vector<2x128xf32>
    %102 = math.tanh %101 : vector<2x128xf32>
    %cst_29 = arith.constant 1.000000e+00 : f32
    %103 = vector.broadcast %cst_29 : f32 to vector<2x128xf32>
    %104 = arith.subf %103, %97 : vector<2x128xf32>
    %105 = arith.mulf %104, %102 : vector<2x128xf32>
    %106 = arith.mulf %97, %45 : vector<2x128xf32>
    %107 = arith.addf %105, %106 : vector<2x128xf32>
    %108 = vector.extract_strided_slice %75 {offsets = [0, 0], sizes = [2, 128], strides = [1, 1]} : vector<2x384xf32> to vector<2x128xf32>
    %109 = vector.extract_strided_slice %81 {offsets = [0, 0], sizes = [2, 128], strides = [1, 1]} : vector<2x384xf32> to vector<2x128xf32>
    %110 = arith.addf %108, %109 : vector<2x128xf32>
    %111 = arith.negf %110 : vector<2x128xf32>
    %112 = math.exp %111 : vector<2x128xf32>
    %cst_30 = arith.constant 1.000000e+00 : f32
    %113 = vector.broadcast %cst_30 : f32 to vector<2x128xf32>
    %114 = arith.addf %113, %112 : vector<2x128xf32>
    %115 = arith.divf %113, %114 : vector<2x128xf32>
    %116 = vector.extract_strided_slice %75 {offsets = [0, 128], sizes = [2, 128], strides = [1, 1]} : vector<2x384xf32> to vector<2x128xf32>
    %117 = vector.extract_strided_slice %81 {offsets = [0, 128], sizes = [2, 128], strides = [1, 1]} : vector<2x384xf32> to vector<2x128xf32>
    %118 = arith.addf %116, %117 : vector<2x128xf32>
    %119 = arith.negf %118 : vector<2x128xf32>
    %120 = math.exp %119 : vector<2x128xf32>
    %cst_31 = arith.constant 1.000000e+00 : f32
    %121 = vector.broadcast %cst_31 : f32 to vector<2x128xf32>
    %122 = arith.addf %121, %120 : vector<2x128xf32>
    %123 = arith.divf %121, %122 : vector<2x128xf32>
    %124 = vector.extract_strided_slice %75 {offsets = [0, 256], sizes = [2, 128], strides = [1, 1]} : vector<2x384xf32> to vector<2x128xf32>
    %125 = vector.extract_strided_slice %81 {offsets = [0, 256], sizes = [2, 128], strides = [1, 1]} : vector<2x384xf32> to vector<2x128xf32>
    %126 = arith.mulf %115, %125 : vector<2x128xf32>
    %127 = arith.addf %124, %126 : vector<2x128xf32>
    %128 = math.tanh %127 : vector<2x128xf32>
    %cst_32 = arith.constant 1.000000e+00 : f32
    %129 = vector.broadcast %cst_32 : f32 to vector<2x128xf32>
    %130 = arith.subf %129, %123 : vector<2x128xf32>
    %131 = arith.mulf %130, %128 : vector<2x128xf32>
    %132 = arith.mulf %123, %71 : vector<2x128xf32>
    %133 = arith.addf %131, %132 : vector<2x128xf32>
    %c0_33 = arith.constant 0 : index
    %c1536 = arith.constant 1536 : index
    %134 = vector.load %arg12[%c0_33, %c1536] : memref<2x2048xf32, #tpu.memory_space<vmem>>, vector<2x128xf32>
    tpu.vector_store %arg12[%c0_33, %c1536], %107 {strides = array<i32>} : memref<2x2048xf32, #tpu.memory_space<vmem>>, vector<2x128xf32>,
    %c0_34 = arith.constant 0 : index
    %c384 = arith.constant 384 : index
    %135 = vector.load %arg12[%c0_34, %c384] : memref<2x2048xf32, #tpu.memory_space<vmem>>, vector<2x128xf32>
    tpu.vector_store %arg12[%c0_34, %c384], %133 {strides = array<i32>} : memref<2x2048xf32, #tpu.memory_space<vmem>>, vector<2x128xf32>,
    %136 = vector.extract_strided_slice %5 {offsets = [4, 0], sizes = [2, 384], strides = [1, 1]} : vector<16x768xf32> to vector<2x384xf32>
    %137 = vector.extract_strided_slice %5 {offsets = [10, 384], sizes = [2, 384], strides = [1, 1]} : vector<16x768xf32> to vector<2x384xf32>
    %cst_35 = arith.constant dense<0.000000e+00> : vector<2x384xf32>
    %138 = tpu.matmul %107, %6, %cst_35 {dimension_numbers = #tpu.dot_dimension_numbers<[1], [0], [0], [1], [0, 0, 1, 1], [], []>} : vector<2x128xf32>, vector<128x384xf32>, vector<2x384xf32> -> vector<2x384xf32>
    %139 = vector.broadcast %8 : vector<1x384xf32> to vector<2x384xf32>
    %140 = arith.addf %138, %139 : vector<2x384xf32>
    %cst_36 = arith.constant dense<0.000000e+00> : vector<2x384xf32>
    %141 = tpu.matmul %133, %7, %cst_36 {dimension_numbers = #tpu.dot_dimension_numbers<[1], [0], [0], [1], [0, 0, 1, 1], [], []>} : vector<2x128xf32>, vector<128x384xf32>, vector<2x384xf32> -> vector<2x384xf32>
    %142 = vector.broadcast %9 : vector<1x384xf32> to vector<2x384xf32>
    %143 = arith.addf %141, %142 : vector<2x384xf32>
    %144 = vector.extract_strided_slice %136 {offsets = [0, 0], sizes = [2, 128], strides = [1, 1]} : vector<2x384xf32> to vector<2x128xf32>
    %145 = vector.extract_strided_slice %140 {offsets = [0, 0], sizes = [2, 128], strides = [1, 1]} : vector<2x384xf32> to vector<2x128xf32>
    %146 = arith.addf %144, %145 : vector<2x128xf32>
    %147 = arith.negf %146 : vector<2x128xf32>
    %148 = math.exp %147 : vector<2x128xf32>
    %cst_37 = arith.constant 1.000000e+00 : f32
    %149 = vector.broadcast %cst_37 : f32 to vector<2x128xf32>
    %150 = arith.addf %149, %148 : vector<2x128xf32>
    %151 = arith.divf %149, %150 : vector<2x128xf32>
    %152 = vector.extract_strided_slice %136 {offsets = [0, 128], sizes = [2, 128], strides = [1, 1]} : vector<2x384xf32> to vector<2x128xf32>
    %153 = vector.extract_strided_slice %140 {offsets = [0, 128], sizes = [2, 128], strides = [1, 1]} : vector<2x384xf32> to vector<2x128xf32>
    %154 = arith.addf %152, %153 : vector<2x128xf32>
    %155 = arith.negf %154 : vector<2x128xf32>
    %156 = math.exp %155 : vector<2x128xf32>
    %cst_38 = arith.constant 1.000000e+00 : f32
    %157 = vector.broadcast %cst_38 : f32 to vector<2x128xf32>
    %158 = arith.addf %157, %156 : vector<2x128xf32>
    %159 = arith.divf %157, %158 : vector<2x128xf32>
    %160 = vector.extract_strided_slice %136 {offsets = [0, 256], sizes = [2, 128], strides = [1, 1]} : vector<2x384xf32> to vector<2x128xf32>
    %161 = vector.extract_strided_slice %140 {offsets = [0, 256], sizes = [2, 128], strides = [1, 1]} : vector<2x384xf32> to vector<2x128xf32>
    %162 = arith.mulf %151, %161 : vector<2x128xf32>
    %163 = arith.addf %160, %162 : vector<2x128xf32>
    %164 = math.tanh %163 : vector<2x128xf32>
    %cst_39 = arith.constant 1.000000e+00 : f32
    %165 = vector.broadcast %cst_39 : f32 to vector<2x128xf32>
    %166 = arith.subf %165, %159 : vector<2x128xf32>
    %167 = arith.mulf %166, %164 : vector<2x128xf32>
    %168 = arith.mulf %159, %107 : vector<2x128xf32>
    %169 = arith.addf %167, %168 : vector<2x128xf32>
    %170 = vector.extract_strided_slice %137 {offsets = [0, 0], sizes = [2, 128], strides = [1, 1]} : vector<2x384xf32> to vector<2x128xf32>
    %171 = vector.extract_strided_slice %143 {offsets = [0, 0], sizes = [2, 128], strides = [1, 1]} : vector<2x384xf32> to vector<2x128xf32>
    %172 = arith.addf %170, %171 : vector<2x128xf32>
    %173 = arith.negf %172 : vector<2x128xf32>
    %174 = math.exp %173 : vector<2x128xf32>
    %cst_40 = arith.constant 1.000000e+00 : f32
    %175 = vector.broadcast %cst_40 : f32 to vector<2x128xf32>
    %176 = arith.addf %175, %174 : vector<2x128xf32>
    %177 = arith.divf %175, %176 : vector<2x128xf32>
    %178 = vector.extract_strided_slice %137 {offsets = [0, 128], sizes = [2, 128], strides = [1, 1]} : vector<2x384xf32> to vector<2x128xf32>
    %179 = vector.extract_strided_slice %143 {offsets = [0, 128], sizes = [2, 128], strides = [1, 1]} : vector<2x384xf32> to vector<2x128xf32>
    %180 = arith.addf %178, %179 : vector<2x128xf32>
    %181 = arith.negf %180 : vector<2x128xf32>
    %182 = math.exp %181 : vector<2x128xf32>
    %cst_41 = arith.constant 1.000000e+00 : f32
    %183 = vector.broadcast %cst_41 : f32 to vector<2x128xf32>
    %184 = arith.addf %183, %182 : vector<2x128xf32>
    %185 = arith.divf %183, %184 : vector<2x128xf32>
    %186 = vector.extract_strided_slice %137 {offsets = [0, 256], sizes = [2, 128], strides = [1, 1]} : vector<2x384xf32> to vector<2x128xf32>
    %187 = vector.extract_strided_slice %143 {offsets = [0, 256], sizes = [2, 128], strides = [1, 1]} : vector<2x384xf32> to vector<2x128xf32>
    %188 = arith.mulf %177, %187 : vector<2x128xf32>
    %189 = arith.addf %186, %188 : vector<2x128xf32>
    %190 = math.tanh %189 : vector<2x128xf32>
    %cst_42 = arith.constant 1.000000e+00 : f32
    %191 = vector.broadcast %cst_42 : f32 to vector<2x128xf32>
    %192 = arith.subf %191, %185 : vector<2x128xf32>
    %193 = arith.mulf %192, %190 : vector<2x128xf32>
    %194 = arith.mulf %185, %133 : vector<2x128xf32>
    %195 = arith.addf %193, %194 : vector<2x128xf32>
    %c0_43 = arith.constant 0 : index
    %c1280 = arith.constant 1280 : index
    %196 = vector.load %arg12[%c0_43, %c1280] : memref<2x2048xf32, #tpu.memory_space<vmem>>, vector<2x128xf32>
    tpu.vector_store %arg12[%c0_43, %c1280], %169 {strides = array<i32>} : memref<2x2048xf32, #tpu.memory_space<vmem>>, vector<2x128xf32>,
    %c0_44 = arith.constant 0 : index
    %c640 = arith.constant 640 : index
    %197 = vector.load %arg12[%c0_44, %c640] : memref<2x2048xf32, #tpu.memory_space<vmem>>, vector<2x128xf32>
    tpu.vector_store %arg12[%c0_44, %c640], %195 {strides = array<i32>} : memref<2x2048xf32, #tpu.memory_space<vmem>>, vector<2x128xf32>,
    %198 = vector.extract_strided_slice %5 {offsets = [6, 0], sizes = [2, 384], strides = [1, 1]} : vector<16x768xf32> to vector<2x384xf32>
    %199 = vector.extract_strided_slice %5 {offsets = [8, 384], sizes = [2, 384], strides = [1, 1]} : vector<16x768xf32> to vector<2x384xf32>
    %cst_45 = arith.constant dense<0.000000e+00> : vector<2x384xf32>
    %200 = tpu.matmul %169, %6, %cst_45 {dimension_numbers = #tpu.dot_dimension_numbers<[1], [0], [0], [1], [0, 0, 1, 1], [], []>} : vector<2x128xf32>, vector<128x384xf32>, vector<2x384xf32> -> vector<2x384xf32>
    %201 = vector.broadcast %8 : vector<1x384xf32> to vector<2x384xf32>
    %202 = arith.addf %200, %201 : vector<2x384xf32>
    %cst_46 = arith.constant dense<0.000000e+00> : vector<2x384xf32>
    %203 = tpu.matmul %195, %7, %cst_46 {dimension_numbers = #tpu.dot_dimension_numbers<[1], [0], [0], [1], [0, 0, 1, 1], [], []>} : vector<2x128xf32>, vector<128x384xf32>, vector<2x384xf32> -> vector<2x384xf32>
    %204 = vector.broadcast %9 : vector<1x384xf32> to vector<2x384xf32>
    %205 = arith.addf %203, %204 : vector<2x384xf32>
    %206 = vector.extract_strided_slice %198 {offsets = [0, 0], sizes = [2, 128], strides = [1, 1]} : vector<2x384xf32> to vector<2x128xf32>
    %207 = vector.extract_strided_slice %202 {offsets = [0, 0], sizes = [2, 128], strides = [1, 1]} : vector<2x384xf32> to vector<2x128xf32>
    %208 = arith.addf %206, %207 : vector<2x128xf32>
    %209 = arith.negf %208 : vector<2x128xf32>
    %210 = math.exp %209 : vector<2x128xf32>
    %cst_47 = arith.constant 1.000000e+00 : f32
    %211 = vector.broadcast %cst_47 : f32 to vector<2x128xf32>
    %212 = arith.addf %211, %210 : vector<2x128xf32>
    %213 = arith.divf %211, %212 : vector<2x128xf32>
    %214 = vector.extract_strided_slice %198 {offsets = [0, 128], sizes = [2, 128], strides = [1, 1]} : vector<2x384xf32> to vector<2x128xf32>
    %215 = vector.extract_strided_slice %202 {offsets = [0, 128], sizes = [2, 128], strides = [1, 1]} : vector<2x384xf32> to vector<2x128xf32>
    %216 = arith.addf %214, %215 : vector<2x128xf32>
    %217 = arith.negf %216 : vector<2x128xf32>
    %218 = math.exp %217 : vector<2x128xf32>
    %cst_48 = arith.constant 1.000000e+00 : f32
    %219 = vector.broadcast %cst_48 : f32 to vector<2x128xf32>
    %220 = arith.addf %219, %218 : vector<2x128xf32>
    %221 = arith.divf %219, %220 : vector<2x128xf32>
    %222 = vector.extract_strided_slice %198 {offsets = [0, 256], sizes = [2, 128], strides = [1, 1]} : vector<2x384xf32> to vector<2x128xf32>
    %223 = vector.extract_strided_slice %202 {offsets = [0, 256], sizes = [2, 128], strides = [1, 1]} : vector<2x384xf32> to vector<2x128xf32>
    %224 = arith.mulf %213, %223 : vector<2x128xf32>
    %225 = arith.addf %222, %224 : vector<2x128xf32>
    %226 = math.tanh %225 : vector<2x128xf32>
    %cst_49 = arith.constant 1.000000e+00 : f32
    %227 = vector.broadcast %cst_49 : f32 to vector<2x128xf32>
    %228 = arith.subf %227, %221 : vector<2x128xf32>
    %229 = arith.mulf %228, %226 : vector<2x128xf32>
    %230 = arith.mulf %221, %169 : vector<2x128xf32>
    %231 = arith.addf %229, %230 : vector<2x128xf32>
    %232 = vector.extract_strided_slice %199 {offsets = [0, 0], sizes = [2, 128], strides = [1, 1]} : vector<2x384xf32> to vector<2x128xf32>
    %233 = vector.extract_strided_slice %205 {offsets = [0, 0], sizes = [2, 128], strides = [1, 1]} : vector<2x384xf32> to vector<2x128xf32>
    %234 = arith.addf %232, %233 : vector<2x128xf32>
    %235 = arith.negf %234 : vector<2x128xf32>
    %236 = math.exp %235 : vector<2x128xf32>
    %cst_50 = arith.constant 1.000000e+00 : f32
    %237 = vector.broadcast %cst_50 : f32 to vector<2x128xf32>
    %238 = arith.addf %237, %236 : vector<2x128xf32>
    %239 = arith.divf %237, %238 : vector<2x128xf32>
    %240 = vector.extract_strided_slice %199 {offsets = [0, 128], sizes = [2, 128], strides = [1, 1]} : vector<2x384xf32> to vector<2x128xf32>
    %241 = vector.extract_strided_slice %205 {offsets = [0, 128], sizes = [2, 128], strides = [1, 1]} : vector<2x384xf32> to vector<2x128xf32>
    %242 = arith.addf %240, %241 : vector<2x128xf32>
    %243 = arith.negf %242 : vector<2x128xf32>
    %244 = math.exp %243 : vector<2x128xf32>
    %cst_51 = arith.constant 1.000000e+00 : f32
    %245 = vector.broadcast %cst_51 : f32 to vector<2x128xf32>
    %246 = arith.addf %245, %244 : vector<2x128xf32>
    %247 = arith.divf %245, %246 : vector<2x128xf32>
    %248 = vector.extract_strided_slice %199 {offsets = [0, 256], sizes = [2, 128], strides = [1, 1]} : vector<2x384xf32> to vector<2x128xf32>
    %249 = vector.extract_strided_slice %205 {offsets = [0, 256], sizes = [2, 128], strides = [1, 1]} : vector<2x384xf32> to vector<2x128xf32>
    %250 = arith.mulf %239, %249 : vector<2x128xf32>
    %251 = arith.addf %248, %250 : vector<2x128xf32>
    %252 = math.tanh %251 : vector<2x128xf32>
    %cst_52 = arith.constant 1.000000e+00 : f32
    %253 = vector.broadcast %cst_52 : f32 to vector<2x128xf32>
    %254 = arith.subf %253, %247 : vector<2x128xf32>
    %255 = arith.mulf %254, %252 : vector<2x128xf32>
    %256 = arith.mulf %247, %195 : vector<2x128xf32>
    %257 = arith.addf %255, %256 : vector<2x128xf32>
    %c0_53 = arith.constant 0 : index
    %c1024 = arith.constant 1024 : index
    %258 = vector.load %arg12[%c0_53, %c1024] : memref<2x2048xf32, #tpu.memory_space<vmem>>, vector<2x128xf32>
    tpu.vector_store %arg12[%c0_53, %c1024], %231 {strides = array<i32>} : memref<2x2048xf32, #tpu.memory_space<vmem>>, vector<2x128xf32>,
    %c0_54 = arith.constant 0 : index
    %c896 = arith.constant 896 : index
    %259 = vector.load %arg12[%c0_54, %c896] : memref<2x2048xf32, #tpu.memory_space<vmem>>, vector<2x128xf32>
    tpu.vector_store %arg12[%c0_54, %c896], %257 {strides = array<i32>} : memref<2x2048xf32, #tpu.memory_space<vmem>>, vector<2x128xf32>,
    %260 = vector.extract_strided_slice %5 {offsets = [8, 0], sizes = [2, 384], strides = [1, 1]} : vector<16x768xf32> to vector<2x384xf32>
    %261 = vector.extract_strided_slice %5 {offsets = [6, 384], sizes = [2, 384], strides = [1, 1]} : vector<16x768xf32> to vector<2x384xf32>
    %cst_55 = arith.constant dense<0.000000e+00> : vector<2x384xf32>
    %262 = tpu.matmul %231, %6, %cst_55 {dimension_numbers = #tpu.dot_dimension_numbers<[1], [0], [0], [1], [0, 0, 1, 1], [], []>} : vector<2x128xf32>, vector<128x384xf32>, vector<2x384xf32> -> vector<2x384xf32>
    %263 = vector.broadcast %8 : vector<1x384xf32> to vector<2x384xf32>
    %264 = arith.addf %262, %263 : vector<2x384xf32>
    %cst_56 = arith.constant dense<0.000000e+00> : vector<2x384xf32>
    %265 = tpu.matmul %257, %7, %cst_56 {dimension_numbers = #tpu.dot_dimension_numbers<[1], [0], [0], [1], [0, 0, 1, 1], [], []>} : vector<2x128xf32>, vector<128x384xf32>, vector<2x384xf32> -> vector<2x384xf32>
    %266 = vector.broadcast %9 : vector<1x384xf32> to vector<2x384xf32>
    %267 = arith.addf %265, %266 : vector<2x384xf32>
    %268 = vector.extract_strided_slice %260 {offsets = [0, 0], sizes = [2, 128], strides = [1, 1]} : vector<2x384xf32> to vector<2x128xf32>
    %269 = vector.extract_strided_slice %264 {offsets = [0, 0], sizes = [2, 128], strides = [1, 1]} : vector<2x384xf32> to vector<2x128xf32>
    %270 = arith.addf %268, %269 : vector<2x128xf32>
    %271 = arith.negf %270 : vector<2x128xf32>
    %272 = math.exp %271 : vector<2x128xf32>
    %cst_57 = arith.constant 1.000000e+00 : f32
    %273 = vector.broadcast %cst_57 : f32 to vector<2x128xf32>
    %274 = arith.addf %273, %272 : vector<2x128xf32>
    %275 = arith.divf %273, %274 : vector<2x128xf32>
    %276 = vector.extract_strided_slice %260 {offsets = [0, 128], sizes = [2, 128], strides = [1, 1]} : vector<2x384xf32> to vector<2x128xf32>
    %277 = vector.extract_strided_slice %264 {offsets = [0, 128], sizes = [2, 128], strides = [1, 1]} : vector<2x384xf32> to vector<2x128xf32>
    %278 = arith.addf %276, %277 : vector<2x128xf32>
    %279 = arith.negf %278 : vector<2x128xf32>
    %280 = math.exp %279 : vector<2x128xf32>
    %cst_58 = arith.constant 1.000000e+00 : f32
    %281 = vector.broadcast %cst_58 : f32 to vector<2x128xf32>
    %282 = arith.addf %281, %280 : vector<2x128xf32>
    %283 = arith.divf %281, %282 : vector<2x128xf32>
    %284 = vector.extract_strided_slice %260 {offsets = [0, 256], sizes = [2, 128], strides = [1, 1]} : vector<2x384xf32> to vector<2x128xf32>
    %285 = vector.extract_strided_slice %264 {offsets = [0, 256], sizes = [2, 128], strides = [1, 1]} : vector<2x384xf32> to vector<2x128xf32>
    %286 = arith.mulf %275, %285 : vector<2x128xf32>
    %287 = arith.addf %284, %286 : vector<2x128xf32>
    %288 = math.tanh %287 : vector<2x128xf32>
    %cst_59 = arith.constant 1.000000e+00 : f32
    %289 = vector.broadcast %cst_59 : f32 to vector<2x128xf32>
    %290 = arith.subf %289, %283 : vector<2x128xf32>
    %291 = arith.mulf %290, %288 : vector<2x128xf32>
    %292 = arith.mulf %283, %231 : vector<2x128xf32>
    %293 = arith.addf %291, %292 : vector<2x128xf32>
    %294 = vector.extract_strided_slice %261 {offsets = [0, 0], sizes = [2, 128], strides = [1, 1]} : vector<2x384xf32> to vector<2x128xf32>
    %295 = vector.extract_strided_slice %267 {offsets = [0, 0], sizes = [2, 128], strides = [1, 1]} : vector<2x384xf32> to vector<2x128xf32>
    %296 = arith.addf %294, %295 : vector<2x128xf32>
    %297 = arith.negf %296 : vector<2x128xf32>
    %298 = math.exp %297 : vector<2x128xf32>
    %cst_60 = arith.constant 1.000000e+00 : f32
    %299 = vector.broadcast %cst_60 : f32 to vector<2x128xf32>
    %300 = arith.addf %299, %298 : vector<2x128xf32>
    %301 = arith.divf %299, %300 : vector<2x128xf32>
    %302 = vector.extract_strided_slice %261 {offsets = [0, 128], sizes = [2, 128], strides = [1, 1]} : vector<2x384xf32> to vector<2x128xf32>
    %303 = vector.extract_strided_slice %267 {offsets = [0, 128], sizes = [2, 128], strides = [1, 1]} : vector<2x384xf32> to vector<2x128xf32>
    %304 = arith.addf %302, %303 : vector<2x128xf32>
    %305 = arith.negf %304 : vector<2x128xf32>
    %306 = math.exp %305 : vector<2x128xf32>
    %cst_61 = arith.constant 1.000000e+00 : f32
    %307 = vector.broadcast %cst_61 : f32 to vector<2x128xf32>
    %308 = arith.addf %307, %306 : vector<2x128xf32>
    %309 = arith.divf %307, %308 : vector<2x128xf32>
    %310 = vector.extract_strided_slice %261 {offsets = [0, 256], sizes = [2, 128], strides = [1, 1]} : vector<2x384xf32> to vector<2x128xf32>
    %311 = vector.extract_strided_slice %267 {offsets = [0, 256], sizes = [2, 128], strides = [1, 1]} : vector<2x384xf32> to vector<2x128xf32>
    %312 = arith.mulf %301, %311 : vector<2x128xf32>
    %313 = arith.addf %310, %312 : vector<2x128xf32>
    %314 = math.tanh %313 : vector<2x128xf32>
    %cst_62 = arith.constant 1.000000e+00 : f32
    %315 = vector.broadcast %cst_62 : f32 to vector<2x128xf32>
    %316 = arith.subf %315, %309 : vector<2x128xf32>
    %317 = arith.mulf %316, %314 : vector<2x128xf32>
    %318 = arith.mulf %309, %257 : vector<2x128xf32>
    %319 = arith.addf %317, %318 : vector<2x128xf32>
    %c0_63 = arith.constant 0 : index
    %c768 = arith.constant 768 : index
    %320 = vector.load %arg12[%c0_63, %c768] : memref<2x2048xf32, #tpu.memory_space<vmem>>, vector<2x128xf32>
    tpu.vector_store %arg12[%c0_63, %c768], %293 {strides = array<i32>} : memref<2x2048xf32, #tpu.memory_space<vmem>>, vector<2x128xf32>,
    %c0_64 = arith.constant 0 : index
    %c1152 = arith.constant 1152 : index
    %321 = vector.load %arg12[%c0_64, %c1152] : memref<2x2048xf32, #tpu.memory_space<vmem>>, vector<2x128xf32>
    tpu.vector_store %arg12[%c0_64, %c1152], %319 {strides = array<i32>} : memref<2x2048xf32, #tpu.memory_space<vmem>>, vector<2x128xf32>,
    %322 = vector.extract_strided_slice %5 {offsets = [10, 0], sizes = [2, 384], strides = [1, 1]} : vector<16x768xf32> to vector<2x384xf32>
    %323 = vector.extract_strided_slice %5 {offsets = [4, 384], sizes = [2, 384], strides = [1, 1]} : vector<16x768xf32> to vector<2x384xf32>
    %cst_65 = arith.constant dense<0.000000e+00> : vector<2x384xf32>
    %324 = tpu.matmul %293, %6, %cst_65 {dimension_numbers = #tpu.dot_dimension_numbers<[1], [0], [0], [1], [0, 0, 1, 1], [], []>} : vector<2x128xf32>, vector<128x384xf32>, vector<2x384xf32> -> vector<2x384xf32>
    %325 = vector.broadcast %8 : vector<1x384xf32> to vector<2x384xf32>
    %326 = arith.addf %324, %325 : vector<2x384xf32>
    %cst_66 = arith.constant dense<0.000000e+00> : vector<2x384xf32>
    %327 = tpu.matmul %319, %7, %cst_66 {dimension_numbers = #tpu.dot_dimension_numbers<[1], [0], [0], [1], [0, 0, 1, 1], [], []>} : vector<2x128xf32>, vector<128x384xf32>, vector<2x384xf32> -> vector<2x384xf32>
    %328 = vector.broadcast %9 : vector<1x384xf32> to vector<2x384xf32>
    %329 = arith.addf %327, %328 : vector<2x384xf32>
    %330 = vector.extract_strided_slice %322 {offsets = [0, 0], sizes = [2, 128], strides = [1, 1]} : vector<2x384xf32> to vector<2x128xf32>
    %331 = vector.extract_strided_slice %326 {offsets = [0, 0], sizes = [2, 128], strides = [1, 1]} : vector<2x384xf32> to vector<2x128xf32>
    %332 = arith.addf %330, %331 : vector<2x128xf32>
    %333 = arith.negf %332 : vector<2x128xf32>
    %334 = math.exp %333 : vector<2x128xf32>
    %cst_67 = arith.constant 1.000000e+00 : f32
    %335 = vector.broadcast %cst_67 : f32 to vector<2x128xf32>
    %336 = arith.addf %335, %334 : vector<2x128xf32>
    %337 = arith.divf %335, %336 : vector<2x128xf32>
    %338 = vector.extract_strided_slice %322 {offsets = [0, 128], sizes = [2, 128], strides = [1, 1]} : vector<2x384xf32> to vector<2x128xf32>
    %339 = vector.extract_strided_slice %326 {offsets = [0, 128], sizes = [2, 128], strides = [1, 1]} : vector<2x384xf32> to vector<2x128xf32>
    %340 = arith.addf %338, %339 : vector<2x128xf32>
    %341 = arith.negf %340 : vector<2x128xf32>
    %342 = math.exp %341 : vector<2x128xf32>
    %cst_68 = arith.constant 1.000000e+00 : f32
    %343 = vector.broadcast %cst_68 : f32 to vector<2x128xf32>
    %344 = arith.addf %343, %342 : vector<2x128xf32>
    %345 = arith.divf %343, %344 : vector<2x128xf32>
    %346 = vector.extract_strided_slice %322 {offsets = [0, 256], sizes = [2, 128], strides = [1, 1]} : vector<2x384xf32> to vector<2x128xf32>
    %347 = vector.extract_strided_slice %326 {offsets = [0, 256], sizes = [2, 128], strides = [1, 1]} : vector<2x384xf32> to vector<2x128xf32>
    %348 = arith.mulf %337, %347 : vector<2x128xf32>
    %349 = arith.addf %346, %348 : vector<2x128xf32>
    %350 = math.tanh %349 : vector<2x128xf32>
    %cst_69 = arith.constant 1.000000e+00 : f32
    %351 = vector.broadcast %cst_69 : f32 to vector<2x128xf32>
    %352 = arith.subf %351, %345 : vector<2x128xf32>
    %353 = arith.mulf %352, %350 : vector<2x128xf32>
    %354 = arith.mulf %345, %293 : vector<2x128xf32>
    %355 = arith.addf %353, %354 : vector<2x128xf32>
    %356 = vector.extract_strided_slice %323 {offsets = [0, 0], sizes = [2, 128], strides = [1, 1]} : vector<2x384xf32> to vector<2x128xf32>
    %357 = vector.extract_strided_slice %329 {offsets = [0, 0], sizes = [2, 128], strides = [1, 1]} : vector<2x384xf32> to vector<2x128xf32>
    %358 = arith.addf %356, %357 : vector<2x128xf32>
    %359 = arith.negf %358 : vector<2x128xf32>
    %360 = math.exp %359 : vector<2x128xf32>
    %cst_70 = arith.constant 1.000000e+00 : f32
    %361 = vector.broadcast %cst_70 : f32 to vector<2x128xf32>
    %362 = arith.addf %361, %360 : vector<2x128xf32>
    %363 = arith.divf %361, %362 : vector<2x128xf32>
    %364 = vector.extract_strided_slice %323 {offsets = [0, 128], sizes = [2, 128], strides = [1, 1]} : vector<2x384xf32> to vector<2x128xf32>
    %365 = vector.extract_strided_slice %329 {offsets = [0, 128], sizes = [2, 128], strides = [1, 1]} : vector<2x384xf32> to vector<2x128xf32>
    %366 = arith.addf %364, %365 : vector<2x128xf32>
    %367 = arith.negf %366 : vector<2x128xf32>
    %368 = math.exp %367 : vector<2x128xf32>
    %cst_71 = arith.constant 1.000000e+00 : f32
    %369 = vector.broadcast %cst_71 : f32 to vector<2x128xf32>
    %370 = arith.addf %369, %368 : vector<2x128xf32>
    %371 = arith.divf %369, %370 : vector<2x128xf32>
    %372 = vector.extract_strided_slice %323 {offsets = [0, 256], sizes = [2, 128], strides = [1, 1]} : vector<2x384xf32> to vector<2x128xf32>
    %373 = vector.extract_strided_slice %329 {offsets = [0, 256], sizes = [2, 128], strides = [1, 1]} : vector<2x384xf32> to vector<2x128xf32>
    %374 = arith.mulf %363, %373 : vector<2x128xf32>
    %375 = arith.addf %372, %374 : vector<2x128xf32>
    %376 = math.tanh %375 : vector<2x128xf32>
    %cst_72 = arith.constant 1.000000e+00 : f32
    %377 = vector.broadcast %cst_72 : f32 to vector<2x128xf32>
    %378 = arith.subf %377, %371 : vector<2x128xf32>
    %379 = arith.mulf %378, %376 : vector<2x128xf32>
    %380 = arith.mulf %371, %319 : vector<2x128xf32>
    %381 = arith.addf %379, %380 : vector<2x128xf32>
    %c0_73 = arith.constant 0 : index
    %c512 = arith.constant 512 : index
    %382 = vector.load %arg12[%c0_73, %c512] : memref<2x2048xf32, #tpu.memory_space<vmem>>, vector<2x128xf32>
    tpu.vector_store %arg12[%c0_73, %c512], %355 {strides = array<i32>} : memref<2x2048xf32, #tpu.memory_space<vmem>>, vector<2x128xf32>,
    %c0_74 = arith.constant 0 : index
    %c1408 = arith.constant 1408 : index
    %383 = vector.load %arg12[%c0_74, %c1408] : memref<2x2048xf32, #tpu.memory_space<vmem>>, vector<2x128xf32>
    tpu.vector_store %arg12[%c0_74, %c1408], %381 {strides = array<i32>} : memref<2x2048xf32, #tpu.memory_space<vmem>>, vector<2x128xf32>,
    %384 = vector.extract_strided_slice %5 {offsets = [12, 0], sizes = [2, 384], strides = [1, 1]} : vector<16x768xf32> to vector<2x384xf32>
    %385 = vector.extract_strided_slice %5 {offsets = [2, 384], sizes = [2, 384], strides = [1, 1]} : vector<16x768xf32> to vector<2x384xf32>
    %cst_75 = arith.constant dense<0.000000e+00> : vector<2x384xf32>
    %386 = tpu.matmul %355, %6, %cst_75 {dimension_numbers = #tpu.dot_dimension_numbers<[1], [0], [0], [1], [0, 0, 1, 1], [], []>} : vector<2x128xf32>, vector<128x384xf32>, vector<2x384xf32> -> vector<2x384xf32>
    %387 = vector.broadcast %8 : vector<1x384xf32> to vector<2x384xf32>
    %388 = arith.addf %386, %387 : vector<2x384xf32>
    %cst_76 = arith.constant dense<0.000000e+00> : vector<2x384xf32>
    %389 = tpu.matmul %381, %7, %cst_76 {dimension_numbers = #tpu.dot_dimension_numbers<[1], [0], [0], [1], [0, 0, 1, 1], [], []>} : vector<2x128xf32>, vector<128x384xf32>, vector<2x384xf32> -> vector<2x384xf32>
    %390 = vector.broadcast %9 : vector<1x384xf32> to vector<2x384xf32>
    %391 = arith.addf %389, %390 : vector<2x384xf32>
    %392 = vector.extract_strided_slice %384 {offsets = [0, 0], sizes = [2, 128], strides = [1, 1]} : vector<2x384xf32> to vector<2x128xf32>
    %393 = vector.extract_strided_slice %388 {offsets = [0, 0], sizes = [2, 128], strides = [1, 1]} : vector<2x384xf32> to vector<2x128xf32>
    %394 = arith.addf %392, %393 : vector<2x128xf32>
    %395 = arith.negf %394 : vector<2x128xf32>
    %396 = math.exp %395 : vector<2x128xf32>
    %cst_77 = arith.constant 1.000000e+00 : f32
    %397 = vector.broadcast %cst_77 : f32 to vector<2x128xf32>
    %398 = arith.addf %397, %396 : vector<2x128xf32>
    %399 = arith.divf %397, %398 : vector<2x128xf32>
    %400 = vector.extract_strided_slice %384 {offsets = [0, 128], sizes = [2, 128], strides = [1, 1]} : vector<2x384xf32> to vector<2x128xf32>
    %401 = vector.extract_strided_slice %388 {offsets = [0, 128], sizes = [2, 128], strides = [1, 1]} : vector<2x384xf32> to vector<2x128xf32>
    %402 = arith.addf %400, %401 : vector<2x128xf32>
    %403 = arith.negf %402 : vector<2x128xf32>
    %404 = math.exp %403 : vector<2x128xf32>
    %cst_78 = arith.constant 1.000000e+00 : f32
    %405 = vector.broadcast %cst_78 : f32 to vector<2x128xf32>
    %406 = arith.addf %405, %404 : vector<2x128xf32>
    %407 = arith.divf %405, %406 : vector<2x128xf32>
    %408 = vector.extract_strided_slice %384 {offsets = [0, 256], sizes = [2, 128], strides = [1, 1]} : vector<2x384xf32> to vector<2x128xf32>
    %409 = vector.extract_strided_slice %388 {offsets = [0, 256], sizes = [2, 128], strides = [1, 1]} : vector<2x384xf32> to vector<2x128xf32>
    %410 = arith.mulf %399, %409 : vector<2x128xf32>
    %411 = arith.addf %408, %410 : vector<2x128xf32>
    %412 = math.tanh %411 : vector<2x128xf32>
    %cst_79 = arith.constant 1.000000e+00 : f32
    %413 = vector.broadcast %cst_79 : f32 to vector<2x128xf32>
    %414 = arith.subf %413, %407 : vector<2x128xf32>
    %415 = arith.mulf %414, %412 : vector<2x128xf32>
    %416 = arith.mulf %407, %355 : vector<2x128xf32>
    %417 = arith.addf %415, %416 : vector<2x128xf32>
    %418 = vector.extract_strided_slice %385 {offsets = [0, 0], sizes = [2, 128], strides = [1, 1]} : vector<2x384xf32> to vector<2x128xf32>
    %419 = vector.extract_strided_slice %391 {offsets = [0, 0], sizes = [2, 128], strides = [1, 1]} : vector<2x384xf32> to vector<2x128xf32>
    %420 = arith.addf %418, %419 : vector<2x128xf32>
    %421 = arith.negf %420 : vector<2x128xf32>
    %422 = math.exp %421 : vector<2x128xf32>
    %cst_80 = arith.constant 1.000000e+00 : f32
    %423 = vector.broadcast %cst_80 : f32 to vector<2x128xf32>
    %424 = arith.addf %423, %422 : vector<2x128xf32>
    %425 = arith.divf %423, %424 : vector<2x128xf32>
    %426 = vector.extract_strided_slice %385 {offsets = [0, 128], sizes = [2, 128], strides = [1, 1]} : vector<2x384xf32> to vector<2x128xf32>
    %427 = vector.extract_strided_slice %391 {offsets = [0, 128], sizes = [2, 128], strides = [1, 1]} : vector<2x384xf32> to vector<2x128xf32>
    %428 = arith.addf %426, %427 : vector<2x128xf32>
    %429 = arith.negf %428 : vector<2x128xf32>
    %430 = math.exp %429 : vector<2x128xf32>
    %cst_81 = arith.constant 1.000000e+00 : f32
    %431 = vector.broadcast %cst_81 : f32 to vector<2x128xf32>
    %432 = arith.addf %431, %430 : vector<2x128xf32>
    %433 = arith.divf %431, %432 : vector<2x128xf32>
    %434 = vector.extract_strided_slice %385 {offsets = [0, 256], sizes = [2, 128], strides = [1, 1]} : vector<2x384xf32> to vector<2x128xf32>
    %435 = vector.extract_strided_slice %391 {offsets = [0, 256], sizes = [2, 128], strides = [1, 1]} : vector<2x384xf32> to vector<2x128xf32>
    %436 = arith.mulf %425, %435 : vector<2x128xf32>
    %437 = arith.addf %434, %436 : vector<2x128xf32>
    %438 = math.tanh %437 : vector<2x128xf32>
    %cst_82 = arith.constant 1.000000e+00 : f32
    %439 = vector.broadcast %cst_82 : f32 to vector<2x128xf32>
    %440 = arith.subf %439, %433 : vector<2x128xf32>
    %441 = arith.mulf %440, %438 : vector<2x128xf32>
    %442 = arith.mulf %433, %381 : vector<2x128xf32>
    %443 = arith.addf %441, %442 : vector<2x128xf32>
    %c0_83 = arith.constant 0 : index
    %c256 = arith.constant 256 : index
    %444 = vector.load %arg12[%c0_83, %c256] : memref<2x2048xf32, #tpu.memory_space<vmem>>, vector<2x128xf32>
    tpu.vector_store %arg12[%c0_83, %c256], %417 {strides = array<i32>} : memref<2x2048xf32, #tpu.memory_space<vmem>>, vector<2x128xf32>,
    %c0_84 = arith.constant 0 : index
    %c1664 = arith.constant 1664 : index
    %445 = vector.load %arg12[%c0_84, %c1664] : memref<2x2048xf32, #tpu.memory_space<vmem>>, vector<2x128xf32>
    tpu.vector_store %arg12[%c0_84, %c1664], %443 {strides = array<i32>} : memref<2x2048xf32, #tpu.memory_space<vmem>>, vector<2x128xf32>,
    %446 = vector.extract_strided_slice %5 {offsets = [14, 0], sizes = [2, 384], strides = [1, 1]} : vector<16x768xf32> to vector<2x384xf32>
    %447 = vector.extract_strided_slice %5 {offsets = [0, 384], sizes = [2, 384], strides = [1, 1]} : vector<16x768xf32> to vector<2x384xf32>
    %cst_85 = arith.constant dense<0.000000e+00> : vector<2x384xf32>
    %448 = tpu.matmul %417, %6, %cst_85 {dimension_numbers = #tpu.dot_dimension_numbers<[1], [0], [0], [1], [0, 0, 1, 1], [], []>} : vector<2x128xf32>, vector<128x384xf32>, vector<2x384xf32> -> vector<2x384xf32>
    %449 = vector.broadcast %8 : vector<1x384xf32> to vector<2x384xf32>
    %450 = arith.addf %448, %449 : vector<2x384xf32>
    %cst_86 = arith.constant dense<0.000000e+00> : vector<2x384xf32>
    %451 = tpu.matmul %443, %7, %cst_86 {dimension_numbers = #tpu.dot_dimension_numbers<[1], [0], [0], [1], [0, 0, 1, 1], [], []>} : vector<2x128xf32>, vector<128x384xf32>, vector<2x384xf32> -> vector<2x384xf32>
    %452 = vector.broadcast %9 : vector<1x384xf32> to vector<2x384xf32>
    %453 = arith.addf %451, %452 : vector<2x384xf32>
    %454 = vector.extract_strided_slice %446 {offsets = [0, 0], sizes = [2, 128], strides = [1, 1]} : vector<2x384xf32> to vector<2x128xf32>
    %455 = vector.extract_strided_slice %450 {offsets = [0, 0], sizes = [2, 128], strides = [1, 1]} : vector<2x384xf32> to vector<2x128xf32>
    %456 = arith.addf %454, %455 : vector<2x128xf32>
    %457 = arith.negf %456 : vector<2x128xf32>
    %458 = math.exp %457 : vector<2x128xf32>
    %cst_87 = arith.constant 1.000000e+00 : f32
    %459 = vector.broadcast %cst_87 : f32 to vector<2x128xf32>
    %460 = arith.addf %459, %458 : vector<2x128xf32>
    %461 = arith.divf %459, %460 : vector<2x128xf32>
    %462 = vector.extract_strided_slice %446 {offsets = [0, 128], sizes = [2, 128], strides = [1, 1]} : vector<2x384xf32> to vector<2x128xf32>
    %463 = vector.extract_strided_slice %450 {offsets = [0, 128], sizes = [2, 128], strides = [1, 1]} : vector<2x384xf32> to vector<2x128xf32>
    %464 = arith.addf %462, %463 : vector<2x128xf32>
    %465 = arith.negf %464 : vector<2x128xf32>
    %466 = math.exp %465 : vector<2x128xf32>
    %cst_88 = arith.constant 1.000000e+00 : f32
    %467 = vector.broadcast %cst_88 : f32 to vector<2x128xf32>
    %468 = arith.addf %467, %466 : vector<2x128xf32>
    %469 = arith.divf %467, %468 : vector<2x128xf32>
    %470 = vector.extract_strided_slice %446 {offsets = [0, 256], sizes = [2, 128], strides = [1, 1]} : vector<2x384xf32> to vector<2x128xf32>
    %471 = vector.extract_strided_slice %450 {offsets = [0, 256], sizes = [2, 128], strides = [1, 1]} : vector<2x384xf32> to vector<2x128xf32>
    %472 = arith.mulf %461, %471 : vector<2x128xf32>
    %473 = arith.addf %470, %472 : vector<2x128xf32>
    %474 = math.tanh %473 : vector<2x128xf32>
    %cst_89 = arith.constant 1.000000e+00 : f32
    %475 = vector.broadcast %cst_89 : f32 to vector<2x128xf32>
    %476 = arith.subf %475, %469 : vector<2x128xf32>
    %477 = arith.mulf %476, %474 : vector<2x128xf32>
    %478 = arith.mulf %469, %417 : vector<2x128xf32>
    %479 = arith.addf %477, %478 : vector<2x128xf32>
    %480 = vector.extract_strided_slice %447 {offsets = [0, 0], sizes = [2, 128], strides = [1, 1]} : vector<2x384xf32> to vector<2x128xf32>
    %481 = vector.extract_strided_slice %453 {offsets = [0, 0], sizes = [2, 128], strides = [1, 1]} : vector<2x384xf32> to vector<2x128xf32>
    %482 = arith.addf %480, %481 : vector<2x128xf32>
    %483 = arith.negf %482 : vector<2x128xf32>
    %484 = math.exp %483 : vector<2x128xf32>
    %cst_90 = arith.constant 1.000000e+00 : f32
    %485 = vector.broadcast %cst_90 : f32 to vector<2x128xf32>
    %486 = arith.addf %485, %484 : vector<2x128xf32>
    %487 = arith.divf %485, %486 : vector<2x128xf32>
    %488 = vector.extract_strided_slice %447 {offsets = [0, 128], sizes = [2, 128], strides = [1, 1]} : vector<2x384xf32> to vector<2x128xf32>
    %489 = vector.extract_strided_slice %453 {offsets = [0, 128], sizes = [2, 128], strides = [1, 1]} : vector<2x384xf32> to vector<2x128xf32>
    %490 = arith.addf %488, %489 : vector<2x128xf32>
    %491 = arith.negf %490 : vector<2x128xf32>
    %492 = math.exp %491 : vector<2x128xf32>
    %cst_91 = arith.constant 1.000000e+00 : f32
    %493 = vector.broadcast %cst_91 : f32 to vector<2x128xf32>
    %494 = arith.addf %493, %492 : vector<2x128xf32>
    %495 = arith.divf %493, %494 : vector<2x128xf32>
    %496 = vector.extract_strided_slice %447 {offsets = [0, 256], sizes = [2, 128], strides = [1, 1]} : vector<2x384xf32> to vector<2x128xf32>
    %497 = vector.extract_strided_slice %453 {offsets = [0, 256], sizes = [2, 128], strides = [1, 1]} : vector<2x384xf32> to vector<2x128xf32>
    %498 = arith.mulf %487, %497 : vector<2x128xf32>
    %499 = arith.addf %496, %498 : vector<2x128xf32>
    %500 = math.tanh %499 : vector<2x128xf32>
    %cst_92 = arith.constant 1.000000e+00 : f32
    %501 = vector.broadcast %cst_92 : f32 to vector<2x128xf32>
    %502 = arith.subf %501, %495 : vector<2x128xf32>
    %503 = arith.mulf %502, %500 : vector<2x128xf32>
    %504 = arith.mulf %495, %443 : vector<2x128xf32>
    %505 = arith.addf %503, %504 : vector<2x128xf32>
    %c0_93 = arith.constant 0 : index
    %c0_94 = arith.constant 0 : index
    %506 = vector.load %arg12[%c0_93, %c0_94] : memref<2x2048xf32, #tpu.memory_space<vmem>>, vector<2x128xf32>
    tpu.vector_store %arg12[%c0_93, %c0_94], %479 {strides = array<i32>} : memref<2x2048xf32, #tpu.memory_space<vmem>>, vector<2x128xf32>,
    %c0_95 = arith.constant 0 : index
    %c1920 = arith.constant 1920 : index
    %507 = vector.load %arg12[%c0_95, %c1920] : memref<2x2048xf32, #tpu.memory_space<vmem>>, vector<2x128xf32>
    tpu.vector_store %arg12[%c0_95, %c1920], %505 {strides = array<i32>} : memref<2x2048xf32, #tpu.memory_space<vmem>>, vector<2x128xf32>,
    %c0_96 = arith.constant 0 : index
    %c0_97 = arith.constant 0 : index
    %508 = vector.load %arg12[%c0_96, %c0_97] : memref<2x2048xf32, #tpu.memory_space<vmem>>, vector<2x2048xf32>
    %c0_98 = arith.constant 0 : index
    %c0_99 = arith.constant 0 : index
    %509 = vector.load %arg7[%c0_98, %c0_99] : memref<2048x512xf32, #tpu.memory_space<vmem>>, vector<2048x512xf32>
    %cst_100 = arith.constant dense<0.000000e+00> : vector<2x512xf32>
    %510 = tpu.matmul %508, %509, %cst_100 {dimension_numbers = #tpu.dot_dimension_numbers<[1], [0], [0], [1], [0, 0, 1, 1], [], []>} : vector<2x2048xf32>, vector<2048x512xf32>, vector<2x512xf32> -> vector<2x512xf32>
    %c0_101 = arith.constant 0 : index
    %c0_102 = arith.constant 0 : index
    %511 = vector.load %arg8[%c0_101, %c0_102] : memref<1x512xf32, #tpu.memory_space<vmem>>, vector<1x512xf32>
    %512 = vector.broadcast %511 : vector<1x512xf32> to vector<2x512xf32>
    %513 = arith.addf %510, %512 : vector<2x512xf32>
    %cst_103 = arith.constant 0.000000e+00 : f32
    %514 = vector.broadcast %cst_103 : f32 to vector<2x512xf32>
    %515 = arith.maximumf %513, %514 : vector<2x512xf32>
    %c0_104 = arith.constant 0 : index
    %c0_105 = arith.constant 0 : index
    %516 = vector.load %arg9[%c0_104, %c0_105] : memref<512x3xf32, #tpu.memory_space<vmem>>, vector<512x3xf32>
    %cst_106 = arith.constant dense<0.000000e+00> : vector<2x3xf32>
    %517 = tpu.matmul %515, %516, %cst_106 {dimension_numbers = #tpu.dot_dimension_numbers<[1], [0], [0], [1], [0, 0, 1, 1], [], []>} : vector<2x512xf32>, vector<512x3xf32>, vector<2x3xf32> -> vector<2x3xf32>
    %c0_107 = arith.constant 0 : index
    %c0_108 = arith.constant 0 : index
    %518 = vector.load %arg10[%c0_107, %c0_108] : memref<1x3xf32, #tpu.memory_space<vmem>>, vector<1x3xf32>
    %519 = vector.broadcast %518 : vector<1x3xf32> to vector<2x3xf32>
    %520 = arith.addf %517, %519 : vector<2x3xf32>
    %c0_109 = arith.constant 0 : index
    %c0_110 = arith.constant 0 : index
    %521 = vector.load %arg11[%c0_109, %c0_110] : memref<2x3xf32, #tpu.memory_space<vmem>>, vector<2x3xf32>
    tpu.vector_store %arg11[%c0_109, %c0_110], %520 {strides = array<i32>} : memref<2x3xf32, #tpu.memory_space<vmem>>, vector<2x3xf32>,
    return
  }
}

</mosaic_0001>

<bundles_post_ra>
// kernel: q_model_forward.1
= control target key start
LH: loop header
LB: loop body
LE: loop exit
PB: predicated region body
PF: predicated region fallthrough
CT: control target
= control target key end

     0   :  { %16 = vsyncpa [#allocation4], 0  ;;  %s9870_s0 = inlined_call_operand.vmem [shape: f32[16,4], index: 0, kind: input, shape index: {}]   ;;  %s9871_s1 = inlined_call_operand.hbm [shape: f32[4,768], index: 1, kind: input, shape index: {}]   ;;  %s9872_s2 = inlined_call_operand.hbm [shape: f32[1,768], index: 2, kind: input, shape index: {}]   ;;  %s9873_s3 = inlined_call_operand.hbm [shape: f32[128,384], index: 3, kind: input, shape index: {}]   ;;  %s9874_s4 = inlined_call_operand.hbm [shape: f32[1,384], index: 4, kind: input, shape index: {}]   ;;  %s9875_s5 = inlined_call_operand.hbm [shape: f32[128,384], index: 5, kind: input, shape index: {}]   ;;  %s9876_s6 = inlined_call_operand.hbm [shape: f32[1,384], index: 6, kind: input, shape index: {}]   ;;  %s9877_s7 = inlined_call_operand.hbm [shape: f32[2048,512], index: 7, kind: input, shape index: {}]   ;;  %s9878_s8 = inlined_call_operand.hbm [shape: f32[1,512], index: 8, kind: input, shape index: {}]   ;;  %s9879_s9 = inlined_call_operand.vmem [shape: f32[512,3], index: 9, kind: input, shape index: {}]   ;;  %s9880_s10 = inlined_call_operand.hbm [shape: f32[1,3], index: 10, kind: input, shape index: {}]   ;;  %s9881_s11 = inlined_call_operand.hbm [shape: f32[2,3], index: 11, kind: output, shape index: {}]  }
   0x1   :  { %17 = vsyncpa [#allocation7], 0 }
   0x2   :  { %18 = vsyncpa [#allocation10], 0 }
   0x3   :  { %19 = vsyncpa [#allocation13], 0 }
   0x4   :  { %20 = vsyncpa [#allocation16], 0 }
   0x5   :  { %21 = vsyncpa [#allocation5], 0  ;;  %s7511_s17 = smov [#allocation6]   ;;  %s7512_s19 = smov [#allocation9]  }
   0x6   :  { %s40_s18 = sshll.u32 %s7511_s17, 4  ;;  %s62_s20 = sshll.u32 %s7512_s19, 4  ;;  %s41_s18 = int_to_ptr.vmem [resolvable:$true] %s40_s18  ;;  %s63_s20 = int_to_ptr.vmem [resolvable:$true] %s62_s20 }
   0x7   :  { %s7307_s21 = scalar_lea.vmem %s41_s18, 96  ;;  %p7312_p1 = scmp.lt.s32.totalorder %s41_s18, %s41_s18 }
   0x8   :  { %p7308_p0 = scmp.ne.s32.totalorder %s41_s18, %s7307_s21  ;;  %p7313_p2 = scmp.lt.s32.totalorder %s7307_s21, %s7307_s21 }
   0xa   :  { %p7314_p3 = por %p7313_p2, %p7312_p1 }
   0xc   :  { %p7315_p4 = pnand %p7314_p3, %p7308_p0 }
   0xe   :  { %7318 = shalt.err (!%p7315_p4)
}
   0xf   :  { %43 = dma.hbm_to_vmem [thread:$0]  %s9872_s2, 96, %s41_s18, [#allocation7]  }
  0x10   :  { %s7327_s24 = scalar_lea.vmem %s63_s20, 48  ;;  %s7331_s25 = scalar_lea.vmem %s63_s20, 64 }
  0x11   :  { %p7328_p5 = scmp.ne.s32.totalorder %s63_s20, %s7327_s24  ;;  %p7332_p6 = scmp.lt.s32.totalorder %s63_s20, %s63_s20 }
  0x12   :  { %p7333_p7 = scmp.lt.s32.totalorder %s7331_s25, %s7327_s24 }
  0x14   :  { %p7334_p8 = por %p7333_p7, %p7332_p6 }
  0x16   :  { %p7335_p9 = pnand %p7334_p8, %p7328_p5 }
  0x18   :  { %7338 = shalt.err (!%p7335_p9)
}
  0x19   :  { %65 = dma.hbm_to_vmem [thread:$0]  %s9874_s4, 48, %s63_s20, [#allocation10]  }
  0x1a   :  { %s7513_s28 = smov [#allocation12]   ;;  %s7514_s30 = smov [#allocation15]  }
  0x1b   :  { %s84_s29 = sshll.u32 %s7513_s28, 4  ;;  %s106_s12 = sshll.u32 %s7514_s30, 4  ;;  %s85_s29 = int_to_ptr.vmem [resolvable:$true] %s84_s29  ;;  %s107_s12 = int_to_ptr.vmem [resolvable:$true] %s106_s12 }
  0x1c   :  { %s7347_s13 = scalar_lea.vmem %s85_s29, 48  ;;  %s7351_s2 = scalar_lea.vmem %s85_s29, 64 }
  0x1d   :  { %p7348_p10 = scmp.ne.s32.totalorder %s85_s29, %s7347_s13  ;;  %p7352_p11 = scmp.lt.s32.totalorder %s85_s29, %s85_s29 }
  0x1e   :  { %p7353_p12 = scmp.lt.s32.totalorder %s7351_s2, %s7347_s13 }
  0x20   :  { %p7354_p13 = por %p7353_p12, %p7352_p11 }
  0x22   :  { %p7355_p0 = pnand %p7354_p13, %p7348_p10 }
  0x24   :  { %7358 = shalt.err (!%p7355_p0)
}
  0x25   :  { %87 = dma.hbm_to_vmem [thread:$0]  %s9876_s6, 48, %s85_s29, [#allocation13]  }
  0x26   :  { %s7367_s16 = scalar_lea.vmem %s107_s12, 64  ;;  %p7372_p2 = scmp.lt.s32.totalorder %s107_s12, %s107_s12 }
  0x27   :  { %p7368_p1 = scmp.ne.s32.totalorder %s107_s12, %s7367_s16  ;;  %p7373_p3 = scmp.lt.s32.totalorder %s7367_s16, %s7367_s16 }
  0x29   :  { %p7374_p4 = por %p7373_p3, %p7372_p2 }
  0x2b   :  { %p7375_p5 = pnand %p7374_p4, %p7368_p1 }
  0x2d   :  { %7378 = shalt.err (!%p7375_p5)
}
  0x2e   :  { %109 = dma.hbm_to_vmem [thread:$0]  %s9878_s8, 64, %s107_s12, [#allocation16]  }
  0x2f   :  { %s7515_s18 = smov [#allocation3]   ;;  %s7516_s20 = smov [#allocation8]  }
  0x30   :  { %s30_s19 = sshll.u32 %s7515_s18, 4  ;;  %s49_s21 = sshll.u32 %s7516_s20, 4  ;;  %s31_s19 = int_to_ptr.vmem [resolvable:$true] %s30_s19  ;;  %s50_s21 = int_to_ptr.vmem [resolvable:$true] %s49_s21 }
  0x31   :  { %s7387_s22 = scalar_lea.vmem %s31_s19, 384  ;;  %p7392_p7 = scmp.lt.s32.totalorder %s31_s19, %s31_s19 }
  0x32   :  { %p7388_p6 = scmp.ne.s32.totalorder %s31_s19, %s7387_s22  ;;  %p7393_p8 = scmp.lt.s32.totalorder %s7387_s22, %s7387_s22 }
  0x34   :  { %p7394_p9 = por %p7393_p8, %p7392_p7 }
  0x36   :  { %p7395_p10 = pnand %p7394_p9, %p7388_p6 }
  0x38   :  { %7398 = shalt.err (!%p7395_p10)
}
  0x39   :  { %33 = dma.hbm_to_vmem [thread:$0]  %s9871_s1, 384, %s31_s19, [#allocation4]  }
  0x3a   :  { %s7407_s24 = scalar_lea.vmem %s50_s21, 6144  ;;  %p7412_p12 = scmp.lt.s32.totalorder %s50_s21, %s50_s21 }
  0x3b   :  { %p7408_p11 = scmp.ne.s32.totalorder %s50_s21, %s7407_s24  ;;  %p7413_p13 = scmp.lt.s32.totalorder %s7407_s24, %s7407_s24 }
  0x3d   :  { %p7414_p0 = por %p7413_p13, %p7412_p12 }
  0x3f   :  { %p7415_p1 = pnand %p7414_p0, %p7408_p11 }
  0x41   :  { %7418 = shalt.err (!%p7415_p1)
}
  0x42   :  { %s7517_s8 = smov 384   ;;  %s7518_s25 = smov 24  }
  0x43   :  { %55 = dma.hbm_to_vmem [thread:$0]  %s9873_s3, 6144, %s50_s21, [#allocation7], %s7517_s8, %s7517_s8, %s7518_s25  }
  0x44   :  { %s7519_s28 = smov [#allocation11]   ;;  %s7520_s30 = smov [#allocation14]  }
  0x45   :  { %s71_s29 = sshll.u32 %s7519_s28, 4  ;;  %s93_s12 = sshll.u32 %s7520_s30, 4  ;;  %s72_s29 = int_to_ptr.vmem [resolvable:$true] %s71_s29  ;;  %s94_s12 = int_to_ptr.vmem [resolvable:$true] %s93_s12 }
  0x46   :  { %s7427_s1 = scalar_lea.vmem %s72_s29, 6144  ;;  %p7432_p3 = scmp.lt.s32.totalorder %s72_s29, %s72_s29 }
  0x47   :  { %p7428_p2 = scmp.ne.s32.totalorder %s72_s29, %s7427_s1  ;;  %p7433_p4 = scmp.lt.s32.totalorder %s7427_s1, %s7427_s1 }
  0x49   :  { %p7434_p5 = por %p7433_p4, %p7432_p3 }
  0x4b   :  { %p7435_p6 = pnand %p7434_p5, %p7428_p2 }
  0x4d   :  { %7438 = shalt.err (!%p7435_p6)
}
  0x4e   :  { %77 = dma.hbm_to_vmem [thread:$0]  %s9875_s5, 6144, %s72_s29, [#allocation10], %s7517_s8, %s7517_s8, %s7518_s25  }
  0x4f   :  { %s7447_s14 = scalar_lea.vmem %s94_s12, 131072  ;;  %p7452_p8 = scmp.lt.s32.totalorder %s94_s12, %s94_s12 }
  0x50   :  { %p7448_p7 = scmp.ne.s32.totalorder %s94_s12, %s7447_s14  ;;  %p7453_p9 = scmp.lt.s32.totalorder %s7447_s14, %s7447_s14 }
  0x52   :  { %p7454_p10 = por %p7453_p9, %p7452_p8 }
  0x54   :  { %p7455_p11 = pnand %p7454_p10, %p7448_p7 }
  0x56   :  { %7458 = shalt.err (!%p7455_p11)
}
  0x57   :  { %s7521_s3 = smov 512   ;;  %s7522_s15 = smov 32  }
  0x58   :  { %99 = dma.hbm_to_vmem [thread:$0]  %s9877_s7, 131072, %s94_s12, [#allocation13], %s7521_s3, %s7521_s3, %s7522_s15  }
  0x59   :  { %s7523_s17 = smov [#allocation17]  }
  0x5a   :  { %s118_s18 = sshll.u32 %s7523_s17, 4  ;;  %s119_s18 = int_to_ptr.vmem [resolvable:$true] %s118_s18 }
  0x5b   :  { %s7467_s19 = scalar_lea.vmem %s119_s18, 16  ;;  %s7471_s20 = scalar_lea.vmem %s119_s18, 32 }
  0x5c   :  { %p7468_p12 = scmp.ne.s32.totalorder %s119_s18, %s7467_s19  ;;  %p7472_p13 = scmp.lt.s32.totalorder %s119_s18, %s119_s18 }
  0x5d   :  { %p7473_p0 = scmp.lt.s32.totalorder %s7471_s20, %s7467_s19 }
  0x5f   :  { %p7474_p1 = por %p7473_p0, %p7472_p13 }
  0x61   :  { %p7475_p2 = pnand %p7474_p1, %p7468_p12 }
  0x63   :  { %7478 = shalt.err (!%p7475_p2)
}
  0x64   :  { %121 = dma.hbm_to_vmem [thread:$0]  %s9880_s10, 16, %s119_s18, [#allocation16]  }
  0x65   :  { %7499 = dma.done.wait [#allocation4], 384  }
  0x66   :  { %7500 = vsyncadd [#allocation4], 4294966912 }
  0x67   :  { %7501 = dma.done.wait [#allocation7], 6240  }
  0x68   :  { %7502 = vsyncadd [#allocation7], 4294961056 }
  0x69   :  { %7503 = dma.done.wait [#allocation10], 6192  }
  0x6a   :  { %7504 = vsyncadd [#allocation10], 4294961104 }
  0x6b   :  { %7505 = dma.done.wait [#allocation13], 131120  }
  0x6c   :  { %7506 = vsyncadd [#allocation13], 4294836176 }
  0x6d   :  { %7507 = dma.done.wait [#allocation16], 80  }
  0x6e   :  { %7508 = vsyncadd [#allocation16], 4294967216  ;;  %v9953_v0 = vmov 0.0   ;;  %v151_v1 = vld [vmem:[#allocation3] sm:$0xff]  ;;  %vm199_vm0 = vcmask 1043456   ;;  %v152_v2 = vld [vmem:[#allocation3 + $0x8] sm:$0xff] }
  0x6f   :  { %282 = vmatprep.mubr.f32.mxu1 %v9953_v0  ;;  %276 = vmatprep.mubr.f32.mxu0 %v9953_v0  ;;  %v189_v3 = vcombine.high %v151_v1, %v151_v1  ;;  %v190_v4 = vcombine.high %v152_v2, %v152_v2  ;;  %v7620_v5 = vld [vmem:[%s9870_s0 + $0x8] sm:$0xff]  ;;  %vm192_vm1 = vcmask 31744   ;;  %v149_v7 = vld [vmem:[%s9870_s0] sm:$0xff]  ;;  %v7640_v9 = vld [vmem:[#allocation8 + $0x158] sm:$0xff]  ;;  %vm7525_vm2 = vmmov 0  }
  0x70   :  { %v7625_v6 = vld [vmem:[#allocation8 + $0x170] sm:$0xff]  ;;  %v7637_v8 = vld [vmem:[#allocation8 + $0x168] sm:$0xff]  ;;  %10178 = vst [vmem:[#allocation26_spill] sm:$0xff] %v7640_v9  ;;  %v7647_v11 = vld [vmem:[#allocation8 + $0x140] sm:$0xff]  ;;  %vm5949_vm3 = vcmask 17408  }
  0x71   :  { %6921 = vmatprep.subr.msk.mxu1 %vm199_vm0, %v189_v3  ;;  %5970 = vmatprep.subr.msk.mxu0 %vm199_vm0, %v189_v3  ;;  %10177 = vst [vmem:[#allocation25_spill] sm:$0xff] %v7625_v6  ;;  %v7644_v10 = vld [vmem:[#allocation8 + $0x150] sm:$0xff]  ;;  %10179 = vst [vmem:[#allocation27_spill] sm:$0xff] %v7647_v11  ;;  %v7651_v12 = vld [vmem:[#allocation8 + $0x138] sm:$0xff] }
  0x72   :  { %6922 = vmatpush1.msk.msra.mxu1 %vm199_vm0, %v151_v1  ;;  %5971 = vmatpush1.msk.msra.mxu0 %vm199_vm0, %v151_v1  ;;  %v153_v13 = vld [vmem:[#allocation3 + $0x10] sm:$0xff]  ;;  %v7654_v14 = vld [vmem:[#allocation8 + $0x128] sm:$0xff]  ;;  %v7657_v16 = vld [vmem:[#allocation8 + $0x120] sm:$0xff] }
  0x73   :  { %5973 = vmatmul.mubr.msk.f32.vlgmr.msra.gmra.mxu1 %vm192_vm1, %v7620_v5  ;;  %5974 = vmatprep.subr.msk.mxu1 %vm199_vm0, %v190_v4  ;;  %v191_v15 = vcombine.high %v153_v13, %v153_v13  ;;  %v7662_v17 = vld [vmem:[#allocation8 + $0x110] sm:$0xff]  ;;  %v7666_v18 = vld [vmem:[#allocation8 + $0x108] sm:$0xff]  ;;  %v7670_v19 = vld [vmem:[#allocation8 + $0xf8] sm:$0xff] }
  0x74   :  { %5975 = vmatpush1.msk.msra.mxu1 %vm199_vm0, %v152_v2  ;;  %353 = vmatprep.mubr.f32.mxu1 %v9953_v0  ;;  %v7673_v20 = vld [vmem:[#allocation8 + $0x178] sm:$0xff]  ;;  %v7676_v21 = vld [vmem:[#allocation8 + $0xf0] sm:$0xff]  ;;  %v7680_v22 = vld [vmem:[#allocation8 + $0xe0] sm:$0xff] }
  0x75   :  { %557 = vmatprep.subr.mxu1 %v7625_v6  ;;  %5972 = vmatmul.mubr.msk.f32.vlgmr.msra.gmra.mxu0 %vm192_vm1, %v149_v7  ;;  %v7683_v23 = vld [vmem:[#allocation8 + $0x160] sm:$0xff]  ;;  %v7686_v24 = vld [vmem:[#allocation8 + $0xd8] sm:$0xff]  ;;  %v7690_v25 = vld [vmem:[#allocation8 + $0xc8] sm:$0xff] }
  0x76   :  { %430 = vmatprep.mubr.f32.mxu0 %v9953_v0  ;;  %5978 = vmatprep.subr.msk.mxu0 %vm199_vm0, %v191_v15  ;;  %10180 = vst [vmem:[#allocation28_spill] sm:$0xff] %v7690_v25  ;;  %v7693_v26 = vld [vmem:[#allocation8 + $0x148] sm:$0xff]  ;;  %v7696_v27 = vld [vmem:[#allocation8 + $0xc0] sm:$0xff]  ;;  %v7700_v28 = vld [vmem:[#allocation8 + $0xb0] sm:$0xff] }
  0x77   :  { %5976 = vmatmul.mubr.msk.f32.vlgmr.msra.gmra.mxu1 %vm192_vm1, %v149_v7  ;;  %5979 = vmatpush1.msk.msra.mxu0 %vm199_vm0, %v153_v13  ;;  %10181 = vst [vmem:[#allocation29_spill] sm:$0xff] %v7696_v27  ;;  %10182 = vst [vmem:[#allocation30_spill] sm:$0xff] %v7700_v28  ;;  %v7703_v29 = vld [vmem:[#allocation8 + $0x130] sm:$0xff]  ;;  %v7706_v30 = vld [vmem:[#allocation8 + $0xa8] sm:$0xff] }
  0x78   :  { %558 = vmatpush1.msra.mxu1 %v7637_v8  ;;  %359 = vmatprep.mubr.f32.mxu1 %v9953_v0  ;;  %10183 = vst [vmem:[#allocation31_spill] sm:$0xff] %v7706_v30  ;;  %v7710_v31 = vld [vmem:[#allocation8 + $0x98] sm:$0xff]  ;;  %v7716_v33 = vld [vmem:[#allocation8 + $0x90] sm:$0xff]  ;;  %v7720_v34 = vld [vmem:[#allocation8 + $0x80] sm:$0xff] }
  0x79   :  { %559 = vmatprep.subr.mxu1 %v7640_v9  ;;  %6361 = vmatprep.subr.mxu0 %v9953_v0  ;;  %10184 = vst [vmem:[#allocation32_spill] sm:$0xff] %v7710_v31  ;;  %v7713_v32 = vld [vmem:[#allocation8 + $0x118] sm:$0xff]  ;;  %10185 = vst [vmem:[#allocation33_spill] sm:$0xff] %v7716_v33  ;;  %v7723_v35 = vld [vmem:[#allocation8 + $0x100] sm:$0xff] }
  0x7a   :  { %560 = vmatpush1.msra.mxu1 %v7644_v10  ;;  %5980 = vmatmul.mubr.msk.f32.vlgmr.msra.gmra.mxu0 %vm192_vm1, %v149_v7  ;;  %10186 = vst [vmem:[#allocation34_spill] sm:$0xff] %v7720_v34  ;;  %v7726_v36 = vld [vmem:[#allocation8 + $0x78] sm:$0xff]  ;;  %v7730_v37 = vld [vmem:[#allocation8 + $0x68] sm:$0xff]  ;;  %v7736_v39 = vld [vmem:[#allocation8 + $0x60] sm:$0xff] }
  0x7b   :  { %561 = vmatprep.subr.mxu1 %v7647_v11  ;;  %5977 = vmatmul.mubr.msk.f32.gmra.mxu1 %vm192_vm1, %v7620_v5  ;;  %10187 = vst [vmem:[#allocation35_spill] sm:$0xff] %v7726_v36  ;;  %10188 = vst [vmem:[#allocation36_spill] sm:$0xff] %v7730_v37  ;;  %v7733_v38 = vld [vmem:[#allocation8 + $0xe8] sm:$0xff]  ;;  %v7740_v40 = vld [vmem:[#allocation8 + $0x50] sm:$0xff] }
  0x7c   :  { %562 = vmatpush1.msra.mxu1 %v7651_v12  ;;  %621 = vmatprep.mubr.f32.mxu1 %v9953_v0  ;;  %10189 = vst [vmem:[#allocation37_spill] sm:$0xff] %v7733_v38  ;;  %10190 = vst [vmem:[#allocation38_spill] sm:$0xff] %v7736_v39  ;;  %v7743_v41 = vld [vmem:[#allocation8 + $0xd0] sm:$0xff]  ;;  %v7746_v42 = vld [vmem:[#allocation8 + $0x48] sm:$0xff] }
  0x7d   :  { %563 = vmatprep.subr.mxu1 %v7654_v14  ;;  %6362 = vmatpush3.msra.mxu0 %v7673_v20  ;;  %10191 = vst [vmem:[#allocation39_spill] sm:$0xff] %v7740_v40  ;;  %10192 = vst [vmem:[#allocation40_spill] sm:$0xff] %v7743_v41  ;;  %v7750_v43 = vld [vmem:[#allocation8 + $0x38] sm:$0xff]  ;;  %v7756_v45 = vld [vmem:[#allocation8 + $0x30] sm:$0xff] }
  0x7e   :  { %564 = vmatpush1.msra.mxu1 %v7657_v16  ;;  %6363 = vmatprep.subr.mxu0 %v9953_v0  ;;  %10193 = vst [vmem:[#allocation41_spill] sm:$0xff] %v7746_v42  ;;  %10194 = vst [vmem:[#allocation42_spill] sm:$0xff] %v7750_v43  ;;  %v7753_v44 = vld [vmem:[#allocation8 + $0xb8] sm:$0xff]  ;;  %v7760_v46 = vld [vmem:[#allocation8 + $0x20] sm:$0xff] }
  0x7f   :  { %565 = vmatprep.subr.mxu1 %v7662_v17  ;;  %6364 = vmatpush3.msra.mxu0 %v7683_v23  ;;  %10195 = vst [vmem:[#allocation43_spill] sm:$0xff] %v7753_v44  ;;  %10196 = vst [vmem:[#allocation44_spill] sm:$0xff] %v7756_v45  ;;  %v7763_v47 = vld [vmem:[#allocation8 + $0xa0] sm:$0xff]  ;;  %v7766_v48 = vld [vmem:[#allocation8 + $0x18] sm:$0xff] }
  0x80   :  { %566 = vmatpush1.msra.mxu1 %v7666_v18  ;;  %6365 = vmatprep.subr.mxu0 %v9953_v0  ;;  %10197 = vst [vmem:[#allocation45_spill] sm:$0xff] %v7760_v46  ;;  %10198 = vst [vmem:[#allocation46_spill] sm:$0xff] %v7763_v47  ;;  %v7770_v49 = vld [vmem:[#allocation8 + $0x8] sm:$0xff]  ;;  %v7776_v51 = vld [vmem:[#allocation8] sm:$0xff] }
  0x81   :  { %567 = vmatprep.subr.mxu1 %v7670_v19  ;;  %6366 = vmatpush3.msra.mxu0 %v7693_v26  ;;  %10199 = vst [vmem:[#allocation47_spill] sm:$0xff] %v7766_v48  ;;  %10200 = vst [vmem:[#allocation48_spill] sm:$0xff] %v7770_v49  ;;  %v7773_v50 = vld [vmem:[#allocation8 + $0x88] sm:$0xff]  ;;  %v7780_v52 = vld [vmem:[#allocation11 + $0x170] sm:$0xff] }
  0x82   :  { %568 = vmatpush1.msra.mxu1 %v7676_v21  ;;  %6367 = vmatprep.subr.mxu0 %v9953_v0  ;;  %10201 = vst [vmem:[#allocation49_spill] sm:$0xff] %v7773_v50  ;;  %10202 = vst [vmem:[#allocation50_spill] sm:$0xff] %v7776_v51  ;;  %v7784_v53 = vld [vmem:[#allocation11 + $0x168] sm:$0xff]  ;;  %v7790_v55 = vld [vmem:[#allocation11 + $0x158] sm:$0xff] }
  0x83   :  { %569 = vmatprep.subr.mxu1 %v7680_v22  ;;  %6368 = vmatpush3.msra.mxu0 %v7703_v29  ;;  %10203 = vst [vmem:[#allocation51_spill] sm:$0xff] %v7780_v52  ;;  %v7787_v54 = vld [vmem:[#allocation8 + $0x70] sm:$0xff]  ;;  %v7797_v57 = vld [vmem:[#allocation8 + $0x58] sm:$0xff]  ;;  %v7800_v58 = vld [vmem:[#allocation11 + $0x140] sm:$0xff] }
  0x84   :  { %570 = vmatpush1.msra.mxu1 %v7686_v24  ;;  %6369 = vmatprep.subr.mxu0 %v9953_v0  ;;  %10204 = vst [vmem:[#allocation52_spill] sm:$0xff] %v7787_v54  ;;  %v7795_v56 = vld [vmem:[#allocation11 + $0x150] sm:$0xff]  ;;  %10205 = vst [vmem:[#allocation53_spill] sm:$0xff] %v7797_v57  ;;  %v7804_v59 = vld [vmem:[#allocation11 + $0x138] sm:$0xff] }
  0x85   :  { %571 = vmatprep.subr.mxu1 %v7690_v25  ;;  %6370 = vmatpush3.msra.mxu0 %v7713_v32  ;;  %10206 = vst [vmem:[#allocation54_spill] sm:$0xff] %v7800_v58  ;;  %10207 = vst [vmem:[#allocation55_spill] sm:$0xff] %v7804_v59  ;;  %v7808_v60 = vld [vmem:[#allocation11 + $0x128] sm:$0xff]  ;;  %v7811_v61 = vld [vmem:[#allocation8 + $0x40] sm:$0xff] }
  0x86   :  { %572 = vmatpush1.msra.mxu1 %v7696_v27  ;;  %6371 = vmatprep.subr.mxu0 %v9953_v0  ;;  %10208 = vst [vmem:[#allocation56_spill] sm:$0xff] %v7808_v60  ;;  %10209 = vst [vmem:[#allocation57_spill] sm:$0xff] %v7811_v61  ;;  %v7814_v62 = vld [vmem:[#allocation11 + $0x120] sm:$0xff]  ;;  %v7818_v63 = vld [vmem:[#allocation11 + $0x110] sm:$0xff] }
  0x87   :  { %573 = vmatprep.subr.mxu1 %v7700_v28  ;;  %6372 = vmatpush3.msra.mxu0 %v7723_v35  ;;  %10210 = vst [vmem:[#allocation58_spill] sm:$0xff] %v7814_v62  ;;  %10211 = vst [vmem:[#allocation59_spill] sm:$0xff] %v7818_v63  ;;  %v7822_v1 = vld [vmem:[#allocation11 + $0x108] sm:$0xff]  ;;  %v7828_v3 = vld [vmem:[#allocation11 + $0xf8] sm:$0xff] }
  0x88   :  { %574 = vmatpush1.msra.mxu1 %v7706_v30  ;;  %6373 = vmatprep.subr.mxu0 %v9953_v0  ;;  %10212 = vst [vmem:[#allocation60_spill] sm:$0xff] %v7822_v1  ;;  %v7825_v2 = vld [vmem:[#allocation8 + $0x28] sm:$0xff]  ;;  %10214 = vst [vmem:[#allocation62_spill] sm:$0xff] %v7828_v3  ;;  %v7833_v4 = vld [vmem:[#allocation11 + $0xf0] sm:$0xff] }
  0x89   :  { %575 = vmatprep.subr.mxu1 %v7710_v31  ;;  %6374 = vmatpush3.msra.mxu0 %v7733_v38  ;;  %10213 = vst [vmem:[#allocation61_spill] sm:$0xff] %v7825_v2  ;;  %10215 = vst [vmem:[#allocation63_spill] sm:$0xff] %v7833_v4  ;;  %v7837_v7 = vld [vmem:[#allocation11 + $0xe0] sm:$0xff]  ;;  %v7840_v13 = vld [vmem:[#allocation8 + $0x10] sm:$0xff] }
  0x8a   :  { %576 = vmatpush1.msra.mxu1 %v7716_v33  ;;  %6375 = vmatprep.subr.mxu0 %v9953_v0  ;;  %10216 = vst [vmem:[#allocation64_spill] sm:$0xff] %v7837_v7  ;;  %10217 = vst [vmem:[#allocation65_spill] sm:$0xff] %v7840_v13  ;;  %v7843_v15 = vld [vmem:[#allocation11 + $0xd8] sm:$0xff] }
  0x8b   :  { %577 = vmatprep.subr.mxu1 %v7720_v34  ;;  %6376 = vmatpush3.msra.mxu0 %v7743_v41  ;;  %10218 = vst [vmem:[#allocation66_spill] sm:$0xff] %v7843_v15 }
  0x8c   :  { %578 = vmatpush1.msra.mxu1 %v7726_v36  ;;  %6377 = vmatprep.subr.mxu0 %v9953_v0 }
  0x8d   :  { %579 = vmatprep.subr.mxu1 %v7730_v37  ;;  %6378 = vmatpush3.msra.mxu0 %v7753_v44 }
  0x8e   :  { %580 = vmatpush1.msra.mxu1 %v7736_v39  ;;  %6379 = vmatprep.subr.mxu0 %v9953_v0 }
  0x8f   :  { %581 = vmatprep.subr.mxu1 %v7740_v40  ;;  %6380 = vmatpush3.msra.mxu0 %v7763_v47 }
  0x90   :  { %582 = vmatpush1.msra.mxu1 %v7746_v42  ;;  %6381 = vmatprep.subr.mxu0 %v9953_v0 }
  0x91   :  { %583 = vmatprep.subr.mxu1 %v7750_v43  ;;  %6382 = vmatpush3.msra.mxu0 %v7773_v50 }
  0x92   :  { %584 = vmatpush1.msra.mxu1 %v7756_v45  ;;  %6383 = vmatprep.subr.mxu0 %v9953_v0 }
  0x93   :  { %585 = vmatprep.subr.mxu1 %v7760_v46  ;;  %6384 = vmatpush3.msra.mxu0 %v7787_v54 }
  0x94   :  { %586 = vmatpush1.msra.mxu1 %v7766_v48  ;;  %6385 = vmatprep.subr.mxu0 %v9953_v0 }
  0x95   :  { %587 = vmatprep.subr.mxu1 %v7770_v49  ;;  %6386 = vmatpush3.msra.mxu0 %v7797_v57 }
  0x96   :  { %588 = vmatpush1.msra.mxu1 %v7776_v51  ;;  %6387 = vmatprep.subr.mxu0 %v9953_v0 }
  0x97   :  { %622 = vmatmul.mubr.f32.vlgmr.msra.gmra.mxu1 %v9953_v0  ;;  %714 = vmatprep.subr.mxu1 %v7780_v52 }
  0x98   :  { %715 = vmatpush1.msra.mxu1 %v7784_v53  ;;  %436 = vmatprep.mubr.f32.mxu0 %v9953_v0 }
  0x99   :  { %716 = vmatprep.subr.mxu1 %v7790_v55  ;;  %6388 = vmatpush3.msra.mxu0 %v7811_v61 }
  0x9a   :  { %717 = vmatpush1.msra.mxu1 %v7795_v56  ;;  %5981 = vmatmul.mubr.msk.f32.gmra.mxu0 %vm192_vm1, %v7620_v5  ;;  %v7847_v5 = vld [vmem:[#allocation11 + $0xc8] sm:$0xff] }
  0x9b   :  { %718 = vmatprep.subr.mxu1 %v7800_v58  ;;  %6389 = vmatprep.subr.mxu0 %v9953_v0  ;;  %10219 = vst [vmem:[#allocation67_spill] sm:$0xff] %v7847_v5  ;;  %v7899_v58 = vld [vmem:[#allocation11 + $0x118] sm:$0xff] }
  0x9c   :  { %719 = vmatpush1.msra.mxu1 %v7804_v59  ;;  %6390 = vmatpush3.msra.mxu0 %v7825_v2  ;;  %v7889_v59 = vld [vmem:[#allocation11 + $0x130] sm:$0xff]  ;;  %10232 = vst [vmem:[#allocation80_spill] sm:$0xff] %v7899_v58 }
  0x9d   :  { %720 = vmatprep.subr.mxu1 %v7808_v60  ;;  %6391 = vmatprep.subr.mxu0 %v9953_v0  ;;  %v7879_v60 = vld [vmem:[#allocation11 + $0x148] sm:$0xff]  ;;  %10229 = vst [vmem:[#allocation77_spill] sm:$0xff] %v7889_v59 }
  0x9e   :  { %721 = vmatpush1.msra.mxu1 %v7814_v62  ;;  %778 = vmatprep.mubr.f32.mxu1 %v9953_v0  ;;  %v7872_v62 = vld [vmem:[#allocation11 + $0x90] sm:$0xff]  ;;  %10226 = vst [vmem:[#allocation74_spill] sm:$0xff] %v7879_v60 }
  0x9f   :  { %722 = vmatprep.subr.mxu1 %v7818_v63  ;;  %6392 = vmatpush3.msra.mxu0 %v7840_v13  ;;  %v7855_v63 = vld [vmem:[#allocation11 + $0xb0] sm:$0xff]  ;;  %10224 = vst [vmem:[#allocation72_spill] sm:$0xff] %v7872_v62 }
  0xa0   :  { %723 = vmatpush1.msra.mxu1 %v7822_v1  ;;  %v7851_v1 = vld [vmem:[#allocation11 + $0xc0] sm:$0xff]  ;;  %10221 = vst [vmem:[#allocation69_spill] sm:$0xff] %v7855_v63  ;;  %6393 = vmatprep.mubr.msk.f32.mxu0 %vm7525_vm2, %v9953_v0 }
  0xa1   :  { %724 = vmatprep.subr.mxu1 %v7828_v3  ;;  %10220 = vst [vmem:[#allocation68_spill] sm:$0xff] %v7851_v1  ;;  %v7859_v3 = vld [vmem:[#allocation11 + $0x178] sm:$0xff]  ;;  %6394 = vmatmul.mubr.f32.vlgmr.msra.gmra.mxu0 %v9953_v0 }
  0xa2   :  { %725 = vmatpush1.msra.mxu1 %v7833_v4  ;;  %v7862_v4 = vld [vmem:[#allocation11 + $0xa8] sm:$0xff]  ;;  %6396 = vmatprep.subr.mxu0 %v9953_v0 }
  0xa3   :  { %726 = vmatprep.subr.mxu1 %v7837_v7  ;;  %10222 = vst [vmem:[#allocation70_spill] sm:$0xff] %v7862_v4  ;;  %v7866_v7 = vld [vmem:[#allocation11 + $0x98] sm:$0xff]  ;;  %6397 = vmatpush3.msra.mxu0 %v7859_v3 }
  0xa4   :  { %727 = vmatpush1.msra.mxu1 %v7843_v15  ;;  %10223 = vst [vmem:[#allocation71_spill] sm:$0xff] %v7866_v7  ;;  %v7869_v15 = vld [vmem:[#allocation11 + $0x160] sm:$0xff]  ;;  %6398 = vmatprep.subr.mxu0 %v9953_v0 }
  0xa5   :  { %728 = vmatprep.subr.mxu1 %v7847_v5  ;;  %v7876_v5 = vld [vmem:[#allocation11 + $0x80] sm:$0xff]  ;;  %6399 = vmatpush3.msra.mxu0 %v7869_v15 }
  0xa6   :  { %729 = vmatpush1.msra.mxu1 %v7851_v1  ;;  %10225 = vst [vmem:[#allocation73_spill] sm:$0xff] %v7876_v5  ;;  %v7882_v1 = vld [vmem:[#allocation11 + $0x78] sm:$0xff]  ;;  %6400 = vmatprep.subr.mxu0 %v9953_v0 }
  0xa7   :  { %730 = vmatprep.subr.mxu1 %v7855_v63  ;;  %10227 = vst [vmem:[#allocation75_spill] sm:$0xff] %v7882_v1  ;;  %v7886_v63 = vld [vmem:[#allocation11 + $0x68] sm:$0xff]  ;;  %6401 = vmatpush3.msra.mxu0 %v7879_v60  ;;  %v7909_v60 = vld [vmem:[#allocation11 + $0x100] sm:$0xff] }
  0xa8   :  { %731 = vmatpush1.msra.mxu1 %v7862_v4  ;;  %10228 = vst [vmem:[#allocation76_spill] sm:$0xff] %v7886_v63  ;;  %v7892_v4 = vld [vmem:[#allocation11 + $0x60] sm:$0xff]  ;;  %6402 = vmatprep.subr.mxu0 %v9953_v0 }
  0xa9   :  { %732 = vmatprep.subr.mxu1 %v7866_v7  ;;  %10230 = vst [vmem:[#allocation78_spill] sm:$0xff] %v7892_v4  ;;  %v7896_v7 = vld [vmem:[#allocation11 + $0x50] sm:$0xff]  ;;  %6403 = vmatpush3.msra.mxu0 %v7889_v59  ;;  %v7919_v59 = vld [vmem:[#allocation11 + $0xe8] sm:$0xff] }
  0xaa   :  { %733 = vmatpush1.msra.mxu1 %v7872_v62  ;;  %10231 = vst [vmem:[#allocation79_spill] sm:$0xff] %v7896_v7  ;;  %v7902_v62 = vld [vmem:[#allocation11 + $0x48] sm:$0xff]  ;;  %6404 = vmatprep.subr.mxu0 %v9953_v0 }
  0xab   :  { %734 = vmatprep.subr.mxu1 %v7876_v5  ;;  %10233 = vst [vmem:[#allocation81_spill] sm:$0xff] %v7902_v62  ;;  %v7906_v5 = vld [vmem:[#allocation11 + $0x38] sm:$0xff]  ;;  %6405 = vmatpush3.msra.mxu0 %v7899_v58  ;;  %v7929_v58 = vld [vmem:[#allocation11 + $0xd0] sm:$0xff] }
  0xac   :  { %735 = vmatpush1.msra.mxu1 %v7882_v1  ;;  %10234 = vst [vmem:[#allocation82_spill] sm:$0xff] %v7906_v5  ;;  %v7912_v1 = vld [vmem:[#allocation11 + $0x30] sm:$0xff]  ;;  %6406 = vmatprep.subr.mxu0 %v9953_v0 }
  0xad   :  { %736 = vmatprep.subr.mxu1 %v7886_v63  ;;  %10235 = vst [vmem:[#allocation83_spill] sm:$0xff] %v7912_v1  ;;  %v7916_v63 = vld [vmem:[#allocation11 + $0x20] sm:$0xff]  ;;  %6407 = vmatpush3.msra.mxu0 %v7909_v60 }
  0xae   :  { %737 = vmatpush1.msra.mxu1 %v7892_v4  ;;  %10236 = vst [vmem:[#allocation84_spill] sm:$0xff] %v7916_v63  ;;  %v7922_v4 = vld [vmem:[#allocation11 + $0x18] sm:$0xff]  ;;  %6408 = vmatprep.subr.mxu0 %v9953_v0 }
  0xaf   :  { %738 = vmatprep.subr.mxu1 %v7896_v7  ;;  %10237 = vst [vmem:[#allocation85_spill] sm:$0xff] %v7922_v4  ;;  %v7926_v7 = vld [vmem:[#allocation11 + $0x8] sm:$0xff]  ;;  %6409 = vmatpush3.msra.mxu0 %v7919_v59 }
  0xb0   :  { %739 = vmatpush1.msra.mxu1 %v7902_v62  ;;  %10238 = vst [vmem:[#allocation86_spill] sm:$0xff] %v7926_v7  ;;  %v7932_v62 = vld [vmem:[#allocation11] sm:$0xff]  ;;  %6410 = vmatprep.subr.mxu0 %v9953_v0 }
  0xb1   :  { %740 = vmatprep.subr.mxu1 %v7906_v5  ;;  %10239 = vst [vmem:[#allocation87_spill] sm:$0xff] %v7932_v62  ;;  %v7937_v5 = vld [vmem:[#allocation11 + $0xb8] sm:$0xff]  ;;  %6411 = vmatpush3.msra.mxu0 %v7929_v58 }
  0xb2   :  { %741 = vmatpush1.msra.mxu1 %v7912_v1  ;;  %6412 = vmatprep.subr.mxu0 %v9953_v0  ;;  %v7943_v1 = vld [vmem:[#allocation11 + $0xa0] sm:$0xff] }
  0xb3   :  { %742 = vmatprep.subr.mxu1 %v7916_v63  ;;  %10240 = vst [vmem:[#allocation88_spill] sm:$0xff] %v7943_v1  ;;  %6413 = vmatpush3.msra.mxu0 %v7937_v5 }
  0xb4   :  { %743 = vmatpush1.msra.mxu1 %v7922_v4  ;;  %6414 = vmatprep.subr.mxu0 %v9953_v0  ;;  %v7948_v4 = vld [vmem:[#allocation11 + $0x88] sm:$0xff] }
  0xb5   :  { %744 = vmatprep.subr.mxu1 %v7926_v7  ;;  %10241 = vst [vmem:[#allocation89_spill] sm:$0xff] %v7948_v4  ;;  %6428 = vmatprep.mubr.msk.f32.mxu0 %vm7525_vm2, %v9953_v0  ;;  %v7961_v7 = vld [vmem:[#allocation11 + $0x58] sm:$0xff] }
  0xb6   :  { %745 = vmatpush1.msra.mxu1 %v7932_v62  ;;  %6415 = vmatpush3.msra.mxu0 %v7943_v1  ;;  %v7955_v62 = vld [vmem:[#allocation11 + $0x70] sm:$0xff]  ;;  %10243 = vst [vmem:[#allocation91_spill] sm:$0xff] %v7961_v7 }
  0xb7   :  { %779 = vmatmul.mubr.f32.vlgmr.msra.gmra.mxu1 %v9953_v0  ;;  %919 = vmatprep.subr.mxu1 %v7625_v6  ;;  %10242 = vst [vmem:[#allocation90_spill] sm:$0xff] %v7955_v62  ;;  %v7967_v6 = vld [vmem:[#allocation11 + $0x40] sm:$0xff] }
  0xb8   :  { %6416 = vmatprep.subr.mxu0 %v9953_v0  ;;  %920 = vmatpush1.msra.mxu1 %v7637_v8  ;;  %10244 = vst [vmem:[#allocation92_spill] sm:$0xff] %v7967_v6 }
  0xb9   :  { %6417 = vmatpush3.msra.mxu0 %v7948_v4  ;;  %921 = vmatprep.subr.mxu1 %v7640_v9  ;;  %v7973_v9 = vld [vmem:[#allocation11 + $0x28] sm:$0xff] }
  0xba   :  { %6418 = vmatprep.subr.mxu0 %v9953_v0  ;;  %922 = vmatpush1.msra.mxu1 %v7644_v10 }
  0xbb   :  { %6419 = vmatpush3.msra.mxu0 %v7955_v62  ;;  %923 = vmatprep.subr.mxu1 %v7647_v11  ;;  %v7979_v11 = vld [vmem:[#allocation11 + $0x10] sm:$0xff] }
  0xbc   :  { %6420 = vmatprep.subr.mxu0 %v9953_v0  ;;  %924 = vmatpush1.msra.mxu1 %v7651_v12 }
  0xbd   :  { %6421 = vmatpush3.msra.mxu0 %v7961_v7  ;;  %925 = vmatprep.subr.mxu1 %v7654_v14 }
  0xbe   :  { %6422 = vmatprep.subr.mxu0 %v9953_v0  ;;  %926 = vmatpush1.msra.mxu1 %v7657_v16 }
  0xbf   :  { %6423 = vmatpush3.msra.mxu0 %v7967_v6  ;;  %927 = vmatprep.subr.mxu1 %v7662_v17 }
  0xc0   :  { %6424 = vmatprep.subr.mxu0 %v9953_v0  ;;  %928 = vmatpush1.msra.mxu1 %v7666_v18 }
  0xc1   :  { %6425 = vmatpush3.msra.mxu0 %v7973_v9  ;;  %929 = vmatprep.subr.mxu1 %v7670_v19 }
  0xc2   :  { %6426 = vmatprep.subr.mxu0 %v9953_v0  ;;  %930 = vmatpush1.msra.mxu1 %v7676_v21 }
  0xc3   :  { %6427 = vmatpush3.msra.mxu0 %v7979_v11  ;;  %931 = vmatprep.subr.mxu1 %v7680_v22 }
  0xc4   :  { %6429 = vmatmul.mubr.f32.vlgmr.msra.gmra.mxu0 %v9953_v0  ;;  %6431 = vmatprep.subr.mxu0 %v9953_v0 }
  0xc5   :  { %6432 = vmatpush3.msra.mxu0 %v7673_v20  ;;  %932 = vmatpush1.msra.mxu1 %v7686_v24 }
  0xc6   :  { %6433 = vmatprep.subr.mxu0 %v9953_v0  ;;  %933 = vmatprep.subr.mxu1 %v7690_v25 }
  0xc7   :  { %6434 = vmatpush3.msra.mxu0 %v7683_v23  ;;  %934 = vmatpush1.msra.mxu1 %v7696_v27 }
  0xc8   :  { %6435 = vmatprep.subr.mxu0 %v9953_v0  ;;  %935 = vmatprep.subr.mxu1 %v7700_v28 }
  0xc9   :  { %6436 = vmatpush3.msra.mxu0 %v7693_v26  ;;  %936 = vmatpush1.msra.mxu1 %v7706_v30  ;;  %v539_v30 = vld [vmem:[#allocation9] sm:$0x7] }
  0xca   :  { %6437 = vmatprep.subr.mxu0 %v9953_v0  ;;  %937 = vmatprep.subr.mxu1 %v7710_v31 }
  0xcb   :  { %6438 = vmatpush3.msra.mxu0 %v7703_v29  ;;  %938 = vmatpush1.msra.mxu1 %v7716_v33 }
  0xcc   :  { %6439 = vmatprep.subr.mxu0 %v9953_v0  ;;  %939 = vmatprep.subr.mxu1 %v7720_v34 }
  0xcd   :  { %6440 = vmatpush3.msra.mxu0 %v7713_v32  ;;  %940 = vmatpush1.msra.mxu1 %v7726_v36 }
  0xce   :  { %6441 = vmatprep.subr.mxu0 %v9953_v0  ;;  %941 = vmatprep.subr.mxu1 %v7730_v37 }
  0xcf   :  { %6442 = vmatpush3.msra.mxu0 %v7723_v35  ;;  %942 = vmatpush1.msra.mxu1 %v7736_v39 }
  0xd0   :  { %6443 = vmatprep.subr.mxu0 %v9953_v0  ;;  %943 = vmatprep.subr.mxu1 %v7740_v40 }
  0xd1   :  { %6444 = vmatpush3.msra.mxu0 %v7733_v38  ;;  %944 = vmatpush1.msra.mxu1 %v7746_v42 }
  0xd2   :  { %6445 = vmatprep.subr.mxu0 %v9953_v0  ;;  %945 = vmatprep.subr.mxu1 %v7750_v43 }
  0xd3   :  { %6446 = vmatpush3.msra.mxu0 %v7743_v41  ;;  %946 = vmatpush1.msra.mxu1 %v7756_v45 }
  0xd4   :  { %6447 = vmatprep.subr.mxu0 %v9953_v0  ;;  %947 = vmatprep.subr.mxu1 %v7760_v46 }
  0xd5   :  { %6448 = vmatpush3.msra.mxu0 %v7753_v44  ;;  %948 = vmatpush1.msra.mxu1 %v7766_v48  ;;  %v154_v48 = vld [vmem:[#allocation6] sm:$0x3f] }
  0xd6   :  { %6449 = vmatprep.subr.mxu0 %v9953_v0  ;;  %949 = vmatprep.subr.mxu1 %v7770_v49 }
  0xd7   :  { %6450 = vmatpush3.msra.mxu0 %v7763_v47  ;;  %950 = vmatpush1.msra.mxu1 %v7776_v51 }
  0xd8   :  { %6451 = vmatprep.subr.mxu0 %v9953_v0  ;;  %983 = vmatprep.mubr.f32.mxu1 %v9953_v0 }
  0xd9   :  { %6452 = vmatpush3.msra.mxu0 %v7773_v50  ;;  %6463 = vmatprep.mubr.msk.f32.mxu0 %vm7525_vm2, %v9953_v0 }
  0xda   :  { %6453 = vmatprep.subr.mxu0 %v9953_v0  ;;  %1062 = vmatprep.subr.mxu1 %v7780_v52  ;;  %v156_v52 = vlaneseq }
  0xdb   :  { %6454 = vmatpush3.msra.mxu0 %v7787_v54 }
  0xdc   :  { %6455 = vmatprep.subr.mxu0 %v9953_v0  ;;  %v8045_v51 = vshrl.u32 %v156_v52, 7 }
  0xdd   :  { %6456 = vmatpush3.msra.mxu0 %v7797_v57 }
  0xde   :  { %6457 = vmatprep.subr.mxu0 %v9953_v0  ;;  %10245 = vst [vmem:[#allocation93_spill] sm:$0xff] %v8045_v51  ;;  %v8048_v49 = vsub.s32 0, %v8045_v51  ;;  %v8051_v46 = vsub.s32 1, %v8045_v51  ;;  %v9968_v45 = vsub.s32 3, %v8045_v51  ;;  %v8061_v52 = vsub.s32 2, %v8045_v51 }
  0xdf   :  { %6458 = vmatpush3.msra.mxu0 %v7811_v61  ;;  %v174_v37 = vsub.s32 4, %v8045_v51 }
  0xe0   :  { %6459 = vmatprep.subr.mxu0 %v9953_v0  ;;  %10246 = vst [vmem:[#allocation94_spill] sm:$0xff] %v8048_v49  ;;  %10247 = vst [vmem:[#allocation95_spill] sm:$0xff] %v8051_v46  ;;  %v159_v61 = vrot.slane %v154_v48, %v8048_v49  ;;  %v171_v42 = vrot.slane %v154_v48, %v9968_v45  ;;  %v167_v50 = vrot.slane %v154_v48, %v8061_v52 }
  0xe1   :  { %6460 = vmatpush3.msra.mxu0 %v7825_v2  ;;  %v163_v2 = vrot.slane %v154_v48, %v8051_v46  ;;  %10250 = vst [vmem:[#allocation98_spill] sm:$0xff] %v8061_v52  ;;  %v175_v34 = vrot.slane %v154_v48, %v174_v37  ;;  %v8086_v37 = vrot.slane %v539_v30, %v8051_v46 }
  0xe2   :  { %6461 = vmatprep.subr.mxu0 %v9953_v0 }
  0xe3   :  { %6462 = vmatpush3.msra.mxu0 %v7840_v13  ;;  %10257 = vst [vmem:[#allocation105_spill] sm:$0xff] %v8086_v37 }
  0xe4   :  { %6466 = vmatprep.subr.mxu0 %v9953_v0 }
 0x133   :  { %v284_v43 = vpop.f32.mrf.mxu1 }
 0x134   :  { %v8056_v13 = vadd.f32 %v284_v43, %v159_v61 }
 0x135   :  { %v286_v0 = vpop.f32.mrf.mxu1  ;;  %v278_v54 = vpop.f32.mrf.mxu0 }
 0x136   :  { %10248 = vst [vmem:[#allocation96_spill] sm:$0xff] %v8056_v13  ;;  %v8058_v57 = vadd.f32 %v286_v0, %v163_v2  ;;  %v178_v13 = vsub.s32 5, %v8045_v51  ;;  %v8082_v28 = vadd.f32 %v278_v54, %v159_v61 }
 0x137   :  { %v355_v40 = vpop.f32.mrf.mxu1 }
 0x138   :  { %10249 = vst [vmem:[#allocation97_spill] sm:$0xff] %v8058_v57  ;;  %v280_v57 = vpop.f32.mrf.mxu0  ;;  %v8072_v47 = vrot.slane %v154_v48, %v178_v13  ;;  %10256 = vst [vmem:[#allocation104_spill] sm:$0xff] %v8082_v28 }
 0x139   :  { %v357_v39 = vpop.f32.mrf.mxu1 }
 0x13a   :  { %v8067_v36 = vadd.f32 %v357_v39, %v171_v42  ;;  %v432_v33 = vpop.f32.mrf.mxu0  ;;  %v8080_v39 = vrot.slane %v539_v30, %v8048_v49 }
 0x13b   :  { %v361_v43 = vpop.f32.mrf.mxu1  ;;  %v8074_v45 = vadd.f32 %v432_v33, %v175_v34 }
 0x13c   :  { %10251 = vst [vmem:[#allocation99_spill] sm:$0xff] %v8067_v36  ;;  %v8070_v0 = vadd.f32 %v361_v43, %v167_v50  ;;  %v434_v31 = vpop.f32.mrf.mxu0  ;;  %10255 = vst [vmem:[#allocation103_spill] sm:$0xff] %v8080_v39 }
 0x13d   :  { %10253 = vst [vmem:[#allocation101_spill] sm:$0xff] %v8074_v45  ;;  %v8077_v44 = vadd.f32 %v434_v31, %v8072_v47  ;;  %v363_v36 = vpop.f32.mrf.mxu1  ;;  %v8090_v45 = vadd.f32 %v280_v57, %v163_v2 }
 0x13e   :  { %10252 = vst [vmem:[#allocation100_spill] sm:$0xff] %v8070_v0 }
 0x13f   :  { %10254 = vst [vmem:[#allocation102_spill] sm:$0xff] %v8077_v44  ;;  %10258 = vst [vmem:[#allocation106_spill] sm:$0xff] %v8090_v45 }
 0x157   :  { %v623_v43 = vpop.f32.mrf.mxu1 }
 0x158   :  { %v624_v0 = vadd.f32 %v623_v43, %v8080_v39 }
 0x159   :  { %v625_v48 = vpop.f32.mrf.mxu1 }
 0x15a   :  { %v855_v33 = vadd.f32 %v624_v0, %v8082_v28  ;;  %v626_v31 = vadd.f32 %v625_v48, %v8086_v37  ;;  %v438_v44 = vpop.f32.mrf.mxu0  ;;  %v540_v0 = vld [vmem:[#allocation12] sm:$0x7]  ;;  %v8099_v48 = vrot.slane %v539_v30, %v8061_v52  ;;  %v8109_v28 = vadd.f32 %v355_v40, %v167_v50 }
 0x15b   :  { %v8102_v2 = vrot.slane %v540_v0, %v8051_v46 }
 0x15c   :  { %v5982_v13 = vmul.f32 -1.442695, %v855_v33  ;;  %v862_v41 = vadd.f32 %v626_v31, %v8090_v45  ;;  %v8093_v54 = vpop.f32.mrf.mxu0  ;;  %v8096_v33 = vrot.slane %v540_v0, %v8048_v49  ;;  %10260 = vst [vmem:[#allocation108_spill] sm:$0xff] %v8099_v48 }
 0x15e   :  { %6947 = vpow2.f32 %v5982_v13  ;;  %v5983_v61 = vmul.f32 -1.442695, %v862_v41  ;;  %10259 = vst [vmem:[#allocation107_spill] sm:$0xff] %v8096_v33 }
 0x160   :  { %6949 = vpow2.f32 %v5983_v61 }
 0x161   :  { %v694_v27 = vpop.f32.mrf.mxu0 }
 0x162   :  { %v695_v31 = vadd.f32 %v694_v27, %v8099_v48 }
 0x163   :  { %v6395_v43 = vpop.f32.mrf.mxu0 }
 0x16b   :  { %v6948_v39 = vpop.eup %6947 }
 0x16c   :  { %v859_v25 = vadd.f32 1.0, %v6948_v39  ;;  %v8106_v39 = vadd.f32 %v363_v36, %v171_v42 }
 0x16d   :  { %v6950_v57 = vpop.eup %6949 }
 0x16e   :  { %6951 = vrcp.f32 %v859_v25  ;;  %v866_v61 = vadd.f32 1.0, %v6950_v57 }
 0x170   :  { %6953 = vrcp.f32 %v866_v61 }
 0x177   :  { %v780_v13 = vpop.f32.mrf.mxu1 }
 0x178   :  { %v781_v41 = vadd.f32 %v780_v13, %v8096_v33  ;;  %v8113_v33 = vadd.f32 %v438_v44, %v175_v34  ;;  %v8119_v34 = vrot.slane %v540_v0, %v8061_v52  ;;  %v10263_v0 = vld [vmem:[#allocation55_spill] sm:$0xff]  ;;  %v10285_v52 = vld [vmem:[#allocation78_spill] sm:$0xff] }
 0x179   :  { %v782_v43 = vpop.f32.mrf.mxu1 }
 0x17a   :  { %v877_v25 = vrot.slane %v781_v41, 2  ;;  %v783_v49 = vadd.f32 %v782_v43, %v8102_v2 }
 0x17b   :  { %v6952_v45 = vpop.eup %6951 }
 0x17c   :  { %v879_v30 = vadd.f32 %v877_v25, %v8106_v39  ;;  %v869_v37 = vmul.f32 %v6952_v45, %v695_v31  ;;  %v887_v13 = vrot.slane %v783_v49, 2  ;;  %v10262_v49 = vld [vmem:[#allocation54_spill] sm:$0xff]  ;;  %v10265_v25 = vld [vmem:[#allocation56_spill] sm:$0xff] }
 0x17d   :  { %v6954_v41 = vpop.eup %6953 }
 0x17e   :  { %v5984_v46 = vmul.f32 -1.442695, %v879_v30  ;;  %v870_v38 = vadd.f32 %v869_v37, %v8109_v28  ;;  %v889_v27 = vadd.f32 %v887_v13, %v8113_v33  ;;  %v872_v50 = vsub.f32 1.0, %v6954_v41  ;;  %v10266_v13 = vld [vmem:[#allocation58_spill] sm:$0xff] }
 0x17f   :  { %v874_v61 = vmul.f32 0.0, %v6954_v41  ;;  %v10271_v41 = vld [vmem:[#allocation62_spill] sm:$0xff] }
 0x180   :  { %6955 = vpow2.f32 %v5984_v46  ;;  %v5985_v36 = vmul.f32 -1.442695, %v889_v27  ;;  %v10268_v27 = vld [vmem:[#allocation59_spill] sm:$0xff] }
 0x181   :  { %6957 = vtanh.f32 %v870_v38  ;;  %v10261_v38 = vmov 0.0  }
 0x182   :  { %6959 = vpow2.f32 %v5985_v36  ;;  %v10269_v36 = vld [vmem:[#allocation60_spill] sm:$0xff] }
 0x184   :  { %v851_v42 = vpop.f32.mrf.mxu0 }
 0x185   :  { %v852_v44 = vadd.f32 %v851_v42, %v8119_v34  ;;  %v10270_v42 = vld [vmem:[#allocation80_spill] sm:$0xff] }
 0x186   :  { %v6430_v57 = vpop.f32.mrf.mxu0 }
 0x187   :  { %v897_v30 = vrot.slane %v852_v44, 2  ;;  %v10276_v44 = vld [vmem:[#allocation67_spill] sm:$0xff] }
 0x18d   :  { %v6956_v40 = vpop.eup %6955 }
 0x18e   :  { %v6958_v43 = vpop.eup %6957  ;;  %v883_v45 = vadd.f32 1.0, %v6956_v40  ;;  %v8147_v40 = vadd.f32 %v8093_v54, %v8072_v47  ;;  %v10277_v47 = vld [vmem:[#allocation68_spill] sm:$0xff]  ;;  %v10278_v54 = vld [vmem:[#allocation69_spill] sm:$0xff] }
 0x18f   :  { %v873_v31 = vmul.f32 %v6958_v43, %v872_v50  ;;  %v6960_v46 = vpop.eup %6959  ;;  %v10273_v43 = vld [vmem:[#allocation63_spill] sm:$0xff] }
 0x190   :  { %6961 = vrcp.f32 %v883_v45  ;;  %10272 = vst [vmem:[#allocation54_spill] sm:$0xff] %v8147_v40  ;;  %v10274_v45 = vld [vmem:[#allocation64_spill] sm:$0xff] }
 0x191   :  { %v8116_v37 = vadd.f32 %v874_v61, %v873_v31  ;;  %v10275_v61 = vld [vmem:[#allocation66_spill] sm:$0xff] }
 0x193   :  { %906 = vst [vmem:[#allocation2 + $0x1c] sm:$0x3] %v8116_v37  ;;  %984 = vmatmul.mubr.f32.vlgmr.msra.gmra.mxu1 %v8116_v37  ;;  %6464 = vmatmul.mubr.f32.vlgmr.msra.gmra.mxu0 %v8116_v37 }
 0x194   :  { %1063 = vmatpush1.msra.mxu1 %v7784_v53  ;;  %6467 = vmatpush3.msra.mxu0 %v7859_v3  ;;  %v10264_v53 = vld [vmem:[#allocation74_spill] sm:$0xff] }
 0x195   :  { %1064 = vmatprep.subr.mxu1 %v7790_v55  ;;  %6468 = vmatprep.subr.mxu0 %v10261_v38  ;;  %v893_v55 = vadd.f32 1.0, %v6960_v46  ;;  %v10279_v46 = vld [vmem:[#allocation70_spill] sm:$0xff] }
 0x196   :  { %1065 = vmatpush1.msra.mxu1 %v7795_v56  ;;  %6469 = vmatpush3.msra.mxu0 %v7869_v15  ;;  %v10267_v56 = vld [vmem:[#allocation77_spill] sm:$0xff] }
 0x197   :  { %1066 = vmatprep.subr.mxu1 %v10262_v49  ;;  %6470 = vmatprep.subr.mxu0 %v10261_v38  ;;  %6963 = vrcp.f32 %v893_v55  ;;  %v10280_v49 = vld [vmem:[#allocation71_spill] sm:$0xff]  ;;  %v10282_v55 = vld [vmem:[#allocation73_spill] sm:$0xff] }
 0x198   :  { %1067 = vmatpush1.msra.mxu1 %v10263_v0  ;;  %6471 = vmatpush3.msra.mxu0 %v10264_v53  ;;  %v10281_v0 = vld [vmem:[#allocation72_spill] sm:$0xff] }
 0x199   :  { %1068 = vmatprep.subr.mxu1 %v10265_v25  ;;  %6472 = vmatprep.subr.mxu0 %v10261_v38 }
 0x19a   :  { %1069 = vmatpush1.msra.mxu1 %v10266_v13  ;;  %6473 = vmatpush3.msra.mxu0 %v10267_v56 }
 0x19b   :  { %1070 = vmatprep.subr.mxu1 %v10268_v27  ;;  %6474 = vmatprep.subr.mxu0 %v10261_v38 }
 0x19c   :  { %1071 = vmatpush1.msra.mxu1 %v10269_v36  ;;  %6475 = vmatpush3.msra.mxu0 %v10270_v42 }
 0x19d   :  { %v6962_v57 = vpop.eup %6961  ;;  %1072 = vmatprep.subr.mxu1 %v10271_v41  ;;  %6476 = vmatprep.subr.mxu0 %v10261_v38 }
 0x19e   :  { %v899_v50 = vmul.f32 %v6962_v57, %v897_v30  ;;  %1073 = vmatpush1.msra.mxu1 %v10273_v43  ;;  %6477 = vmatpush3.msra.mxu0 %v7909_v60  ;;  %v10283_v30 = vld [vmem:[#allocation75_spill] sm:$0xff]  ;;  %v10284_v57 = vld [vmem:[#allocation76_spill] sm:$0xff] }
 0x19f   :  { %1074 = vmatprep.subr.mxu1 %v10274_v45  ;;  %6478 = vmatprep.subr.mxu0 %v10261_v38 }
 0x1a0   :  { %v900_v31 = vadd.f32 %v899_v50, %v8147_v40  ;;  %1075 = vmatpush1.msra.mxu1 %v10275_v61  ;;  %6479 = vmatpush3.msra.mxu0 %v7919_v59  ;;  %v7526_v50 = vmov 1983009808  }
 0x1a1   :  { %1076 = vmatprep.subr.mxu1 %v10276_v44  ;;  %6480 = vmatprep.subr.mxu0 %v10261_v38 }
 0x1a2   :  { %6965 = vtanh.f32 %v900_v31  ;;  %1077 = vmatpush1.msra.mxu1 %v10277_v47  ;;  %6481 = vmatpush3.msra.mxu0 %v7929_v58  ;;  %v910_v31 = vunpack.c.l.s4 %v7526_v50 }
 0x1a3   :  { %1078 = vmatprep.subr.mxu1 %v10278_v54  ;;  %6482 = vmatprep.subr.mxu0 %v10261_v38 }
 0x1a4   :  { %1079 = vmatpush1.msra.mxu1 %v10279_v46  ;;  %6483 = vmatpush3.msra.mxu0 %v7937_v5 }
 0x1a5   :  { %1080 = vmatprep.subr.mxu1 %v10280_v49  ;;  %6484 = vmatprep.subr.mxu0 %v10261_v38 }
 0x1a6   :  { %1081 = vmatpush1.msra.mxu1 %v10281_v0  ;;  %6485 = vmatpush3.msra.mxu0 %v7943_v1  ;;  %v6964_v0 = vpop.eup %6963  ;;  %v10286_v1 = vld [vmem:[#allocation79_spill] sm:$0xff] }
 0x1a7   :  { %1082 = vmatprep.subr.mxu1 %v10282_v55  ;;  %6486 = vmatprep.subr.mxu0 %v10261_v38  ;;  %v10287_v55 = vld [vmem:[#allocation81_spill] sm:$0xff]  ;;  %v902_v50 = vsub.f32 1.0, %v6964_v0 }
 0x1a8   :  { %1083 = vmatpush1.msra.mxu1 %v10283_v30  ;;  %6487 = vmatpush3.msra.mxu0 %v7948_v4  ;;  %v10288_v4 = vld [vmem:[#allocation82_spill] sm:$0xff]  ;;  %v10289_v30 = vld [vmem:[#allocation83_spill] sm:$0xff] }
 0x1a9   :  { %1084 = vmatprep.subr.mxu1 %v10284_v57  ;;  %6488 = vmatprep.subr.mxu0 %v10261_v38  ;;  %v911_v57 = vunpack.c.0.s8 %v910_v31 }
 0x1aa   :  { %1085 = vmatpush1.msra.mxu1 %v10285_v52  ;;  %6489 = vmatpush3.msra.mxu0 %v7955_v62 }
 0x1ab   :  { %1086 = vmatprep.subr.mxu1 %v10286_v1  ;;  %6490 = vmatprep.subr.mxu0 %v10261_v38  ;;  %v10290_v1 = vld [vmem:[#allocation85_spill] sm:$0xff]  ;;  %v8191_v31 = vsub.s32 %v911_v57, %v8045_v51  ;;  %v8512_v51 = vld [vmem:[#allocation8 + $0x20] sm:$0xff] }
 0x1ac   :  { %1087 = vmatpush1.msra.mxu1 %v10287_v55  ;;  %6491 = vmatpush3.msra.mxu0 %v7961_v7  ;;  %v904_v55 = vmul.f32 0.0, %v6964_v0 }
 0x1ad   :  { %1088 = vmatprep.subr.mxu1 %v10288_v4  ;;  %6492 = vmatprep.subr.mxu0 %v10261_v38  ;;  %v10291_v4 = vld [vmem:[#allocation86_spill] sm:$0xff]  ;;  %10292 = vst [vmem:[#allocation55_spill] sm:$0xff] %v8191_v31 }
 0x1ae   :  { %1089 = vmatpush1.msra.mxu1 %v10289_v30  ;;  %6493 = vmatpush3.msra.mxu0 %v7967_v6  ;;  %v10293_v6 = vld [vmem:[#allocation87_spill] sm:$0xff] }
 0x1af   :  { %v6966_v62 = vpop.eup %6965  ;;  %1090 = vmatprep.subr.mxu1 %v7916_v63  ;;  %6494 = vmatprep.subr.mxu0 %v10261_v38 }
 0x1b0   :  { %1091 = vmatpush1.msra.mxu1 %v10290_v1  ;;  %6495 = vmatpush3.msra.mxu0 %v7973_v9  ;;  %v903_v7 = vmul.f32 %v6966_v62, %v902_v50  ;;  %v10294_v50 = vld [vmem:[#allocation25_spill] sm:$0xff] }
 0x1b1   :  { %1092 = vmatprep.subr.mxu1 %v10291_v4  ;;  %6496 = vmatprep.subr.mxu0 %v10261_v38 }
 0x1b2   :  { %1093 = vmatpush1.msra.mxu1 %v10293_v6  ;;  %1126 = vmatprep.mubr.f32.mxu1 %v10261_v38  ;;  %v8195_v63 = vadd.f32 %v904_v55, %v903_v7  ;;  %v10295_v55 = vld [vmem:[#allocation26_spill] sm:$0xff] }
 0x1b3   :  { %6497 = vmatpush3.msra.mxu0 %v7979_v11  ;;  %6498 = vmatprep.mubr.msk.f32.mxu0 %vm7525_vm2, %v10261_v38 }
 0x1b4   :  { %v908_v62 = vcombine.high %v8195_v63, %v8195_v63  ;;  %v1060_v0 = vrot.slane %v8195_v63, 6  ;;  %1292 = vmatprep.subr.mxu1 %v10294_v50  ;;  %6501 = vmatprep.subr.mxu0 %v10261_v38  ;;  %v10296_v50 = vld [vmem:[#allocation27_spill] sm:$0xff] }
 0x1b6   :  { %v915_v57 = vrot.slane %v908_v62, %v8191_v31  ;;  %1127 = vmatmul.mubr.f32.vlgmr.msra.gmra.mxu1 %v1060_v0  ;;  %6499 = vmatmul.mubr.f32.vlgmr.msra.gmra.mxu0 %v1060_v0  ;;  %v10314_v62 = vld [vmem:[#allocation41_spill] sm:$0xff] }
 0x1b7   :  { %1293 = vmatpush1.msra.mxu1 %v7637_v8  ;;  %6502 = vmatpush3.msra.mxu0 %v7673_v20  ;;  %v10297_v8 = vld [vmem:[#allocation37_spill] sm:$0xff] }
 0x1b8   :  { %v916_v7 = vcombine.high %v915_v57, %v915_v57  ;;  %1294 = vmatprep.subr.mxu1 %v10295_v55  ;;  %6503 = vmatprep.subr.mxu0 %v10261_v38  ;;  %v10305_v20 = vld [vmem:[#allocation33_spill] sm:$0xff]  ;;  %v10316_v57 = vld [vmem:[#allocation42_spill] sm:$0xff] }
 0x1b9   :  { %1295 = vmatpush1.msra.mxu1 %v7644_v10  ;;  %6504 = vmatpush3.msra.mxu0 %v7683_v23  ;;  %v10298_v10 = vld [vmem:[#allocation28_spill] sm:$0xff]  ;;  %v10308_v23 = vld [vmem:[#allocation35_spill] sm:$0xff]  ;;  %v10315_v0 = vld [vmem:[#allocation53_spill] sm:$0xff] }
 0x1ba   :  { %918 = vst [vmem:[#allocation2 + $0x2] sm:$0x3] %v916_v7  ;;  %1296 = vmatprep.subr.mxu1 %v10296_v50  ;;  %6505 = vmatprep.subr.mxu0 %v10261_v38  ;;  %v10317_v7 = vld [vmem:[#allocation44_spill] sm:$0xff]  ;;  %v10318_v55 = vld [vmem:[#allocation57_spill] sm:$0xff] }
 0x1bb   :  { %1297 = vmatpush1.msra.mxu1 %v7651_v12  ;;  %6506 = vmatpush3.msra.mxu0 %v7693_v26  ;;  %v10299_v12 = vld [vmem:[#allocation29_spill] sm:$0xff]  ;;  %v10310_v26 = vld [vmem:[#allocation36_spill] sm:$0xff] }
 0x1bc   :  { %1298 = vmatprep.subr.mxu1 %v7654_v14  ;;  %6507 = vmatprep.subr.mxu0 %v10261_v38  ;;  %v10300_v14 = vld [vmem:[#allocation40_spill] sm:$0xff]  ;;  %v10319_v50 = vld [vmem:[#allocation45_spill] sm:$0xff]  ;;  %10370 = vst [vmem:[#allocation29_spill] sm:$0xff] %v8512_v51 }
 0x1bd   :  { %1299 = vmatpush1.msra.mxu1 %v7657_v16  ;;  %6508 = vmatpush3.msra.mxu0 %v7703_v29  ;;  %v10301_v16 = vld [vmem:[#allocation30_spill] sm:$0xff] }
 0x1be   :  { %1300 = vmatprep.subr.mxu1 %v7662_v17  ;;  %6509 = vmatprep.subr.mxu0 %v10261_v38  ;;  %v10302_v17 = vld [vmem:[#allocation31_spill] sm:$0xff]  ;;  %v10311_v29 = vld [vmem:[#allocation38_spill] sm:$0xff] }
 0x1bf   :  { %1301 = vmatpush1.msra.mxu1 %v7666_v18  ;;  %6510 = vmatpush3.msra.mxu0 %v7713_v32  ;;  %v10303_v18 = vld [vmem:[#allocation43_spill] sm:$0xff]  ;;  %v10312_v32 = vld [vmem:[#allocation52_spill] sm:$0xff] }
 0x1c0   :  { %1302 = vmatprep.subr.mxu1 %v7670_v19  ;;  %6511 = vmatprep.subr.mxu0 %v10261_v38  ;;  %v10304_v19 = vld [vmem:[#allocation32_spill] sm:$0xff] }
 0x1c1   :  { %1303 = vmatpush1.msra.mxu1 %v7676_v21  ;;  %6512 = vmatpush3.msra.mxu0 %v7723_v35  ;;  %v10306_v21 = vld [vmem:[#allocation46_spill] sm:$0xff]  ;;  %v10313_v35 = vld [vmem:[#allocation39_spill] sm:$0xff] }
 0x1c2   :  { %1304 = vmatprep.subr.mxu1 %v7680_v22  ;;  %6513 = vmatprep.subr.mxu0 %v10261_v38  ;;  %v10307_v22 = vld [vmem:[#allocation34_spill] sm:$0xff] }
 0x1c3   :  { %1305 = vmatpush1.msra.mxu1 %v7686_v24  ;;  %6514 = vmatpush3.msra.mxu0 %v10297_v8  ;;  %v10309_v24 = vld [vmem:[#allocation49_spill] sm:$0xff]  ;;  %v10320_v8 = vld [vmem:[#allocation47_spill] sm:$0xff] }
 0x1c4   :  { %1306 = vmatprep.subr.mxu1 %v10298_v10  ;;  %6515 = vmatprep.subr.mxu0 %v10261_v38  ;;  %v10321_v10 = vld [vmem:[#allocation61_spill] sm:$0xff] }
 0x1c5   :  { %1307 = vmatpush1.msra.mxu1 %v10299_v12  ;;  %6516 = vmatpush3.msra.mxu0 %v10300_v14  ;;  %v10322_v12 = vld [vmem:[#allocation48_spill] sm:$0xff]  ;;  %v10323_v14 = vld [vmem:[#allocation50_spill] sm:$0xff] }
 0x1c6   :  { %1308 = vmatprep.subr.mxu1 %v10301_v16  ;;  %6517 = vmatprep.subr.mxu0 %v10261_v38  ;;  %v10324_v16 = vld [vmem:[#allocation65_spill] sm:$0xff] }
 0x1c7   :  { %1309 = vmatpush1.msra.mxu1 %v10302_v17  ;;  %6518 = vmatpush3.msra.mxu0 %v10303_v18  ;;  %v10325_v17 = vld [vmem:[#allocation51_spill] sm:$0xff] }
 0x1c8   :  { %1310 = vmatprep.subr.mxu1 %v10304_v19  ;;  %6519 = vmatprep.subr.mxu0 %v10261_v38 }
 0x1c9   :  { %1311 = vmatpush1.msra.mxu1 %v10305_v20  ;;  %6520 = vmatpush3.msra.mxu0 %v10306_v21  ;;  %v10326_v20 = vld [vmem:[#allocation103_spill] sm:$0xff] }
 0x1ca   :  { %1312 = vmatprep.subr.mxu1 %v10307_v22  ;;  %6521 = vmatprep.subr.mxu0 %v10261_v38 }
 0x1cb   :  { %1313 = vmatpush1.msra.mxu1 %v10308_v23  ;;  %6522 = vmatpush3.msra.mxu0 %v10309_v24 }
 0x1cc   :  { %1314 = vmatprep.subr.mxu1 %v10310_v26  ;;  %6523 = vmatprep.subr.mxu0 %v10261_v38  ;;  %v10327_v26 = vld [vmem:[#allocation105_spill] sm:$0xff] }
 0x1cd   :  { %1315 = vmatpush1.msra.mxu1 %v10311_v29  ;;  %6524 = vmatpush3.msra.mxu0 %v10312_v32  ;;  %v10328_v32 = vld [vmem:[#allocation104_spill] sm:$0xff] }
 0x1ce   :  { %1316 = vmatprep.subr.mxu1 %v10313_v35  ;;  %6525 = vmatprep.subr.mxu0 %v10261_v38 }
 0x1cf   :  { %1317 = vmatpush1.msra.mxu1 %v10314_v62  ;;  %6526 = vmatpush3.msra.mxu0 %v10315_v0 }
 0x1d0   :  { %1318 = vmatprep.subr.mxu1 %v10316_v57  ;;  %6527 = vmatprep.subr.mxu0 %v10261_v38  ;;  %v10329_v57 = vld [vmem:[#allocation106_spill] sm:$0xff] }
 0x1d1   :  { %1319 = vmatpush1.msra.mxu1 %v10317_v7  ;;  %6528 = vmatpush3.msra.mxu0 %v10318_v55 }
 0x1d2   :  { %1320 = vmatprep.subr.mxu1 %v10319_v50  ;;  %6529 = vmatprep.subr.mxu0 %v10261_v38 }
 0x1d3   :  { %1321 = vmatpush1.msra.mxu1 %v10320_v8  ;;  %6530 = vmatpush3.msra.mxu0 %v10321_v10 }
 0x1d4   :  { %1322 = vmatprep.subr.mxu1 %v10322_v12  ;;  %6531 = vmatprep.subr.mxu0 %v10261_v38 }
 0x1d5   :  { %1323 = vmatpush1.msra.mxu1 %v10323_v14  ;;  %1356 = vmatprep.mubr.f32.mxu1 %v10261_v38 }
 0x1d6   :  { %6532 = vmatpush3.msra.mxu0 %v10324_v16  ;;  %6533 = vmatprep.mubr.msk.f32.mxu0 %vm7525_vm2, %v10261_v38 }
 0x1d7   :  { %1435 = vmatprep.subr.mxu1 %v10325_v17  ;;  %6536 = vmatprep.subr.mxu0 %v10261_v38 }
 0x253   :  { %v985_v18 = vpop.f32.mrf.mxu1  ;;  %v1056_v19 = vpop.f32.mrf.mxu0 }
 0x254   :  { %v986_v21 = vadd.f32 %v985_v18, %v10326_v20  ;;  %v1057_v12 = vadd.f32 %v1056_v19, %v8099_v48  ;;  %v10330_v18 = vld [vmem:[#allocation107_spill] sm:$0xff] }
 0x255   :  { %v987_v22 = vpop.f32.mrf.mxu1  ;;  %v6465_v23 = vpop.f32.mrf.mxu0 }
 0x256   :  { %v1204_v24 = vrot.slane %v986_v21, 6  ;;  %v988_v29 = vadd.f32 %v987_v22, %v10327_v26  ;;  %v1224_v22 = vrot.slane %v1057_v12, 6 }
 0x258   :  { %v1206_v35 = vadd.f32 %v1204_v24, %v10328_v32  ;;  %v1214_v0 = vrot.slane %v988_v29, 6 }
 0x25a   :  { %v5986_v62 = vmul.f32 -1.442695, %v1206_v35  ;;  %v1216_v7 = vadd.f32 %v1214_v0, %v10329_v57 }
 0x25c   :  { %6967 = vpow2.f32 %v5986_v62  ;;  %v5987_v55 = vmul.f32 -1.442695, %v1216_v7 }
 0x25e   :  { %6969 = vpow2.f32 %v5987_v55 }
 0x269   :  { %v6968_v50 = vpop.eup %6967 }
 0x26a   :  { %v1210_v8 = vadd.f32 1.0, %v6968_v50 }
 0x26b   :  { %v6970_v10 = vpop.eup %6969 }
 0x26c   :  { %6971 = vrcp.f32 %v1210_v8  ;;  %v1220_v14 = vadd.f32 1.0, %v6970_v10 }
 0x26e   :  { %6973 = vrcp.f32 %v1220_v14 }
 0x276   :  { %v1128_v16 = vpop.f32.mrf.mxu1  ;;  %v1199_v17 = vpop.f32.mrf.mxu0 }
 0x277   :  { %v1129_v21 = vadd.f32 %v1128_v16, %v10330_v18  ;;  %v1232_v16 = vrot.slane %v8116_v37, 6  ;;  %v8293_v37 = vld [vmem:[#allocation11 + $0x158] sm:$0xff] }
 0x278   :  { %v1130_v23 = vpop.f32.mrf.mxu1  ;;  %v6500_v24 = vpop.f32.mrf.mxu0 }
 0x279   :  { %v6972_v29 = vpop.eup %6971  ;;  %v1237_v35 = vrot.slane %v1129_v21, 4  ;;  %v1131_v62 = vadd.f32 %v1130_v23, %v8102_v2 }
 0x27a   :  { %v1226_v0 = vmul.f32 %v6972_v29, %v1224_v22 }
 0x27b   :  { %v1239_v7 = vadd.f32 %v1237_v35, %v8106_v39  ;;  %v1247_v19 = vrot.slane %v1131_v62, 4  ;;  %v6974_v12 = vpop.eup %6973 }
 0x27c   :  { %v1227_v55 = vadd.f32 %v1226_v0, %v8109_v28  ;;  %v1229_v21 = vsub.f32 1.0, %v6974_v12  ;;  %v1234_v14 = vmul.f32 %v6974_v12, %v1232_v16  ;;  %v8386_v16 = vld [vmem:[#allocation8 + $0x150] sm:$0xff] }
 0x27d   :  { %v5988_v50 = vmul.f32 -1.442695, %v1239_v7  ;;  %v1249_v8 = vadd.f32 %v1247_v19, %v8113_v33 }
 0x27e   :  { %6975 = vtanh.f32 %v1227_v55  ;;  %v8289_v55 = vld [vmem:[#allocation11 + $0x168] sm:$0xff] }
 0x27f   :  { %6977 = vpow2.f32 %v5988_v50  ;;  %v5989_v10 = vmul.f32 -1.442695, %v1249_v8  ;;  %v8297_v50 = vld [vmem:[#allocation11 + $0x150] sm:$0xff]  ;;  %v8301_v8 = vld [vmem:[#allocation11 + $0x140] sm:$0xff] }
 0x281   :  { %6979 = vpow2.f32 %v5989_v10  ;;  %v8306_v10 = vld [vmem:[#allocation11 + $0x138] sm:$0xff] }
 0x28b   :  { %v6976_v24 = vpop.eup %6975 }
 0x28c   :  { %v6978_v23 = vpop.eup %6977  ;;  %v1230_v22 = vmul.f32 %v6976_v24, %v1229_v21  ;;  %v8389_v21 = vld [vmem:[#allocation8 + $0x160] sm:$0xff] }
 0x28d   :  { %v1243_v29 = vadd.f32 1.0, %v6978_v23  ;;  %v8392_v24 = vld [vmem:[#allocation8 + $0x140] sm:$0xff]  ;;  %v8396_v23 = vld [vmem:[#allocation8 + $0x138] sm:$0xff] }
 0x28e   :  { %v8284_v35 = vadd.f32 %v1234_v14, %v1230_v22  ;;  %v6980_v19 = vpop.eup %6979  ;;  %v8399_v22 = vld [vmem:[#allocation8 + $0x148] sm:$0xff] }
 0x28f   :  { %6981 = vrcp.f32 %v1243_v29  ;;  %v8402_v14 = vld [vmem:[#allocation8 + $0x128] sm:$0xff]  ;;  %v8406_v29 = vld [vmem:[#allocation8 + $0x120] sm:$0xff] }
 0x290   :  { %v1275_v62 = vrot.slane %v8284_v35, %v8191_v31  ;;  %v1290_v0 = vrot.slane %v8284_v35, 2 }
 0x292   :  { %v1276_v7 = vcombine.high %v1275_v62, %v1275_v62  ;;  %1357 = vmatmul.mubr.f32.vlgmr.msra.gmra.mxu1 %v1290_v0  ;;  %6534 = vmatmul.mubr.f32.vlgmr.msra.gmra.mxu0 %v1290_v0  ;;  %v8409_v62 = vld [vmem:[#allocation8 + $0x130] sm:$0xff] }
 0x293   :  { %1436 = vmatpush1.msra.mxu1 %v8289_v55  ;;  %6537 = vmatpush3.msra.mxu0 %v7859_v3  ;;  %v1200_v3 = vadd.f32 %v1199_v17, %v8119_v34  ;;  %v8412_v0 = vld [vmem:[#allocation8 + $0x110] sm:$0xff] }
 0x294   :  { %1278 = vst [vmem:[#allocation2 + $0x18] sm:$0x3] %v1276_v7  ;;  %1437 = vmatprep.subr.mxu1 %v8293_v37  ;;  %6538 = vmatprep.subr.mxu0 %v10261_v38  ;;  %v8416_v7 = vld [vmem:[#allocation8 + $0x108] sm:$0xff] }
 0x295   :  { %1438 = vmatpush1.msra.mxu1 %v8297_v50  ;;  %6539 = vmatpush3.msra.mxu0 %v7869_v15  ;;  %v1253_v15 = vadd.f32 1.0, %v6980_v19  ;;  %v1257_v17 = vrot.slane %v1200_v3, 4  ;;  %v8419_v19 = vld [vmem:[#allocation8 + $0x118] sm:$0xff] }
 0x296   :  { %1439 = vmatprep.subr.mxu1 %v8301_v8  ;;  %6540 = vmatprep.subr.mxu0 %v10261_v38  ;;  %v8422_v3 = vld [vmem:[#allocation8 + $0xf8] sm:$0xff] }
 0x297   :  { %1440 = vmatpush1.msra.mxu1 %v8306_v10  ;;  %6541 = vmatpush3.msra.mxu0 %v10264_v53  ;;  %6983 = vrcp.f32 %v1253_v15  ;;  %v8426_v15 = vld [vmem:[#allocation8 + $0xf0] sm:$0xff] }
 0x298   :  { %1441 = vmatprep.subr.mxu1 %v10265_v25  ;;  %6542 = vmatprep.subr.mxu0 %v10261_v38  ;;  %10344 = vst [vmem:[#allocation74_spill] sm:$0xff] %v8426_v15 }
 0x299   :  { %1442 = vmatpush1.msra.mxu1 %v10266_v13  ;;  %6543 = vmatpush3.msra.mxu0 %v10267_v56  ;;  %v10333_v13 = vld [vmem:[#allocation73_spill] sm:$0xff] }
 0x29a   :  { %1443 = vmatprep.subr.mxu1 %v10268_v27  ;;  %6544 = vmatprep.subr.mxu0 %v10261_v38  ;;  %v10335_v56 = vld [vmem:[#allocation89_spill] sm:$0xff]  ;;  %v10336_v27 = vld [vmem:[#allocation76_spill] sm:$0xff] }
 0x29b   :  { %1444 = vmatpush1.msra.mxu1 %v10269_v36  ;;  %6545 = vmatpush3.msra.mxu0 %v10270_v42  ;;  %v10338_v42 = vld [vmem:[#allocation79_spill] sm:$0xff] }
 0x29c   :  { %v6982_v12 = vpop.eup %6981  ;;  %1445 = vmatprep.subr.mxu1 %v10271_v41  ;;  %6546 = vmatprep.subr.mxu0 %v10261_v38  ;;  %v10339_v41 = vld [vmem:[#allocation81_spill] sm:$0xff] }
 0x29d   :  { %v1259_v53 = vmul.f32 %v6982_v12, %v1257_v17  ;;  %1446 = vmatpush1.msra.mxu1 %v10273_v43  ;;  %6547 = vmatpush3.msra.mxu0 %v7909_v60  ;;  %v10332_v60 = vld [vmem:[#allocation88_spill] sm:$0xff]  ;;  %v10340_v43 = vld [vmem:[#allocation91_spill] sm:$0xff] }
 0x29e   :  { %1447 = vmatprep.subr.mxu1 %v10274_v45  ;;  %6548 = vmatprep.subr.mxu0 %v10261_v38  ;;  %v10341_v45 = vld [vmem:[#allocation82_spill] sm:$0xff]  ;;  %v8429_v17 = vld [vmem:[#allocation8 + $0x100] sm:$0xff] }
 0x29f   :  { %v1260_v25 = vadd.f32 %v1259_v53, %v8147_v40  ;;  %1448 = vmatpush1.msra.mxu1 %v10275_v61  ;;  %6549 = vmatpush3.msra.mxu0 %v7919_v59  ;;  %v10331_v59 = vld [vmem:[#allocation72_spill] sm:$0xff]  ;;  %10345 = vst [vmem:[#allocation56_spill] sm:$0xff] %v8429_v17  ;;  %v8432_v12 = vld [vmem:[#allocation8 + $0xe0] sm:$0xff]  ;;  %v8436_v53 = vld [vmem:[#allocation8 + $0xd8] sm:$0xff] }
 0x2a0   :  { %1449 = vmatprep.subr.mxu1 %v10276_v44  ;;  %6550 = vmatprep.subr.mxu0 %v10261_v38  ;;  %v10342_v61 = vld [vmem:[#allocation92_spill] sm:$0xff]  ;;  %v1264_v44 = vrot.slane %v8195_v63, 2  ;;  %10346 = vst [vmem:[#allocation58_spill] sm:$0xff] %v8432_v12  ;;  %10347 = vst [vmem:[#allocation77_spill] sm:$0xff] %v8436_v53 }
 0x2a1   :  { %6985 = vtanh.f32 %v1260_v25  ;;  %1450 = vmatpush1.msra.mxu1 %v10277_v47  ;;  %6551 = vmatpush3.msra.mxu0 %v7929_v58  ;;  %v10334_v58 = vld [vmem:[#allocation75_spill] sm:$0xff]  ;;  %v8439_v25 = vld [vmem:[#allocation8 + $0xe8] sm:$0xff] }
 0x2a2   :  { %1451 = vmatprep.subr.mxu1 %v10278_v54  ;;  %6552 = vmatprep.subr.mxu0 %v10261_v38  ;;  %v10343_v54 = vld [vmem:[#allocation84_spill] sm:$0xff]  ;;  %10348 = vst [vmem:[#allocation59_spill] sm:$0xff] %v8439_v25 }
 0x2a3   :  { %1452 = vmatpush1.msra.mxu1 %v10279_v46  ;;  %6553 = vmatpush3.msra.mxu0 %v7937_v5  ;;  %v10337_v5 = vld [vmem:[#allocation90_spill] sm:$0xff] }
 0x2a4   :  { %1453 = vmatprep.subr.mxu1 %v10280_v49  ;;  %6554 = vmatprep.subr.mxu0 %v10261_v38  ;;  %v6984_v36 = vpop.eup %6983 }
 0x2a5   :  { %1454 = vmatpush1.msra.mxu1 %v10331_v59  ;;  %6555 = vmatpush3.msra.mxu0 %v10332_v60  ;;  %v1266_v49 = vmul.f32 %v6984_v36, %v1264_v44  ;;  %v8442_v59 = vld [vmem:[#allocation8 + $0xc8] sm:$0xff]  ;;  %v8446_v60 = vld [vmem:[#allocation8 + $0xc0] sm:$0xff]  ;;  %v8489_v44 = vld [vmem:[#allocation8 + $0x70] sm:$0xff] }
 0x2a6   :  { %1455 = vmatprep.subr.mxu1 %v10333_v13  ;;  %6556 = vmatprep.subr.mxu0 %v10261_v38  ;;  %10349 = vst [vmem:[#allocation60_spill] sm:$0xff] %v8442_v59  ;;  %10350 = vst [vmem:[#allocation80_spill] sm:$0xff] %v8446_v60  ;;  %v8449_v13 = vld [vmem:[#allocation8 + $0xd0] sm:$0xff] }
 0x2a7   :  { %1456 = vmatpush1.msra.mxu1 %v10334_v58  ;;  %6557 = vmatpush3.msra.mxu0 %v10335_v56  ;;  %10351 = vst [vmem:[#allocation62_spill] sm:$0xff] %v8449_v13  ;;  %v8452_v58 = vld [vmem:[#allocation8 + $0xb0] sm:$0xff]  ;;  %v8456_v56 = vld [vmem:[#allocation8 + $0xa8] sm:$0xff]  ;;  %10363 = vst [vmem:[#allocation86_spill] sm:$0xff] %v8489_v44 }
 0x2a8   :  { %1457 = vmatprep.subr.mxu1 %v10336_v27  ;;  %6558 = vmatprep.subr.mxu0 %v10261_v38  ;;  %10352 = vst [vmem:[#allocation63_spill] sm:$0xff] %v8452_v58  ;;  %10353 = vst [vmem:[#allocation64_spill] sm:$0xff] %v8456_v56  ;;  %v8459_v27 = vld [vmem:[#allocation8 + $0xb8] sm:$0xff] }
 0x2a9   :  { %1458 = vmatpush1.msra.mxu1 %v10285_v52  ;;  %6559 = vmatpush3.msra.mxu0 %v10337_v5  ;;  %v1262_v52 = vsub.f32 1.0, %v6984_v36  ;;  %10354 = vst [vmem:[#allocation66_spill] sm:$0xff] %v8459_v27  ;;  %v8462_v5 = vld [vmem:[#allocation8 + $0x98] sm:$0xff]  ;;  %v8466_v36 = vld [vmem:[#allocation8 + $0x90] sm:$0xff] }
 0x2aa   :  { %1459 = vmatprep.subr.mxu1 %v10338_v42  ;;  %6560 = vmatprep.subr.mxu0 %v10261_v38  ;;  %10355 = vst [vmem:[#allocation67_spill] sm:$0xff] %v8462_v5  ;;  %10356 = vst [vmem:[#allocation68_spill] sm:$0xff] %v8466_v36  ;;  %v8469_v42 = vld [vmem:[#allocation8 + $0xa0] sm:$0xff] }
 0x2ab   :  { %1460 = vmatpush1.msra.mxu1 %v10339_v41  ;;  %6561 = vmatpush3.msra.mxu0 %v10340_v43  ;;  %10357 = vst [vmem:[#allocation69_spill] sm:$0xff] %v8469_v42  ;;  %v8472_v41 = vld [vmem:[#allocation8 + $0x80] sm:$0xff]  ;;  %v8476_v43 = vld [vmem:[#allocation8 + $0x78] sm:$0xff] }
 0x2ac   :  { %1461 = vmatprep.subr.mxu1 %v10341_v45  ;;  %6562 = vmatprep.subr.mxu0 %v10261_v38  ;;  %10358 = vst [vmem:[#allocation70_spill] sm:$0xff] %v8472_v41  ;;  %10359 = vst [vmem:[#allocation71_spill] sm:$0xff] %v8476_v43  ;;  %v8479_v45 = vld [vmem:[#allocation8 + $0x88] sm:$0xff] }
 0x2ad   :  { %1462 = vmatpush1.msra.mxu1 %v10289_v30  ;;  %6563 = vmatpush3.msra.mxu0 %v10342_v61  ;;  %v8372_v30 = vld [vmem:[#allocation8 + $0x170] sm:$0xff]  ;;  %10360 = vst [vmem:[#allocation78_spill] sm:$0xff] %v8479_v45  ;;  %v8482_v61 = vld [vmem:[#allocation8 + $0x68] sm:$0xff] }
 0x2ae   :  { %v6986_v47 = vpop.eup %6985  ;;  %1463 = vmatprep.subr.mxu1 %v10343_v54  ;;  %6564 = vmatprep.subr.mxu0 %v10261_v38  ;;  %10361 = vst [vmem:[#allocation83_spill] sm:$0xff] %v8482_v61  ;;  %v8496_v54 = vld [vmem:[#allocation8 + $0x48] sm:$0xff] }
 0x2af   :  { %1464 = vmatpush1.msra.mxu1 %v10290_v1  ;;  %6565 = vmatpush3.msra.mxu0 %v7973_v9  ;;  %v1263_v46 = vmul.f32 %v6986_v47, %v1262_v52  ;;  %v8486_v52 = vld [vmem:[#allocation8 + $0x60] sm:$0xff]  ;;  %v8492_v47 = vld [vmem:[#allocation8 + $0x50] sm:$0xff]  ;;  %10365 = vst [vmem:[#allocation25_spill] sm:$0xff] %v8496_v54 }
 0x2b0   :  { %1465 = vmatprep.subr.mxu1 %v10291_v4  ;;  %6566 = vmatprep.subr.mxu0 %v10261_v38  ;;  %v8382_v4 = vld [vmem:[#allocation8 + $0x158] sm:$0xff]  ;;  %10362 = vst [vmem:[#allocation85_spill] sm:$0xff] %v8486_v52  ;;  %10364 = vst [vmem:[#allocation87_spill] sm:$0xff] %v8492_v47 }
 0x2b1   :  { %1466 = vmatpush1.msra.mxu1 %v10293_v6  ;;  %1499 = vmatprep.mubr.f32.mxu1 %v10261_v38  ;;  %v8364_v63 = vadd.f32 %v1266_v49, %v1263_v46  ;;  %v8376_v6 = vld [vmem:[#allocation8 + $0x168] sm:$0xff]  ;;  %v8499_v46 = vld [vmem:[#allocation8 + $0x58] sm:$0xff] }
 0x2b2   :  { %6567 = vmatpush3.msra.mxu0 %v7979_v11  ;;  %6568 = vmatprep.mubr.msk.f32.mxu0 %vm7525_vm2, %v10261_v38  ;;  %v8379_v11 = vld [vmem:[#allocation8 + $0x178] sm:$0xff]  ;;  %10366 = vst [vmem:[#allocation26_spill] sm:$0xff] %v8499_v46 }
 0x2b3   :  { %v1280_v9 = vcombine.high %v8364_v63, %v8364_v63  ;;  %v1433_v1 = vrot.slane %v8364_v63, 4  ;;  %1664 = vmatprep.subr.mxu1 %v8372_v30  ;;  %6571 = vmatprep.subr.mxu0 %v10261_v38  ;;  %v8502_v49 = vld [vmem:[#allocation8 + $0x38] sm:$0xff] }
 0x2b4   :  { %10367 = vst [vmem:[#allocation27_spill] sm:$0xff] %v8502_v49 }
 0x2b5   :  { %5990 = vst.sshfl [vmem:[#allocation2 + $0x6] sm:$0x3 pattern:$0x76325410] %v1280_v9  ;;  %1500 = vmatmul.mubr.f32.vlgmr.msra.gmra.mxu1 %v1433_v1  ;;  %6569 = vmatmul.mubr.f32.vlgmr.msra.gmra.mxu0 %v1433_v1  ;;  %v8506_v9 = vld [vmem:[#allocation8 + $0x30] sm:$0xff]  ;;  %v8509_v1 = vld [vmem:[#allocation8 + $0x40] sm:$0xff] }
 0x2b6   :  { %1665 = vmatpush1.msra.mxu1 %v8376_v6  ;;  %6572 = vmatpush3.msra.mxu0 %v8379_v11  ;;  %10368 = vst [vmem:[#allocation37_spill] sm:$0xff] %v8506_v9  ;;  %10369 = vst [vmem:[#allocation28_spill] sm:$0xff] %v8509_v1 }
 0x2b7   :  { %1666 = vmatprep.subr.mxu1 %v8382_v4  ;;  %6573 = vmatprep.subr.mxu0 %v10261_v38 }
 0x2b8   :  { %1667 = vmatpush1.msra.mxu1 %v8386_v16  ;;  %6574 = vmatpush3.msra.mxu0 %v8389_v21 }
 0x2b9   :  { %1668 = vmatprep.subr.mxu1 %v8392_v24  ;;  %6575 = vmatprep.subr.mxu0 %v10261_v38 }
 0x2ba   :  { %1669 = vmatpush1.msra.mxu1 %v8396_v23  ;;  %6576 = vmatpush3.msra.mxu0 %v8399_v22 }
 0x2bb   :  { %1670 = vmatprep.subr.mxu1 %v8402_v14  ;;  %6577 = vmatprep.subr.mxu0 %v10261_v38 }
 0x2bc   :  { %1671 = vmatpush1.msra.mxu1 %v8406_v29  ;;  %6578 = vmatpush3.msra.mxu0 %v8409_v62 }
 0x2bd   :  { %1672 = vmatprep.subr.mxu1 %v8412_v0  ;;  %6579 = vmatprep.subr.mxu0 %v10261_v38 }
 0x2be   :  { %1673 = vmatpush1.msra.mxu1 %v8416_v7  ;;  %6580 = vmatpush3.msra.mxu0 %v8419_v19 }
 0x2bf   :  { %1674 = vmatprep.subr.mxu1 %v8422_v3  ;;  %6581 = vmatprep.subr.mxu0 %v10261_v38 }
 0x2c0   :  { %1675 = vmatpush1.msra.mxu1 %v8426_v15  ;;  %6582 = vmatpush3.msra.mxu0 %v8429_v17 }
 0x2c1   :  { %1676 = vmatprep.subr.mxu1 %v8432_v12  ;;  %6583 = vmatprep.subr.mxu0 %v10261_v38 }
 0x2c2   :  { %1677 = vmatpush1.msra.mxu1 %v8436_v53  ;;  %6584 = vmatpush3.msra.mxu0 %v8439_v25 }
 0x2c3   :  { %1678 = vmatprep.subr.mxu1 %v8442_v59  ;;  %6585 = vmatprep.subr.mxu0 %v10261_v38 }
 0x2c4   :  { %1679 = vmatpush1.msra.mxu1 %v8446_v60  ;;  %6586 = vmatpush3.msra.mxu0 %v8449_v13 }
 0x2c5   :  { %1680 = vmatprep.subr.mxu1 %v8452_v58  ;;  %6587 = vmatprep.subr.mxu0 %v10261_v38 }
 0x2c6   :  { %1681 = vmatpush1.msra.mxu1 %v8456_v56  ;;  %6588 = vmatpush3.msra.mxu0 %v8459_v27 }
 0x2c7   :  { %1682 = vmatprep.subr.mxu1 %v8462_v5  ;;  %6589 = vmatprep.subr.mxu0 %v10261_v38 }
 0x2c8   :  { %1683 = vmatpush1.msra.mxu1 %v8466_v36  ;;  %6590 = vmatpush3.msra.mxu0 %v8469_v42 }
 0x2c9   :  { %1684 = vmatprep.subr.mxu1 %v8472_v41  ;;  %6591 = vmatprep.subr.mxu0 %v10261_v38 }
 0x2ca   :  { %1685 = vmatpush1.msra.mxu1 %v8476_v43  ;;  %6592 = vmatpush3.msra.mxu0 %v8479_v45 }
 0x2cb   :  { %1686 = vmatprep.subr.mxu1 %v8482_v61  ;;  %6593 = vmatprep.subr.mxu0 %v10261_v38 }
 0x2cc   :  { %1687 = vmatpush1.msra.mxu1 %v8486_v52  ;;  %6594 = vmatpush3.msra.mxu0 %v8489_v44 }
 0x2cd   :  { %1688 = vmatprep.subr.mxu1 %v8492_v47  ;;  %6595 = vmatprep.subr.mxu0 %v10261_v38 }
 0x2ce   :  { %1689 = vmatpush1.msra.mxu1 %v8496_v54  ;;  %6596 = vmatpush3.msra.mxu0 %v8499_v46  ;;  %v8516_v46 = vld [vmem:[#allocation8 + $0x18] sm:$0xff]  ;;  %v8522_v54 = vld [vmem:[#allocation8 + $0x8] sm:$0xff] }
 0x2cf   :  { %1690 = vmatprep.subr.mxu1 %v8502_v49  ;;  %6597 = vmatprep.subr.mxu0 %v10261_v38  ;;  %10371 = vst [vmem:[#allocation40_spill] sm:$0xff] %v8516_v46  ;;  %v8519_v49 = vld [vmem:[#allocation8 + $0x28] sm:$0xff]  ;;  %10373 = vst [vmem:[#allocation31_spill] sm:$0xff] %v8522_v54 }
 0x2d0   :  { %1691 = vmatpush1.msra.mxu1 %v8506_v9  ;;  %6598 = vmatpush3.msra.mxu0 %v8509_v1  ;;  %10372 = vst [vmem:[#allocation30_spill] sm:$0xff] %v8519_v49  ;;  %v8526_v1 = vld [vmem:[#allocation8] sm:$0xff] }
 0x2d1   :  { %1692 = vmatprep.subr.mxu1 %v8512_v51  ;;  %6599 = vmatprep.subr.mxu0 %v10261_v38  ;;  %10374 = vst [vmem:[#allocation43_spill] sm:$0xff] %v8526_v1  ;;  %v8530_v51 = vld [vmem:[#allocation8 + $0x10] sm:$0xff] }
 0x2d2   :  { %1693 = vmatpush1.msra.mxu1 %v8516_v46  ;;  %6600 = vmatpush3.msra.mxu0 %v8519_v49  ;;  %10375 = vst [vmem:[#allocation32_spill] sm:$0xff] %v8530_v51  ;;  %v8535_v49 = vld [vmem:[#allocation11 + $0x170] sm:$0xff] }
 0x2d3   :  { %1694 = vmatprep.subr.mxu1 %v8522_v54  ;;  %6601 = vmatprep.subr.mxu0 %v10261_v38  ;;  %10376 = vst [vmem:[#allocation33_spill] sm:$0xff] %v8535_v49 }
 0x2d4   :  { %1695 = vmatpush1.msra.mxu1 %v8526_v1  ;;  %1728 = vmatprep.mubr.f32.mxu1 %v10261_v38 }
 0x2d5   :  { %6602 = vmatpush3.msra.mxu0 %v8530_v51  ;;  %6603 = vmatprep.mubr.msk.f32.mxu0 %vm7525_vm2, %v10261_v38 }
 0x2d6   :  { %1807 = vmatprep.subr.mxu1 %v8535_v49  ;;  %6606 = vmatprep.subr.mxu0 %v10261_v38 }
 0x352   :  { %v1358_v54 = vpop.f32.mrf.mxu1  ;;  %v1429_v46 = vpop.f32.mrf.mxu0 }
 0x353   :  { %v1359_v9 = vadd.f32 %v1358_v54, %v10326_v20  ;;  %v1430_v54 = vadd.f32 %v1429_v46, %v8099_v48 }
 0x354   :  { %v1360_v1 = vpop.f32.mrf.mxu1  ;;  %v6535_v47 = vpop.f32.mrf.mxu0 }
 0x355   :  { %v1577_v44 = vrot.slane %v1359_v9, 4  ;;  %v1361_v52 = vadd.f32 %v1360_v1, %v10327_v26  ;;  %v1597_v26 = vrot.slane %v1430_v54, 4 }
 0x357   :  { %v1579_v51 = vadd.f32 %v1577_v44, %v10328_v32  ;;  %v1587_v45 = vrot.slane %v1361_v52, 4 }
 0x359   :  { %v5991_v61 = vmul.f32 -1.442695, %v1579_v51  ;;  %v1589_v43 = vadd.f32 %v1587_v45, %v10329_v57 }
 0x35b   :  { %6987 = vpow2.f32 %v5991_v61  ;;  %v5992_v41 = vmul.f32 -1.442695, %v1589_v43 }
 0x35d   :  { %6989 = vpow2.f32 %v5992_v41 }
 0x368   :  { %v6988_v49 = vpop.eup %6987 }
 0x369   :  { %v1583_v42 = vadd.f32 1.0, %v6988_v49 }
 0x36a   :  { %v6990_v36 = vpop.eup %6989 }
 0x36b   :  { %6991 = vrcp.f32 %v1583_v42  ;;  %v1593_v20 = vadd.f32 1.0, %v6990_v36 }
 0x36d   :  { %6993 = vrcp.f32 %v1593_v20 }
 0x375   :  { %v1501_v47 = vpop.f32.mrf.mxu1  ;;  %v1572_v9 = vpop.f32.mrf.mxu0 }
 0x376   :  { %v1502_v1 = vadd.f32 %v1501_v47, %v10330_v18 }
 0x377   :  { %v1503_v44 = vpop.f32.mrf.mxu1  ;;  %v6570_v51 = vpop.f32.mrf.mxu0 }
 0x378   :  { %v6992_v52 = vpop.eup %6991  ;;  %v1609_v61 = vrot.slane %v1502_v1, 6  ;;  %v1504_v45 = vadd.f32 %v1503_v44, %v8102_v2  ;;  %v1604_v1 = vrot.slane %v8284_v35, 6 }
 0x379   :  { %v1599_v43 = vmul.f32 %v6992_v52, %v1597_v26 }
 0x37a   :  { %v1611_v41 = vadd.f32 %v1609_v61, %v8106_v39  ;;  %v1619_v46 = vrot.slane %v1504_v45, 6  ;;  %v6994_v54 = vpop.eup %6993 }
 0x37b   :  { %v1600_v42 = vadd.f32 %v1599_v43, %v8109_v28  ;;  %v1602_v51 = vsub.f32 1.0, %v6994_v54  ;;  %v1606_v20 = vmul.f32 %v6994_v54, %v1604_v1  ;;  %v8579_v54 = vld [vmem:[#allocation11 + $0x130] sm:$0xff]  ;;  %v8586_v1 = vld [vmem:[#allocation11 + $0x108] sm:$0xff] }
 0x37c   :  { %v5993_v49 = vmul.f32 -1.442695, %v1611_v41  ;;  %v1621_v36 = vadd.f32 %v1619_v46, %v8113_v33  ;;  %v8556_v41 = vld [vmem:[#allocation11 + $0x178] sm:$0xff]  ;;  %v8572_v46 = vld [vmem:[#allocation11 + $0x128] sm:$0xff] }
 0x37d   :  { %6995 = vtanh.f32 %v1600_v42  ;;  %v1573_v42 = vadd.f32 %v1572_v9, %v8119_v34  ;;  %v8582_v9 = vld [vmem:[#allocation11 + $0x110] sm:$0xff] }
 0x37e   :  { %6997 = vpow2.f32 %v5993_v49  ;;  %v5994_v47 = vmul.f32 -1.442695, %v1621_v36  ;;  %v8569_v49 = vld [vmem:[#allocation11 + $0x148] sm:$0xff] }
 0x380   :  { %6999 = vpow2.f32 %v5994_v47  ;;  %v8576_v47 = vld [vmem:[#allocation11 + $0x120] sm:$0xff] }
 0x38a   :  { %v6996_v18 = vpop.eup %6995 }
 0x38b   :  { %v6998_v44 = vpop.eup %6997  ;;  %v1603_v26 = vmul.f32 %v6996_v18, %v1602_v51  ;;  %v8562_v18 = vld [vmem:[#allocation11 + $0x160] sm:$0xff]  ;;  %v1629_v51 = vrot.slane %v1573_v42, 6 }
 0x38c   :  { %v1615_v52 = vadd.f32 1.0, %v6998_v44  ;;  %v8589_v44 = vld [vmem:[#allocation11 + $0x118] sm:$0xff] }
 0x38d   :  { %v8550_v61 = vadd.f32 %v1606_v20, %v1603_v26  ;;  %v7000_v35 = vpop.eup %6999  ;;  %v8592_v20 = vld [vmem:[#allocation11 + $0xf8] sm:$0xff] }
 0x38e   :  { %7001 = vrcp.f32 %v1615_v52  ;;  %v1625_v36 = vadd.f32 1.0, %v7000_v35  ;;  %10377 = vst [vmem:[#allocation46_spill] sm:$0xff] %v8592_v20  ;;  %v8602_v35 = vld [vmem:[#allocation11 + $0xe0] sm:$0xff] }
 0x38f   :  { %v1641_v45 = vcombine.high %v8550_v61, %v8550_v61  ;;  %v1662_v43 = vrot.slane %v8550_v61, 4  ;;  %10380 = vst [vmem:[#allocation49_spill] sm:$0xff] %v8602_v35 }
 0x390   :  { %7003 = vrcp.f32 %v1625_v36  ;;  %v8610_v36 = vld [vmem:[#allocation11 + $0xe8] sm:$0xff] }
 0x391   :  { %5995 = vst.sshfl [vmem:[#allocation2 + $0x14] sm:$0x3 pattern:$0x76325410] %v1641_v45  ;;  %1729 = vmatmul.mubr.f32.vlgmr.msra.gmra.mxu1 %v1662_v43  ;;  %6604 = vmatmul.mubr.f32.vlgmr.msra.gmra.mxu0 %v1662_v43  ;;  %v8596_v45 = vld [vmem:[#allocation11 + $0xf0] sm:$0xff]  ;;  %v8599_v43 = vld [vmem:[#allocation11 + $0x100] sm:$0xff] }
 0x392   :  { %1808 = vmatpush1.msra.mxu1 %v8289_v55  ;;  %6607 = vmatpush3.msra.mxu0 %v8556_v41  ;;  %10378 = vst [vmem:[#allocation34_spill] sm:$0xff] %v8596_v45  ;;  %10379 = vst [vmem:[#allocation35_spill] sm:$0xff] %v8599_v43 }
 0x393   :  { %1809 = vmatprep.subr.mxu1 %v8293_v37  ;;  %6608 = vmatprep.subr.mxu0 %v10261_v38  ;;  %10382 = vst [vmem:[#allocation38_spill] sm:$0xff] %v8610_v36 }
 0x394   :  { %1810 = vmatpush1.msra.mxu1 %v8297_v50  ;;  %6609 = vmatpush3.msra.mxu0 %v8562_v18 }
 0x395   :  { %1811 = vmatprep.subr.mxu1 %v8301_v8  ;;  %6610 = vmatprep.subr.mxu0 %v10261_v38 }
 0x396   :  { %1812 = vmatpush1.msra.mxu1 %v8306_v10  ;;  %6611 = vmatpush3.msra.mxu0 %v8569_v49 }
 0x397   :  { %1813 = vmatprep.subr.mxu1 %v8572_v46  ;;  %6612 = vmatprep.subr.mxu0 %v10261_v38 }
 0x398   :  { %1814 = vmatpush1.msra.mxu1 %v8576_v47  ;;  %6613 = vmatpush3.msra.mxu0 %v8579_v54 }
 0x399   :  { %1815 = vmatprep.subr.mxu1 %v8582_v9  ;;  %6614 = vmatprep.subr.mxu0 %v10261_v38 }
 0x39a   :  { %1816 = vmatpush1.msra.mxu1 %v8586_v1  ;;  %6615 = vmatpush3.msra.mxu0 %v8589_v44 }
 0x39b   :  { %v7002_v26 = vpop.eup %7001  ;;  %1817 = vmatprep.subr.mxu1 %v8592_v20  ;;  %6616 = vmatprep.subr.mxu0 %v10261_v38  ;;  %v8607_v20 = vld [vmem:[#allocation11 + $0xd8] sm:$0xff] }
 0x39c   :  { %v1631_v52 = vmul.f32 %v7002_v26, %v1629_v51  ;;  %1818 = vmatpush1.msra.mxu1 %v8596_v45  ;;  %6617 = vmatpush3.msra.mxu0 %v8599_v43  ;;  %10381 = vst [vmem:[#allocation36_spill] sm:$0xff] %v8607_v20  ;;  %v8613_v51 = vld [vmem:[#allocation11 + $0xc8] sm:$0xff]  ;;  %v8617_v26 = vld [vmem:[#allocation11 + $0xc0] sm:$0xff] }
 0x39d   :  { %1819 = vmatprep.subr.mxu1 %v8602_v35  ;;  %6618 = vmatprep.subr.mxu0 %v10261_v38  ;;  %10383 = vst [vmem:[#allocation52_spill] sm:$0xff] %v8613_v51  ;;  %10384 = vst [vmem:[#allocation39_spill] sm:$0xff] %v8617_v26  ;;  %v8684_v45 = vld [vmem:[#allocation11 + $0x20] sm:$0xff] }
 0x39e   :  { %v1632_v42 = vadd.f32 %v1631_v52, %v8147_v40  ;;  %1820 = vmatpush1.msra.mxu1 %v8607_v20  ;;  %6619 = vmatpush3.msra.mxu0 %v8610_v36  ;;  %v8620_v52 = vld [vmem:[#allocation11 + $0xd0] sm:$0xff]  ;;  %v8627_v36 = vld [vmem:[#allocation11 + $0xa8] sm:$0xff]  ;;  %10404 = vst [vmem:[#allocation76_spill] sm:$0xff] %v8684_v45 }
 0x39f   :  { %1821 = vmatprep.subr.mxu1 %v8613_v51  ;;  %6620 = vmatprep.subr.mxu0 %v10261_v38  ;;  %10385 = vst [vmem:[#allocation41_spill] sm:$0xff] %v8620_v52  ;;  %v8623_v20 = vld [vmem:[#allocation11 + $0xb0] sm:$0xff]  ;;  %10387 = vst [vmem:[#allocation42_spill] sm:$0xff] %v8627_v36  ;;  %v8630_v51 = vld [vmem:[#allocation11 + $0xb8] sm:$0xff] }
 0x3a0   :  { %7005 = vtanh.f32 %v1632_v42  ;;  %1822 = vmatpush1.msra.mxu1 %v8617_v26  ;;  %6621 = vmatpush3.msra.mxu0 %v8620_v52  ;;  %10386 = vst [vmem:[#allocation53_spill] sm:$0xff] %v8623_v20  ;;  %10388 = vst [vmem:[#allocation44_spill] sm:$0xff] %v8630_v51  ;;  %v8633_v42 = vld [vmem:[#allocation11 + $0x98] sm:$0xff]  ;;  %v8637_v52 = vld [vmem:[#allocation11 + $0x90] sm:$0xff] }
 0x3a1   :  { %1823 = vmatprep.subr.mxu1 %v8623_v20  ;;  %6622 = vmatprep.subr.mxu0 %v10261_v38  ;;  %10389 = vst [vmem:[#allocation57_spill] sm:$0xff] %v8633_v42  ;;  %10390 = vst [vmem:[#allocation45_spill] sm:$0xff] %v8637_v52  ;;  %v8640_v20 = vld [vmem:[#allocation11 + $0xa0] sm:$0xff]  ;;  %v8694_v40 = vld [vmem:[#allocation11 + $0x8] sm:$0xff] }
 0x3a2   :  { %1824 = vmatpush1.msra.mxu1 %v8627_v36  ;;  %6623 = vmatpush3.msra.mxu0 %v8630_v51  ;;  %10391 = vst [vmem:[#allocation47_spill] sm:$0xff] %v8640_v20  ;;  %v8643_v26 = vld [vmem:[#allocation11 + $0x80] sm:$0xff]  ;;  %v8647_v51 = vld [vmem:[#allocation11 + $0x78] sm:$0xff]  ;;  %v8653_v36 = vld [vmem:[#allocation11 + $0x68] sm:$0xff] }
 0x3a3   :  { %1825 = vmatprep.subr.mxu1 %v8633_v42  ;;  %6624 = vmatprep.subr.mxu0 %v10261_v38  ;;  %10392 = vst [vmem:[#allocation61_spill] sm:$0xff] %v8643_v26  ;;  %10393 = vst [vmem:[#allocation48_spill] sm:$0xff] %v8647_v51  ;;  %v8650_v42 = vld [vmem:[#allocation11 + $0x88] sm:$0xff] }
 0x3a4   :  { %1826 = vmatpush1.msra.mxu1 %v8637_v52  ;;  %6625 = vmatpush3.msra.mxu0 %v8640_v20  ;;  %10394 = vst [vmem:[#allocation50_spill] sm:$0xff] %v8650_v42  ;;  %10395 = vst [vmem:[#allocation65_spill] sm:$0xff] %v8653_v36  ;;  %v8657_v20 = vld [vmem:[#allocation11 + $0x60] sm:$0xff]  ;;  %v7004_v52 = vpop.eup %7003 }
 0x3a5   :  { %1827 = vmatprep.subr.mxu1 %v8643_v26  ;;  %6626 = vmatprep.subr.mxu0 %v10261_v38  ;;  %10396 = vst [vmem:[#allocation51_spill] sm:$0xff] %v8657_v20  ;;  %v8660_v26 = vld [vmem:[#allocation11 + $0x70] sm:$0xff]  ;;  %v1634_v35 = vsub.f32 1.0, %v7004_v52 }
 0x3a6   :  { %1828 = vmatpush1.msra.mxu1 %v8647_v51  ;;  %6627 = vmatpush3.msra.mxu0 %v8650_v42  ;;  %10397 = vst [vmem:[#allocation104_spill] sm:$0xff] %v8660_v26  ;;  %v8663_v51 = vld [vmem:[#allocation11 + $0x50] sm:$0xff]  ;;  %v8667_v42 = vld [vmem:[#allocation11 + $0x48] sm:$0xff] }
 0x3a7   :  { %1829 = vmatprep.subr.mxu1 %v8653_v36  ;;  %6628 = vmatprep.subr.mxu0 %v10261_v38  ;;  %10398 = vst [vmem:[#allocation106_spill] sm:$0xff] %v8663_v51  ;;  %10399 = vst [vmem:[#allocation72_spill] sm:$0xff] %v8667_v42  ;;  %v8670_v36 = vld [vmem:[#allocation11 + $0x58] sm:$0xff] }
 0x3a8   :  { %1830 = vmatpush1.msra.mxu1 %v8657_v20  ;;  %6629 = vmatpush3.msra.mxu0 %v8660_v26  ;;  %10400 = vst [vmem:[#allocation88_spill] sm:$0xff] %v8670_v36  ;;  %v8673_v20 = vld [vmem:[#allocation11 + $0x38] sm:$0xff]  ;;  %v8677_v26 = vld [vmem:[#allocation11 + $0x30] sm:$0xff] }
 0x3a9   :  { %1831 = vmatprep.subr.mxu1 %v8663_v51  ;;  %6630 = vmatprep.subr.mxu0 %v10261_v38  ;;  %10401 = vst [vmem:[#allocation73_spill] sm:$0xff] %v8673_v20  ;;  %10402 = vst [vmem:[#allocation75_spill] sm:$0xff] %v8677_v26  ;;  %v8680_v51 = vld [vmem:[#allocation11 + $0x40] sm:$0xff] }
 0x3aa   :  { %1832 = vmatpush1.msra.mxu1 %v8667_v42  ;;  %6631 = vmatpush3.msra.mxu0 %v8670_v36  ;;  %10403 = vst [vmem:[#allocation89_spill] sm:$0xff] %v8680_v51  ;;  %v1636_v42 = vrot.slane %v8364_v63, 2  ;;  %v8691_v36 = vld [vmem:[#allocation11 + $0x28] sm:$0xff]  ;;  %v8698_v63 = vld [vmem:[#allocation11] sm:$0xff] }
 0x3ab   :  { %1833 = vmatprep.subr.mxu1 %v8673_v20  ;;  %6632 = vmatprep.subr.mxu0 %v10261_v38  ;;  %v8688_v20 = vld [vmem:[#allocation11 + $0x18] sm:$0xff] }
 0x3ac   :  { %1834 = vmatpush1.msra.mxu1 %v8677_v26  ;;  %6633 = vmatpush3.msra.mxu0 %v8680_v51  ;;  %10405 = vst [vmem:[#allocation90_spill] sm:$0xff] %v8688_v20  ;;  %v1638_v51 = vmul.f32 %v7004_v52, %v1636_v42  ;;  %v10409_v42 = vld [vmem:[#allocation71_spill] sm:$0xff] }
 0x3ad   :  { %v7006_v43 = vpop.eup %7005  ;;  %1835 = vmatprep.subr.mxu1 %v8684_v45  ;;  %6634 = vmatprep.subr.mxu0 %v10261_v38 }
 0x3ae   :  { %1836 = vmatpush1.msra.mxu1 %v8688_v20  ;;  %6635 = vmatpush3.msra.mxu0 %v8691_v36  ;;  %v1635_v26 = vmul.f32 %v7006_v43, %v1634_v35  ;;  %v8702_v20 = vld [vmem:[#allocation11 + $0x10] sm:$0xff] }
 0x3af   :  { %1837 = vmatprep.subr.mxu1 %v8694_v40  ;;  %6636 = vmatprep.subr.mxu0 %v10261_v38 }
 0x3b0   :  { %1838 = vmatpush1.msra.mxu1 %v8698_v63  ;;  %1871 = vmatprep.mubr.f32.mxu1 %v10261_v38  ;;  %v1639_v45 = vadd.f32 %v1638_v51, %v1635_v26  ;;  %v10407_v51 = vld [vmem:[#allocation69_spill] sm:$0xff]  ;;  %v10408_v26 = vld [vmem:[#allocation70_spill] sm:$0xff] }
 0x3b1   :  { %6637 = vmatpush3.msra.mxu0 %v8702_v20  ;;  %6638 = vmatprep.mubr.msk.f32.mxu0 %vm7525_vm2, %v10261_v38 }
 0x3b2   :  { %v1658_v43 = vrot.slane %v1639_v45, %v8191_v31  ;;  %v8708_v35 = vrot.slane %v1639_v45, 2  ;;  %2016 = vmatprep.subr.mxu1 %v8372_v30  ;;  %6641 = vmatprep.subr.mxu0 %v10261_v38  ;;  %v10406_v45 = vld [vmem:[#allocation68_spill] sm:$0xff] }
 0x3b4   :  { %v1659_v52 = vcombine.high %v1658_v43, %v1658_v43  ;;  %1872 = vmatmul.mubr.f32.vlgmr.msra.gmra.mxu1 %v8708_v35  ;;  %6639 = vmatmul.mubr.f32.vlgmr.msra.gmra.mxu0 %v8708_v35  ;;  %v10410_v43 = vld [vmem:[#allocation78_spill] sm:$0xff] }
 0x3b5   :  { %2017 = vmatpush1.msra.mxu1 %v8376_v6  ;;  %6642 = vmatpush3.msra.mxu0 %v8379_v11 }
 0x3b6   :  { %1661 = vst [vmem:[#allocation2 + $0xa] sm:$0x3] %v1659_v52  ;;  %2018 = vmatprep.subr.mxu1 %v8382_v4  ;;  %6643 = vmatprep.subr.mxu0 %v10261_v38  ;;  %v10411_v52 = vld [vmem:[#allocation83_spill] sm:$0xff] }
 0x3b7   :  { %2019 = vmatpush1.msra.mxu1 %v8386_v16  ;;  %6644 = vmatpush3.msra.mxu0 %v8389_v21 }
 0x3b8   :  { %2020 = vmatprep.subr.mxu1 %v8392_v24  ;;  %6645 = vmatprep.subr.mxu0 %v10261_v38 }
 0x3b9   :  { %2021 = vmatpush1.msra.mxu1 %v8396_v23  ;;  %6646 = vmatpush3.msra.mxu0 %v8399_v22 }
 0x3ba   :  { %2022 = vmatprep.subr.mxu1 %v8402_v14  ;;  %6647 = vmatprep.subr.mxu0 %v10261_v38 }
 0x3bb   :  { %2023 = vmatpush1.msra.mxu1 %v8406_v29  ;;  %6648 = vmatpush3.msra.mxu0 %v8409_v62 }
 0x3bc   :  { %2024 = vmatprep.subr.mxu1 %v8412_v0  ;;  %6649 = vmatprep.subr.mxu0 %v10261_v38 }
 0x3bd   :  { %2025 = vmatpush1.msra.mxu1 %v8416_v7  ;;  %6650 = vmatpush3.msra.mxu0 %v8419_v19 }
 0x3be   :  { %2026 = vmatprep.subr.mxu1 %v8422_v3  ;;  %6651 = vmatprep.subr.mxu0 %v10261_v38 }
 0x3bf   :  { %2027 = vmatpush1.msra.mxu1 %v8426_v15  ;;  %6652 = vmatpush3.msra.mxu0 %v8429_v17  ;;  %v10429_v15 = vld [vmem:[#allocation107_spill] sm:$0xff] }
 0x3c0   :  { %2028 = vmatprep.subr.mxu1 %v8432_v12  ;;  %6653 = vmatprep.subr.mxu0 %v10261_v38 }
 0x3c1   :  { %2029 = vmatpush1.msra.mxu1 %v8436_v53  ;;  %6654 = vmatpush3.msra.mxu0 %v8439_v25 }
 0x3c2   :  { %2030 = vmatprep.subr.mxu1 %v8442_v59  ;;  %6655 = vmatprep.subr.mxu0 %v10261_v38 }
 0x3c3   :  { %2031 = vmatpush1.msra.mxu1 %v8446_v60  ;;  %6656 = vmatpush3.msra.mxu0 %v8449_v13  ;;  %v10428_v13 = vld [vmem:[#allocation105_spill] sm:$0xff] }
 0x3c4   :  { %2032 = vmatprep.subr.mxu1 %v8452_v58  ;;  %6657 = vmatprep.subr.mxu0 %v10261_v38 }
 0x3c5   :  { %2033 = vmatpush1.msra.mxu1 %v8456_v56  ;;  %6658 = vmatpush3.msra.mxu0 %v8459_v27  ;;  %v10412_v27 = vld [vmem:[#allocation85_spill] sm:$0xff]  ;;  %v10414_v56 = vld [vmem:[#allocation87_spill] sm:$0xff] }
 0x3c6   :  { %2034 = vmatprep.subr.mxu1 %v8462_v5  ;;  %6659 = vmatprep.subr.mxu0 %v10261_v38  ;;  %v10413_v5 = vld [vmem:[#allocation86_spill] sm:$0xff] }
 0x3c7   :  { %2035 = vmatpush1.msra.mxu1 %v10406_v45  ;;  %6660 = vmatpush3.msra.mxu0 %v10407_v51  ;;  %v10415_v51 = vld [vmem:[#allocation25_spill] sm:$0xff]  ;;  %v10417_v45 = vld [vmem:[#allocation27_spill] sm:$0xff] }
 0x3c8   :  { %2036 = vmatprep.subr.mxu1 %v10408_v26  ;;  %6661 = vmatprep.subr.mxu0 %v10261_v38  ;;  %v10416_v26 = vld [vmem:[#allocation26_spill] sm:$0xff] }
 0x3c9   :  { %2037 = vmatpush1.msra.mxu1 %v10409_v42  ;;  %6662 = vmatpush3.msra.mxu0 %v10410_v43  ;;  %v10418_v43 = vld [vmem:[#allocation37_spill] sm:$0xff] }
 0x3ca   :  { %2038 = vmatprep.subr.mxu1 %v10411_v52  ;;  %6663 = vmatprep.subr.mxu0 %v10261_v38  ;;  %v10419_v52 = vld [vmem:[#allocation28_spill] sm:$0xff]  ;;  %v10420_v42 = vld [vmem:[#allocation29_spill] sm:$0xff] }
 0x3cb   :  { %2039 = vmatpush1.msra.mxu1 %v10412_v27  ;;  %6664 = vmatpush3.msra.mxu0 %v10413_v5  ;;  %v10421_v5 = vld [vmem:[#allocation40_spill] sm:$0xff]  ;;  %v10423_v27 = vld [vmem:[#allocation31_spill] sm:$0xff] }
 0x3cc   :  { %2040 = vmatprep.subr.mxu1 %v10414_v56  ;;  %6665 = vmatprep.subr.mxu0 %v10261_v38  ;;  %v10422_v56 = vld [vmem:[#allocation30_spill] sm:$0xff] }
 0x3cd   :  { %2041 = vmatpush1.msra.mxu1 %v10415_v51  ;;  %6666 = vmatpush3.msra.mxu0 %v10416_v26  ;;  %v10424_v26 = vld [vmem:[#allocation43_spill] sm:$0xff] }
 0x3ce   :  { %2042 = vmatprep.subr.mxu1 %v10417_v45  ;;  %6667 = vmatprep.subr.mxu0 %v10261_v38  ;;  %v10425_v45 = vld [vmem:[#allocation32_spill] sm:$0xff] }
 0x3cf   :  { %2043 = vmatpush1.msra.mxu1 %v10418_v43  ;;  %6668 = vmatpush3.msra.mxu0 %v10419_v52 }
 0x3d0   :  { %2044 = vmatprep.subr.mxu1 %v10420_v42  ;;  %6669 = vmatprep.subr.mxu0 %v10261_v38  ;;  %v10426_v42 = vld [vmem:[#allocation33_spill] sm:$0xff] }
 0x3d1   :  { %2045 = vmatpush1.msra.mxu1 %v10421_v5  ;;  %6670 = vmatpush3.msra.mxu0 %v10422_v56  ;;  %v10427_v56 = vld [vmem:[#allocation103_spill] sm:$0xff] }
 0x3d2   :  { %2046 = vmatprep.subr.mxu1 %v10423_v27  ;;  %6671 = vmatprep.subr.mxu0 %v10261_v38 }
 0x3d3   :  { %2047 = vmatpush1.msra.mxu1 %v10424_v26  ;;  %2080 = vmatprep.mubr.f32.mxu1 %v10261_v38 }
 0x3d4   :  { %6672 = vmatpush3.msra.mxu0 %v10425_v45  ;;  %6673 = vmatprep.mubr.msk.f32.mxu0 %vm7525_vm2, %v10261_v38 }
 0x3d5   :  { %2157 = vmatprep.subr.mxu1 %v10426_v42  ;;  %6676 = vmatprep.subr.mxu0 %v10261_v38 }
 0x451   :  { %v1730_v5 = vpop.f32.mrf.mxu1  ;;  %v1801_v52 = vpop.f32.mrf.mxu0 }
 0x452   :  { %v1731_v43 = vadd.f32 %v1730_v5, %v10427_v56  ;;  %v1802_v5 = vadd.f32 %v1801_v52, %v8099_v48 }
 0x453   :  { %v1732_v27 = vpop.f32.mrf.mxu1  ;;  %v6605_v51 = vpop.f32.mrf.mxu0 }
 0x454   :  { %v1949_v58 = vrot.slane %v1731_v43, 2  ;;  %v1733_v26 = vadd.f32 %v1732_v27, %v10428_v13  ;;  %v1969_v13 = vrot.slane %v1802_v5, 2  ;;  %v1976_v5 = vrot.slane %v8550_v61, 6 }
 0x456   :  { %v1951_v60 = vadd.f32 %v1949_v58, %v10328_v32  ;;  %v1959_v45 = vrot.slane %v1733_v26, 2 }
 0x458   :  { %v5996_v59 = vmul.f32 -1.442695, %v1951_v60  ;;  %v1961_v25 = vadd.f32 %v1959_v45, %v10329_v57 }
 0x45a   :  { %7007 = vpow2.f32 %v5996_v59  ;;  %v5997_v53 = vmul.f32 -1.442695, %v1961_v25 }
 0x45c   :  { %7009 = vpow2.f32 %v5997_v53 }
 0x467   :  { %v7008_v42 = vpop.eup %7007 }
 0x468   :  { %v1955_v12 = vadd.f32 1.0, %v7008_v42 }
 0x469   :  { %v7010_v17 = vpop.eup %7009 }
 0x46a   :  { %7011 = vrcp.f32 %v1955_v12  ;;  %v1965_v56 = vadd.f32 1.0, %v7010_v17 }
 0x46c   :  { %7013 = vrcp.f32 %v1965_v56 }
 0x474   :  { %v1873_v51 = vpop.f32.mrf.mxu1  ;;  %v1944_v43 = vpop.f32.mrf.mxu0 }
 0x475   :  { %v1874_v27 = vadd.f32 %v1873_v51, %v10429_v15 }
 0x476   :  { %v1875_v32 = vpop.f32.mrf.mxu1  ;;  %v6640_v60 = vpop.f32.mrf.mxu0 }
 0x477   :  { %v7012_v58 = vpop.eup %7011  ;;  %v1980_v59 = vadd.f32 %v1874_v27, %v8106_v39  ;;  %v1876_v25 = vadd.f32 %v1875_v32, %v8102_v2 }
 0x478   :  { %v1971_v57 = vmul.f32 %v7012_v58, %v1969_v13 }
 0x479   :  { %v5998_v53 = vmul.f32 -1.442695, %v1980_v59  ;;  %v1987_v17 = vadd.f32 %v1876_v25, %v8113_v33  ;;  %v7014_v26 = vpop.eup %7013  ;;  %v10432_v59 = vld [vmem:[#allocation34_spill] sm:$0xff]  ;;  %v10435_v25 = vld [vmem:[#allocation36_spill] sm:$0xff] }
 0x47a   :  { %v1972_v12 = vadd.f32 %v1971_v57, %v8109_v28  ;;  %v1974_v52 = vsub.f32 1.0, %v7014_v26  ;;  %v1978_v56 = vmul.f32 %v7014_v26, %v1976_v5  ;;  %v10433_v57 = vld [vmem:[#allocation35_spill] sm:$0xff]  ;;  %v10439_v26 = vld [vmem:[#allocation41_spill] sm:$0xff]  ;;  %v10442_v5 = vld [vmem:[#allocation44_spill] sm:$0xff] }
 0x47b   :  { %7015 = vpow2.f32 %v5998_v53  ;;  %v5999_v45 = vmul.f32 -1.442695, %v1987_v17  ;;  %v10434_v53 = vld [vmem:[#allocation49_spill] sm:$0xff]  ;;  %v10437_v17 = vld [vmem:[#allocation52_spill] sm:$0xff] }
 0x47c   :  { %7017 = vtanh.f32 %v1972_v12  ;;  %v10436_v12 = vld [vmem:[#allocation38_spill] sm:$0xff] }
 0x47d   :  { %7019 = vpow2.f32 %v5999_v45  ;;  %v10438_v45 = vld [vmem:[#allocation39_spill] sm:$0xff] }
 0x488   :  { %v7016_v42 = vpop.eup %7015 }
 0x489   :  { %v7018_v51 = vpop.eup %7017  ;;  %v1984_v39 = vadd.f32 1.0, %v7016_v42  ;;  %v10440_v42 = vld [vmem:[#allocation53_spill] sm:$0xff] }
 0x48a   :  { %v1975_v13 = vmul.f32 %v7018_v51, %v1974_v52  ;;  %v7020_v33 = vpop.eup %7019  ;;  %v10441_v52 = vld [vmem:[#allocation42_spill] sm:$0xff]  ;;  %v10443_v51 = vld [vmem:[#allocation57_spill] sm:$0xff] }
 0x48b   :  { %7021 = vrcp.f32 %v1984_v39  ;;  %v1991_v58 = vadd.f32 1.0, %v7020_v33  ;;  %v10444_v39 = vld [vmem:[#allocation45_spill] sm:$0xff] }
 0x48c   :  { %v1979_v27 = vadd.f32 %v1978_v56, %v1975_v13  ;;  %v10445_v13 = vld [vmem:[#allocation47_spill] sm:$0xff]  ;;  %v10446_v56 = vld [vmem:[#allocation61_spill] sm:$0xff] }
 0x48d   :  { %7023 = vrcp.f32 %v1991_v58  ;;  %v10449_v33 = vld [vmem:[#allocation65_spill] sm:$0xff]  ;;  %v10451_v58 = vld [vmem:[#allocation104_spill] sm:$0xff] }
 0x48e   :  { %v2002_v32 = vcombine.high %v1979_v27, %v1979_v27  ;;  %v8792_v60 = vrot.slane %v1979_v27, 6  ;;  %v10447_v27 = vld [vmem:[#allocation48_spill] sm:$0xff] }
 0x490   :  { %v2009_v28 = vrot.slane %v2002_v32, %v8191_v31  ;;  %2081 = vmatmul.mubr.f32.vlgmr.msra.gmra.mxu1 %v8792_v60  ;;  %6674 = vmatmul.mubr.f32.vlgmr.msra.gmra.mxu0 %v8792_v60  ;;  %v10448_v32 = vld [vmem:[#allocation50_spill] sm:$0xff]  ;;  %v10455_v31 = vld [vmem:[#allocation73_spill] sm:$0xff] }
 0x491   :  { %2158 = vmatpush1.msra.mxu1 %v8289_v55  ;;  %6677 = vmatpush3.msra.mxu0 %v8556_v41  ;;  %v1945_v55 = vadd.f32 %v1944_v43, %v8119_v34 }
 0x492   :  { %v2010_v61 = vcombine.high %v2009_v28, %v2009_v28  ;;  %2159 = vmatprep.subr.mxu1 %v8293_v37  ;;  %6678 = vmatprep.subr.mxu0 %v10261_v38 }
 0x493   :  { %2160 = vmatpush1.msra.mxu1 %v8297_v50  ;;  %6679 = vmatpush3.msra.mxu0 %v8562_v18 }
 0x494   :  { %2012 = vst [vmem:[#allocation2 + $0x10] sm:$0x3] %v2010_v61  ;;  %2161 = vmatprep.subr.mxu1 %v8301_v8  ;;  %6680 = vmatprep.subr.mxu0 %v10261_v38  ;;  %v10430_v8 = vld [vmem:[#allocation46_spill] sm:$0xff]  ;;  %v10450_v61 = vld [vmem:[#allocation51_spill] sm:$0xff] }
 0x495   :  { %2162 = vmatpush1.msra.mxu1 %v8306_v10  ;;  %6681 = vmatpush3.msra.mxu0 %v8569_v49  ;;  %v10431_v10 = vld [vmem:[#allocation54_spill] sm:$0xff] }
 0x496   :  { %2163 = vmatprep.subr.mxu1 %v8572_v46  ;;  %6682 = vmatprep.subr.mxu0 %v10261_v38 }
 0x497   :  { %2164 = vmatpush1.msra.mxu1 %v8576_v47  ;;  %6683 = vmatpush3.msra.mxu0 %v8579_v54 }
 0x498   :  { %v7022_v37 = vpop.eup %7021  ;;  %2165 = vmatprep.subr.mxu1 %v8582_v9  ;;  %6684 = vmatprep.subr.mxu0 %v10261_v38 }
 0x499   :  { %v1994_v50 = vmul.f32 %v7022_v37, %v1945_v55  ;;  %2166 = vmatpush1.msra.mxu1 %v8586_v1  ;;  %6685 = vmatpush3.msra.mxu0 %v8589_v44  ;;  %v10452_v55 = vld [vmem:[#allocation106_spill] sm:$0xff]  ;;  %v10453_v37 = vld [vmem:[#allocation72_spill] sm:$0xff] }
 0x49a   :  { %2167 = vmatprep.subr.mxu1 %v10430_v8  ;;  %6686 = vmatprep.subr.mxu0 %v10261_v38  ;;  %v7024_v28 = vpop.eup %7023 }
 0x49b   :  { %v1995_v43 = vadd.f32 %v1994_v50, %v10431_v10  ;;  %2168 = vmatpush1.msra.mxu1 %v10432_v59  ;;  %6687 = vmatpush3.msra.mxu0 %v10433_v57  ;;  %v10454_v50 = vld [vmem:[#allocation88_spill] sm:$0xff]  ;;  %v1997_v10 = vsub.f32 1.0, %v7024_v28 }
 0x49c   :  { %2169 = vmatprep.subr.mxu1 %v10434_v53  ;;  %6688 = vmatprep.subr.mxu0 %v10261_v38 }
 0x49d   :  { %7025 = vtanh.f32 %v1995_v43  ;;  %2170 = vmatpush1.msra.mxu1 %v10435_v25  ;;  %6689 = vmatpush3.msra.mxu0 %v10436_v12 }
 0x49e   :  { %2171 = vmatprep.subr.mxu1 %v10437_v17  ;;  %6690 = vmatprep.subr.mxu0 %v10261_v38 }
 0x49f   :  { %2172 = vmatpush1.msra.mxu1 %v10438_v45  ;;  %6691 = vmatpush3.msra.mxu0 %v10439_v26 }
 0x4a0   :  { %2173 = vmatprep.subr.mxu1 %v10440_v42  ;;  %6692 = vmatprep.subr.mxu0 %v10261_v38 }
 0x4a1   :  { %2174 = vmatpush1.msra.mxu1 %v10441_v52  ;;  %6693 = vmatpush3.msra.mxu0 %v10442_v5 }
 0x4a2   :  { %2175 = vmatprep.subr.mxu1 %v10443_v51  ;;  %6694 = vmatprep.subr.mxu0 %v10261_v38 }
 0x4a3   :  { %2176 = vmatpush1.msra.mxu1 %v10444_v39  ;;  %6695 = vmatpush3.msra.mxu0 %v10445_v13 }
 0x4a4   :  { %2177 = vmatprep.subr.mxu1 %v10446_v56  ;;  %6696 = vmatprep.subr.mxu0 %v10261_v38 }
 0x4a5   :  { %2178 = vmatpush1.msra.mxu1 %v10447_v27  ;;  %6697 = vmatpush3.msra.mxu0 %v10448_v32  ;;  %v10457_v32 = vld [vmem:[#allocation89_spill] sm:$0xff] }
 0x4a6   :  { %2179 = vmatprep.subr.mxu1 %v10449_v33  ;;  %6698 = vmatprep.subr.mxu0 %v10261_v38  ;;  %v10456_v33 = vld [vmem:[#allocation75_spill] sm:$0xff] }
 0x4a7   :  { %2180 = vmatpush1.msra.mxu1 %v10450_v61  ;;  %6699 = vmatpush3.msra.mxu0 %v10451_v58  ;;  %v1999_v58 = vmul.f32 %v7024_v28, %v8708_v35  ;;  %v10476_v35 = vld [vmem:[#allocation78_spill] sm:$0xff]  ;;  %v10477_v28 = vld [vmem:[#allocation83_spill] sm:$0xff] }
 0x4a8   :  { %2181 = vmatprep.subr.mxu1 %v10452_v55  ;;  %6700 = vmatprep.subr.mxu0 %v10261_v38  ;;  %v10458_v55 = vld [vmem:[#allocation76_spill] sm:$0xff] }
 0x4a9   :  { %2182 = vmatpush1.msra.mxu1 %v10453_v37  ;;  %6701 = vmatpush3.msra.mxu0 %v10454_v50  ;;  %v10459_v37 = vld [vmem:[#allocation90_spill] sm:$0xff] }
 0x4aa   :  { %v7026_v43 = vpop.eup %7025  ;;  %2183 = vmatprep.subr.mxu1 %v10455_v31  ;;  %6702 = vmatprep.subr.mxu0 %v10261_v38 }
 0x4ab   :  { %2184 = vmatpush1.msra.mxu1 %v10456_v33  ;;  %6703 = vmatpush3.msra.mxu0 %v10457_v32  ;;  %v1998_v61 = vmul.f32 %v7026_v43, %v1997_v10  ;;  %v10480_v10 = vld [vmem:[#allocation87_spill] sm:$0xff]  ;;  %v10481_v43 = vld [vmem:[#allocation25_spill] sm:$0xff] }
 0x4ac   :  { %2185 = vmatprep.subr.mxu1 %v10458_v55  ;;  %6704 = vmatprep.subr.mxu0 %v10261_v38 }
 0x4ad   :  { %2186 = vmatpush1.msra.mxu1 %v10459_v37  ;;  %6705 = vmatpush3.msra.mxu0 %v8691_v36  ;;  %v8858_v50 = vadd.f32 %v1999_v58, %v1998_v61  ;;  %v10478_v61 = vld [vmem:[#allocation85_spill] sm:$0xff]  ;;  %v10479_v58 = vld [vmem:[#allocation86_spill] sm:$0xff] }
 0x4ae   :  { %2187 = vmatprep.subr.mxu1 %v8694_v40  ;;  %6706 = vmatprep.subr.mxu0 %v10261_v38 }
 0x4af   :  { %2188 = vmatpush1.msra.mxu1 %v8698_v63  ;;  %2221 = vmatprep.mubr.f32.mxu1 %v10261_v38  ;;  %2013 = vst [vmem:[#allocation2 + $0xe] sm:$0x3] %v8858_v50 }
 0x4b0   :  { %6707 = vmatpush3.msra.mxu0 %v8702_v20  ;;  %6708 = vmatprep.mubr.msk.f32.mxu0 %vm7525_vm2, %v10261_v38 }
 0x4b1   :  { %2222 = vmatmul.mubr.f32.vlgmr.msra.gmra.mxu1 %v8858_v50  ;;  %6709 = vmatmul.mubr.f32.vlgmr.msra.gmra.mxu0 %v8858_v50 }
 0x4b2   :  { %2365 = vmatprep.subr.mxu1 %v8372_v30  ;;  %6711 = vmatprep.subr.mxu0 %v10261_v38  ;;  %v10460_v30 = vld [vmem:[#allocation74_spill] sm:$0xff] }
 0x4b3   :  { %2366 = vmatpush1.msra.mxu1 %v8376_v6  ;;  %6712 = vmatpush3.msra.mxu0 %v8379_v11  ;;  %v10461_v6 = vld [vmem:[#allocation56_spill] sm:$0xff]  ;;  %v10462_v11 = vld [vmem:[#allocation58_spill] sm:$0xff] }
 0x4b4   :  { %2367 = vmatprep.subr.mxu1 %v8382_v4  ;;  %6713 = vmatprep.subr.mxu0 %v10261_v38  ;;  %v10463_v4 = vld [vmem:[#allocation77_spill] sm:$0xff] }
 0x4b5   :  { %2368 = vmatpush1.msra.mxu1 %v8386_v16  ;;  %6714 = vmatpush3.msra.mxu0 %v8389_v21  ;;  %v10464_v16 = vld [vmem:[#allocation59_spill] sm:$0xff]  ;;  %v10465_v21 = vld [vmem:[#allocation60_spill] sm:$0xff] }
 0x4b6   :  { %2369 = vmatprep.subr.mxu1 %v8392_v24  ;;  %6715 = vmatprep.subr.mxu0 %v10261_v38  ;;  %v10466_v24 = vld [vmem:[#allocation80_spill] sm:$0xff] }
 0x4b7   :  { %2370 = vmatpush1.msra.mxu1 %v8396_v23  ;;  %6716 = vmatpush3.msra.mxu0 %v8399_v22  ;;  %v10467_v23 = vld [vmem:[#allocation62_spill] sm:$0xff]  ;;  %v10468_v22 = vld [vmem:[#allocation63_spill] sm:$0xff] }
 0x4b8   :  { %2371 = vmatprep.subr.mxu1 %v8402_v14  ;;  %6717 = vmatprep.subr.mxu0 %v10261_v38  ;;  %v10469_v14 = vld [vmem:[#allocation64_spill] sm:$0xff] }
 0x4b9   :  { %2372 = vmatpush1.msra.mxu1 %v8406_v29  ;;  %6718 = vmatpush3.msra.mxu0 %v8409_v62  ;;  %v10470_v29 = vld [vmem:[#allocation66_spill] sm:$0xff]  ;;  %v10471_v62 = vld [vmem:[#allocation67_spill] sm:$0xff] }
 0x4ba   :  { %2373 = vmatprep.subr.mxu1 %v8412_v0  ;;  %6719 = vmatprep.subr.mxu0 %v10261_v38  ;;  %v10472_v0 = vld [vmem:[#allocation68_spill] sm:$0xff] }
 0x4bb   :  { %2374 = vmatpush1.msra.mxu1 %v8416_v7  ;;  %6720 = vmatpush3.msra.mxu0 %v8419_v19  ;;  %v10473_v7 = vld [vmem:[#allocation69_spill] sm:$0xff]  ;;  %v10474_v19 = vld [vmem:[#allocation70_spill] sm:$0xff] }
 0x4bc   :  { %2375 = vmatprep.subr.mxu1 %v8422_v3  ;;  %6721 = vmatprep.subr.mxu0 %v10261_v38  ;;  %v10475_v3 = vld [vmem:[#allocation71_spill] sm:$0xff] }
 0x4bd   :  { %2376 = vmatpush1.msra.mxu1 %v10460_v30  ;;  %6722 = vmatpush3.msra.mxu0 %v10461_v6  ;;  %v10482_v30 = vld [vmem:[#allocation26_spill] sm:$0xff]  ;;  %v10483_v6 = vld [vmem:[#allocation27_spill] sm:$0xff] }
 0x4be   :  { %2377 = vmatprep.subr.mxu1 %v10462_v11  ;;  %6723 = vmatprep.subr.mxu0 %v10261_v38  ;;  %v10484_v11 = vld [vmem:[#allocation37_spill] sm:$0xff] }
 0x4bf   :  { %2378 = vmatpush1.msra.mxu1 %v10463_v4  ;;  %6724 = vmatpush3.msra.mxu0 %v10464_v16  ;;  %v10485_v4 = vld [vmem:[#allocation28_spill] sm:$0xff]  ;;  %v10486_v16 = vld [vmem:[#allocation29_spill] sm:$0xff] }
 0x4c0   :  { %2379 = vmatprep.subr.mxu1 %v10465_v21  ;;  %6725 = vmatprep.subr.mxu0 %v10261_v38  ;;  %v10487_v21 = vld [vmem:[#allocation40_spill] sm:$0xff] }
 0x4c1   :  { %2380 = vmatpush1.msra.mxu1 %v10466_v24  ;;  %6726 = vmatpush3.msra.mxu0 %v10467_v23  ;;  %v10488_v24 = vld [vmem:[#allocation30_spill] sm:$0xff]  ;;  %v10489_v23 = vld [vmem:[#allocation31_spill] sm:$0xff] }
 0x4c2   :  { %2381 = vmatprep.subr.mxu1 %v10468_v22  ;;  %6727 = vmatprep.subr.mxu0 %v10261_v38  ;;  %v10490_v22 = vld [vmem:[#allocation43_spill] sm:$0xff] }
 0x4c3   :  { %2382 = vmatpush1.msra.mxu1 %v10469_v14  ;;  %6728 = vmatpush3.msra.mxu0 %v10470_v29  ;;  %v10491_v14 = vld [vmem:[#allocation32_spill] sm:$0xff]  ;;  %v10492_v29 = vld [vmem:[#allocation33_spill] sm:$0xff] }
 0x4c4   :  { %2383 = vmatprep.subr.mxu1 %v10471_v62  ;;  %6729 = vmatprep.subr.mxu0 %v10261_v38 }
 0x4c5   :  { %2384 = vmatpush1.msra.mxu1 %v10472_v0  ;;  %6730 = vmatpush3.msra.mxu0 %v10473_v7  ;;  %v10493_v7 = vld [vmem:[#allocation103_spill] sm:$0xff] }
 0x4c6   :  { %2385 = vmatprep.subr.mxu1 %v10474_v19  ;;  %6731 = vmatprep.subr.mxu0 %v10261_v38 }
 0x4c7   :  { %2386 = vmatpush1.msra.mxu1 %v10475_v3  ;;  %6732 = vmatpush3.msra.mxu0 %v10476_v35 }
 0x4c8   :  { %2387 = vmatprep.subr.mxu1 %v10477_v28  ;;  %6733 = vmatprep.subr.mxu0 %v10261_v38  ;;  %v10494_v28 = vld [vmem:[#allocation96_spill] sm:$0xff] }
 0x4c9   :  { %2388 = vmatpush1.msra.mxu1 %v10478_v61  ;;  %6734 = vmatpush3.msra.mxu0 %v10479_v58 }
 0x4ca   :  { %2389 = vmatprep.subr.mxu1 %v10480_v10  ;;  %6735 = vmatprep.subr.mxu0 %v10261_v38  ;;  %v10495_v10 = vld [vmem:[#allocation105_spill] sm:$0xff] }
 0x4cb   :  { %2390 = vmatpush1.msra.mxu1 %v10481_v43  ;;  %6736 = vmatpush3.msra.mxu0 %v10482_v30  ;;  %v10496_v30 = vld [vmem:[#allocation97_spill] sm:$0xff] }
 0x4cc   :  { %2391 = vmatprep.subr.mxu1 %v10483_v6  ;;  %6737 = vmatprep.subr.mxu0 %v10261_v38 }
 0x4cd   :  { %2392 = vmatpush1.msra.mxu1 %v10484_v11  ;;  %6738 = vmatpush3.msra.mxu0 %v10485_v4 }
 0x4ce   :  { %2393 = vmatprep.subr.mxu1 %v10486_v16  ;;  %6739 = vmatprep.subr.mxu0 %v10261_v38 }
 0x4cf   :  { %2394 = vmatpush1.msra.mxu1 %v10487_v21  ;;  %6740 = vmatpush3.msra.mxu0 %v10488_v24 }
 0x4d0   :  { %2395 = vmatprep.subr.mxu1 %v10489_v23  ;;  %6741 = vmatprep.subr.mxu0 %v10261_v38 }
 0x4d1   :  { %2396 = vmatpush1.msra.mxu1 %v10490_v22  ;;  %2429 = vmatprep.mubr.f32.mxu1 %v10261_v38 }
 0x4d2   :  { %6742 = vmatpush3.msra.mxu0 %v10491_v14  ;;  %6743 = vmatprep.mubr.msk.f32.mxu0 %vm7525_vm2, %v10261_v38 }
 0x4d3   :  { %2508 = vmatprep.subr.mxu1 %v10492_v29  ;;  %6746 = vmatprep.subr.mxu0 %v10261_v38 }
 0x550   :  { %v2082_v62 = vpop.f32.mrf.mxu1  ;;  %v2153_v0 = vpop.f32.mrf.mxu0 }
 0x551   :  { %v2083_v19 = vadd.f32 %v2082_v62, %v10493_v7  ;;  %v2154_v29 = vadd.f32 %v2153_v0, %v8099_v48 }
 0x552   :  { %v2084_v3 = vpop.f32.mrf.mxu1  ;;  %v6675_v35 = vpop.f32.mrf.mxu0 }
 0x553   :  { %v2298_v61 = vadd.f32 %v2083_v19, %v10494_v28  ;;  %v2085_v43 = vadd.f32 %v2084_v3, %v10495_v10 }
 0x555   :  { %v6000_v58 = vmul.f32 -1.442695, %v2298_v61  ;;  %v2305_v6 = vadd.f32 %v2085_v43, %v10496_v30  ;;  %v10497_v43 = vld [vmem:[#allocation99_spill] sm:$0xff]  ;;  %v10499_v30 = vld [vmem:[#allocation101_spill] sm:$0xff] }
 0x557   :  { %7027 = vpow2.f32 %v6000_v58  ;;  %v6001_v11 = vmul.f32 -1.442695, %v2305_v6 }
 0x559   :  { %7029 = vpow2.f32 %v6001_v11  ;;  %v10498_v11 = vld [vmem:[#allocation100_spill] sm:$0xff] }
 0x564   :  { %v7028_v4 = vpop.eup %7027 }
 0x565   :  { %v2302_v16 = vadd.f32 1.0, %v7028_v4 }
 0x566   :  { %v7030_v21 = vpop.eup %7029 }
 0x567   :  { %7031 = vrcp.f32 %v2302_v16  ;;  %v2309_v24 = vadd.f32 1.0, %v7030_v21 }
 0x569   :  { %7033 = vrcp.f32 %v2309_v24 }
 0x571   :  { %v2223_v23 = vpop.f32.mrf.mxu1  ;;  %v2294_v22 = vpop.f32.mrf.mxu0 }
 0x572   :  { %v2224_v14 = vadd.f32 %v2223_v23, %v10429_v15 }
 0x573   :  { %v2225_v62 = vpop.f32.mrf.mxu1  ;;  %v6710_v19 = vpop.f32.mrf.mxu0 }
 0x574   :  { %v7032_v35 = vpop.eup %7031  ;;  %v2320_v3 = vrot.slane %v2224_v14, 2  ;;  %v2226_v61 = vadd.f32 %v2225_v62, %v8102_v2 }
 0x575   :  { %v2312_v58 = vmul.f32 %v7032_v35, %v2154_v29  ;;  %v8955_v35 = vld [vmem:[#allocation11 + $0x168] sm:$0xff] }
 0x576   :  { %v2322_v6 = vadd.f32 %v2320_v3, %v10497_v43  ;;  %v2330_v21 = vrot.slane %v2226_v61, 2  ;;  %v7034_v0 = vpop.eup %7033  ;;  %v2295_v3 = vadd.f32 %v2294_v22, %v8119_v34  ;;  %v9073_v22 = vld [vmem:[#allocation8 + $0x120] sm:$0xff]  ;;  %v9076_v61 = vld [vmem:[#allocation8 + $0x130] sm:$0xff] }
 0x577   :  { %v2313_v4 = vadd.f32 %v2312_v58, %v10498_v11  ;;  %v2315_v19 = vsub.f32 1.0, %v7034_v0  ;;  %v2317_v29 = vmul.f32 %v7034_v0, %v8792_v60  ;;  %v8967_v60 = vld [vmem:[#allocation11 + $0x140] sm:$0xff]  ;;  %v9079_v58 = vld [vmem:[#allocation8 + $0x110] sm:$0xff] }
 0x578   :  { %v6002_v16 = vmul.f32 -1.442695, %v2322_v6  ;;  %v2332_v23 = vadd.f32 %v2330_v21, %v10499_v30  ;;  %v9083_v6 = vld [vmem:[#allocation8 + $0x108] sm:$0xff]  ;;  %v9093_v21 = vld [vmem:[#allocation8 + $0xf0] sm:$0xff]  ;;  %v9099_v0 = vld [vmem:[#allocation8 + $0xe0] sm:$0xff] }
 0x579   :  { %7035 = vtanh.f32 %v2313_v4  ;;  %v9086_v4 = vld [vmem:[#allocation8 + $0x118] sm:$0xff] }
 0x57a   :  { %7037 = vpow2.f32 %v6002_v16  ;;  %v6003_v15 = vmul.f32 -1.442695, %v2332_v23  ;;  %v9089_v16 = vld [vmem:[#allocation8 + $0xf8] sm:$0xff]  ;;  %v9096_v23 = vld [vmem:[#allocation8 + $0x100] sm:$0xff] }
 0x57c   :  { %7039 = vpow2.f32 %v6003_v15  ;;  %v8959_v15 = vld [vmem:[#allocation11 + $0x158] sm:$0xff] }
 0x586   :  { %v7036_v48 = vpop.eup %7035 }
 0x587   :  { %v7038_v14 = vpop.eup %7037  ;;  %v2316_v28 = vmul.f32 %v7036_v48, %v2315_v19  ;;  %v8963_v48 = vld [vmem:[#allocation11 + $0x150] sm:$0xff] }
 0x588   :  { %v2326_v24 = vadd.f32 1.0, %v7038_v14  ;;  %v9103_v19 = vld [vmem:[#allocation8 + $0xd8] sm:$0xff]  ;;  %v9106_v14 = vld [vmem:[#allocation8 + $0xe8] sm:$0xff] }
 0x589   :  { %v8950_v62 = vadd.f32 %v2317_v29, %v2316_v28  ;;  %v8971_v28 = vld [vmem:[#allocation11 + $0x138] sm:$0xff]  ;;  %v9109_v29 = vld [vmem:[#allocation8 + $0xc8] sm:$0xff] }
 0x58a   :  { %7041 = vrcp.f32 %v2326_v24  ;;  %v9113_v24 = vld [vmem:[#allocation8 + $0xc0] sm:$0xff] }
 0x58b   :  { %2352 = vst [vmem:[#allocation2 + $0xc] sm:$0x3] %v8950_v62  ;;  %2430 = vmatmul.mubr.f32.vlgmr.msra.gmra.mxu1 %v8950_v62  ;;  %6744 = vmatmul.mubr.f32.vlgmr.msra.gmra.mxu0 %v8950_v62 }
 0x58c   :  { %2509 = vmatpush1.msra.mxu1 %v8955_v35  ;;  %6747 = vmatpush3.msra.mxu0 %v8556_v41  ;;  %v7040_v41 = vpop.eup %7039 }
 0x58d   :  { %2510 = vmatprep.subr.mxu1 %v8959_v15  ;;  %6748 = vmatprep.subr.mxu0 %v10261_v38 }
 0x58e   :  { %2511 = vmatpush1.msra.mxu1 %v8963_v48  ;;  %6749 = vmatpush3.msra.mxu0 %v8562_v18  ;;  %v2336_v18 = vadd.f32 1.0, %v7040_v41  ;;  %v9116_v41 = vld [vmem:[#allocation8 + $0xd0] sm:$0xff] }
 0x58f   :  { %2512 = vmatprep.subr.mxu1 %v8967_v60  ;;  %6750 = vmatprep.subr.mxu0 %v10261_v38 }
 0x590   :  { %2513 = vmatpush1.msra.mxu1 %v8971_v28  ;;  %6751 = vmatpush3.msra.mxu0 %v8569_v49  ;;  %v2340_v49 = vrot.slane %v2295_v3, 2  ;;  %7043 = vrcp.f32 %v2336_v18  ;;  %v9119_v3 = vld [vmem:[#allocation8 + $0xb0] sm:$0xff]  ;;  %v9123_v18 = vld [vmem:[#allocation8 + $0xa8] sm:$0xff] }
 0x591   :  { %2514 = vmatprep.subr.mxu1 %v8572_v46  ;;  %6752 = vmatprep.subr.mxu0 %v10261_v38 }
 0x592   :  { %2515 = vmatpush1.msra.mxu1 %v8576_v47  ;;  %6753 = vmatpush3.msra.mxu0 %v8579_v54  ;;  %v10500_v54 = vld [vmem:[#allocation102_spill] sm:$0xff] }
 0x593   :  { %2516 = vmatprep.subr.mxu1 %v8582_v9  ;;  %6754 = vmatprep.subr.mxu0 %v10261_v38 }
 0x594   :  { %2517 = vmatpush1.msra.mxu1 %v8586_v1  ;;  %6755 = vmatpush3.msra.mxu0 %v8589_v44  ;;  %v10501_v1 = vld [vmem:[#allocation50_spill] sm:$0xff]  ;;  %v10502_v44 = vld [vmem:[#allocation65_spill] sm:$0xff] }
 0x595   :  { %2518 = vmatprep.subr.mxu1 %v10430_v8  ;;  %6756 = vmatprep.subr.mxu0 %v10261_v38  ;;  %v10503_v8 = vld [vmem:[#allocation51_spill] sm:$0xff] }
 0x596   :  { %2519 = vmatpush1.msra.mxu1 %v10432_v59  ;;  %6757 = vmatpush3.msra.mxu0 %v10433_v57  ;;  %v10504_v59 = vld [vmem:[#allocation104_spill] sm:$0xff]  ;;  %v10505_v57 = vld [vmem:[#allocation106_spill] sm:$0xff] }
 0x597   :  { %v7042_v46 = vpop.eup %7041  ;;  %2520 = vmatprep.subr.mxu1 %v10434_v53  ;;  %6758 = vmatprep.subr.mxu0 %v10261_v38  ;;  %v10506_v53 = vld [vmem:[#allocation72_spill] sm:$0xff] }
 0x598   :  { %v2342_v47 = vmul.f32 %v7042_v46, %v2340_v49  ;;  %2521 = vmatpush1.msra.mxu1 %v10435_v25  ;;  %6759 = vmatpush3.msra.mxu0 %v10436_v12  ;;  %v10507_v25 = vld [vmem:[#allocation88_spill] sm:$0xff]  ;;  %v9126_v49 = vld [vmem:[#allocation8 + $0xb8] sm:$0xff] }
 0x599   :  { %2522 = vmatprep.subr.mxu1 %v10437_v17  ;;  %6760 = vmatprep.subr.mxu0 %v10261_v38  ;;  %v2348_v17 = vrot.slane %v8858_v50, 2  ;;  %v9069_v50 = vld [vmem:[#allocation8 + $0x128] sm:$0xff]  ;;  %v9129_v46 = vld [vmem:[#allocation8 + $0x98] sm:$0xff] }
 0x59a   :  { %v2343_v9 = vadd.f32 %v2342_v47, %v10500_v54  ;;  %2523 = vmatpush1.msra.mxu1 %v10438_v45  ;;  %6761 = vmatpush3.msra.mxu0 %v10439_v26  ;;  %v9133_v47 = vld [vmem:[#allocation8 + $0x90] sm:$0xff] }
 0x59b   :  { %2524 = vmatprep.subr.mxu1 %v10440_v42  ;;  %6762 = vmatprep.subr.mxu0 %v10261_v38  ;;  %10509 = vst [vmem:[#allocation79_spill] sm:$0xff] %v9133_v47 }
 0x59c   :  { %7045 = vtanh.f32 %v2343_v9  ;;  %2525 = vmatpush1.msra.mxu1 %v10441_v52  ;;  %6763 = vmatpush3.msra.mxu0 %v10442_v5  ;;  %v10508_v5 = vld [vmem:[#allocation55_spill] sm:$0xff] }
 0x59d   :  { %2526 = vmatprep.subr.mxu1 %v10443_v51  ;;  %6764 = vmatprep.subr.mxu0 %v10261_v38  ;;  %v7044_v12 = vpop.eup %7043  ;;  %v9136_v9 = vld [vmem:[#allocation8 + $0xa0] sm:$0xff] }
 0x59e   :  { %2527 = vmatpush1.msra.mxu1 %v10444_v39  ;;  %6765 = vmatpush3.msra.mxu0 %v10445_v13  ;;  %v2345_v45 = vsub.f32 1.0, %v7044_v12  ;;  %v2350_v42 = vmul.f32 %v7044_v12, %v2348_v17  ;;  %v9046_v39 = vld [vmem:[#allocation8 + $0x178] sm:$0xff]  ;;  %10510 = vst [vmem:[#allocation81_spill] sm:$0xff] %v9136_v9  ;;  %v9163_v12 = vld [vmem:[#allocation8 + $0x48] sm:$0xff] }
 0x59f   :  { %2528 = vmatprep.subr.mxu1 %v10446_v56  ;;  %6766 = vmatprep.subr.mxu0 %v10261_v38  ;;  %v9049_v56 = vld [vmem:[#allocation8 + $0x158] sm:$0xff]  ;;  %10518 = vst [vmem:[#allocation35_spill] sm:$0xff] %v9163_v12 }
 0x5a0   :  { %2529 = vmatpush1.msra.mxu1 %v10447_v27  ;;  %6767 = vmatpush3.msra.mxu0 %v10501_v1  ;;  %v9053_v27 = vld [vmem:[#allocation8 + $0x150] sm:$0xff]  ;;  %v9139_v1 = vld [vmem:[#allocation8 + $0x80] sm:$0xff]  ;;  %v9166_v17 = vld [vmem:[#allocation8 + $0x58] sm:$0xff] }
 0x5a1   :  { %2530 = vmatprep.subr.mxu1 %v10502_v44  ;;  %6768 = vmatprep.subr.mxu0 %v10261_v38  ;;  %10511 = vst [vmem:[#allocation91_spill] sm:$0xff] %v9139_v1  ;;  %v9143_v44 = vld [vmem:[#allocation8 + $0x78] sm:$0xff]  ;;  %10519 = vst [vmem:[#allocation49_spill] sm:$0xff] %v9166_v17 }
 0x5a2   :  { %2531 = vmatpush1.msra.mxu1 %v10503_v8  ;;  %6769 = vmatpush3.msra.mxu0 %v10504_v59  ;;  %10512 = vst [vmem:[#allocation82_spill] sm:$0xff] %v9143_v44  ;;  %v9146_v8 = vld [vmem:[#allocation8 + $0x88] sm:$0xff] }
 0x5a3   :  { %2532 = vmatprep.subr.mxu1 %v10505_v57  ;;  %6770 = vmatprep.subr.mxu0 %v10261_v38  ;;  %10513 = vst [vmem:[#allocation92_spill] sm:$0xff] %v9146_v8  ;;  %v9149_v59 = vld [vmem:[#allocation8 + $0x68] sm:$0xff]  ;;  %v9153_v57 = vld [vmem:[#allocation8 + $0x60] sm:$0xff] }
 0x5a4   :  { %2533 = vmatpush1.msra.mxu1 %v10506_v53  ;;  %6771 = vmatpush3.msra.mxu0 %v10507_v25  ;;  %10514 = vst [vmem:[#allocation84_spill] sm:$0xff] %v9149_v59  ;;  %10515 = vst [vmem:[#allocation46_spill] sm:$0xff] %v9153_v57  ;;  %v9156_v53 = vld [vmem:[#allocation8 + $0x70] sm:$0xff] }
 0x5a5   :  { %2534 = vmatprep.subr.mxu1 %v10455_v31  ;;  %6772 = vmatprep.subr.mxu0 %v10261_v38  ;;  %10516 = vst [vmem:[#allocation54_spill] sm:$0xff] %v9156_v53  ;;  %v9159_v25 = vld [vmem:[#allocation8 + $0x50] sm:$0xff] }
 0x5a6   :  { %2535 = vmatpush1.msra.mxu1 %v10456_v33  ;;  %6773 = vmatpush3.msra.mxu0 %v10457_v32  ;;  %v9056_v32 = vld [vmem:[#allocation8 + $0x160] sm:$0xff]  ;;  %10517 = vst [vmem:[#allocation34_spill] sm:$0xff] %v9159_v25 }
 0x5a7   :  { %2536 = vmatprep.subr.mxu1 %v10458_v55  ;;  %6774 = vmatprep.subr.mxu0 %v10261_v38  ;;  %v9059_v33 = vld [vmem:[#allocation8 + $0x140] sm:$0xff]  ;;  %v9063_v55 = vld [vmem:[#allocation8 + $0x138] sm:$0xff] }
 0x5a8   :  { %2537 = vmatpush1.msra.mxu1 %v10459_v37  ;;  %6775 = vmatpush3.msra.mxu0 %v8691_v36  ;;  %v9035_v36 = vld [vmem:[#allocation8 + $0x170] sm:$0xff]  ;;  %v9066_v37 = vld [vmem:[#allocation8 + $0x148] sm:$0xff] }
 0x5a9   :  { %v7046_v26 = vpop.eup %7045  ;;  %2538 = vmatprep.subr.mxu1 %v8694_v40  ;;  %6776 = vmatprep.subr.mxu0 %v10261_v38 }
 0x5aa   :  { %2539 = vmatpush1.msra.mxu1 %v8698_v63  ;;  %2572 = vmatprep.mubr.f32.mxu1 %v10261_v38  ;;  %v2346_v31 = vmul.f32 %v7046_v26, %v2345_v45  ;;  %v9169_v45 = vld [vmem:[#allocation8 + $0x38] sm:$0xff]  ;;  %v9173_v26 = vld [vmem:[#allocation8 + $0x30] sm:$0xff] }
 0x5ab   :  { %6777 = vmatpush3.msra.mxu0 %v8702_v20  ;;  %6778 = vmatprep.mubr.msk.f32.mxu0 %vm7525_vm2, %v10261_v38  ;;  %v9043_v20 = vld [vmem:[#allocation8 + $0x168] sm:$0xff]  ;;  %10520 = vst [vmem:[#allocation36_spill] sm:$0xff] %v9169_v45  ;;  %10521 = vst [vmem:[#allocation38_spill] sm:$0xff] %v9173_v26 }
 0x5ac   :  { %v9033_v52 = vadd.f32 %v2350_v42, %v2346_v31  ;;  %2738 = vmatprep.subr.mxu1 %v9035_v36  ;;  %6781 = vmatprep.subr.mxu0 %v10261_v38  ;;  %v9176_v31 = vld [vmem:[#allocation8 + $0x40] sm:$0xff] }
 0x5ad   :  { %10522 = vst [vmem:[#allocation52_spill] sm:$0xff] %v9176_v31  ;;  %v9179_v42 = vld [vmem:[#allocation8 + $0x20] sm:$0xff] }
 0x5ae   :  { %v2354_v40 = vcombine.high %v9033_v52, %v9033_v52  ;;  %v2506_v63 = vrot.slane %v9033_v52, 6  ;;  %10523 = vst [vmem:[#allocation39_spill] sm:$0xff] %v9179_v42 }
 0x5b0   :  { %v2361_v51 = vrot.slane %v2354_v40, %v10508_v5  ;;  %2573 = vmatmul.mubr.f32.vlgmr.msra.gmra.mxu1 %v2506_v63  ;;  %6779 = vmatmul.mubr.f32.vlgmr.msra.gmra.mxu0 %v2506_v63  ;;  %v9183_v40 = vld [vmem:[#allocation8 + $0x18] sm:$0xff]  ;;  %v9186_v63 = vld [vmem:[#allocation8 + $0x28] sm:$0xff] }
 0x5b1   :  { %2739 = vmatpush1.msra.mxu1 %v9043_v20  ;;  %6782 = vmatpush3.msra.mxu0 %v9046_v39  ;;  %10524 = vst [vmem:[#allocation41_spill] sm:$0xff] %v9183_v40  ;;  %10525 = vst [vmem:[#allocation53_spill] sm:$0xff] %v9186_v63 }
 0x5b2   :  { %v2362_v13 = vcombine.high %v2361_v51, %v2361_v51  ;;  %2740 = vmatprep.subr.mxu1 %v9049_v56  ;;  %6783 = vmatprep.subr.mxu0 %v10261_v38  ;;  %v9189_v51 = vld [vmem:[#allocation8 + $0x8] sm:$0xff] }
 0x5b3   :  { %2741 = vmatpush1.msra.mxu1 %v9053_v27  ;;  %6784 = vmatpush3.msra.mxu0 %v9056_v32  ;;  %10526 = vst [vmem:[#allocation42_spill] sm:$0xff] %v9189_v51 }
 0x5b4   :  { %2364 = vst [vmem:[#allocation2 + $0x12] sm:$0x3] %v2362_v13  ;;  %2742 = vmatprep.subr.mxu1 %v9059_v33  ;;  %6785 = vmatprep.subr.mxu0 %v10261_v38  ;;  %v9193_v13 = vld [vmem:[#allocation8] sm:$0xff] }
 0x5b5   :  { %2743 = vmatpush1.msra.mxu1 %v9063_v55  ;;  %6786 = vmatpush3.msra.mxu0 %v9066_v37  ;;  %10527 = vst [vmem:[#allocation44_spill] sm:$0xff] %v9193_v13 }
 0x5b6   :  { %2744 = vmatprep.subr.mxu1 %v9069_v50  ;;  %6787 = vmatprep.subr.mxu0 %v10261_v38 }
 0x5b7   :  { %2745 = vmatpush1.msra.mxu1 %v9073_v22  ;;  %6788 = vmatpush3.msra.mxu0 %v9076_v61 }
 0x5b8   :  { %2746 = vmatprep.subr.mxu1 %v9079_v58  ;;  %6789 = vmatprep.subr.mxu0 %v10261_v38 }
 0x5b9   :  { %2747 = vmatpush1.msra.mxu1 %v9083_v6  ;;  %6790 = vmatpush3.msra.mxu0 %v9086_v4 }
 0x5ba   :  { %2748 = vmatprep.subr.mxu1 %v9089_v16  ;;  %6791 = vmatprep.subr.mxu0 %v10261_v38 }
 0x5bb   :  { %2749 = vmatpush1.msra.mxu1 %v9093_v21  ;;  %6792 = vmatpush3.msra.mxu0 %v9096_v23 }
 0x5bc   :  { %2750 = vmatprep.subr.mxu1 %v9099_v0  ;;  %6793 = vmatprep.subr.mxu0 %v10261_v38 }
 0x5bd   :  { %2751 = vmatpush1.msra.mxu1 %v9103_v19  ;;  %6794 = vmatpush3.msra.mxu0 %v9106_v14 }
 0x5be   :  { %2752 = vmatprep.subr.mxu1 %v9109_v29  ;;  %6795 = vmatprep.subr.mxu0 %v10261_v38 }
 0x5bf   :  { %2753 = vmatpush1.msra.mxu1 %v9113_v24  ;;  %6796 = vmatpush3.msra.mxu0 %v9116_v41 }
 0x5c0   :  { %2754 = vmatprep.subr.mxu1 %v9119_v3  ;;  %6797 = vmatprep.subr.mxu0 %v10261_v38 }
 0x5c1   :  { %2755 = vmatpush1.msra.mxu1 %v9123_v18  ;;  %6798 = vmatpush3.msra.mxu0 %v9126_v49 }
 0x5c2   :  { %2756 = vmatprep.subr.mxu1 %v9129_v46  ;;  %6799 = vmatprep.subr.mxu0 %v10261_v38 }
 0x5c3   :  { %2757 = vmatpush1.msra.mxu1 %v9133_v47  ;;  %6800 = vmatpush3.msra.mxu0 %v9136_v9  ;;  %v10532_v9 = vld [vmem:[#allocation108_spill] sm:$0xff] }
 0x5c4   :  { %2758 = vmatprep.subr.mxu1 %v9139_v1  ;;  %6801 = vmatprep.subr.mxu0 %v10261_v38 }
 0x5c5   :  { %2759 = vmatpush1.msra.mxu1 %v9143_v44  ;;  %6802 = vmatpush3.msra.mxu0 %v9146_v8 }
 0x5c6   :  { %2760 = vmatprep.subr.mxu1 %v9149_v59  ;;  %6803 = vmatprep.subr.mxu0 %v10261_v38 }
 0x5c7   :  { %2761 = vmatpush1.msra.mxu1 %v9153_v57  ;;  %6804 = vmatpush3.msra.mxu0 %v9156_v53  ;;  %v10531_v57 = vld [vmem:[#allocation97_spill] sm:$0xff] }
 0x5c8   :  { %2762 = vmatprep.subr.mxu1 %v9159_v25  ;;  %6805 = vmatprep.subr.mxu0 %v10261_v38 }
 0x5c9   :  { %2763 = vmatpush1.msra.mxu1 %v9163_v12  ;;  %6806 = vmatpush3.msra.mxu0 %v9166_v17  ;;  %v10530_v12 = vld [vmem:[#allocation96_spill] sm:$0xff] }
 0x5ca   :  { %2764 = vmatprep.subr.mxu1 %v9169_v45  ;;  %6807 = vmatprep.subr.mxu0 %v10261_v38 }
 0x5cb   :  { %2765 = vmatpush1.msra.mxu1 %v9173_v26  ;;  %6808 = vmatpush3.msra.mxu0 %v9176_v31 }
 0x5cc   :  { %2766 = vmatprep.subr.mxu1 %v9179_v42  ;;  %6809 = vmatprep.subr.mxu0 %v10261_v38  ;;  %v9197_v42 = vld [vmem:[#allocation8 + $0x10] sm:$0xff] }
 0x5cd   :  { %2767 = vmatpush1.msra.mxu1 %v9183_v40  ;;  %6810 = vmatpush3.msra.mxu0 %v9186_v63  ;;  %10528 = vst [vmem:[#allocation57_spill] sm:$0xff] %v9197_v42  ;;  %v9202_v63 = vld [vmem:[#allocation11 + $0x170] sm:$0xff] }
 0x5ce   :  { %2768 = vmatprep.subr.mxu1 %v9189_v51  ;;  %6811 = vmatprep.subr.mxu0 %v10261_v38  ;;  %10529 = vst [vmem:[#allocation45_spill] sm:$0xff] %v9202_v63 }
 0x5cf   :  { %2769 = vmatpush1.msra.mxu1 %v9193_v13  ;;  %2802 = vmatprep.mubr.f32.mxu1 %v10261_v38 }
 0x5d0   :  { %6812 = vmatpush3.msra.mxu0 %v9197_v42  ;;  %6813 = vmatprep.mubr.msk.f32.mxu0 %vm7525_vm2, %v10261_v38 }
 0x5d1   :  { %2881 = vmatprep.subr.mxu1 %v9202_v63  ;;  %6816 = vmatprep.subr.mxu0 %v10261_v38 }
 0x64b   :  { %v2431_v51 = vpop.f32.mrf.mxu1  ;;  %v2502_v40 = vpop.f32.mrf.mxu0 }
 0x64c   :  { %v2432_v31 = vadd.f32 %v2431_v51, %v10493_v7  ;;  %v2503_v51 = vadd.f32 %v2502_v40, %v10532_v9 }
 0x64d   :  { %v2433_v13 = vpop.f32.mrf.mxu1  ;;  %v6745_v26 = vpop.f32.mrf.mxu0 }
 0x64e   :  { %v2650_v45 = vrot.slane %v2432_v31, 6  ;;  %v2434_v17 = vadd.f32 %v2433_v13, %v10495_v10  ;;  %v2670_v26 = vrot.slane %v2503_v51, 6  ;;  %v10533_v10 = vld [vmem:[#allocation107_spill] sm:$0xff] }
 0x650   :  { %v2652_v42 = vadd.f32 %v2650_v45, %v10530_v12  ;;  %v2660_v53 = vrot.slane %v2434_v17, 6 }
 0x652   :  { %v6004_v25 = vmul.f32 -1.442695, %v2652_v42  ;;  %v2662_v59 = vadd.f32 %v2660_v53, %v10531_v57 }
 0x654   :  { %7047 = vpow2.f32 %v6004_v25  ;;  %v6005_v8 = vmul.f32 -1.442695, %v2662_v59 }
 0x656   :  { %7049 = vpow2.f32 %v6005_v8 }
 0x661   :  { %v7048_v63 = vpop.eup %7047 }
 0x662   :  { %v2656_v44 = vadd.f32 1.0, %v7048_v63 }
 0x663   :  { %v7050_v1 = vpop.eup %7049 }
 0x664   :  { %7051 = vrcp.f32 %v2656_v44  ;;  %v2666_v7 = vadd.f32 1.0, %v7050_v1 }
 0x666   :  { %7053 = vrcp.f32 %v2666_v7 }
 0x670   :  { %v2574_v31 = vpop.f32.mrf.mxu1  ;;  %v2645_v47 = vpop.f32.mrf.mxu0 }
 0x671   :  { %v7052_v13 = vpop.eup %7051  ;;  %v2575_v45 = vadd.f32 %v2574_v31, %v10533_v10 }
 0x672   :  { %v2672_v42 = vmul.f32 %v7052_v13, %v2670_v26  ;;  %v2576_v25 = vpop.f32.mrf.mxu1  ;;  %v6780_v17 = vpop.f32.mrf.mxu0  ;;  %v2678_v26 = vrot.slane %v8950_v62, 6  ;;  %v9223_v62 = vld [vmem:[#allocation11 + $0x178] sm:$0xff] }
 0x673   :  { %v2683_v53 = vrot.slane %v2575_v45, 4  ;;  %v2577_v8 = vadd.f32 %v2576_v25, %v8102_v2  ;;  %v7054_v51 = vpop.eup %7053 }
 0x674   :  { %v2673_v59 = vadd.f32 %v2672_v42, %v10498_v11  ;;  %v2675_v7 = vsub.f32 1.0, %v7054_v51  ;;  %v2680_v45 = vmul.f32 %v7054_v51, %v2678_v26  ;;  %v9243_v51 = vld [vmem:[#allocation11 + $0x120] sm:$0xff]  ;;  %v9246_v26 = vld [vmem:[#allocation11 + $0x130] sm:$0xff] }
 0x675   :  { %v2685_v44 = vadd.f32 %v2683_v53, %v10497_v43  ;;  %v2693_v1 = vrot.slane %v2577_v8, 4 }
 0x676   :  { %7055 = vtanh.f32 %v2673_v59 }
 0x677   :  { %v6006_v40 = vmul.f32 -1.442695, %v2685_v44  ;;  %v2695_v63 = vadd.f32 %v2693_v1, %v10499_v30  ;;  %v9235_v44 = vld [vmem:[#allocation11 + $0x148] sm:$0xff] }
 0x678   :  { %v9238_v1 = vld [vmem:[#allocation11 + $0x128] sm:$0xff] }
 0x679   :  { %7057 = vpow2.f32 %v6006_v40  ;;  %v6007_v9 = vmul.f32 -1.442695, %v2695_v63  ;;  %v2646_v63 = vadd.f32 %v2645_v47, %v8119_v34  ;;  %v9256_v47 = vld [vmem:[#allocation11 + $0x118] sm:$0xff] }
 0x67b   :  { %7059 = vpow2.f32 %v6007_v9  ;;  %v9229_v9 = vld [vmem:[#allocation11 + $0x160] sm:$0xff] }
 0x683   :  { %v7056_v31 = vpop.eup %7055 }
 0x684   :  { %v2676_v13 = vmul.f32 %v7056_v31, %v2675_v7  ;;  %v9249_v7 = vld [vmem:[#allocation11 + $0x110] sm:$0xff] }
 0x686   :  { %v7058_v25 = vpop.eup %7057  ;;  %v9217_v17 = vadd.f32 %v2680_v45, %v2676_v13  ;;  %v9253_v13 = vld [vmem:[#allocation11 + $0x108] sm:$0xff]  ;;  %v9259_v45 = vld [vmem:[#allocation11 + $0xf8] sm:$0xff] }
 0x687   :  { %v2689_v42 = vadd.f32 1.0, %v7058_v25  ;;  %v2703_v25 = vrot.slane %v2646_v63, 4  ;;  %v9276_v63 = vld [vmem:[#allocation11 + $0xe8] sm:$0xff] }
 0x688   :  { %v2721_v53 = vrot.slane %v9217_v17, %v10508_v5  ;;  %v2736_v8 = vrot.slane %v9217_v17, 2  ;;  %v7060_v40 = vpop.eup %7059  ;;  %v9273_v5 = vld [vmem:[#allocation11 + $0xd8] sm:$0xff]  ;;  %10538 = vst [vmem:[#allocation75_spill] sm:$0xff] %v9276_v63 }
 0x689   :  { %7061 = vrcp.f32 %v2689_v42  ;;  %v2699_v31 = vadd.f32 1.0, %v7060_v40  ;;  %v9263_v42 = vld [vmem:[#allocation11 + $0xf0] sm:$0xff]  ;;  %10537 = vst [vmem:[#allocation73_spill] sm:$0xff] %v9273_v5 }
 0x68a   :  { %v2722_v59 = vcombine.high %v2721_v53, %v2721_v53  ;;  %2803 = vmatmul.mubr.f32.vlgmr.msra.gmra.mxu1 %v2736_v8  ;;  %6814 = vmatmul.mubr.f32.vlgmr.msra.gmra.mxu0 %v2736_v8  ;;  %10534 = vst [vmem:[#allocation47_spill] sm:$0xff] %v9263_v42  ;;  %v9266_v53 = vld [vmem:[#allocation11 + $0x100] sm:$0xff] }
 0x68b   :  { %2882 = vmatpush1.msra.mxu1 %v8955_v35  ;;  %6817 = vmatpush3.msra.mxu0 %v9223_v62  ;;  %10535 = vst [vmem:[#allocation61_spill] sm:$0xff] %v9266_v53  ;;  %7063 = vrcp.f32 %v2699_v31  ;;  %v9287_v31 = vld [vmem:[#allocation11 + $0xd0] sm:$0xff] }
 0x68c   :  { %2724 = vst [vmem:[#allocation2 + $0x8] sm:$0x3] %v2722_v59  ;;  %2883 = vmatprep.subr.mxu1 %v8959_v15  ;;  %6818 = vmatprep.subr.mxu0 %v10261_v38  ;;  %v9269_v59 = vld [vmem:[#allocation11 + $0xe0] sm:$0xff]  ;;  %10541 = vst [vmem:[#allocation90_spill] sm:$0xff] %v9287_v31 }
 0x68d   :  { %2884 = vmatpush1.msra.mxu1 %v8963_v48  ;;  %6819 = vmatpush3.msra.mxu0 %v9229_v9  ;;  %10536 = vst [vmem:[#allocation48_spill] sm:$0xff] %v9269_v59 }
 0x68e   :  { %2885 = vmatprep.subr.mxu1 %v8967_v60  ;;  %6820 = vmatprep.subr.mxu0 %v10261_v38 }
 0x68f   :  { %2886 = vmatpush1.msra.mxu1 %v8971_v28  ;;  %6821 = vmatpush3.msra.mxu0 %v9235_v44 }
 0x690   :  { %2887 = vmatprep.subr.mxu1 %v9238_v1  ;;  %6822 = vmatprep.subr.mxu0 %v10261_v38 }
 0x691   :  { %2888 = vmatpush1.msra.mxu1 %v9243_v51  ;;  %6823 = vmatpush3.msra.mxu0 %v9246_v26 }
 0x692   :  { %2889 = vmatprep.subr.mxu1 %v9249_v7  ;;  %6824 = vmatprep.subr.mxu0 %v10261_v38 }
 0x693   :  { %2890 = vmatpush1.msra.mxu1 %v9253_v13  ;;  %6825 = vmatpush3.msra.mxu0 %v9256_v47 }
 0x694   :  { %2891 = vmatprep.subr.mxu1 %v9259_v45  ;;  %6826 = vmatprep.subr.mxu0 %v10261_v38 }
 0x695   :  { %2892 = vmatpush1.msra.mxu1 %v9263_v42  ;;  %6827 = vmatpush3.msra.mxu0 %v9266_v53  ;;  %v9279_v42 = vld [vmem:[#allocation11 + $0xc8] sm:$0xff]  ;;  %v9284_v53 = vld [vmem:[#allocation11 + $0xc0] sm:$0xff] }
 0x696   :  { %v7062_v8 = vpop.eup %7061  ;;  %2893 = vmatprep.subr.mxu1 %v9269_v59  ;;  %6828 = vmatprep.subr.mxu0 %v10261_v38  ;;  %10539 = vst [vmem:[#allocation89_spill] sm:$0xff] %v9279_v42  ;;  %10540 = vst [vmem:[#allocation76_spill] sm:$0xff] %v9284_v53 }
 0x697   :  { %v2705_v40 = vmul.f32 %v7062_v8, %v2703_v25  ;;  %2894 = vmatpush1.msra.mxu1 %v9273_v5  ;;  %6829 = vmatpush3.msra.mxu0 %v9276_v63  ;;  %v9290_v25 = vld [vmem:[#allocation11 + $0xb0] sm:$0xff]  ;;  %v9294_v8 = vld [vmem:[#allocation11 + $0xa8] sm:$0xff] }
 0x698   :  { %2895 = vmatprep.subr.mxu1 %v9279_v42  ;;  %6830 = vmatprep.subr.mxu0 %v10261_v38  ;;  %10542 = vst [vmem:[#allocation74_spill] sm:$0xff] %v9290_v25  ;;  %10543 = vst [vmem:[#allocation56_spill] sm:$0xff] %v9294_v8  ;;  %v9361_v63 = vld [vmem:[#allocation11 + $0x8] sm:$0xff]  ;;  %v9369_v5 = vld [vmem:[#allocation11 + $0x10] sm:$0xff] }
 0x699   :  { %v2706_v59 = vadd.f32 %v2705_v40, %v10500_v54  ;;  %2896 = vmatpush1.msra.mxu1 %v9284_v53  ;;  %6831 = vmatpush3.msra.mxu0 %v9287_v31  ;;  %v9297_v40 = vld [vmem:[#allocation11 + $0xb8] sm:$0xff]  ;;  %v9304_v31 = vld [vmem:[#allocation11 + $0x90] sm:$0xff]  ;;  %10562 = vst [vmem:[#allocation87_spill] sm:$0xff] %v9361_v63 }
 0x69a   :  { %2897 = vmatprep.subr.mxu1 %v9290_v25  ;;  %6832 = vmatprep.subr.mxu0 %v10261_v38  ;;  %10544 = vst [vmem:[#allocation58_spill] sm:$0xff] %v9297_v40  ;;  %v9300_v53 = vld [vmem:[#allocation11 + $0x98] sm:$0xff]  ;;  %10546 = vst [vmem:[#allocation59_spill] sm:$0xff] %v9304_v31  ;;  %v9307_v25 = vld [vmem:[#allocation11 + $0xa0] sm:$0xff] }
 0x69b   :  { %7065 = vtanh.f32 %v2706_v59  ;;  %2898 = vmatpush1.msra.mxu1 %v9294_v8  ;;  %6833 = vmatpush3.msra.mxu0 %v9297_v40  ;;  %10545 = vst [vmem:[#allocation77_spill] sm:$0xff] %v9300_v53  ;;  %10547 = vst [vmem:[#allocation60_spill] sm:$0xff] %v9307_v25  ;;  %v9310_v59 = vld [vmem:[#allocation11 + $0x80] sm:$0xff]  ;;  %v9314_v40 = vld [vmem:[#allocation11 + $0x78] sm:$0xff] }
 0x69c   :  { %2899 = vmatprep.subr.mxu1 %v9300_v53  ;;  %6834 = vmatprep.subr.mxu0 %v10261_v38  ;;  %10548 = vst [vmem:[#allocation80_spill] sm:$0xff] %v9310_v59  ;;  %10549 = vst [vmem:[#allocation62_spill] sm:$0xff] %v9314_v40  ;;  %v9317_v53 = vld [vmem:[#allocation11 + $0x88] sm:$0xff] }
 0x69d   :  { %2900 = vmatpush1.msra.mxu1 %v9304_v31  ;;  %6835 = vmatpush3.msra.mxu0 %v9307_v25  ;;  %10550 = vst [vmem:[#allocation63_spill] sm:$0xff] %v9317_v53  ;;  %v9320_v8 = vld [vmem:[#allocation11 + $0x68] sm:$0xff]  ;;  %v9324_v25 = vld [vmem:[#allocation11 + $0x60] sm:$0xff]  ;;  %v9330_v31 = vld [vmem:[#allocation11 + $0x50] sm:$0xff] }
 0x69e   :  { %2901 = vmatprep.subr.mxu1 %v9310_v59  ;;  %6836 = vmatprep.subr.mxu0 %v10261_v38  ;;  %10551 = vst [vmem:[#allocation64_spill] sm:$0xff] %v9320_v8  ;;  %10552 = vst [vmem:[#allocation66_spill] sm:$0xff] %v9324_v25  ;;  %v9327_v59 = vld [vmem:[#allocation11 + $0x70] sm:$0xff] }
 0x69f   :  { %2902 = vmatpush1.msra.mxu1 %v9314_v40  ;;  %6837 = vmatpush3.msra.mxu0 %v9317_v53  ;;  %10553 = vst [vmem:[#allocation67_spill] sm:$0xff] %v9327_v59  ;;  %10554 = vst [vmem:[#allocation68_spill] sm:$0xff] %v9330_v31  ;;  %v9334_v53 = vld [vmem:[#allocation11 + $0x48] sm:$0xff]  ;;  %v7064_v40 = vpop.eup %7063 }
 0x6a0   :  { %2903 = vmatprep.subr.mxu1 %v9320_v8  ;;  %6838 = vmatprep.subr.mxu0 %v10261_v38  ;;  %10555 = vst [vmem:[#allocation69_spill] sm:$0xff] %v9334_v53  ;;  %v9337_v8 = vld [vmem:[#allocation11 + $0x58] sm:$0xff]  ;;  %v2708_v54 = vsub.f32 1.0, %v7064_v40 }
 0x6a1   :  { %2904 = vmatpush1.msra.mxu1 %v9324_v25  ;;  %6839 = vmatpush3.msra.mxu0 %v9327_v59  ;;  %10556 = vst [vmem:[#allocation70_spill] sm:$0xff] %v9337_v8  ;;  %v9340_v25 = vld [vmem:[#allocation11 + $0x38] sm:$0xff]  ;;  %v9344_v59 = vld [vmem:[#allocation11 + $0x30] sm:$0xff] }
 0x6a2   :  { %2905 = vmatprep.subr.mxu1 %v9330_v31  ;;  %6840 = vmatprep.subr.mxu0 %v10261_v38  ;;  %10557 = vst [vmem:[#allocation71_spill] sm:$0xff] %v9340_v25  ;;  %10558 = vst [vmem:[#allocation78_spill] sm:$0xff] %v9344_v59  ;;  %v9347_v31 = vld [vmem:[#allocation11 + $0x40] sm:$0xff] }
 0x6a3   :  { %2906 = vmatpush1.msra.mxu1 %v9334_v53  ;;  %6841 = vmatpush3.msra.mxu0 %v9337_v8  ;;  %10559 = vst [vmem:[#allocation83_spill] sm:$0xff] %v9347_v31  ;;  %v9350_v53 = vld [vmem:[#allocation11 + $0x20] sm:$0xff]  ;;  %v9354_v8 = vld [vmem:[#allocation11 + $0x18] sm:$0xff] }
 0x6a4   :  { %2907 = vmatprep.subr.mxu1 %v9340_v25  ;;  %6842 = vmatprep.subr.mxu0 %v10261_v38  ;;  %10560 = vst [vmem:[#allocation85_spill] sm:$0xff] %v9350_v53  ;;  %10561 = vst [vmem:[#allocation86_spill] sm:$0xff] %v9354_v8  ;;  %v9357_v25 = vld [vmem:[#allocation11 + $0x28] sm:$0xff] }
 0x6a5   :  { %2908 = vmatpush1.msra.mxu1 %v9344_v59  ;;  %6843 = vmatpush3.msra.mxu0 %v9347_v31  ;;  %v2710_v59 = vrot.slane %v9033_v52, 2 }
 0x6a6   :  { %2909 = vmatprep.subr.mxu1 %v9350_v53  ;;  %6844 = vmatprep.subr.mxu0 %v10261_v38  ;;  %v9365_v53 = vld [vmem:[#allocation11] sm:$0xff] }
 0x6a7   :  { %2910 = vmatpush1.msra.mxu1 %v9354_v8  ;;  %6845 = vmatpush3.msra.mxu0 %v9357_v25  ;;  %10563 = vst [vmem:[#allocation25_spill] sm:$0xff] %v9365_v53  ;;  %v2712_v31 = vmul.f32 %v7064_v40, %v2710_v59 }
 0x6a8   :  { %v7066_v42 = vpop.eup %7065  ;;  %2911 = vmatprep.subr.mxu1 %v9361_v63  ;;  %6846 = vmatprep.subr.mxu0 %v10261_v38 }
 0x6a9   :  { %2912 = vmatpush1.msra.mxu1 %v9365_v53  ;;  %2945 = vmatprep.mubr.f32.mxu1 %v10261_v38  ;;  %v2709_v8 = vmul.f32 %v7066_v42, %v2708_v54  ;;  %v10564_v54 = vld [vmem:[#allocation79_spill] sm:$0xff] }
 0x6aa   :  { %6847 = vmatpush3.msra.mxu0 %v9369_v5  ;;  %6848 = vmatprep.mubr.msk.f32.mxu0 %vm7525_vm2, %v10261_v38 }
 0x6ab   :  { %v9374_v52 = vadd.f32 %v2712_v31, %v2709_v8  ;;  %3110 = vmatprep.subr.mxu1 %v9035_v36  ;;  %6851 = vmatprep.subr.mxu0 %v10261_v38  ;;  %v10565_v36 = vld [vmem:[#allocation81_spill] sm:$0xff] }
 0x6ad   :  { %v2726_v53 = vcombine.high %v9374_v52, %v9374_v52  ;;  %v2879_v63 = vrot.slane %v9374_v52, 4 }
 0x6af   :  { %6008 = vst.sshfl [vmem:[#allocation2 + $0x16] sm:$0x3 pattern:$0x76325410] %v2726_v53  ;;  %2946 = vmatmul.mubr.f32.vlgmr.msra.gmra.mxu1 %v2879_v63  ;;  %6849 = vmatmul.mubr.f32.vlgmr.msra.gmra.mxu0 %v2879_v63 }
 0x6b0   :  { %3111 = vmatpush1.msra.mxu1 %v9043_v20  ;;  %6852 = vmatpush3.msra.mxu0 %v9046_v39  ;;  %v10566_v20 = vld [vmem:[#allocation91_spill] sm:$0xff]  ;;  %v10567_v39 = vld [vmem:[#allocation82_spill] sm:$0xff] }
 0x6b1   :  { %3112 = vmatprep.subr.mxu1 %v9049_v56  ;;  %6853 = vmatprep.subr.mxu0 %v10261_v38  ;;  %v10568_v56 = vld [vmem:[#allocation92_spill] sm:$0xff] }
 0x6b2   :  { %3113 = vmatpush1.msra.mxu1 %v9053_v27  ;;  %6854 = vmatpush3.msra.mxu0 %v9056_v32  ;;  %v10569_v27 = vld [vmem:[#allocation84_spill] sm:$0xff]  ;;  %v10570_v32 = vld [vmem:[#allocation46_spill] sm:$0xff] }
 0x6b3   :  { %3114 = vmatprep.subr.mxu1 %v9059_v33  ;;  %6855 = vmatprep.subr.mxu0 %v10261_v38  ;;  %v10571_v33 = vld [vmem:[#allocation54_spill] sm:$0xff] }
 0x6b4   :  { %3115 = vmatpush1.msra.mxu1 %v9063_v55  ;;  %6856 = vmatpush3.msra.mxu0 %v9066_v37  ;;  %v10572_v55 = vld [vmem:[#allocation34_spill] sm:$0xff]  ;;  %v10573_v37 = vld [vmem:[#allocation35_spill] sm:$0xff] }
 0x6b5   :  { %3116 = vmatprep.subr.mxu1 %v9069_v50  ;;  %6857 = vmatprep.subr.mxu0 %v10261_v38  ;;  %v10574_v50 = vld [vmem:[#allocation49_spill] sm:$0xff] }
 0x6b6   :  { %3117 = vmatpush1.msra.mxu1 %v9073_v22  ;;  %6858 = vmatpush3.msra.mxu0 %v9076_v61  ;;  %v10575_v22 = vld [vmem:[#allocation36_spill] sm:$0xff]  ;;  %v10576_v61 = vld [vmem:[#allocation38_spill] sm:$0xff] }
 0x6b7   :  { %3118 = vmatprep.subr.mxu1 %v9079_v58  ;;  %6859 = vmatprep.subr.mxu0 %v10261_v38  ;;  %v10577_v58 = vld [vmem:[#allocation52_spill] sm:$0xff] }
 0x6b8   :  { %3119 = vmatpush1.msra.mxu1 %v9083_v6  ;;  %6860 = vmatpush3.msra.mxu0 %v9086_v4  ;;  %v10578_v6 = vld [vmem:[#allocation39_spill] sm:$0xff]  ;;  %v10579_v4 = vld [vmem:[#allocation41_spill] sm:$0xff] }
 0x6b9   :  { %3120 = vmatprep.subr.mxu1 %v9089_v16  ;;  %6861 = vmatprep.subr.mxu0 %v10261_v38  ;;  %v10580_v16 = vld [vmem:[#allocation53_spill] sm:$0xff] }
 0x6ba   :  { %3121 = vmatpush1.msra.mxu1 %v9093_v21  ;;  %6862 = vmatpush3.msra.mxu0 %v9096_v23  ;;  %v10581_v21 = vld [vmem:[#allocation42_spill] sm:$0xff]  ;;  %v10582_v23 = vld [vmem:[#allocation44_spill] sm:$0xff] }
 0x6bb   :  { %3122 = vmatprep.subr.mxu1 %v9099_v0  ;;  %6863 = vmatprep.subr.mxu0 %v10261_v38  ;;  %v10583_v0 = vld [vmem:[#allocation57_spill] sm:$0xff] }
 0x6bc   :  { %3123 = vmatpush1.msra.mxu1 %v9103_v19  ;;  %6864 = vmatpush3.msra.mxu0 %v9106_v14  ;;  %v10584_v19 = vld [vmem:[#allocation45_spill] sm:$0xff] }
 0x6bd   :  { %3124 = vmatprep.subr.mxu1 %v9109_v29  ;;  %6865 = vmatprep.subr.mxu0 %v10261_v38 }
 0x6be   :  { %3125 = vmatpush1.msra.mxu1 %v9113_v24  ;;  %6866 = vmatpush3.msra.mxu0 %v9116_v41  ;;  %v10585_v24 = vld [vmem:[#allocation103_spill] sm:$0xff] }
 0x6bf   :  { %3126 = vmatprep.subr.mxu1 %v9119_v3  ;;  %6867 = vmatprep.subr.mxu0 %v10261_v38 }
 0x6c0   :  { %3127 = vmatpush1.msra.mxu1 %v9123_v18  ;;  %6868 = vmatpush3.msra.mxu0 %v9126_v49 }
 0x6c1   :  { %3128 = vmatprep.subr.mxu1 %v9129_v46  ;;  %6869 = vmatprep.subr.mxu0 %v10261_v38  ;;  %v10586_v46 = vld [vmem:[#allocation105_spill] sm:$0xff] }
 0x6c2   :  { %3129 = vmatpush1.msra.mxu1 %v10564_v54  ;;  %6870 = vmatpush3.msra.mxu0 %v10565_v36 }
 0x6c3   :  { %3130 = vmatprep.subr.mxu1 %v10566_v20  ;;  %6871 = vmatprep.subr.mxu0 %v10261_v38  ;;  %v10587_v20 = vld [vmem:[#allocation108_spill] sm:$0xff] }
 0x6c4   :  { %3131 = vmatpush1.msra.mxu1 %v10567_v39  ;;  %6872 = vmatpush3.msra.mxu0 %v10568_v56 }
 0x6c5   :  { %3132 = vmatprep.subr.mxu1 %v10569_v27  ;;  %6873 = vmatprep.subr.mxu0 %v10261_v38 }
 0x6c6   :  { %3133 = vmatpush1.msra.mxu1 %v10570_v32  ;;  %6874 = vmatpush3.msra.mxu0 %v10571_v33 }
 0x6c7   :  { %3134 = vmatprep.subr.mxu1 %v10572_v55  ;;  %6875 = vmatprep.subr.mxu0 %v10261_v38 }
 0x6c8   :  { %3135 = vmatpush1.msra.mxu1 %v10573_v37  ;;  %6876 = vmatpush3.msra.mxu0 %v10574_v50 }
 0x6c9   :  { %3136 = vmatprep.subr.mxu1 %v10575_v22  ;;  %6877 = vmatprep.subr.mxu0 %v10261_v38 }
 0x6ca   :  { %3137 = vmatpush1.msra.mxu1 %v10576_v61  ;;  %6878 = vmatpush3.msra.mxu0 %v10577_v58 }
 0x6cb   :  { %3138 = vmatprep.subr.mxu1 %v10578_v6  ;;  %6879 = vmatprep.subr.mxu0 %v10261_v38 }
 0x6cc   :  { %3139 = vmatpush1.msra.mxu1 %v10579_v4  ;;  %6880 = vmatpush3.msra.mxu0 %v10580_v16 }
 0x6cd   :  { %3140 = vmatprep.subr.mxu1 %v10581_v21  ;;  %6881 = vmatprep.subr.mxu0 %v10261_v38 }
 0x6ce   :  { %3141 = vmatpush1.msra.mxu1 %v10582_v23  ;;  %3174 = vmatprep.mubr.f32.mxu1 %v10261_v38 }
 0x6cf   :  { %6882 = vmatpush3.msra.mxu0 %v10583_v0  ;;  %6883 = vmatprep.mubr.msk.f32.mxu0 %vm7525_vm2, %v10261_v38 }
 0x6d0   :  { %3253 = vmatprep.subr.mxu1 %v10584_v19  ;;  %6886 = vmatprep.subr.mxu0 %v10261_v38 }
 0x74a   :  { %v2804_v14 = vpop.f32.mrf.mxu1  ;;  %v2875_v29 = vpop.f32.mrf.mxu0 }
 0x74b   :  { %v2805_v41 = vadd.f32 %v2804_v14, %v10585_v24  ;;  %v2876_v39 = vadd.f32 %v2875_v29, %v10587_v20 }
 0x74c   :  { %v2806_v3 = vpop.f32.mrf.mxu1  ;;  %v6815_v18 = vpop.f32.mrf.mxu0 }
 0x74d   :  { %v3023_v49 = vrot.slane %v2805_v41, 4  ;;  %v2807_v42 = vadd.f32 %v2806_v3, %v10586_v46  ;;  %v3043_v27 = vrot.slane %v2876_v39, 4  ;;  %v3050_v41 = vrot.slane %v9217_v17, 6  ;;  %v10601_v39 = vld [vmem:[#allocation59_spill] sm:$0xff] }
 0x74f   :  { %v3025_v53 = vadd.f32 %v3023_v49, %v10530_v12  ;;  %v3033_v31 = vrot.slane %v2807_v42, 4 }
 0x751   :  { %v6009_v63 = vmul.f32 -1.442695, %v3025_v53  ;;  %v3035_v8 = vadd.f32 %v3033_v31, %v10531_v57 }
 0x753   :  { %7067 = vpow2.f32 %v6009_v63  ;;  %v6010_v40 = vmul.f32 -1.442695, %v3035_v8 }
 0x755   :  { %7069 = vpow2.f32 %v6010_v40  ;;  %v10597_v40 = vld [vmem:[#allocation74_spill] sm:$0xff] }
 0x760   :  { %v7068_v59 = vpop.eup %7067 }
 0x761   :  { %v3029_v54 = vadd.f32 1.0, %v7068_v59  ;;  %v10598_v59 = vld [vmem:[#allocation56_spill] sm:$0xff] }
 0x762   :  { %v7070_v36 = vpop.eup %7069 }
 0x763   :  { %7071 = vrcp.f32 %v3029_v54  ;;  %v3039_v56 = vadd.f32 1.0, %v7070_v36  ;;  %v10599_v54 = vld [vmem:[#allocation58_spill] sm:$0xff]  ;;  %v10600_v36 = vld [vmem:[#allocation77_spill] sm:$0xff] }
 0x765   :  { %7073 = vrcp.f32 %v3039_v56  ;;  %v10602_v56 = vld [vmem:[#allocation60_spill] sm:$0xff] }
 0x76f   :  { %v2947_v32 = vpop.f32.mrf.mxu1  ;;  %v3018_v33 = vpop.f32.mrf.mxu0 }
 0x770   :  { %v7072_v55 = vpop.eup %7071  ;;  %v2948_v37 = vadd.f32 %v2947_v32, %v10533_v10  ;;  %v10604_v32 = vld [vmem:[#allocation62_spill] sm:$0xff] }
 0x771   :  { %v3045_v50 = vmul.f32 %v7072_v55, %v3043_v27  ;;  %v2949_v22 = vpop.f32.mrf.mxu1  ;;  %v6850_v61 = vpop.f32.mrf.mxu0  ;;  %v10603_v27 = vld [vmem:[#allocation80_spill] sm:$0xff] }
 0x772   :  { %v3055_v58 = vrot.slane %v2948_v37, 6  ;;  %v2950_v6 = vadd.f32 %v2949_v22, %v8102_v2  ;;  %v7074_v19 = vpop.eup %7073  ;;  %v10606_v55 = vld [vmem:[#allocation64_spill] sm:$0xff]  ;;  %v10607_v37 = vld [vmem:[#allocation66_spill] sm:$0xff]  ;;  %v10610_v61 = vld [vmem:[#allocation69_spill] sm:$0xff] }
 0x773   :  { %v3046_v4 = vadd.f32 %v3045_v50, %v10498_v11  ;;  %v3048_v29 = vsub.f32 1.0, %v7074_v19  ;;  %v3052_v49 = vmul.f32 %v7074_v19, %v3050_v41  ;;  %v10608_v50 = vld [vmem:[#allocation67_spill] sm:$0xff]  ;;  %v10609_v22 = vld [vmem:[#allocation68_spill] sm:$0xff] }
 0x774   :  { %v3057_v16 = vadd.f32 %v3055_v58, %v10497_v43  ;;  %v3065_v23 = vrot.slane %v2950_v6, 6  ;;  %v10611_v58 = vld [vmem:[#allocation70_spill] sm:$0xff]  ;;  %v10617_v41 = vld [vmem:[#allocation87_spill] sm:$0xff] }
 0x775   :  { %7075 = vtanh.f32 %v3046_v4  ;;  %v10612_v4 = vld [vmem:[#allocation71_spill] sm:$0xff] }
 0x776   :  { %v6011_v21 = vmul.f32 -1.442695, %v3057_v16  ;;  %v3067_v0 = vadd.f32 %v3065_v23, %v10499_v30  ;;  %v10613_v16 = vld [vmem:[#allocation78_spill] sm:$0xff]  ;;  %v10615_v23 = vld [vmem:[#allocation85_spill] sm:$0xff] }
 0x778   :  { %7077 = vpow2.f32 %v6011_v21  ;;  %v6012_v14 = vmul.f32 -1.442695, %v3067_v0  ;;  %v10614_v21 = vld [vmem:[#allocation83_spill] sm:$0xff]  ;;  %v10616_v0 = vld [vmem:[#allocation86_spill] sm:$0xff] }
 0x77a   :  { %7079 = vpow2.f32 %v6012_v14  ;;  %v3082_v14 = vrot.slane %v9374_v52, 2 }
 0x782   :  { %v7076_v3 = vpop.eup %7075 }
 0x783   :  { %v3049_v18 = vmul.f32 %v7076_v3, %v3048_v29  ;;  %v10618_v3 = vld [vmem:[#allocation25_spill] sm:$0xff] }
 0x785   :  { %v7078_v42 = vpop.eup %7077  ;;  %v9459_v53 = vadd.f32 %v3052_v49, %v3049_v18 }
 0x786   :  { %v3061_v63 = vadd.f32 1.0, %v7078_v42  ;;  %v10619_v42 = vld [vmem:[#allocation55_spill] sm:$0xff] }
 0x787   :  { %v3087_v31 = vcombine.high %v9459_v53, %v9459_v53  ;;  %v3108_v8 = vrot.slane %v9459_v53, 4  ;;  %v7080_v17 = vpop.eup %7079 }
 0x788   :  { %7081 = vrcp.f32 %v3061_v63 }
 0x789   :  { %6013 = vst.sshfl [vmem:[#allocation2 + $0x4] sm:$0x3 pattern:$0x76325410] %v3087_v31  ;;  %3175 = vmatmul.mubr.f32.vlgmr.msra.gmra.mxu1 %v3108_v8  ;;  %6884 = vmatmul.mubr.f32.vlgmr.msra.gmra.mxu0 %v3108_v8  ;;  %v3525_v8 = vld [vmem:[#allocation14 + $0x1e8] sm:$0xff] }
 0x78a   :  { %3254 = vmatpush1.msra.mxu1 %v8955_v35  ;;  %6887 = vmatpush3.msra.mxu0 %v9223_v62  ;;  %v3019_v35 = vadd.f32 %v3018_v33, %v8119_v34  ;;  %v10605_v33 = vld [vmem:[#allocation63_spill] sm:$0xff] }
 0x78b   :  { %3255 = vmatprep.subr.mxu1 %v8959_v15  ;;  %6888 = vmatprep.subr.mxu0 %v10261_v38  ;;  %v3071_v15 = vadd.f32 1.0, %v7080_v17  ;;  %v3524_v17 = vld [vmem:[#allocation14 + $0x1e0] sm:$0xff] }
 0x78c   :  { %3256 = vmatpush1.msra.mxu1 %v8963_v48  ;;  %6889 = vmatpush3.msra.mxu0 %v9229_v9  ;;  %v3075_v48 = vrot.slane %v3019_v35, 6  ;;  %v10590_v9 = vld [vmem:[#allocation48_spill] sm:$0xff]  ;;  %v3521_v35 = vld [vmem:[#allocation14 + $0x1c8] sm:$0xff] }
 0x78d   :  { %3257 = vmatprep.subr.mxu1 %v8967_v60  ;;  %6890 = vmatprep.subr.mxu0 %v10261_v38  ;;  %v10588_v60 = vld [vmem:[#allocation47_spill] sm:$0xff]  ;;  %7083 = vrcp.f32 %v3071_v15  ;;  %v3652_v15 = vld [vmem:[#allocation14 + $0x5e0] sm:$0xff] }
 0x78e   :  { %3258 = vmatpush1.msra.mxu1 %v8971_v28  ;;  %6891 = vmatpush3.msra.mxu0 %v9235_v44  ;;  %v10589_v28 = vld [vmem:[#allocation61_spill] sm:$0xff] }
 0x78f   :  { %3259 = vmatprep.subr.mxu1 %v9238_v1  ;;  %6892 = vmatprep.subr.mxu0 %v10261_v38  ;;  %v10591_v1 = vld [vmem:[#allocation73_spill] sm:$0xff] }
 0x790   :  { %3260 = vmatpush1.msra.mxu1 %v9243_v51  ;;  %6893 = vmatpush3.msra.mxu0 %v9246_v26  ;;  %v10592_v51 = vld [vmem:[#allocation75_spill] sm:$0xff]  ;;  %v10593_v26 = vld [vmem:[#allocation89_spill] sm:$0xff] }
 0x791   :  { %3261 = vmatprep.subr.mxu1 %v9249_v7  ;;  %6894 = vmatprep.subr.mxu0 %v10261_v38  ;;  %v10594_v7 = vld [vmem:[#allocation102_spill] sm:$0xff] }
 0x792   :  { %3262 = vmatpush1.msra.mxu1 %v9253_v13  ;;  %6895 = vmatpush3.msra.mxu0 %v9256_v47  ;;  %v10595_v47 = vld [vmem:[#allocation76_spill] sm:$0xff] }
 0x793   :  { %3263 = vmatprep.subr.mxu1 %v9259_v45  ;;  %6896 = vmatprep.subr.mxu0 %v10261_v38  ;;  %v10596_v45 = vld [vmem:[#allocation90_spill] sm:$0xff] }
 0x794   :  { %3264 = vmatpush1.msra.mxu1 %v10588_v60  ;;  %6897 = vmatpush3.msra.mxu0 %v10589_v28  ;;  %v3649_v60 = vld [vmem:[#allocation14 + $0x5c8] sm:$0xff]  ;;  %v3516_v28 = vld [vmem:[#allocation14 + $0x1a0] sm:$0xff] }
 0x795   :  { %v7082_v62 = vpop.eup %7081  ;;  %3265 = vmatprep.subr.mxu1 %v10590_v9  ;;  %6898 = vmatprep.subr.mxu0 %v10261_v38  ;;  %v3513_v9 = vld [vmem:[#allocation14 + $0x188] sm:$0xff] }
 0x796   :  { %v3077_v44 = vmul.f32 %v7082_v62, %v3075_v48  ;;  %3266 = vmatpush1.msra.mxu1 %v10591_v1  ;;  %6899 = vmatpush3.msra.mxu0 %v10592_v51  ;;  %v3517_v48 = vld [vmem:[#allocation14 + $0x1a8] sm:$0xff]  ;;  %v3648_v62 = vld [vmem:[#allocation14 + $0x5c0] sm:$0xff] }
 0x797   :  { %3267 = vmatprep.subr.mxu1 %v10593_v26  ;;  %6900 = vmatprep.subr.mxu0 %v10261_v38  ;;  %v3512_v1 = vld [vmem:[#allocation14 + $0x180] sm:$0xff]  ;;  %v3509_v26 = vld [vmem:[#allocation14 + $0x168] sm:$0xff] }
 0x798   :  { %v3078_v13 = vadd.f32 %v3077_v44, %v10594_v7  ;;  %3268 = vmatpush1.msra.mxu1 %v10595_v47  ;;  %6901 = vmatpush3.msra.mxu0 %v10596_v45  ;;  %v3645_v44 = vld [vmem:[#allocation14 + $0x5a8] sm:$0xff]  ;;  %v3644_v51 = vld [vmem:[#allocation14 + $0x5a0] sm:$0xff] }
 0x799   :  { %3269 = vmatprep.subr.mxu1 %v10597_v40  ;;  %6902 = vmatprep.subr.mxu0 %v10261_v38  ;;  %v3508_v47 = vld [vmem:[#allocation14 + $0x160] sm:$0xff]  ;;  %v3505_v40 = vld [vmem:[#allocation14 + $0x148] sm:$0xff] }
 0x79a   :  { %7085 = vtanh.f32 %v3078_v13  ;;  %3270 = vmatpush1.msra.mxu1 %v10598_v59  ;;  %6903 = vmatpush3.msra.mxu0 %v10599_v54  ;;  %v7084_v6 = vpop.eup %7083  ;;  %v3641_v13 = vld [vmem:[#allocation14 + $0x588] sm:$0xff]  ;;  %v3640_v45 = vld [vmem:[#allocation14 + $0x580] sm:$0xff] }
 0x79b   :  { %3271 = vmatprep.subr.mxu1 %v10600_v36  ;;  %6904 = vmatprep.subr.mxu0 %v10261_v38  ;;  %v3080_v19 = vsub.f32 1.0, %v7084_v6  ;;  %v3084_v49 = vmul.f32 %v7084_v6, %v3082_v14  ;;  %v3637_v59 = vld [vmem:[#allocation14 + $0x568] sm:$0xff]  ;;  %v3504_v54 = vld [vmem:[#allocation14 + $0x140] sm:$0xff] }
 0x79c   :  { %3272 = vmatpush1.msra.mxu1 %v10601_v39  ;;  %6905 = vmatpush3.msra.mxu0 %v10602_v56  ;;  %v3636_v36 = vld [vmem:[#allocation14 + $0x560] sm:$0xff]  ;;  %v3501_v39 = vld [vmem:[#allocation14 + $0x128] sm:$0xff] }
 0x79d   :  { %3273 = vmatprep.subr.mxu1 %v10603_v27  ;;  %6906 = vmatprep.subr.mxu0 %v10261_v38  ;;  %v3633_v56 = vld [vmem:[#allocation14 + $0x548] sm:$0xff]  ;;  %v3500_v27 = vld [vmem:[#allocation14 + $0x120] sm:$0xff] }
 0x79e   :  { %3274 = vmatpush1.msra.mxu1 %v10604_v32  ;;  %6907 = vmatpush3.msra.mxu0 %v10605_v33  ;;  %v3632_v32 = vld [vmem:[#allocation14 + $0x540] sm:$0xff]  ;;  %v3497_v33 = vld [vmem:[#allocation14 + $0x108] sm:$0xff] }
 0x79f   :  { %3275 = vmatprep.subr.mxu1 %v10606_v55  ;;  %6908 = vmatprep.subr.mxu0 %v10261_v38  ;;  %v3629_v55 = vld [vmem:[#allocation14 + $0x528] sm:$0xff]  ;;  %v3624_v6 = vld [vmem:[#allocation14 + $0x500] sm:$0xff] }
 0x7a0   :  { %3276 = vmatpush1.msra.mxu1 %v10607_v37  ;;  %6909 = vmatpush3.msra.mxu0 %v10608_v50  ;;  %v3496_v37 = vld [vmem:[#allocation14 + $0x100] sm:$0xff] }
 0x7a1   :  { %3277 = vmatprep.subr.mxu1 %v10609_v22  ;;  %6910 = vmatprep.subr.mxu0 %v10261_v38  ;;  %v3628_v50 = vld [vmem:[#allocation14 + $0x520] sm:$0xff]  ;;  %v3493_v22 = vld [vmem:[#allocation14 + $0xe8] sm:$0xff] }
 0x7a2   :  { %3278 = vmatpush1.msra.mxu1 %v10610_v61  ;;  %6911 = vmatpush3.msra.mxu0 %v10611_v58  ;;  %v3625_v61 = vld [vmem:[#allocation14 + $0x508] sm:$0xff]  ;;  %v3492_v58 = vld [vmem:[#allocation14 + $0xe0] sm:$0xff] }
 0x7a3   :  { %3279 = vmatprep.subr.mxu1 %v10612_v4  ;;  %6912 = vmatprep.subr.mxu0 %v10261_v38  ;;  %v3489_v4 = vld [vmem:[#allocation14 + $0xc8] sm:$0xff]  ;;  %v3484_v14 = vld [vmem:[#allocation14 + $0xa0] sm:$0xff] }
 0x7a4   :  { %3280 = vmatpush1.msra.mxu1 %v10613_v16  ;;  %6913 = vmatpush3.msra.mxu0 %v10614_v21  ;;  %v3621_v16 = vld [vmem:[#allocation14 + $0x4e8] sm:$0xff]  ;;  %v3488_v21 = vld [vmem:[#allocation14 + $0xc0] sm:$0xff] }
 0x7a5   :  { %3281 = vmatprep.subr.mxu1 %v10615_v23  ;;  %6914 = vmatprep.subr.mxu0 %v10261_v38  ;;  %v3620_v23 = vld [vmem:[#allocation14 + $0x4e0] sm:$0xff] }
 0x7a6   :  { %3282 = vmatpush1.msra.mxu1 %v10616_v0  ;;  %6915 = vmatpush3.msra.mxu0 %v9357_v25  ;;  %v3485_v0 = vld [vmem:[#allocation14 + $0xa8] sm:$0xff] }
 0x7a7   :  { %v7086_v29 = vpop.eup %7085  ;;  %3283 = vmatprep.subr.mxu1 %v10617_v41  ;;  %6916 = vmatprep.subr.mxu0 %v10261_v38  ;;  %v3481_v41 = vld [vmem:[#allocation14 + $0x88] sm:$0xff] }
 0x7a8   :  { %3284 = vmatpush1.msra.mxu1 %v10618_v3  ;;  %3317 = vmatprep.mubr.f32.mxu1 %v10261_v38  ;;  %v3081_v18 = vmul.f32 %v7086_v29, %v3080_v19  ;;  %v3617_v19 = vld [vmem:[#allocation14 + $0x4c8] sm:$0xff]  ;;  %v3616_v29 = vld [vmem:[#allocation14 + $0x4c0] sm:$0xff] }
 0x7a9   :  { %6917 = vmatpush3.msra.mxu0 %v9369_v5  ;;  %6918 = vmatprep.mubr.msk.f32.mxu0 %vm7525_vm2, %v10261_v38  ;;  %v3653_v5 = vld [vmem:[#allocation14 + $0x5e8] sm:$0xff]  ;;  %v3520_v38 = vld [vmem:[#allocation14 + $0x1c0] sm:$0xff] }
 0x7aa   :  { %v3085_v25 = vadd.f32 %v3084_v49, %v3081_v18  ;;  %4598 = vmatprep.subr.mxu1 %v3525_v8  ;;  %4669 = vmatprep.subr.mxu0 %v3653_v5  ;;  %v3613_v3 = vld [vmem:[#allocation14 + $0x4a8] sm:$0xff]  ;;  %v3480_v18 = vld [vmem:[#allocation14 + $0x80] sm:$0xff] }
 0x7ab   :  { %v3612_v49 = vld [vmem:[#allocation14 + $0x4a0] sm:$0xff] }
 0x7ac   :  { %v3104_v63 = vrot.slane %v3085_v25, %v10619_v42  ;;  %v9533_v52 = vrot.slane %v3085_v25, 2  ;;  %v3477_v25 = vld [vmem:[#allocation14 + $0x68] sm:$0xff]  ;;  %v3608_v8 = vld [vmem:[#allocation14 + $0x480] sm:$0xff] }
 0x7ad   :  { %v3472_v5 = vld [vmem:[#allocation14 + $0x40] sm:$0xff] }
 0x7ae   :  { %v3105_v31 = vcombine.high %v3104_v63, %v3104_v63  ;;  %3318 = vmatmul.mubr.f32.vlgmr.msra.gmra.mxu1 %v9533_v52  ;;  %6919 = vmatmul.mubr.f32.vlgmr.msra.gmra.mxu0 %v9533_v52  ;;  %v3609_v63 = vld [vmem:[#allocation14 + $0x488] sm:$0xff] }
 0x7af   :  { %4599 = vmatpush1.msra.mxu1 %v3524_v17  ;;  %4670 = vmatpush1.msra.mxu0 %v3652_v15  ;;  %v3473_v17 = vld [vmem:[#allocation14 + $0x48] sm:$0xff] }
 0x7b0   :  { %3107 = vst [vmem:[#allocation2 + $0x1a] sm:$0x3] %v3105_v31  ;;  %4600 = vmatprep.subr.mxu1 %v3521_v35  ;;  %4671 = vmatprep.subr.mxu0 %v3649_v60  ;;  %v3476_v31 = vld [vmem:[#allocation14 + $0x60] sm:$0xff]  ;;  %v3605_v35 = vld [vmem:[#allocation14 + $0x468] sm:$0xff] }
 0x7b1   :  { %4601 = vmatpush1.msra.mxu1 %v3520_v38  ;;  %4672 = vmatpush1.msra.mxu0 %v3648_v62  ;;  %v3604_v38 = vld [vmem:[#allocation14 + $0x460] sm:$0xff]  ;;  %v3469_v15 = vld [vmem:[#allocation14 + $0x28] sm:$0xff] }
 0x7b2   :  { %4602 = vmatprep.subr.mxu1 %v3517_v48  ;;  %4673 = vmatprep.subr.mxu0 %v3645_v44  ;;  %v3601_v48 = vld [vmem:[#allocation14 + $0x448] sm:$0xff]  ;;  %v3468_v60 = vld [vmem:[#allocation14 + $0x20] sm:$0xff] }
 0x7b3   :  { %4603 = vmatpush1.msra.mxu1 %v3516_v28  ;;  %4674 = vmatpush1.msra.mxu0 %v3644_v51  ;;  %v3600_v28 = vld [vmem:[#allocation14 + $0x440] sm:$0xff]  ;;  %v3465_v62 = vld [vmem:[#allocation14 + $0x8] sm:$0xff] }
 0x7b4   :  { %4604 = vmatprep.subr.mxu1 %v3513_v9  ;;  %4675 = vmatprep.subr.mxu0 %v3641_v13  ;;  %v3597_v9 = vld [vmem:[#allocation14 + $0x428] sm:$0xff]  ;;  %v3464_v44 = vld [vmem:[#allocation14] sm:$0xff] }
 0x7b5   :  { %4605 = vmatpush1.msra.mxu1 %v3512_v1  ;;  %4676 = vmatpush1.msra.mxu0 %v3640_v45  ;;  %v3596_v1 = vld [vmem:[#allocation14 + $0x420] sm:$0xff]  ;;  %v3589_v51 = vld [vmem:[#allocation14 + $0x3e8] sm:$0xff] }
 0x7b6   :  { %4606 = vmatprep.subr.mxu1 %v3509_v26  ;;  %4677 = vmatprep.subr.mxu0 %v3637_v59  ;;  %v3593_v26 = vld [vmem:[#allocation14 + $0x408] sm:$0xff]  ;;  %v3588_v13 = vld [vmem:[#allocation14 + $0x3e0] sm:$0xff] }
 0x7b7   :  { %4607 = vmatpush1.msra.mxu1 %v3508_v47  ;;  %4678 = vmatpush1.msra.mxu0 %v3636_v36  ;;  %v3592_v47 = vld [vmem:[#allocation14 + $0x400] sm:$0xff]  ;;  %v3585_v45 = vld [vmem:[#allocation14 + $0x3c8] sm:$0xff] }
 0x7b8   :  { %4608 = vmatprep.subr.mxu1 %v3505_v40  ;;  %4679 = vmatprep.subr.mxu0 %v3633_v56  ;;  %v3717_v40 = vld [vmem:[#allocation14 + $0x7e8] sm:$0xff]  ;;  %v3584_v59 = vld [vmem:[#allocation14 + $0x3c0] sm:$0xff] }
 0x7b9   :  { %4609 = vmatpush1.msra.mxu1 %v3504_v54  ;;  %4680 = vmatpush1.msra.mxu0 %v3632_v32  ;;  %v3716_v54 = vld [vmem:[#allocation14 + $0x7e0] sm:$0xff]  ;;  %v3581_v36 = vld [vmem:[#allocation14 + $0x3a8] sm:$0xff] }
 0x7ba   :  { %4610 = vmatprep.subr.mxu1 %v3501_v39  ;;  %4681 = vmatprep.subr.mxu0 %v3629_v55  ;;  %v3713_v39 = vld [vmem:[#allocation14 + $0x7c8] sm:$0xff]  ;;  %v3580_v56 = vld [vmem:[#allocation14 + $0x3a0] sm:$0xff] }
 0x7bb   :  { %4611 = vmatpush1.msra.mxu1 %v3500_v27  ;;  %4682 = vmatpush1.msra.mxu0 %v3628_v50  ;;  %v3712_v27 = vld [vmem:[#allocation14 + $0x7c0] sm:$0xff]  ;;  %v3577_v32 = vld [vmem:[#allocation14 + $0x388] sm:$0xff] }
 0x7bc   :  { %4612 = vmatprep.subr.mxu1 %v3497_v33  ;;  %4683 = vmatprep.subr.mxu0 %v3625_v61  ;;  %v3709_v33 = vld [vmem:[#allocation14 + $0x7a8] sm:$0xff]  ;;  %v3576_v55 = vld [vmem:[#allocation14 + $0x380] sm:$0xff] }
 0x7bd   :  { %4613 = vmatpush1.msra.mxu1 %v3496_v37  ;;  %4684 = vmatpush1.msra.mxu0 %v3624_v6  ;;  %v3708_v37 = vld [vmem:[#allocation14 + $0x7a0] sm:$0xff]  ;;  %v3573_v50 = vld [vmem:[#allocation14 + $0x368] sm:$0xff] }
 0x7be   :  { %4614 = vmatprep.subr.mxu1 %v3493_v22  ;;  %4685 = vmatprep.subr.mxu0 %v3621_v16  ;;  %v3705_v22 = vld [vmem:[#allocation14 + $0x788] sm:$0xff]  ;;  %v3572_v61 = vld [vmem:[#allocation14 + $0x360] sm:$0xff] }
 0x7bf   :  { %4615 = vmatpush1.msra.mxu1 %v3492_v58  ;;  %4686 = vmatpush1.msra.mxu0 %v3620_v23  ;;  %v3704_v58 = vld [vmem:[#allocation14 + $0x780] sm:$0xff]  ;;  %v3569_v6 = vld [vmem:[#allocation14 + $0x348] sm:$0xff] }
 0x7c0   :  { %4616 = vmatprep.subr.mxu1 %v3489_v4  ;;  %4687 = vmatprep.subr.mxu0 %v3617_v19  ;;  %v3701_v4 = vld [vmem:[#allocation14 + $0x768] sm:$0xff]  ;;  %v3568_v16 = vld [vmem:[#allocation14 + $0x340] sm:$0xff] }
 0x7c1   :  { %4617 = vmatpush1.msra.mxu1 %v3488_v21  ;;  %4688 = vmatpush1.msra.mxu0 %v3616_v29  ;;  %v3700_v21 = vld [vmem:[#allocation14 + $0x760] sm:$0xff]  ;;  %v3565_v23 = vld [vmem:[#allocation14 + $0x328] sm:$0xff] }
 0x7c2   :  { %4618 = vmatprep.subr.mxu1 %v3485_v0  ;;  %4689 = vmatprep.subr.mxu0 %v3613_v3  ;;  %v3697_v0 = vld [vmem:[#allocation14 + $0x748] sm:$0xff]  ;;  %v3564_v19 = vld [vmem:[#allocation14 + $0x320] sm:$0xff] }
 0x7c3   :  { %4619 = vmatpush1.msra.mxu1 %v3484_v14  ;;  %4690 = vmatpush1.msra.mxu0 %v3612_v49  ;;  %v3696_v14 = vld [vmem:[#allocation14 + $0x740] sm:$0xff]  ;;  %v3561_v29 = vld [vmem:[#allocation14 + $0x308] sm:$0xff] }
 0x7c4   :  { %4620 = vmatprep.subr.mxu1 %v3481_v41  ;;  %4691 = vmatprep.subr.mxu0 %v3609_v63  ;;  %v3693_v41 = vld [vmem:[#allocation14 + $0x728] sm:$0xff]  ;;  %v3560_v3 = vld [vmem:[#allocation14 + $0x300] sm:$0xff] }
 0x7c5   :  { %4621 = vmatpush1.msra.mxu1 %v3480_v18  ;;  %4692 = vmatpush1.msra.mxu0 %v3608_v8  ;;  %v3692_v18 = vld [vmem:[#allocation14 + $0x720] sm:$0xff]  ;;  %v3557_v49 = vld [vmem:[#allocation14 + $0x2e8] sm:$0xff] }
 0x7c6   :  { %4622 = vmatprep.subr.mxu1 %v3477_v25  ;;  %4693 = vmatprep.subr.mxu0 %v3605_v35  ;;  %v3689_v25 = vld [vmem:[#allocation14 + $0x708] sm:$0xff]  ;;  %v3556_v63 = vld [vmem:[#allocation14 + $0x2e0] sm:$0xff] }
 0x7c7   :  { %4623 = vmatpush1.msra.mxu1 %v3476_v31  ;;  %4694 = vmatpush1.msra.mxu0 %v3604_v38  ;;  %v3688_v31 = vld [vmem:[#allocation14 + $0x700] sm:$0xff]  ;;  %v3553_v8 = vld [vmem:[#allocation14 + $0x2c8] sm:$0xff] }
 0x7c8   :  { %4624 = vmatprep.subr.mxu1 %v3473_v17  ;;  %4695 = vmatprep.subr.mxu0 %v3601_v48  ;;  %v3685_v17 = vld [vmem:[#allocation14 + $0x6e8] sm:$0xff]  ;;  %v3552_v35 = vld [vmem:[#allocation14 + $0x2c0] sm:$0xff] }
 0x7c9   :  { %4625 = vmatpush1.msra.mxu1 %v3472_v5  ;;  %4696 = vmatpush1.msra.mxu0 %v3600_v28  ;;  %v3684_v5 = vld [vmem:[#allocation14 + $0x6e0] sm:$0xff]  ;;  %v3549_v38 = vld [vmem:[#allocation14 + $0x2a8] sm:$0xff] }
 0x7ca   :  { %4626 = vmatprep.subr.mxu1 %v3469_v15  ;;  %4697 = vmatprep.subr.mxu0 %v3597_v9  ;;  %v3681_v15 = vld [vmem:[#allocation14 + $0x6c8] sm:$0xff]  ;;  %v3548_v48 = vld [vmem:[#allocation14 + $0x2a0] sm:$0xff] }
 0x7cb   :  { %4627 = vmatpush1.msra.mxu1 %v3468_v60  ;;  %4698 = vmatpush1.msra.mxu0 %v3596_v1  ;;  %v3680_v60 = vld [vmem:[#allocation14 + $0x6c0] sm:$0xff]  ;;  %v3545_v28 = vld [vmem:[#allocation14 + $0x288] sm:$0xff] }
 0x7cc   :  { %4628 = vmatprep.subr.mxu1 %v3465_v62  ;;  %4699 = vmatprep.subr.mxu0 %v3593_v26  ;;  %v3677_v62 = vld [vmem:[#allocation14 + $0x6a8] sm:$0xff]  ;;  %v3544_v9 = vld [vmem:[#allocation14 + $0x280] sm:$0xff] }
 0x7cd   :  { %4629 = vmatpush1.msra.mxu1 %v3464_v44  ;;  %4700 = vmatpush1.msra.mxu0 %v3592_v47  ;;  %v3676_v44 = vld [vmem:[#allocation14 + $0x6a0] sm:$0xff]  ;;  %v3541_v1 = vld [vmem:[#allocation14 + $0x268] sm:$0xff] }
 0x7ce   :  { %4630 = vmatprep.subr.mxu1 %v3589_v51  ;;  %4701 = vmatprep.subr.mxu0 %v3717_v40  ;;  %v3673_v51 = vld [vmem:[#allocation14 + $0x688] sm:$0xff]  ;;  %v3540_v26 = vld [vmem:[#allocation14 + $0x260] sm:$0xff] }
 0x7cf   :  { %4631 = vmatpush2.msra.mxu1 %v3588_v13  ;;  %4702 = vmatpush2.msra.mxu0 %v3716_v54  ;;  %v3672_v13 = vld [vmem:[#allocation14 + $0x680] sm:$0xff]  ;;  %v3537_v47 = vld [vmem:[#allocation14 + $0x248] sm:$0xff] }
 0x7d0   :  { %4632 = vmatprep.subr.mxu1 %v3585_v45  ;;  %4703 = vmatprep.subr.mxu0 %v3713_v39  ;;  %v3669_v45 = vld [vmem:[#allocation14 + $0x668] sm:$0xff]  ;;  %v3536_v40 = vld [vmem:[#allocation14 + $0x240] sm:$0xff] }
 0x7d1   :  { %4633 = vmatpush2.msra.mxu1 %v3584_v59  ;;  %4704 = vmatpush2.msra.mxu0 %v3712_v27  ;;  %v3668_v59 = vld [vmem:[#allocation14 + $0x660] sm:$0xff]  ;;  %v3533_v54 = vld [vmem:[#allocation14 + $0x228] sm:$0xff] }
 0x7d2   :  { %4634 = vmatprep.subr.mxu1 %v3581_v36  ;;  %4705 = vmatprep.subr.mxu0 %v3709_v33  ;;  %v3665_v36 = vld [vmem:[#allocation14 + $0x648] sm:$0xff]  ;;  %v3532_v39 = vld [vmem:[#allocation14 + $0x220] sm:$0xff] }
 0x7d3   :  { %4635 = vmatpush2.msra.mxu1 %v3580_v56  ;;  %4706 = vmatpush2.msra.mxu0 %v3708_v37  ;;  %v3664_v56 = vld [vmem:[#allocation14 + $0x640] sm:$0xff]  ;;  %v3529_v27 = vld [vmem:[#allocation14 + $0x208] sm:$0xff] }
 0x7d4   :  { %4636 = vmatprep.subr.mxu1 %v3577_v32  ;;  %4707 = vmatprep.subr.mxu0 %v3705_v22  ;;  %v3661_v32 = vld [vmem:[#allocation14 + $0x628] sm:$0xff]  ;;  %v3528_v33 = vld [vmem:[#allocation14 + $0x200] sm:$0xff] }
 0x7d5   :  { %4637 = vmatpush2.msra.mxu1 %v3576_v55  ;;  %4708 = vmatpush2.msra.mxu0 %v3704_v58  ;;  %v3660_v55 = vld [vmem:[#allocation14 + $0x620] sm:$0xff]  ;;  %v3657_v37 = vld [vmem:[#allocation14 + $0x608] sm:$0xff] }
 0x7d6   :  { %4638 = vmatprep.subr.mxu1 %v3573_v50  ;;  %4709 = vmatprep.subr.mxu0 %v3701_v4  ;;  %v3781_v50 = vld [vmem:[#allocation14 + $0x9e8] sm:$0xff]  ;;  %v3656_v22 = vld [vmem:[#allocation14 + $0x600] sm:$0xff] }
 0x7d7   :  { %4639 = vmatpush2.msra.mxu1 %v3572_v61  ;;  %4710 = vmatpush2.msra.mxu0 %v3700_v21  ;;  %v3909_v61 = vld [vmem:[#allocation14 + $0xde8] sm:$0xff] }
 0x7d8   :  { %4640 = vmatprep.subr.mxu1 %v3569_v6  ;;  %4711 = vmatprep.subr.mxu0 %v3697_v0 }
 0x7d9   :  { %4641 = vmatpush2.msra.mxu1 %v3568_v16  ;;  %4712 = vmatpush2.msra.mxu0 %v3696_v14 }
 0x7da   :  { %4642 = vmatprep.subr.mxu1 %v3565_v23  ;;  %4713 = vmatprep.subr.mxu0 %v3693_v41 }
 0x7db   :  { %4643 = vmatpush2.msra.mxu1 %v3564_v19  ;;  %4714 = vmatpush2.msra.mxu0 %v3692_v18 }
 0x7dc   :  { %4644 = vmatprep.subr.mxu1 %v3561_v29  ;;  %4715 = vmatprep.subr.mxu0 %v3689_v25 }
 0x7dd   :  { %4645 = vmatpush2.msra.mxu1 %v3560_v3  ;;  %4716 = vmatpush2.msra.mxu0 %v3688_v31 }
 0x7de   :  { %4646 = vmatprep.subr.mxu1 %v3557_v49  ;;  %4717 = vmatprep.subr.mxu0 %v3685_v17 }
 0x7df   :  { %4647 = vmatpush2.msra.mxu1 %v3556_v63  ;;  %4718 = vmatpush2.msra.mxu0 %v3684_v5 }
 0x7e0   :  { %4648 = vmatprep.subr.mxu1 %v3553_v8  ;;  %4719 = vmatprep.subr.mxu0 %v3681_v15 }
 0x7e1   :  { %4649 = vmatpush2.msra.mxu1 %v3552_v35  ;;  %4720 = vmatpush2.msra.mxu0 %v3680_v60 }
 0x7e2   :  { %4650 = vmatprep.subr.mxu1 %v3549_v38  ;;  %4721 = vmatprep.subr.mxu0 %v3677_v62 }
 0x7e3   :  { %4651 = vmatpush2.msra.mxu1 %v3548_v48  ;;  %4722 = vmatpush2.msra.mxu0 %v3676_v44 }
 0x7e4   :  { %4652 = vmatprep.subr.mxu1 %v3545_v28  ;;  %4723 = vmatprep.subr.mxu0 %v3673_v51 }
 0x7e5   :  { %4653 = vmatpush2.msra.mxu1 %v3544_v9  ;;  %4724 = vmatpush2.msra.mxu0 %v3672_v13 }
 0x7e6   :  { %4654 = vmatprep.subr.mxu1 %v3541_v1  ;;  %4725 = vmatprep.subr.mxu0 %v3669_v45 }
 0x7e7   :  { %4655 = vmatpush2.msra.mxu1 %v3540_v26  ;;  %4726 = vmatpush2.msra.mxu0 %v3668_v59  ;;  %v3461_v59 = vld [vmem:[#allocation2 + $0x8] sm:$0xff] }
 0x7e8   :  { %4656 = vmatprep.subr.mxu1 %v3537_v47  ;;  %4727 = vmatprep.subr.mxu0 %v3665_v36 }
 0x7e9   :  { %4657 = vmatpush2.msra.mxu1 %v3536_v40  ;;  %4728 = vmatpush2.msra.mxu0 %v3664_v56 }
 0x7ea   :  { %4658 = vmatprep.subr.mxu1 %v3533_v54  ;;  %4729 = vmatprep.subr.mxu0 %v3661_v32 }
 0x7eb   :  { %4659 = vmatpush2.msra.mxu1 %v3532_v39  ;;  %4730 = vmatpush2.msra.mxu0 %v3660_v55 }
 0x7ec   :  { %4660 = vmatprep.subr.mxu1 %v3529_v27  ;;  %4731 = vmatprep.subr.mxu0 %v3657_v37  ;;  %v4531_v27 = vcombine.high %v3461_v59, %v3461_v59  ;;  %v3780_v37 = vld [vmem:[#allocation14 + $0x9e0] sm:$0xff] }
 0x7ed   :  { %4661 = vmatpush2.msra.mxu1 %v3528_v33  ;;  %4732 = vmatpush2.msra.mxu0 %v3656_v22  ;;  %v9555_v33 = vrot.slane %v3461_v59, %v10619_v42  ;;  %v3777_v22 = vld [vmem:[#allocation14 + $0x9c8] sm:$0xff]  ;;  %v3736_v59 = vld [vmem:[#allocation14 + $0x880] sm:$0xff] }
 0x7ee   :  { %4740 = vmatprep.subr.mxu1 %v3781_v50  ;;  %4811 = vmatprep.subr.mxu0 %v3909_v61 }
 0x7ef   :  { %v9575_v61 = vcombine.high %v9555_v33, %v9555_v33 }
 0x849   :  { %v3176_v58 = vpop.f32.mrf.mxu1  ;;  %v3247_v6 = vpop.f32.mrf.mxu0 }
 0x84a   :  { %v3177_v4 = vadd.f32 %v3176_v58, %v10585_v24  ;;  %v3248_v24 = vadd.f32 %v3247_v6, %v10587_v20  ;;  %v3776_v58 = vld [vmem:[#allocation14 + $0x9c0] sm:$0xff] }
 0x84b   :  { %v3178_v16 = vpop.f32.mrf.mxu1  ;;  %v6885_v21 = vpop.f32.mrf.mxu0  ;;  %v3908_v6 = vld [vmem:[#allocation14 + $0xde0] sm:$0xff] }
 0x84c   :  { %v3395_v23 = vrot.slane %v3177_v4, 2  ;;  %v3179_v0 = vadd.f32 %v3178_v16, %v10586_v46  ;;  %v3415_v31 = vrot.slane %v3248_v24, 2  ;;  %v3773_v4 = vld [vmem:[#allocation14 + $0x9a8] sm:$0xff]  ;;  %v3896_v24 = vld [vmem:[#allocation14 + $0xd80] sm:$0xff] }
 0x84d   :  { %v3905_v16 = vld [vmem:[#allocation14 + $0xdc8] sm:$0xff] }
 0x84e   :  { %v3397_v19 = vadd.f32 %v3395_v23, %v10530_v12  ;;  %v3405_v29 = vrot.slane %v3179_v0, 2  ;;  %v3772_v23 = vld [vmem:[#allocation14 + $0x9a0] sm:$0xff] }
 0x84f   :  { %v3904_v0 = vld [vmem:[#allocation14 + $0xdc0] sm:$0xff] }
 0x850   :  { %v6014_v14 = vmul.f32 -1.442695, %v3397_v19  ;;  %v3407_v41 = vadd.f32 %v3405_v29, %v10531_v57  ;;  %v3769_v19 = vld [vmem:[#allocation14 + $0x988] sm:$0xff]  ;;  %v3768_v29 = vld [vmem:[#allocation14 + $0x980] sm:$0xff] }
 0x852   :  { %7087 = vpow2.f32 %v6014_v14  ;;  %v6015_v3 = vmul.f32 -1.442695, %v3407_v41  ;;  %v3901_v14 = vld [vmem:[#allocation14 + $0xda8] sm:$0xff]  ;;  %v3900_v41 = vld [vmem:[#allocation14 + $0xda0] sm:$0xff] }
 0x854   :  { %7089 = vpow2.f32 %v6015_v3  ;;  %v3765_v3 = vld [vmem:[#allocation14 + $0x968] sm:$0xff] }
 0x85f   :  { %v7088_v18 = vpop.eup %7087 }
 0x860   :  { %v3401_v49 = vadd.f32 1.0, %v7088_v18  ;;  %v3897_v18 = vld [vmem:[#allocation14 + $0xd88] sm:$0xff] }
 0x861   :  { %v7090_v25 = vpop.eup %7089 }
 0x862   :  { %7091 = vrcp.f32 %v3401_v49  ;;  %v3411_v63 = vadd.f32 1.0, %v7090_v25  ;;  %v3764_v25 = vld [vmem:[#allocation14 + $0x960] sm:$0xff] }
 0x864   :  { %7093 = vrcp.f32 %v3411_v63  ;;  %v3761_v63 = vld [vmem:[#allocation14 + $0x948] sm:$0xff] }
 0x86e   :  { %v3319_v8 = vpop.f32.mrf.mxu1  ;;  %v3390_v17 = vpop.f32.mrf.mxu0 }
 0x86f   :  { %v7092_v46 = vpop.eup %7091  ;;  %v3320_v12 = vadd.f32 %v3319_v8, %v10533_v10  ;;  %v3422_v10 = vrot.slane %v9459_v53, 6  ;;  %v3391_v40 = vadd.f32 %v3390_v17, %v8119_v34  ;;  %v3760_v8 = vld [vmem:[#allocation14 + $0x940] sm:$0xff] }
 0x870   :  { %v3417_v35 = vmul.f32 %v7092_v46, %v3415_v31  ;;  %v3321_v5 = vpop.f32.mrf.mxu1  ;;  %v6920_v38 = vpop.f32.mrf.mxu0  ;;  %v3893_v31 = vld [vmem:[#allocation14 + $0xd68] sm:$0xff]  ;;  %v3892_v17 = vld [vmem:[#allocation14 + $0xd60] sm:$0xff] }
 0x871   :  { %v3426_v57 = vadd.f32 %v3320_v12, %v10497_v43  ;;  %v3322_v60 = vadd.f32 %v3321_v5, %v8102_v2  ;;  %v7094_v62 = vpop.eup %7093  ;;  %v3757_v12 = vld [vmem:[#allocation14 + $0x928] sm:$0xff]  ;;  %v3756_v38 = vld [vmem:[#allocation14 + $0x920] sm:$0xff] }
 0x872   :  { %v3418_v15 = vadd.f32 %v3417_v35, %v10498_v11  ;;  %v3420_v9 = vsub.f32 1.0, %v7094_v62  ;;  %v3424_v26 = vmul.f32 %v7094_v62, %v3422_v10  ;;  %v3889_v35 = vld [vmem:[#allocation14 + $0xd48] sm:$0xff]  ;;  %v3884_v62 = vld [vmem:[#allocation14 + $0xd20] sm:$0xff] }
 0x873   :  { %v6016_v48 = vmul.f32 -1.442695, %v3426_v57  ;;  %v3433_v20 = vadd.f32 %v3322_v60, %v10499_v30  ;;  %v3888_v57 = vld [vmem:[#allocation14 + $0xd40] sm:$0xff]  ;;  %v3753_v60 = vld [vmem:[#allocation14 + $0x908] sm:$0xff] }
 0x874   :  { %7095 = vtanh.f32 %v3418_v15 }
 0x875   :  { %7097 = vpow2.f32 %v6016_v48  ;;  %v6017_v28 = vmul.f32 -1.442695, %v3433_v20  ;;  %v3885_v20 = vld [vmem:[#allocation14 + $0xd28] sm:$0xff] }
 0x877   :  { %7099 = vpow2.f32 %v6017_v28  ;;  %v3752_v28 = vld [vmem:[#allocation14 + $0x900] sm:$0xff] }
 0x881   :  { %v7096_v44 = vpop.eup %7095 }
 0x882   :  { %v7098_v1 = vpop.eup %7097  ;;  %v3421_v51 = vmul.f32 %v7096_v44, %v3420_v9  ;;  %v3749_v9 = vld [vmem:[#allocation14 + $0x8e8] sm:$0xff] }
 0x883   :  { %v3430_v43 = vadd.f32 1.0, %v7098_v1  ;;  %v3881_v44 = vld [vmem:[#allocation14 + $0xd08] sm:$0xff]  ;;  %v3748_v1 = vld [vmem:[#allocation14 + $0x8e0] sm:$0xff] }
 0x884   :  { %v3425_v13 = vadd.f32 %v3424_v26, %v3421_v51  ;;  %v7100_v45 = vpop.eup %7099  ;;  %v3880_v51 = vld [vmem:[#allocation14 + $0xd00] sm:$0xff]  ;;  %v3877_v26 = vld [vmem:[#allocation14 + $0xce8] sm:$0xff] }
 0x885   :  { %7101 = vrcp.f32 %v3430_v43  ;;  %v3437_v30 = vadd.f32 1.0, %v7100_v45  ;;  %v3744_v43 = vld [vmem:[#allocation14 + $0x8c0] sm:$0xff] }
 0x886   :  { %v3448_v11 = vcombine.high %v3425_v13, %v3425_v13  ;;  %v3876_v13 = vld [vmem:[#allocation14 + $0xce0] sm:$0xff] }
 0x887   :  { %7103 = vrcp.f32 %v3437_v30  ;;  %v3872_v45 = vld [vmem:[#allocation14 + $0xcc0] sm:$0xff]  ;;  %v3737_v30 = vld [vmem:[#allocation14 + $0x888] sm:$0xff] }
 0x888   :  { %v3455_v2 = vrot.slane %v3448_v11, %v10619_v42  ;;  %v3741_v11 = vld [vmem:[#allocation14 + $0x8a8] sm:$0xff] }
 0x88a   :  { %v3456_v47 = vcombine.high %v3455_v2, %v3455_v2  ;;  %v3873_v2 = vld [vmem:[#allocation14 + $0xcc8] sm:$0xff] }
 0x88c   :  { %3458 = vst [vmem:[#allocation2] sm:$0x3] %v3456_v47  ;;  %v3740_v47 = vld [vmem:[#allocation14 + $0x8a0] sm:$0xff] }
 0x892   :  { %v7102_v54 = vpop.eup %7101 }
 0x893   :  { %v3440_v53 = vmul.f32 %v7102_v54, %v3391_v40  ;;  %v3460_v36 = vld [vmem:[#allocation2] sm:$0xff]  ;;  %v3869_v40 = vld [vmem:[#allocation14 + $0xca8] sm:$0xff] }
 0x894   :  { %v9551_v39 = vrot.slane %v3460_v36, %v10619_v42  ;;  %v4514_v56 = vcombine.high %v3460_v36, %v3460_v36  ;;  %v7104_v49 = vpop.eup %7103  ;;  %v3868_v54 = vld [vmem:[#allocation14 + $0xca0] sm:$0xff]  ;;  %v3865_v36 = vld [vmem:[#allocation14 + $0xc88] sm:$0xff] }
 0x895   :  { %v3441_v32 = vadd.f32 %v3440_v53, %v10594_v7  ;;  %v9570_v7 = vrot.slane %v4531_v27, %v10619_v42  ;;  %v3443_v46 = vsub.f32 1.0, %v7104_v49  ;;  %v3445_v48 = vmul.f32 %v7104_v49, %v9533_v52  ;;  %v3745_v52 = vld [vmem:[#allocation14 + $0x8c8] sm:$0xff]  ;;  %v3864_v27 = vld [vmem:[#allocation14 + $0xc80] sm:$0xff] }
 0x896   :  { %v9559_v55 = vcombine.high %v9551_v39, %v9551_v39  ;;  %v9562_v34 = vrot.slane %v4514_v56, %v10619_v42  ;;  %v3733_v53 = vld [vmem:[#allocation14 + $0x868] sm:$0xff]  ;;  %v3732_v56 = vld [vmem:[#allocation14 + $0x860] sm:$0xff] }
 0x897   :  { %7105 = vtanh.f32 %v3441_v32  ;;  %v9582_v21 = vcombine.high %v9570_v7, %v9570_v7  ;;  %v3729_v32 = vld [vmem:[#allocation14 + $0x848] sm:$0xff]  ;;  %v3848_v49 = vld [vmem:[#allocation14 + $0xc00] sm:$0xff] }
 0x898   :  { %4662 = vmatprep.mubr.f32.mxu1 %v9559_v55  ;;  %v9567_v50 = vcombine.high %v9562_v34, %v9562_v34 }
 0x899   :  { %4663 = vmatmul.mubr.f32.vlgmr.msra.gmra.mxu1 %v9551_v39 }
 0x89a   :  { %4741 = vmatpush1.msra.mxu1 %v3780_v37  ;;  %4733 = vmatprep.mubr.f32.mxu0 %v9567_v50  ;;  %v3861_v37 = vld [vmem:[#allocation14 + $0xc68] sm:$0xff] }
 0x89b   :  { %4742 = vmatprep.subr.mxu1 %v3777_v22  ;;  %4804 = vmatprep.mubr.f32.mxu1 %v9575_v61  ;;  %v3728_v22 = vld [vmem:[#allocation14 + $0x840] sm:$0xff] }
 0x89c   :  { %4734 = vmatmul.mubr.f32.vlgmr.msra.gmra.mxu0 %v9562_v34  ;;  %4743 = vmatpush1.msra.mxu1 %v3776_v58  ;;  %v3860_v58 = vld [vmem:[#allocation14 + $0xc60] sm:$0xff] }
 0x89d   :  { %4812 = vmatpush1.msra.mxu0 %v3908_v6  ;;  %4744 = vmatprep.subr.mxu1 %v3773_v4  ;;  %v3725_v6 = vld [vmem:[#allocation14 + $0x828] sm:$0xff] }
 0x89e   :  { %4813 = vmatprep.subr.mxu0 %v3905_v16  ;;  %4875 = vmatprep.mubr.f32.mxu0 %v9582_v21  ;;  %v3857_v4 = vld [vmem:[#allocation14 + $0xc48] sm:$0xff]  ;;  %v3724_v16 = vld [vmem:[#allocation14 + $0x820] sm:$0xff] }
 0x89f   :  { %4745 = vmatpush1.msra.mxu1 %v3772_v23  ;;  %4814 = vmatpush1.msra.mxu0 %v3904_v0  ;;  %v3856_v23 = vld [vmem:[#allocation14 + $0xc40] sm:$0xff]  ;;  %v3721_v0 = vld [vmem:[#allocation14 + $0x808] sm:$0xff] }
 0x8a0   :  { %4746 = vmatprep.subr.mxu1 %v3769_v19  ;;  %4815 = vmatprep.subr.mxu0 %v3901_v14  ;;  %v3853_v19 = vld [vmem:[#allocation14 + $0xc28] sm:$0xff]  ;;  %v3720_v14 = vld [vmem:[#allocation14 + $0x800] sm:$0xff] }
 0x8a1   :  { %4747 = vmatpush1.msra.mxu1 %v3768_v29  ;;  %4816 = vmatpush1.msra.mxu0 %v3900_v41  ;;  %v3852_v29 = vld [vmem:[#allocation14 + $0xc20] sm:$0xff]  ;;  %v3845_v41 = vld [vmem:[#allocation14 + $0xbe8] sm:$0xff] }
 0x8a2   :  { %4748 = vmatprep.subr.mxu1 %v3765_v3  ;;  %4817 = vmatprep.subr.mxu0 %v3897_v18  ;;  %v3849_v3 = vld [vmem:[#allocation14 + $0xc08] sm:$0xff]  ;;  %v3844_v18 = vld [vmem:[#allocation14 + $0xbe0] sm:$0xff] }
 0x8a3   :  { %4749 = vmatpush1.msra.mxu1 %v3764_v25  ;;  %4818 = vmatpush1.msra.mxu0 %v3896_v24  ;;  %v3841_v25 = vld [vmem:[#allocation14 + $0xbc8] sm:$0xff] }
 0x8a4   :  { %v7106_v5 = vpop.eup %7105  ;;  %4750 = vmatprep.subr.mxu1 %v3761_v63  ;;  %4819 = vmatprep.subr.mxu0 %v3893_v31  ;;  %v3973_v24 = vld [vmem:[#allocation14 + $0xfe8] sm:$0xff]  ;;  %v3840_v63 = vld [vmem:[#allocation14 + $0xbc0] sm:$0xff] }
 0x8a5   :  { %v3444_v15 = vmul.f32 %v7106_v5, %v3443_v46  ;;  %4751 = vmatpush1.msra.mxu1 %v3760_v8  ;;  %4820 = vmatpush1.msra.mxu0 %v3892_v17  ;;  %v3972_v31 = vld [vmem:[#allocation14 + $0xfe0] sm:$0xff]  ;;  %v3837_v8 = vld [vmem:[#allocation14 + $0xba8] sm:$0xff] }
 0x8a6   :  { %4752 = vmatprep.subr.mxu1 %v3757_v12  ;;  %4821 = vmatprep.subr.mxu0 %v3889_v35  ;;  %v3969_v17 = vld [vmem:[#allocation14 + $0xfc8] sm:$0xff]  ;;  %v3836_v46 = vld [vmem:[#allocation14 + $0xba0] sm:$0xff] }
 0x8a7   :  { %v3446_v10 = vadd.f32 %v3445_v48, %v3444_v15  ;;  %4753 = vmatpush1.msra.mxu1 %v3756_v38  ;;  %4822 = vmatpush1.msra.mxu0 %v3888_v57  ;;  %v3968_v12 = vld [vmem:[#allocation14 + $0xfc0] sm:$0xff]  ;;  %v3833_v35 = vld [vmem:[#allocation14 + $0xb88] sm:$0xff] }
 0x8a8   :  { %4754 = vmatprep.subr.mxu1 %v3753_v60  ;;  %4823 = vmatprep.subr.mxu0 %v3885_v20  ;;  %v3965_v5 = vld [vmem:[#allocation14 + $0xfa8] sm:$0xff]  ;;  %v3832_v38 = vld [vmem:[#allocation14 + $0xb80] sm:$0xff] }
 0x8a9   :  { %3459 = vst [vmem:[#allocation2 + $0x1e] sm:$0x3] %v3446_v10  ;;  %4755 = vmatpush1.msra.mxu1 %v3752_v28  ;;  %4824 = vmatpush1.msra.mxu0 %v3884_v62  ;;  %v3964_v57 = vld [vmem:[#allocation14 + $0xfa0] sm:$0xff]  ;;  %v3829_v15 = vld [vmem:[#allocation14 + $0xb68] sm:$0xff] }
 0x8aa   :  { %4756 = vmatprep.subr.mxu1 %v3749_v9  ;;  %4825 = vmatprep.subr.mxu0 %v3881_v44  ;;  %v3961_v48 = vld [vmem:[#allocation14 + $0xf88] sm:$0xff]  ;;  %v3828_v60 = vld [vmem:[#allocation14 + $0xb60] sm:$0xff] }
 0x8ab   :  { %4757 = vmatpush1.msra.mxu1 %v3748_v1  ;;  %4826 = vmatpush1.msra.mxu0 %v3880_v51  ;;  %v3960_v20 = vld [vmem:[#allocation14 + $0xf80] sm:$0xff]  ;;  %v3825_v28 = vld [vmem:[#allocation14 + $0xb48] sm:$0xff] }
 0x8ac   :  { %4758 = vmatprep.subr.mxu1 %v3745_v52  ;;  %4827 = vmatprep.subr.mxu0 %v3877_v26  ;;  %v3957_v62 = vld [vmem:[#allocation14 + $0xf68] sm:$0xff]  ;;  %v3824_v10 = vld [vmem:[#allocation14 + $0xb40] sm:$0xff] }
 0x8ad   :  { %4759 = vmatpush1.msra.mxu1 %v3744_v43  ;;  %4828 = vmatpush1.msra.mxu0 %v3876_v13  ;;  %v3956_v9 = vld [vmem:[#allocation14 + $0xf60] sm:$0xff]  ;;  %v3821_v44 = vld [vmem:[#allocation14 + $0xb28] sm:$0xff] }
 0x8ae   :  { %4760 = vmatprep.subr.mxu1 %v3741_v11  ;;  %4829 = vmatprep.subr.mxu0 %v3873_v2  ;;  %v3953_v1 = vld [vmem:[#allocation14 + $0xf48] sm:$0xff]  ;;  %v3820_v51 = vld [vmem:[#allocation14 + $0xb20] sm:$0xff] }
 0x8af   :  { %4761 = vmatpush1.msra.mxu1 %v3740_v47  ;;  %4830 = vmatpush1.msra.mxu0 %v3872_v45  ;;  %v3952_v52 = vld [vmem:[#allocation14 + $0xf40] sm:$0xff]  ;;  %v3817_v26 = vld [vmem:[#allocation14 + $0xb08] sm:$0xff] }
 0x8b0   :  { %4762 = vmatprep.subr.mxu1 %v3737_v30  ;;  %4831 = vmatprep.subr.mxu0 %v3869_v40  ;;  %v3949_v43 = vld [vmem:[#allocation14 + $0xf28] sm:$0xff]  ;;  %v3816_v13 = vld [vmem:[#allocation14 + $0xb00] sm:$0xff] }
 0x8b1   :  { %4763 = vmatpush1.msra.mxu1 %v3736_v59  ;;  %4832 = vmatpush1.msra.mxu0 %v3868_v54  ;;  %v3948_v11 = vld [vmem:[#allocation14 + $0xf20] sm:$0xff]  ;;  %v3813_v2 = vld [vmem:[#allocation14 + $0xae8] sm:$0xff] }
 0x8b2   :  { %4764 = vmatprep.subr.mxu1 %v3733_v53  ;;  %4833 = vmatprep.subr.mxu0 %v3865_v36  ;;  %v3945_v47 = vld [vmem:[#allocation14 + $0xf08] sm:$0xff]  ;;  %v3812_v45 = vld [vmem:[#allocation14 + $0xae0] sm:$0xff] }
 0x8b3   :  { %4765 = vmatpush1.msra.mxu1 %v3732_v56  ;;  %4834 = vmatpush1.msra.mxu0 %v3864_v27  ;;  %v3944_v30 = vld [vmem:[#allocation14 + $0xf00] sm:$0xff]  ;;  %v3809_v40 = vld [vmem:[#allocation14 + $0xac8] sm:$0xff] }
 0x8b4   :  { %4766 = vmatprep.subr.mxu1 %v3729_v32  ;;  %4835 = vmatprep.subr.mxu0 %v3861_v37  ;;  %v3941_v59 = vld [vmem:[#allocation14 + $0xee8] sm:$0xff]  ;;  %v3808_v54 = vld [vmem:[#allocation14 + $0xac0] sm:$0xff] }
 0x8b5   :  { %4767 = vmatpush1.msra.mxu1 %v3728_v22  ;;  %4836 = vmatpush1.msra.mxu0 %v3860_v58  ;;  %v3940_v53 = vld [vmem:[#allocation14 + $0xee0] sm:$0xff]  ;;  %v3805_v36 = vld [vmem:[#allocation14 + $0xaa8] sm:$0xff] }
 0x8b6   :  { %4768 = vmatprep.subr.mxu1 %v3725_v6  ;;  %4837 = vmatprep.subr.mxu0 %v3857_v4  ;;  %v3937_v56 = vld [vmem:[#allocation14 + $0xec8] sm:$0xff]  ;;  %v3804_v27 = vld [vmem:[#allocation14 + $0xaa0] sm:$0xff] }
 0x8b7   :  { %4769 = vmatpush1.msra.mxu1 %v3724_v16  ;;  %4838 = vmatpush1.msra.mxu0 %v3856_v23  ;;  %v3936_v32 = vld [vmem:[#allocation14 + $0xec0] sm:$0xff]  ;;  %v3801_v37 = vld [vmem:[#allocation14 + $0xa88] sm:$0xff] }
 0x8b8   :  { %4770 = vmatprep.subr.mxu1 %v3721_v0  ;;  %4839 = vmatprep.subr.mxu0 %v3853_v19  ;;  %v3933_v22 = vld [vmem:[#allocation14 + $0xea8] sm:$0xff]  ;;  %v3800_v58 = vld [vmem:[#allocation14 + $0xa80] sm:$0xff] }
 0x8b9   :  { %4771 = vmatpush1.msra.mxu1 %v3720_v14  ;;  %4840 = vmatpush1.msra.mxu0 %v3852_v29  ;;  %v3932_v6 = vld [vmem:[#allocation14 + $0xea0] sm:$0xff]  ;;  %v3797_v4 = vld [vmem:[#allocation14 + $0xa68] sm:$0xff] }
 0x8ba   :  { %4772 = vmatprep.subr.mxu1 %v3845_v41  ;;  %4841 = vmatprep.subr.mxu0 %v3849_v3  ;;  %v3929_v16 = vld [vmem:[#allocation14 + $0xe88] sm:$0xff]  ;;  %v3796_v23 = vld [vmem:[#allocation14 + $0xa60] sm:$0xff] }
 0x8bb   :  { %4773 = vmatpush2.msra.mxu1 %v3844_v18  ;;  %4842 = vmatpush1.msra.mxu0 %v3848_v49  ;;  %v3928_v0 = vld [vmem:[#allocation14 + $0xe80] sm:$0xff]  ;;  %v3793_v19 = vld [vmem:[#allocation14 + $0xa48] sm:$0xff] }
 0x8bc   :  { %4774 = vmatprep.subr.mxu1 %v3841_v25  ;;  %4843 = vmatprep.subr.mxu0 %v3973_v24  ;;  %v3925_v14 = vld [vmem:[#allocation14 + $0xe68] sm:$0xff]  ;;  %v3792_v29 = vld [vmem:[#allocation14 + $0xa40] sm:$0xff] }
 0x8bd   :  { %4775 = vmatpush2.msra.mxu1 %v3840_v63  ;;  %4844 = vmatpush2.msra.mxu0 %v3972_v31  ;;  %v3924_v41 = vld [vmem:[#allocation14 + $0xe60] sm:$0xff]  ;;  %v3462_v3 = vld [vmem:[#allocation2 + $0x10] sm:$0xff] }
 0x8be   :  { %4776 = vmatprep.subr.mxu1 %v3837_v8  ;;  %4845 = vmatprep.subr.mxu0 %v3969_v17  ;;  %v3789_v18 = vld [vmem:[#allocation14 + $0xa28] sm:$0xff]  ;;  %v3788_v25 = vld [vmem:[#allocation14 + $0xa20] sm:$0xff]  ;;  %v4548_v8 = vcombine.high %v3462_v3, %v3462_v3 }
 0x8bf   :  { %4777 = vmatpush2.msra.mxu1 %v3836_v46  ;;  %4846 = vmatpush2.msra.mxu0 %v3968_v12  ;;  %v3921_v49 = vld [vmem:[#allocation14 + $0xe48] sm:$0xff]  ;;  %v3920_v24 = vld [vmem:[#allocation14 + $0xe40] sm:$0xff]  ;;  %v9587_v12 = vrot.slane %v3462_v3, %v10619_v42 }
 0x8c0   :  { %4778 = vmatprep.subr.mxu1 %v3833_v35  ;;  %4847 = vmatprep.subr.mxu0 %v3965_v5  ;;  %v3785_v63 = vld [vmem:[#allocation14 + $0xa08] sm:$0xff]  ;;  %v3784_v17 = vld [vmem:[#allocation14 + $0xa00] sm:$0xff] }
 0x8c1   :  { %4779 = vmatpush2.msra.mxu1 %v3832_v38  ;;  %4848 = vmatpush2.msra.mxu0 %v3964_v57  ;;  %v3917_v31 = vld [vmem:[#allocation14 + $0xe28] sm:$0xff]  ;;  %v3916_v46 = vld [vmem:[#allocation14 + $0xe20] sm:$0xff] }
 0x8c2   :  { %4780 = vmatprep.subr.mxu1 %v3829_v15  ;;  %4849 = vmatprep.subr.mxu0 %v3961_v48  ;;  %v3913_v35 = vld [vmem:[#allocation14 + $0xe08] sm:$0xff]  ;;  %v3912_v38 = vld [vmem:[#allocation14 + $0xe00] sm:$0xff]  ;;  %v9590_v15 = vrot.slane %v4548_v8, %v10619_v42  ;;  %v9595_v48 = vcombine.high %v9587_v12, %v9587_v12 }
 0x8c3   :  { %4781 = vmatpush2.msra.mxu1 %v3828_v60  ;;  %4850 = vmatpush2.msra.mxu0 %v3960_v20  ;;  %v4037_v5 = vld [vmem:[#allocation14 + $0x11e8] sm:$0xff]  ;;  %v4036_v57 = vld [vmem:[#allocation14 + $0x11e0] sm:$0xff] }
 0x8c4   :  { %4782 = vmatprep.subr.mxu1 %v3825_v28  ;;  %4851 = vmatprep.subr.mxu0 %v3957_v62  ;;  %v4033_v60 = vld [vmem:[#allocation14 + $0x11c8] sm:$0xff]  ;;  %v4032_v28 = vld [vmem:[#allocation14 + $0x11c0] sm:$0xff] }
 0x8c5   :  { %4783 = vmatpush2.msra.mxu1 %v3824_v10  ;;  %4852 = vmatpush2.msra.mxu0 %v3956_v9  ;;  %v4165_v20 = vld [vmem:[#allocation14 + $0x15e8] sm:$0xff]  ;;  %v4164_v62 = vld [vmem:[#allocation14 + $0x15e0] sm:$0xff]  ;;  %v9601_v10 = vcombine.high %v9590_v15, %v9590_v15 }
 0x8c6   :  { %4784 = vmatprep.subr.mxu1 %v3821_v44  ;;  %4853 = vmatprep.subr.mxu0 %v3953_v1  ;;  %v4029_v9 = vld [vmem:[#allocation14 + $0x11a8] sm:$0xff]  ;;  %v4028_v1 = vld [vmem:[#allocation14 + $0x11a0] sm:$0xff] }
 0x8c7   :  { %4785 = vmatpush2.msra.mxu1 %v3820_v51  ;;  %4854 = vmatpush2.msra.mxu0 %v3952_v52  ;;  %v4161_v44 = vld [vmem:[#allocation14 + $0x15c8] sm:$0xff]  ;;  %v4160_v51 = vld [vmem:[#allocation14 + $0x15c0] sm:$0xff] }
 0x8c8   :  { %4786 = vmatprep.subr.mxu1 %v3817_v26  ;;  %4855 = vmatprep.subr.mxu0 %v3949_v43  ;;  %v4025_v52 = vld [vmem:[#allocation14 + $0x1188] sm:$0xff]  ;;  %v4024_v43 = vld [vmem:[#allocation14 + $0x1180] sm:$0xff] }
 0x8c9   :  { %4787 = vmatpush2.msra.mxu1 %v3816_v13  ;;  %4856 = vmatpush2.msra.mxu0 %v3948_v11  ;;  %v4157_v26 = vld [vmem:[#allocation14 + $0x15a8] sm:$0xff]  ;;  %v4156_v13 = vld [vmem:[#allocation14 + $0x15a0] sm:$0xff] }
 0x8ca   :  { %4788 = vmatprep.subr.mxu1 %v3813_v2  ;;  %4857 = vmatprep.subr.mxu0 %v3945_v47  ;;  %v4021_v11 = vld [vmem:[#allocation14 + $0x1168] sm:$0xff]  ;;  %v4020_v47 = vld [vmem:[#allocation14 + $0x1160] sm:$0xff] }
 0x8cb   :  { %4789 = vmatpush2.msra.mxu1 %v3812_v45  ;;  %4858 = vmatpush2.msra.mxu0 %v3944_v30  ;;  %v4153_v2 = vld [vmem:[#allocation14 + $0x1588] sm:$0xff]  ;;  %v4152_v45 = vld [vmem:[#allocation14 + $0x1580] sm:$0xff] }
 0x8cc   :  { %4790 = vmatprep.subr.mxu1 %v3809_v40  ;;  %4859 = vmatprep.subr.mxu0 %v3941_v59  ;;  %v4017_v30 = vld [vmem:[#allocation14 + $0x1148] sm:$0xff]  ;;  %v4016_v59 = vld [vmem:[#allocation14 + $0x1140] sm:$0xff] }
 0x8cd   :  { %4791 = vmatpush2.msra.mxu1 %v3808_v54  ;;  %4860 = vmatpush2.msra.mxu0 %v3940_v53  ;;  %v4149_v40 = vld [vmem:[#allocation14 + $0x1568] sm:$0xff]  ;;  %v4148_v54 = vld [vmem:[#allocation14 + $0x1560] sm:$0xff] }
 0x8ce   :  { %4792 = vmatprep.subr.mxu1 %v3805_v36  ;;  %4861 = vmatprep.subr.mxu0 %v3937_v56  ;;  %v4013_v53 = vld [vmem:[#allocation14 + $0x1128] sm:$0xff]  ;;  %v4012_v56 = vld [vmem:[#allocation14 + $0x1120] sm:$0xff] }
 0x8cf   :  { %4793 = vmatpush2.msra.mxu1 %v3804_v27  ;;  %4862 = vmatpush2.msra.mxu0 %v3936_v32  ;;  %v4145_v36 = vld [vmem:[#allocation14 + $0x1548] sm:$0xff]  ;;  %v4144_v27 = vld [vmem:[#allocation14 + $0x1540] sm:$0xff] }
 0x8d0   :  { %4794 = vmatprep.subr.mxu1 %v3801_v37  ;;  %4863 = vmatprep.subr.mxu0 %v3933_v22  ;;  %v4009_v32 = vld [vmem:[#allocation14 + $0x1108] sm:$0xff]  ;;  %v4008_v22 = vld [vmem:[#allocation14 + $0x1100] sm:$0xff] }
 0x8d1   :  { %4795 = vmatpush2.msra.mxu1 %v3800_v58  ;;  %4864 = vmatpush2.msra.mxu0 %v3932_v6  ;;  %v4141_v37 = vld [vmem:[#allocation14 + $0x1528] sm:$0xff]  ;;  %v4140_v58 = vld [vmem:[#allocation14 + $0x1520] sm:$0xff] }
 0x8d2   :  { %4796 = vmatprep.subr.mxu1 %v3797_v4  ;;  %4865 = vmatprep.subr.mxu0 %v3929_v16  ;;  %v4005_v6 = vld [vmem:[#allocation14 + $0x10e8] sm:$0xff]  ;;  %v4004_v16 = vld [vmem:[#allocation14 + $0x10e0] sm:$0xff] }
 0x8d3   :  { %4797 = vmatpush2.msra.mxu1 %v3796_v23  ;;  %4866 = vmatpush2.msra.mxu0 %v3928_v0  ;;  %v4137_v4 = vld [vmem:[#allocation14 + $0x1508] sm:$0xff]  ;;  %v4136_v23 = vld [vmem:[#allocation14 + $0x1500] sm:$0xff] }
 0x8d4   :  { %4798 = vmatprep.subr.mxu1 %v3793_v19  ;;  %4867 = vmatprep.subr.mxu0 %v3925_v14  ;;  %v4001_v0 = vld [vmem:[#allocation14 + $0x10c8] sm:$0xff]  ;;  %v4000_v14 = vld [vmem:[#allocation14 + $0x10c0] sm:$0xff] }
 0x8d5   :  { %4799 = vmatpush2.msra.mxu1 %v3792_v29  ;;  %4868 = vmatpush2.msra.mxu0 %v3924_v41  ;;  %v4133_v19 = vld [vmem:[#allocation14 + $0x14e8] sm:$0xff]  ;;  %v4132_v29 = vld [vmem:[#allocation14 + $0x14e0] sm:$0xff] }
 0x8d6   :  { %4800 = vmatprep.subr.mxu1 %v3789_v18  ;;  %4869 = vmatprep.subr.mxu0 %v3921_v49  ;;  %v3997_v41 = vld [vmem:[#allocation14 + $0x10a8] sm:$0xff]  ;;  %v3996_v18 = vld [vmem:[#allocation14 + $0x10a0] sm:$0xff] }
 0x8d7   :  { %4801 = vmatpush2.msra.mxu1 %v3788_v25  ;;  %4870 = vmatpush2.msra.mxu0 %v3920_v24  ;;  %v4129_v3 = vld [vmem:[#allocation14 + $0x14c8] sm:$0xff]  ;;  %v4128_v49 = vld [vmem:[#allocation14 + $0x14c0] sm:$0xff] }
 0x8d8   :  { %4802 = vmatprep.subr.mxu1 %v3785_v63  ;;  %4871 = vmatprep.subr.mxu0 %v3917_v31  ;;  %v3993_v25 = vld [vmem:[#allocation14 + $0x1088] sm:$0xff]  ;;  %v3992_v63 = vld [vmem:[#allocation14 + $0x1080] sm:$0xff] }
 0x8d9   :  { %4803 = vmatpush2.msra.mxu1 %v3784_v17  ;;  %4872 = vmatpush2.msra.mxu0 %v3916_v46  ;;  %v4125_v24 = vld [vmem:[#allocation14 + $0x14a8] sm:$0xff]  ;;  %v4124_v31 = vld [vmem:[#allocation14 + $0x14a0] sm:$0xff] }
 0x8da   :  { %4805 = vmatmul.mubr.f32.vlgmr.msra.gmra.mxu1 %v9555_v33  ;;  %4873 = vmatprep.subr.mxu0 %v3913_v35  ;;  %v3989_v8 = vld [vmem:[#allocation14 + $0x1068] sm:$0xff]  ;;  %v3988_v46 = vld [vmem:[#allocation14 + $0x1060] sm:$0xff] }
 0x8db   :  { %4882 = vmatprep.subr.mxu1 %v4037_v5  ;;  %4874 = vmatpush2.msra.mxu0 %v3912_v38  ;;  %v4121_v17 = vld [vmem:[#allocation14 + $0x1488] sm:$0xff]  ;;  %v4120_v35 = vld [vmem:[#allocation14 + $0x1480] sm:$0xff] }
 0x8dc   :  { %4883 = vmatpush1.msra.mxu1 %v4036_v57  ;;  %4946 = vmatprep.mubr.f32.mxu1 %v9595_v48  ;;  %v3985_v5 = vld [vmem:[#allocation14 + $0x1048] sm:$0xff]  ;;  %v3984_v57 = vld [vmem:[#allocation14 + $0x1040] sm:$0xff] }
 0x8dd   :  { %4876 = vmatmul.mubr.f32.vlgmr.msra.gmra.mxu0 %v9570_v7  ;;  %4884 = vmatprep.subr.mxu1 %v4033_v60  ;;  %v4117_v38 = vld [vmem:[#allocation14 + $0x1468] sm:$0xff]  ;;  %v4116_v60 = vld [vmem:[#allocation14 + $0x1460] sm:$0xff] }
 0x8de   :  { %4953 = vmatprep.subr.mxu0 %v4165_v20  ;;  %4885 = vmatpush1.msra.mxu1 %v4032_v28  ;;  %v3981_v20 = vld [vmem:[#allocation14 + $0x1028] sm:$0xff] }
 0x8df   :  { %4954 = vmatpush1.msra.mxu0 %v4164_v62  ;;  %5017 = vmatprep.mubr.f32.mxu0 %v9601_v10  ;;  %v4113_v28 = vld [vmem:[#allocation14 + $0x1448] sm:$0xff]  ;;  %v3980_v62 = vld [vmem:[#allocation14 + $0x1020] sm:$0xff] }
 0x8e0   :  { %4886 = vmatprep.subr.mxu1 %v4029_v9  ;;  %4955 = vmatprep.subr.mxu0 %v4161_v44  ;;  %v4112_v9 = vld [vmem:[#allocation14 + $0x1440] sm:$0xff]  ;;  %v3977_v44 = vld [vmem:[#allocation14 + $0x1008] sm:$0xff] }
 0x8e1   :  { %4887 = vmatpush1.msra.mxu1 %v4028_v1  ;;  %4956 = vmatpush1.msra.mxu0 %v4160_v51  ;;  %v4109_v1 = vld [vmem:[#allocation14 + $0x1428] sm:$0xff]  ;;  %v3976_v51 = vld [vmem:[#allocation14 + $0x1000] sm:$0xff] }
 0x8e2   :  { %4888 = vmatprep.subr.mxu1 %v4025_v52  ;;  %4957 = vmatprep.subr.mxu0 %v4157_v26  ;;  %v4108_v52 = vld [vmem:[#allocation14 + $0x1420] sm:$0xff]  ;;  %v4101_v26 = vld [vmem:[#allocation14 + $0x13e8] sm:$0xff] }
 0x8e3   :  { %4889 = vmatpush1.msra.mxu1 %v4024_v43  ;;  %4958 = vmatpush1.msra.mxu0 %v4156_v13  ;;  %v4105_v43 = vld [vmem:[#allocation14 + $0x1408] sm:$0xff]  ;;  %v4100_v13 = vld [vmem:[#allocation14 + $0x13e0] sm:$0xff] }
 0x8e4   :  { %4890 = vmatprep.subr.mxu1 %v4021_v11  ;;  %4959 = vmatprep.subr.mxu0 %v4153_v2  ;;  %v4104_v11 = vld [vmem:[#allocation14 + $0x1400] sm:$0xff]  ;;  %v4097_v2 = vld [vmem:[#allocation14 + $0x13c8] sm:$0xff] }
 0x8e5   :  { %4891 = vmatpush1.msra.mxu1 %v4020_v47  ;;  %4960 = vmatpush1.msra.mxu0 %v4152_v45  ;;  %v4229_v47 = vld [vmem:[#allocation14 + $0x17e8] sm:$0xff]  ;;  %v4096_v45 = vld [vmem:[#allocation14 + $0x13c0] sm:$0xff] }
 0x8e6   :  { %4892 = vmatprep.subr.mxu1 %v4017_v30  ;;  %4961 = vmatprep.subr.mxu0 %v4149_v40  ;;  %v4228_v30 = vld [vmem:[#allocation14 + $0x17e0] sm:$0xff]  ;;  %v4093_v40 = vld [vmem:[#allocation14 + $0x13a8] sm:$0xff] }
 0x8e7   :  { %4893 = vmatpush1.msra.mxu1 %v4016_v59  ;;  %4962 = vmatpush1.msra.mxu0 %v4148_v54  ;;  %v4225_v59 = vld [vmem:[#allocation14 + $0x17c8] sm:$0xff]  ;;  %v4092_v54 = vld [vmem:[#allocation14 + $0x13a0] sm:$0xff] }
 0x8e8   :  { %4894 = vmatprep.subr.mxu1 %v4013_v53  ;;  %4963 = vmatprep.subr.mxu0 %v4145_v36  ;;  %v4224_v53 = vld [vmem:[#allocation14 + $0x17c0] sm:$0xff]  ;;  %v4089_v36 = vld [vmem:[#allocation14 + $0x1388] sm:$0xff] }
 0x8e9   :  { %4895 = vmatpush1.msra.mxu1 %v4012_v56  ;;  %4964 = vmatpush1.msra.mxu0 %v4144_v27  ;;  %v4221_v56 = vld [vmem:[#allocation14 + $0x17a8] sm:$0xff]  ;;  %v4088_v27 = vld [vmem:[#allocation14 + $0x1380] sm:$0xff] }
 0x8ea   :  { %4896 = vmatprep.subr.mxu1 %v4009_v32  ;;  %4965 = vmatprep.subr.mxu0 %v4141_v37  ;;  %v4220_v32 = vld [vmem:[#allocation14 + $0x17a0] sm:$0xff]  ;;  %v4085_v37 = vld [vmem:[#allocation14 + $0x1368] sm:$0xff] }
 0x8eb   :  { %4897 = vmatpush1.msra.mxu1 %v4008_v22  ;;  %4966 = vmatpush1.msra.mxu0 %v4140_v58  ;;  %v4217_v22 = vld [vmem:[#allocation14 + $0x1788] sm:$0xff]  ;;  %v4084_v58 = vld [vmem:[#allocation14 + $0x1360] sm:$0xff] }
 0x8ec   :  { %4898 = vmatprep.subr.mxu1 %v4005_v6  ;;  %4967 = vmatprep.subr.mxu0 %v4137_v4  ;;  %v4216_v6 = vld [vmem:[#allocation14 + $0x1780] sm:$0xff]  ;;  %v4081_v4 = vld [vmem:[#allocation14 + $0x1348] sm:$0xff] }
 0x8ed   :  { %4899 = vmatpush1.msra.mxu1 %v4004_v16  ;;  %4968 = vmatpush1.msra.mxu0 %v4136_v23  ;;  %v4213_v16 = vld [vmem:[#allocation14 + $0x1768] sm:$0xff]  ;;  %v4080_v23 = vld [vmem:[#allocation14 + $0x1340] sm:$0xff] }
 0x8ee   :  { %4900 = vmatprep.subr.mxu1 %v4001_v0  ;;  %4969 = vmatprep.subr.mxu0 %v4133_v19  ;;  %v4212_v0 = vld [vmem:[#allocation14 + $0x1760] sm:$0xff]  ;;  %v4077_v19 = vld [vmem:[#allocation14 + $0x1328] sm:$0xff] }
 0x8ef   :  { %4901 = vmatpush1.msra.mxu1 %v4000_v14  ;;  %4970 = vmatpush1.msra.mxu0 %v4132_v29  ;;  %v4209_v14 = vld [vmem:[#allocation14 + $0x1748] sm:$0xff]  ;;  %v4076_v29 = vld [vmem:[#allocation14 + $0x1320] sm:$0xff] }
 0x8f0   :  { %4902 = vmatprep.subr.mxu1 %v3997_v41  ;;  %4971 = vmatprep.subr.mxu0 %v4129_v3  ;;  %v4208_v41 = vld [vmem:[#allocation14 + $0x1740] sm:$0xff]  ;;  %v4073_v3 = vld [vmem:[#allocation14 + $0x1308] sm:$0xff] }
 0x8f1   :  { %4903 = vmatpush1.msra.mxu1 %v3996_v18  ;;  %4972 = vmatpush1.msra.mxu0 %v4128_v49  ;;  %v4205_v18 = vld [vmem:[#allocation14 + $0x1728] sm:$0xff]  ;;  %v4072_v49 = vld [vmem:[#allocation14 + $0x1300] sm:$0xff] }
 0x8f2   :  { %4904 = vmatprep.subr.mxu1 %v3993_v25  ;;  %4973 = vmatprep.subr.mxu0 %v4125_v24  ;;  %v4204_v25 = vld [vmem:[#allocation14 + $0x1720] sm:$0xff]  ;;  %v4069_v24 = vld [vmem:[#allocation14 + $0x12e8] sm:$0xff] }
 0x8f3   :  { %4905 = vmatpush1.msra.mxu1 %v3992_v63  ;;  %4974 = vmatpush1.msra.mxu0 %v4124_v31  ;;  %v4201_v63 = vld [vmem:[#allocation14 + $0x1708] sm:$0xff]  ;;  %v4068_v31 = vld [vmem:[#allocation14 + $0x12e0] sm:$0xff] }
 0x8f4   :  { %4906 = vmatprep.subr.mxu1 %v3989_v8  ;;  %4975 = vmatprep.subr.mxu0 %v4121_v17  ;;  %v4200_v8 = vld [vmem:[#allocation14 + $0x1700] sm:$0xff]  ;;  %v4065_v17 = vld [vmem:[#allocation14 + $0x12c8] sm:$0xff] }
 0x8f5   :  { %4907 = vmatpush1.msra.mxu1 %v3988_v46  ;;  %4976 = vmatpush1.msra.mxu0 %v4120_v35  ;;  %v4197_v46 = vld [vmem:[#allocation14 + $0x16e8] sm:$0xff]  ;;  %v4064_v35 = vld [vmem:[#allocation14 + $0x12c0] sm:$0xff] }
 0x8f6   :  { %4908 = vmatprep.subr.mxu1 %v3985_v5  ;;  %4977 = vmatprep.subr.mxu0 %v4117_v38  ;;  %v4196_v5 = vld [vmem:[#allocation14 + $0x16e0] sm:$0xff]  ;;  %v4061_v38 = vld [vmem:[#allocation14 + $0x12a8] sm:$0xff] }
 0x8f7   :  { %4909 = vmatpush1.msra.mxu1 %v3984_v57  ;;  %4978 = vmatpush1.msra.mxu0 %v4116_v60  ;;  %v4193_v57 = vld [vmem:[#allocation14 + $0x16c8] sm:$0xff]  ;;  %v4060_v60 = vld [vmem:[#allocation14 + $0x12a0] sm:$0xff] }
 0x8f8   :  { %4910 = vmatprep.subr.mxu1 %v3981_v20  ;;  %4979 = vmatprep.subr.mxu0 %v4113_v28  ;;  %v4192_v20 = vld [vmem:[#allocation14 + $0x16c0] sm:$0xff]  ;;  %v4057_v28 = vld [vmem:[#allocation14 + $0x1288] sm:$0xff] }
 0x8f9   :  { %4911 = vmatpush1.msra.mxu1 %v3980_v62  ;;  %4980 = vmatpush1.msra.mxu0 %v4112_v9  ;;  %v4189_v62 = vld [vmem:[#allocation14 + $0x16a8] sm:$0xff]  ;;  %v4056_v9 = vld [vmem:[#allocation14 + $0x1280] sm:$0xff] }
 0x8fa   :  { %4912 = vmatprep.subr.mxu1 %v3977_v44  ;;  %4981 = vmatprep.subr.mxu0 %v4109_v1  ;;  %v4188_v44 = vld [vmem:[#allocation14 + $0x16a0] sm:$0xff]  ;;  %v4053_v1 = vld [vmem:[#allocation14 + $0x1268] sm:$0xff] }
 0x8fb   :  { %4913 = vmatpush1.msra.mxu1 %v3976_v51  ;;  %4982 = vmatpush1.msra.mxu0 %v4108_v52  ;;  %v4185_v51 = vld [vmem:[#allocation14 + $0x1688] sm:$0xff]  ;;  %v4052_v52 = vld [vmem:[#allocation14 + $0x1260] sm:$0xff] }
 0x8fc   :  { %4914 = vmatprep.subr.mxu1 %v4101_v26  ;;  %4983 = vmatprep.subr.mxu0 %v4105_v43  ;;  %v4184_v26 = vld [vmem:[#allocation14 + $0x1680] sm:$0xff]  ;;  %v4049_v43 = vld [vmem:[#allocation14 + $0x1248] sm:$0xff] }
 0x8fd   :  { %4915 = vmatpush2.msra.mxu1 %v4100_v13  ;;  %4984 = vmatpush1.msra.mxu0 %v4104_v11  ;;  %v4181_v13 = vld [vmem:[#allocation14 + $0x1668] sm:$0xff]  ;;  %v4048_v11 = vld [vmem:[#allocation14 + $0x1240] sm:$0xff] }
 0x8fe   :  { %4916 = vmatprep.subr.mxu1 %v4097_v2  ;;  %4985 = vmatprep.subr.mxu0 %v4229_v47  ;;  %v4180_v2 = vld [vmem:[#allocation14 + $0x1660] sm:$0xff]  ;;  %v3463_v47 = vld [vmem:[#allocation2 + $0x18] sm:$0xff] }
 0x8ff   :  { %4917 = vmatpush2.msra.mxu1 %v4096_v45  ;;  %4986 = vmatpush2.msra.mxu0 %v4228_v30  ;;  %v4045_v45 = vld [vmem:[#allocation14 + $0x1228] sm:$0xff] }
 0x900   :  { %4918 = vmatprep.subr.mxu1 %v4093_v40  ;;  %4987 = vmatprep.subr.mxu0 %v4225_v59  ;;  %v4177_v30 = vld [vmem:[#allocation14 + $0x1648] sm:$0xff]  ;;  %v4044_v40 = vld [vmem:[#allocation14 + $0x1220] sm:$0xff] }
 0x901   :  { %4919 = vmatpush2.msra.mxu1 %v4092_v54  ;;  %4988 = vmatpush2.msra.mxu0 %v4224_v53  ;;  %v4176_v59 = vld [vmem:[#allocation14 + $0x1640] sm:$0xff]  ;;  %v4041_v54 = vld [vmem:[#allocation14 + $0x1208] sm:$0xff] }
 0x902   :  { %4920 = vmatprep.subr.mxu1 %v4089_v36  ;;  %4989 = vmatprep.subr.mxu0 %v4221_v56  ;;  %v4173_v53 = vld [vmem:[#allocation14 + $0x1628] sm:$0xff]  ;;  %v4565_v36 = vcombine.high %v3463_v47, %v3463_v47  ;;  %v4040_v56 = vld [vmem:[#allocation14 + $0x1200] sm:$0xff] }
 0x903   :  { %4921 = vmatpush2.msra.mxu1 %v4088_v27  ;;  %4990 = vmatpush2.msra.mxu0 %v4220_v32  ;;  %v4172_v27 = vld [vmem:[#allocation14 + $0x1620] sm:$0xff]  ;;  %v9605_v32 = vrot.slane %v3463_v47, %v10619_v42 }
 0x904   :  { %4922 = vmatprep.subr.mxu1 %v4085_v37  ;;  %4991 = vmatprep.subr.mxu0 %v4217_v22  ;;  %v4169_v37 = vld [vmem:[#allocation14 + $0x1608] sm:$0xff]  ;;  %v4256_v47 = vld [vmem:[#allocation14 + $0x18c0] sm:$0xff] }
 0x905   :  { %4923 = vmatpush2.msra.mxu1 %v4084_v58  ;;  %4992 = vmatpush2.msra.mxu0 %v4216_v6  ;;  %v4293_v22 = vld [vmem:[#allocation14 + $0x19e8] sm:$0xff]  ;;  %v4168_v58 = vld [vmem:[#allocation14 + $0x1600] sm:$0xff] }
 0x906   :  { %4924 = vmatprep.subr.mxu1 %v4081_v4  ;;  %4993 = vmatprep.subr.mxu0 %v4213_v16  ;;  %v4292_v6 = vld [vmem:[#allocation14 + $0x19e0] sm:$0xff]  ;;  %v9608_v4 = vrot.slane %v4565_v36, %v10619_v42  ;;  %v9613_v16 = vcombine.high %v9605_v32, %v9605_v32  ;;  %v4381_v36 = vld [vmem:[#allocation14 + $0x1ca8] sm:$0xff] }
 0x907   :  { %4925 = vmatpush2.msra.mxu1 %v4080_v23  ;;  %4994 = vmatpush2.msra.mxu0 %v4212_v0  ;;  %v4289_v23 = vld [vmem:[#allocation14 + $0x19c8] sm:$0xff] }
 0x908   :  { %4926 = vmatprep.subr.mxu1 %v4077_v19  ;;  %4995 = vmatprep.subr.mxu0 %v4209_v14  ;;  %v4421_v0 = vld [vmem:[#allocation14 + $0x1de8] sm:$0xff]  ;;  %v4288_v19 = vld [vmem:[#allocation14 + $0x19c0] sm:$0xff]  ;;  %v9619_v42 = vcombine.high %v9608_v4, %v9608_v4 }
 0x909   :  { %4927 = vmatpush2.msra.mxu1 %v4076_v29  ;;  %4996 = vmatpush2.msra.mxu0 %v4208_v41  ;;  %v4420_v14 = vld [vmem:[#allocation14 + $0x1de0] sm:$0xff]  ;;  %v4285_v29 = vld [vmem:[#allocation14 + $0x19a8] sm:$0xff] }
 0x90a   :  { %4928 = vmatprep.subr.mxu1 %v4073_v3  ;;  %4997 = vmatprep.subr.mxu0 %v4205_v18  ;;  %v4417_v41 = vld [vmem:[#allocation14 + $0x1dc8] sm:$0xff]  ;;  %v4284_v3 = vld [vmem:[#allocation14 + $0x19a0] sm:$0xff] }
 0x90b   :  { %4929 = vmatpush2.msra.mxu1 %v4072_v49  ;;  %4998 = vmatpush2.msra.mxu0 %v4204_v25  ;;  %v4416_v18 = vld [vmem:[#allocation14 + $0x1dc0] sm:$0xff]  ;;  %v4281_v49 = vld [vmem:[#allocation14 + $0x1988] sm:$0xff] }
 0x90c   :  { %4930 = vmatprep.subr.mxu1 %v4069_v24  ;;  %4999 = vmatprep.subr.mxu0 %v4201_v63  ;;  %v4413_v25 = vld [vmem:[#allocation14 + $0x1da8] sm:$0xff]  ;;  %v4280_v24 = vld [vmem:[#allocation14 + $0x1980] sm:$0xff] }
 0x90d   :  { %4931 = vmatpush2.msra.mxu1 %v4068_v31  ;;  %5000 = vmatpush2.msra.mxu0 %v4200_v8  ;;  %v4412_v63 = vld [vmem:[#allocation14 + $0x1da0] sm:$0xff]  ;;  %v4277_v31 = vld [vmem:[#allocation14 + $0x1968] sm:$0xff] }
 0x90e   :  { %4932 = vmatprep.subr.mxu1 %v4065_v17  ;;  %5001 = vmatprep.subr.mxu0 %v4197_v46  ;;  %v4409_v8 = vld [vmem:[#allocation14 + $0x1d88] sm:$0xff]  ;;  %v4276_v17 = vld [vmem:[#allocation14 + $0x1960] sm:$0xff] }
 0x90f   :  { %4933 = vmatpush2.msra.mxu1 %v4064_v35  ;;  %5002 = vmatpush2.msra.mxu0 %v4196_v5  ;;  %v4408_v46 = vld [vmem:[#allocation14 + $0x1d80] sm:$0xff]  ;;  %v4273_v35 = vld [vmem:[#allocation14 + $0x1948] sm:$0xff] }
 0x910   :  { %4934 = vmatprep.subr.mxu1 %v4061_v38  ;;  %5003 = vmatprep.subr.mxu0 %v4193_v57  ;;  %v4405_v5 = vld [vmem:[#allocation14 + $0x1d68] sm:$0xff]  ;;  %v4272_v38 = vld [vmem:[#allocation14 + $0x1940] sm:$0xff] }
 0x911   :  { %4935 = vmatpush2.msra.mxu1 %v4060_v60  ;;  %5004 = vmatpush2.msra.mxu0 %v4192_v20  ;;  %v4404_v57 = vld [vmem:[#allocation14 + $0x1d60] sm:$0xff]  ;;  %v4269_v60 = vld [vmem:[#allocation14 + $0x1928] sm:$0xff] }
 0x912   :  { %4936 = vmatprep.subr.mxu1 %v4057_v28  ;;  %5005 = vmatprep.subr.mxu0 %v4189_v62  ;;  %v4401_v20 = vld [vmem:[#allocation14 + $0x1d48] sm:$0xff]  ;;  %v4268_v28 = vld [vmem:[#allocation14 + $0x1920] sm:$0xff] }
 0x913   :  { %4937 = vmatpush2.msra.mxu1 %v4056_v9  ;;  %5006 = vmatpush2.msra.mxu0 %v4188_v44  ;;  %v4400_v62 = vld [vmem:[#allocation14 + $0x1d40] sm:$0xff]  ;;  %v4265_v9 = vld [vmem:[#allocation14 + $0x1908] sm:$0xff] }
 0x914   :  { %4938 = vmatprep.subr.mxu1 %v4053_v1  ;;  %5007 = vmatprep.subr.mxu0 %v4185_v51  ;;  %v4397_v44 = vld [vmem:[#allocation14 + $0x1d28] sm:$0xff]  ;;  %v4264_v1 = vld [vmem:[#allocation14 + $0x1900] sm:$0xff] }
 0x915   :  { %4939 = vmatpush2.msra.mxu1 %v4052_v52  ;;  %5008 = vmatpush2.msra.mxu0 %v4184_v26  ;;  %v4396_v51 = vld [vmem:[#allocation14 + $0x1d20] sm:$0xff]  ;;  %v4261_v52 = vld [vmem:[#allocation14 + $0x18e8] sm:$0xff] }
 0x916   :  { %4940 = vmatprep.subr.mxu1 %v4049_v43  ;;  %5009 = vmatprep.subr.mxu0 %v4181_v13  ;;  %v4393_v26 = vld [vmem:[#allocation14 + $0x1d08] sm:$0xff]  ;;  %v4260_v43 = vld [vmem:[#allocation14 + $0x18e0] sm:$0xff] }
 0x917   :  { %4941 = vmatpush2.msra.mxu1 %v4048_v11  ;;  %5010 = vmatpush2.msra.mxu0 %v4180_v2  ;;  %v4392_v13 = vld [vmem:[#allocation14 + $0x1d00] sm:$0xff]  ;;  %v4257_v11 = vld [vmem:[#allocation14 + $0x18c8] sm:$0xff] }
 0x918   :  { %4942 = vmatprep.subr.mxu1 %v4045_v45  ;;  %5011 = vmatprep.subr.mxu0 %v4177_v30  ;;  %v4389_v2 = vld [vmem:[#allocation14 + $0x1ce8] sm:$0xff]  ;;  %v4388_v45 = vld [vmem:[#allocation14 + $0x1ce0] sm:$0xff] }
 0x919   :  { %4943 = vmatpush2.msra.mxu1 %v4044_v40  ;;  %5012 = vmatpush2.msra.mxu0 %v4176_v59  ;;  %v4253_v30 = vld [vmem:[#allocation14 + $0x18a8] sm:$0xff]  ;;  %v4252_v59 = vld [vmem:[#allocation14 + $0x18a0] sm:$0xff] }
 0x91a   :  { %4944 = vmatprep.subr.mxu1 %v4041_v54  ;;  %5013 = vmatprep.subr.mxu0 %v4173_v53  ;;  %v4385_v40 = vld [vmem:[#allocation14 + $0x1cc8] sm:$0xff]  ;;  %v4384_v54 = vld [vmem:[#allocation14 + $0x1cc0] sm:$0xff] }
 0x91b   :  { %4945 = vmatpush2.msra.mxu1 %v4040_v56  ;;  %5014 = vmatpush2.msra.mxu0 %v4172_v27  ;;  %v4249_v53 = vld [vmem:[#allocation14 + $0x1888] sm:$0xff]  ;;  %v4248_v56 = vld [vmem:[#allocation14 + $0x1880] sm:$0xff] }
 0x91c   :  { %4947 = vmatmul.mubr.f32.vlgmr.msra.gmra.mxu1 %v9587_v12  ;;  %5015 = vmatprep.subr.mxu0 %v4169_v37  ;;  %v4380_v27 = vld [vmem:[#allocation14 + $0x1ca0] sm:$0xff]  ;;  %v4245_v37 = vld [vmem:[#allocation14 + $0x1868] sm:$0xff] }
 0x91d   :  { %5024 = vmatprep.subr.mxu1 %v4293_v22  ;;  %5016 = vmatpush2.msra.mxu0 %v4168_v58  ;;  %v4377_v22 = vld [vmem:[#allocation14 + $0x1c88] sm:$0xff]  ;;  %v4244_v58 = vld [vmem:[#allocation14 + $0x1860] sm:$0xff] }
 0x91e   :  { %5025 = vmatpush1.msra.mxu1 %v4292_v6  ;;  %5088 = vmatprep.mubr.f32.mxu1 %v9613_v16  ;;  %v4376_v6 = vld [vmem:[#allocation14 + $0x1c80] sm:$0xff] }
 0x91f   :  { %5018 = vmatmul.mubr.f32.vlgmr.msra.gmra.mxu0 %v9590_v15  ;;  %5026 = vmatprep.subr.mxu1 %v4289_v23  ;;  %v4241_v23 = vld [vmem:[#allocation14 + $0x1848] sm:$0xff] }
 0x920   :  { %5095 = vmatprep.subr.mxu0 %v4421_v0  ;;  %5027 = vmatpush1.msra.mxu1 %v4288_v19  ;;  %v4373_v0 = vld [vmem:[#allocation14 + $0x1c68] sm:$0xff]  ;;  %v4240_v19 = vld [vmem:[#allocation14 + $0x1840] sm:$0xff] }
 0x921   :  { %5096 = vmatpush1.msra.mxu0 %v4420_v14  ;;  %5159 = vmatprep.mubr.f32.mxu0 %v9619_v42  ;;  %v4372_v14 = vld [vmem:[#allocation14 + $0x1c60] sm:$0xff] }
 0x922   :  { %5028 = vmatprep.subr.mxu1 %v4285_v29  ;;  %5097 = vmatprep.subr.mxu0 %v4417_v41  ;;  %v4237_v29 = vld [vmem:[#allocation14 + $0x1828] sm:$0xff] }
 0x923   :  { %5029 = vmatpush1.msra.mxu1 %v4284_v3  ;;  %5098 = vmatpush1.msra.mxu0 %v4416_v18  ;;  %v4369_v41 = vld [vmem:[#allocation14 + $0x1c48] sm:$0xff]  ;;  %v4236_v3 = vld [vmem:[#allocation14 + $0x1820] sm:$0xff] }
 0x924   :  { %5030 = vmatprep.subr.mxu1 %v4281_v49  ;;  %5099 = vmatprep.subr.mxu0 %v4413_v25  ;;  %v4368_v18 = vld [vmem:[#allocation14 + $0x1c40] sm:$0xff]  ;;  %v4233_v49 = vld [vmem:[#allocation14 + $0x1808] sm:$0xff] }
 0x925   :  { %5031 = vmatpush1.msra.mxu1 %v4280_v24  ;;  %5100 = vmatpush1.msra.mxu0 %v4412_v63  ;;  %v4365_v25 = vld [vmem:[#allocation14 + $0x1c28] sm:$0xff]  ;;  %v4232_v24 = vld [vmem:[#allocation14 + $0x1800] sm:$0xff] }
 0x926   :  { %5032 = vmatprep.subr.mxu1 %v4277_v31  ;;  %5101 = vmatprep.subr.mxu0 %v4409_v8  ;;  %v4364_v63 = vld [vmem:[#allocation14 + $0x1c20] sm:$0xff]  ;;  %v4357_v31 = vld [vmem:[#allocation14 + $0x1be8] sm:$0xff] }
 0x927   :  { %5033 = vmatpush1.msra.mxu1 %v4276_v17  ;;  %5102 = vmatpush1.msra.mxu0 %v4408_v46  ;;  %v4361_v8 = vld [vmem:[#allocation14 + $0x1c08] sm:$0xff]  ;;  %v4356_v17 = vld [vmem:[#allocation14 + $0x1be0] sm:$0xff] }
 0x928   :  { %5034 = vmatprep.subr.mxu1 %v4273_v35  ;;  %5103 = vmatprep.subr.mxu0 %v4405_v5  ;;  %v4360_v46 = vld [vmem:[#allocation14 + $0x1c00] sm:$0xff]  ;;  %v4353_v35 = vld [vmem:[#allocation14 + $0x1bc8] sm:$0xff] }
 0x929   :  { %5035 = vmatpush1.msra.mxu1 %v4272_v38  ;;  %5104 = vmatpush1.msra.mxu0 %v4404_v57  ;;  %v4485_v5 = vld [vmem:[#allocation14 + $0x1fe8] sm:$0xff]  ;;  %v4352_v38 = vld [vmem:[#allocation14 + $0x1bc0] sm:$0xff] }
 0x92a   :  { %5036 = vmatprep.subr.mxu1 %v4269_v60  ;;  %5105 = vmatprep.subr.mxu0 %v4401_v20  ;;  %v4484_v57 = vld [vmem:[#allocation14 + $0x1fe0] sm:$0xff]  ;;  %v4349_v60 = vld [vmem:[#allocation14 + $0x1ba8] sm:$0xff] }
 0x92b   :  { %5037 = vmatpush1.msra.mxu1 %v4268_v28  ;;  %5106 = vmatpush1.msra.mxu0 %v4400_v62  ;;  %v4481_v20 = vld [vmem:[#allocation14 + $0x1fc8] sm:$0xff]  ;;  %v4348_v28 = vld [vmem:[#allocation14 + $0x1ba0] sm:$0xff] }
 0x92c   :  { %5038 = vmatprep.subr.mxu1 %v4265_v9  ;;  %5107 = vmatprep.subr.mxu0 %v4397_v44  ;;  %v4480_v62 = vld [vmem:[#allocation14 + $0x1fc0] sm:$0xff]  ;;  %v4345_v9 = vld [vmem:[#allocation14 + $0x1b88] sm:$0xff] }
 0x92d   :  { %5039 = vmatpush1.msra.mxu1 %v4264_v1  ;;  %5108 = vmatpush1.msra.mxu0 %v4396_v51  ;;  %v4477_v44 = vld [vmem:[#allocation14 + $0x1fa8] sm:$0xff]  ;;  %v4344_v1 = vld [vmem:[#allocation14 + $0x1b80] sm:$0xff] }
 0x92e   :  { %5040 = vmatprep.subr.mxu1 %v4261_v52  ;;  %5109 = vmatprep.subr.mxu0 %v4393_v26  ;;  %v4476_v51 = vld [vmem:[#allocation14 + $0x1fa0] sm:$0xff]  ;;  %v4341_v52 = vld [vmem:[#allocation14 + $0x1b68] sm:$0xff] }
 0x92f   :  { %5041 = vmatpush1.msra.mxu1 %v4260_v43  ;;  %5110 = vmatpush1.msra.mxu0 %v4392_v13  ;;  %v4473_v26 = vld [vmem:[#allocation14 + $0x1f88] sm:$0xff]  ;;  %v4340_v43 = vld [vmem:[#allocation14 + $0x1b60] sm:$0xff] }
 0x930   :  { %5042 = vmatprep.subr.mxu1 %v4257_v11  ;;  %5111 = vmatprep.subr.mxu0 %v4389_v2  ;;  %v4472_v13 = vld [vmem:[#allocation14 + $0x1f80] sm:$0xff]  ;;  %v4337_v11 = vld [vmem:[#allocation14 + $0x1b48] sm:$0xff] }
 0x931   :  { %5043 = vmatpush1.msra.mxu1 %v4256_v47  ;;  %5112 = vmatpush1.msra.mxu0 %v4388_v45  ;;  %v4469_v2 = vld [vmem:[#allocation14 + $0x1f68] sm:$0xff]  ;;  %v4336_v47 = vld [vmem:[#allocation14 + $0x1b40] sm:$0xff] }
 0x932   :  { %5044 = vmatprep.subr.mxu1 %v4253_v30  ;;  %5113 = vmatprep.subr.mxu0 %v4385_v40  ;;  %v4468_v45 = vld [vmem:[#allocation14 + $0x1f60] sm:$0xff]  ;;  %v4333_v30 = vld [vmem:[#allocation14 + $0x1b28] sm:$0xff] }
 0x933   :  { %5045 = vmatpush1.msra.mxu1 %v4252_v59  ;;  %5114 = vmatpush1.msra.mxu0 %v4384_v54  ;;  %v4465_v40 = vld [vmem:[#allocation14 + $0x1f48] sm:$0xff]  ;;  %v4332_v59 = vld [vmem:[#allocation14 + $0x1b20] sm:$0xff] }
 0x934   :  { %5046 = vmatprep.subr.mxu1 %v4249_v53  ;;  %5115 = vmatprep.subr.mxu0 %v4381_v36  ;;  %v4464_v54 = vld [vmem:[#allocation14 + $0x1f40] sm:$0xff]  ;;  %v4329_v53 = vld [vmem:[#allocation14 + $0x1b08] sm:$0xff] }
 0x935   :  { %5047 = vmatpush1.msra.mxu1 %v4248_v56  ;;  %5116 = vmatpush1.msra.mxu0 %v4380_v27  ;;  %v4461_v36 = vld [vmem:[#allocation14 + $0x1f28] sm:$0xff]  ;;  %v4328_v56 = vld [vmem:[#allocation14 + $0x1b00] sm:$0xff] }
 0x936   :  { %5048 = vmatprep.subr.mxu1 %v4245_v37  ;;  %5117 = vmatprep.subr.mxu0 %v4377_v22  ;;  %v4460_v27 = vld [vmem:[#allocation14 + $0x1f20] sm:$0xff]  ;;  %v4325_v37 = vld [vmem:[#allocation14 + $0x1ae8] sm:$0xff] }
 0x937   :  { %5049 = vmatpush1.msra.mxu1 %v4244_v58  ;;  %5118 = vmatpush1.msra.mxu0 %v4376_v6  ;;  %v4457_v22 = vld [vmem:[#allocation14 + $0x1f08] sm:$0xff]  ;;  %v4324_v58 = vld [vmem:[#allocation14 + $0x1ae0] sm:$0xff] }
 0x938   :  { %5050 = vmatprep.subr.mxu1 %v4241_v23  ;;  %5119 = vmatprep.subr.mxu0 %v4373_v0  ;;  %v4456_v6 = vld [vmem:[#allocation14 + $0x1f00] sm:$0xff]  ;;  %v4321_v23 = vld [vmem:[#allocation14 + $0x1ac8] sm:$0xff] }
 0x939   :  { %5051 = vmatpush1.msra.mxu1 %v4240_v19  ;;  %5120 = vmatpush1.msra.mxu0 %v4372_v14  ;;  %v4453_v0 = vld [vmem:[#allocation14 + $0x1ee8] sm:$0xff]  ;;  %v4320_v19 = vld [vmem:[#allocation14 + $0x1ac0] sm:$0xff] }
 0x93a   :  { %5052 = vmatprep.subr.mxu1 %v4237_v29  ;;  %5121 = vmatprep.subr.mxu0 %v4369_v41  ;;  %v4452_v14 = vld [vmem:[#allocation14 + $0x1ee0] sm:$0xff]  ;;  %v4317_v29 = vld [vmem:[#allocation14 + $0x1aa8] sm:$0xff] }
 0x93b   :  { %5053 = vmatpush1.msra.mxu1 %v4236_v3  ;;  %5122 = vmatpush1.msra.mxu0 %v4368_v18  ;;  %v4449_v41 = vld [vmem:[#allocation14 + $0x1ec8] sm:$0xff]  ;;  %v4316_v3 = vld [vmem:[#allocation14 + $0x1aa0] sm:$0xff] }
 0x93c   :  { %5054 = vmatprep.subr.mxu1 %v4233_v49  ;;  %5123 = vmatprep.subr.mxu0 %v4365_v25  ;;  %v4448_v18 = vld [vmem:[#allocation14 + $0x1ec0] sm:$0xff]  ;;  %v4313_v49 = vld [vmem:[#allocation14 + $0x1a88] sm:$0xff] }
 0x93d   :  { %5055 = vmatpush1.msra.mxu1 %v4232_v24  ;;  %5124 = vmatpush1.msra.mxu0 %v4364_v63  ;;  %v4445_v25 = vld [vmem:[#allocation14 + $0x1ea8] sm:$0xff]  ;;  %v4312_v24 = vld [vmem:[#allocation14 + $0x1a80] sm:$0xff] }
 0x93e   :  { %5056 = vmatprep.subr.mxu1 %v4357_v31  ;;  %5125 = vmatprep.subr.mxu0 %v4361_v8  ;;  %v4444_v63 = vld [vmem:[#allocation14 + $0x1ea0] sm:$0xff]  ;;  %v4309_v31 = vld [vmem:[#allocation14 + $0x1a68] sm:$0xff] }
 0x93f   :  { %5057 = vmatpush2.msra.mxu1 %v4356_v17  ;;  %5126 = vmatpush1.msra.mxu0 %v4360_v46  ;;  %v4441_v8 = vld [vmem:[#allocation14 + $0x1e88] sm:$0xff]  ;;  %v4308_v17 = vld [vmem:[#allocation14 + $0x1a60] sm:$0xff] }
 0x940   :  { %5058 = vmatprep.subr.mxu1 %v4353_v35  ;;  %5127 = vmatprep.subr.mxu0 %v4485_v5  ;;  %v4440_v46 = vld [vmem:[#allocation14 + $0x1e80] sm:$0xff]  ;;  %v4305_v35 = vld [vmem:[#allocation14 + $0x1a48] sm:$0xff] }
 0x941   :  { %5059 = vmatpush2.msra.mxu1 %v4352_v38  ;;  %5128 = vmatpush2.msra.mxu0 %v4484_v57  ;;  %v4437_v5 = vld [vmem:[#allocation14 + $0x1e68] sm:$0xff]  ;;  %v4304_v38 = vld [vmem:[#allocation14 + $0x1a40] sm:$0xff] }
 0x942   :  { %5060 = vmatprep.subr.mxu1 %v4349_v60  ;;  %5129 = vmatprep.subr.mxu0 %v4481_v20  ;;  %v4436_v57 = vld [vmem:[#allocation14 + $0x1e60] sm:$0xff]  ;;  %v4301_v60 = vld [vmem:[#allocation14 + $0x1a28] sm:$0xff] }
 0x943   :  { %5061 = vmatpush2.msra.mxu1 %v4348_v28  ;;  %5130 = vmatpush2.msra.mxu0 %v4480_v62  ;;  %v4433_v20 = vld [vmem:[#allocation14 + $0x1e48] sm:$0xff]  ;;  %v4300_v28 = vld [vmem:[#allocation14 + $0x1a20] sm:$0xff] }
 0x944   :  { %5062 = vmatprep.subr.mxu1 %v4345_v9  ;;  %5131 = vmatprep.subr.mxu0 %v4477_v44  ;;  %v4432_v62 = vld [vmem:[#allocation14 + $0x1e40] sm:$0xff]  ;;  %v4297_v9 = vld [vmem:[#allocation14 + $0x1a08] sm:$0xff] }
 0x945   :  { %5063 = vmatpush2.msra.mxu1 %v4344_v1  ;;  %5132 = vmatpush2.msra.mxu0 %v4476_v51  ;;  %v4429_v44 = vld [vmem:[#allocation14 + $0x1e28] sm:$0xff]  ;;  %v4296_v1 = vld [vmem:[#allocation14 + $0x1a00] sm:$0xff] }
 0x946   :  { %5064 = vmatprep.subr.mxu1 %v4341_v52  ;;  %5133 = vmatprep.subr.mxu0 %v4473_v26  ;;  %v4428_v51 = vld [vmem:[#allocation14 + $0x1e20] sm:$0xff]  ;;  %v4425_v52 = vld [vmem:[#allocation14 + $0x1e08] sm:$0xff]  ;;  %v3527_v26 = vld [vmem:[#allocation14 + $0x1f8] sm:$0xff] }
 0x947   :  { %5065 = vmatpush2.msra.mxu1 %v4340_v43  ;;  %5134 = vmatpush2.msra.mxu0 %v4472_v13  ;;  %v4424_v43 = vld [vmem:[#allocation14 + $0x1e00] sm:$0xff]  ;;  %v3526_v13 = vld [vmem:[#allocation14 + $0x1f0] sm:$0xff] }
 0x948   :  { %5066 = vmatprep.subr.mxu1 %v4337_v11  ;;  %5135 = vmatprep.subr.mxu0 %v4469_v2  ;;  %v3523_v11 = vld [vmem:[#allocation14 + $0x1d8] sm:$0xff] }
 0x949   :  { %5067 = vmatpush2.msra.mxu1 %v4336_v47  ;;  %5136 = vmatpush2.msra.mxu0 %v4468_v45  ;;  %v3655_v2 = vld [vmem:[#allocation14 + $0x5f8] sm:$0xff]  ;;  %v3522_v47 = vld [vmem:[#allocation14 + $0x1d0] sm:$0xff] }
 0x94a   :  { %5068 = vmatprep.subr.mxu1 %v4333_v30  ;;  %5137 = vmatprep.subr.mxu0 %v4465_v40  ;;  %v3654_v45 = vld [vmem:[#allocation14 + $0x5f0] sm:$0xff]  ;;  %v3519_v30 = vld [vmem:[#allocation14 + $0x1b8] sm:$0xff] }
 0x94b   :  { %5069 = vmatpush2.msra.mxu1 %v4332_v59  ;;  %5138 = vmatpush2.msra.mxu0 %v4464_v54  ;;  %v3651_v40 = vld [vmem:[#allocation14 + $0x5d8] sm:$0xff]  ;;  %v3518_v59 = vld [vmem:[#allocation14 + $0x1b0] sm:$0xff] }
 0x94c   :  { %5070 = vmatprep.subr.mxu1 %v4329_v53  ;;  %5139 = vmatprep.subr.mxu0 %v4461_v36  ;;  %v3650_v54 = vld [vmem:[#allocation14 + $0x5d0] sm:$0xff]  ;;  %v3515_v53 = vld [vmem:[#allocation14 + $0x198] sm:$0xff] }
 0x94d   :  { %5071 = vmatpush2.msra.mxu1 %v4328_v56  ;;  %5140 = vmatpush2.msra.mxu0 %v4460_v27  ;;  %v3647_v36 = vld [vmem:[#allocation14 + $0x5b8] sm:$0xff]  ;;  %v3514_v56 = vld [vmem:[#allocation14 + $0x190] sm:$0xff] }
 0x94e   :  { %5072 = vmatprep.subr.mxu1 %v4325_v37  ;;  %5141 = vmatprep.subr.mxu0 %v4457_v22  ;;  %v3646_v27 = vld [vmem:[#allocation14 + $0x5b0] sm:$0xff]  ;;  %v3643_v37 = vld [vmem:[#allocation14 + $0x598] sm:$0xff] }
 0x94f   :  { %5073 = vmatpush2.msra.mxu1 %v4324_v58  ;;  %5142 = vmatpush2.msra.mxu0 %v4456_v6  ;;  %v3510_v22 = vld [vmem:[#allocation14 + $0x170] sm:$0xff]  ;;  %v3507_v6 = vld [vmem:[#allocation14 + $0x158] sm:$0xff] }
 0x950   :  { %5074 = vmatprep.subr.mxu1 %v4321_v23  ;;  %5143 = vmatprep.subr.mxu0 %v4453_v0  ;;  %v3642_v58 = vld [vmem:[#allocation14 + $0x590] sm:$0xff]  ;;  %v3639_v23 = vld [vmem:[#allocation14 + $0x578] sm:$0xff] }
 0x951   :  { %5075 = vmatpush2.msra.mxu1 %v4320_v19  ;;  %5144 = vmatpush2.msra.mxu0 %v4452_v14  ;;  %v3638_v0 = vld [vmem:[#allocation14 + $0x570] sm:$0xff]  ;;  %v3503_v19 = vld [vmem:[#allocation14 + $0x138] sm:$0xff] }
 0x952   :  { %5076 = vmatprep.subr.mxu1 %v4317_v29  ;;  %5145 = vmatprep.subr.mxu0 %v4449_v41  ;;  %v3635_v14 = vld [vmem:[#allocation14 + $0x558] sm:$0xff]  ;;  %v3502_v29 = vld [vmem:[#allocation14 + $0x130] sm:$0xff] }
 0x953   :  { %5077 = vmatpush2.msra.mxu1 %v4316_v3  ;;  %5146 = vmatpush2.msra.mxu0 %v4448_v18  ;;  %v3634_v41 = vld [vmem:[#allocation14 + $0x550] sm:$0xff]  ;;  %v3499_v3 = vld [vmem:[#allocation14 + $0x118] sm:$0xff] }
 0x954   :  { %5078 = vmatprep.subr.mxu1 %v4313_v49  ;;  %5147 = vmatprep.subr.mxu0 %v4445_v25  ;;  %v3631_v18 = vld [vmem:[#allocation14 + $0x538] sm:$0xff]  ;;  %v3498_v49 = vld [vmem:[#allocation14 + $0x110] sm:$0xff] }
 0x955   :  { %5079 = vmatpush2.msra.mxu1 %v4312_v24  ;;  %5148 = vmatpush2.msra.mxu0 %v4444_v63  ;;  %v3630_v25 = vld [vmem:[#allocation14 + $0x530] sm:$0xff]  ;;  %v3495_v24 = vld [vmem:[#allocation14 + $0xf8] sm:$0xff] }
 0x956   :  { %5080 = vmatprep.subr.mxu1 %v4309_v31  ;;  %5149 = vmatprep.subr.mxu0 %v4441_v8  ;;  %v3627_v63 = vld [vmem:[#allocation14 + $0x518] sm:$0xff]  ;;  %v3494_v31 = vld [vmem:[#allocation14 + $0xf0] sm:$0xff] }
 0x957   :  { %5081 = vmatpush2.msra.mxu1 %v4308_v17  ;;  %5150 = vmatpush2.msra.mxu0 %v4440_v46  ;;  %v3626_v8 = vld [vmem:[#allocation14 + $0x510] sm:$0xff]  ;;  %v3491_v17 = vld [vmem:[#allocation14 + $0xd8] sm:$0xff] }
 0x958   :  { %5082 = vmatprep.subr.mxu1 %v4305_v35  ;;  %5151 = vmatprep.subr.mxu0 %v4437_v5  ;;  %v3623_v46 = vld [vmem:[#allocation14 + $0x4f8] sm:$0xff]  ;;  %v3490_v35 = vld [vmem:[#allocation14 + $0xd0] sm:$0xff] }
 0x959   :  { %5083 = vmatpush2.msra.mxu1 %v4304_v38  ;;  %5152 = vmatpush2.msra.mxu0 %v4436_v57  ;;  %v3622_v5 = vld [vmem:[#allocation14 + $0x4f0] sm:$0xff]  ;;  %v3487_v38 = vld [vmem:[#allocation14 + $0xb8] sm:$0xff] }
 0x95a   :  { %5084 = vmatprep.subr.mxu1 %v4301_v60  ;;  %5153 = vmatprep.subr.mxu0 %v4433_v20  ;;  %v3619_v57 = vld [vmem:[#allocation14 + $0x4d8] sm:$0xff]  ;;  %v3486_v60 = vld [vmem:[#allocation14 + $0xb0] sm:$0xff] }
 0x95b   :  { %5085 = vmatpush2.msra.mxu1 %v4300_v28  ;;  %5154 = vmatpush2.msra.mxu0 %v4432_v62  ;;  %v3618_v20 = vld [vmem:[#allocation14 + $0x4d0] sm:$0xff]  ;;  %v3483_v28 = vld [vmem:[#allocation14 + $0x98] sm:$0xff] }
 0x95c   :  { %5086 = vmatprep.subr.mxu1 %v4297_v9  ;;  %5155 = vmatprep.subr.mxu0 %v4429_v44  ;;  %v3615_v62 = vld [vmem:[#allocation14 + $0x4b8] sm:$0xff]  ;;  %v3482_v9 = vld [vmem:[#allocation14 + $0x90] sm:$0xff] }
 0x95d   :  { %5087 = vmatpush2.msra.mxu1 %v4296_v1  ;;  %5156 = vmatpush2.msra.mxu0 %v4428_v51  ;;  %v3614_v44 = vld [vmem:[#allocation14 + $0x4b0] sm:$0xff]  ;;  %v3479_v1 = vld [vmem:[#allocation14 + $0x78] sm:$0xff] }
 0x95e   :  { %5089 = vmatmul.mubr.f32.vlgmr.msra.gmra.mxu1 %v9605_v32  ;;  %5157 = vmatprep.subr.mxu0 %v4425_v52  ;;  %v3611_v51 = vld [vmem:[#allocation14 + $0x498] sm:$0xff]  ;;  %v3478_v52 = vld [vmem:[#allocation14 + $0x70] sm:$0xff] }
 0x95f   :  { %5166 = vmatprep.subr.mxu1 %v3527_v26  ;;  %5158 = vmatpush2.msra.mxu0 %v4424_v43  ;;  %v3610_v26 = vld [vmem:[#allocation14 + $0x490] sm:$0xff]  ;;  %v3475_v43 = vld [vmem:[#allocation14 + $0x58] sm:$0xff] }
 0x960   :  { %5167 = vmatpush1.msra.mxu1 %v3526_v13  ;;  %5230 = vmatprep.mubr.f32.mxu1 %v9559_v55  ;;  %v3511_v55 = vld [vmem:[#allocation14 + $0x178] sm:$0xff] }
 0x961   :  { %5160 = vmatmul.mubr.f32.vlgmr.msra.gmra.mxu0 %v9608_v4  ;;  %5168 = vmatprep.subr.mxu1 %v3523_v11  ;;  %v3607_v13 = vld [vmem:[#allocation14 + $0x478] sm:$0xff]  ;;  %v3474_v11 = vld [vmem:[#allocation14 + $0x50] sm:$0xff] }
 0x962   :  { %5237 = vmatprep.subr.mxu0 %v3655_v2  ;;  %5169 = vmatpush1.msra.mxu1 %v3522_v47  ;;  %v3606_v2 = vld [vmem:[#allocation14 + $0x470] sm:$0xff]  ;;  %v3471_v47 = vld [vmem:[#allocation14 + $0x38] sm:$0xff] }
 0x963   :  { %5238 = vmatpush1.msra.mxu0 %v3654_v45  ;;  %5301 = vmatprep.mubr.f32.mxu0 %v9567_v50  ;;  %v3506_v50 = vld [vmem:[#allocation14 + $0x150] sm:$0xff]  ;;  %v3603_v45 = vld [vmem:[#allocation14 + $0x458] sm:$0xff] }
 0x964   :  { %5170 = vmatprep.subr.mxu1 %v3519_v30  ;;  %5239 = vmatprep.subr.mxu0 %v3651_v40  ;;  %v3470_v30 = vld [vmem:[#allocation14 + $0x30] sm:$0xff] }
 0x965   :  { %5171 = vmatpush1.msra.mxu1 %v3518_v59  ;;  %5240 = vmatpush1.msra.mxu0 %v3650_v54  ;;  %v3602_v40 = vld [vmem:[#allocation14 + $0x450] sm:$0xff]  ;;  %v3467_v59 = vld [vmem:[#allocation14 + $0x18] sm:$0xff] }
 0x966   :  { %5172 = vmatprep.subr.mxu1 %v3515_v53  ;;  %5241 = vmatprep.subr.mxu0 %v3647_v36  ;;  %v3599_v54 = vld [vmem:[#allocation14 + $0x438] sm:$0xff]  ;;  %v3466_v53 = vld [vmem:[#allocation14 + $0x10] sm:$0xff] }
 0x967   :  { %5173 = vmatpush1.msra.mxu1 %v3514_v56  ;;  %5242 = vmatpush1.msra.mxu0 %v3646_v27  ;;  %v3598_v36 = vld [vmem:[#allocation14 + $0x430] sm:$0xff]  ;;  %v3591_v56 = vld [vmem:[#allocation14 + $0x3f8] sm:$0xff] }
 0x968   :  { %5174 = vmatprep.subr.mxu1 %v3511_v55  ;;  %5243 = vmatprep.subr.mxu0 %v3643_v37  ;;  %v3595_v27 = vld [vmem:[#allocation14 + $0x418] sm:$0xff]  ;;  %v3590_v55 = vld [vmem:[#allocation14 + $0x3f0] sm:$0xff] }
 0x969   :  { %5175 = vmatpush1.msra.mxu1 %v3510_v22  ;;  %5244 = vmatpush1.msra.mxu0 %v3642_v58  ;;  %v3594_v37 = vld [vmem:[#allocation14 + $0x410] sm:$0xff]  ;;  %v3587_v22 = vld [vmem:[#allocation14 + $0x3d8] sm:$0xff] }
 0x96a   :  { %5176 = vmatprep.subr.mxu1 %v3507_v6  ;;  %5245 = vmatprep.subr.mxu0 %v3639_v23  ;;  %v3719_v58 = vld [vmem:[#allocation14 + $0x7f8] sm:$0xff]  ;;  %v3586_v6 = vld [vmem:[#allocation14 + $0x3d0] sm:$0xff] }
 0x96b   :  { %5177 = vmatpush1.msra.mxu1 %v3506_v50  ;;  %5246 = vmatpush1.msra.mxu0 %v3638_v0  ;;  %v3718_v23 = vld [vmem:[#allocation14 + $0x7f0] sm:$0xff]  ;;  %v3583_v50 = vld [vmem:[#allocation14 + $0x3b8] sm:$0xff] }
 0x96c   :  { %5178 = vmatprep.subr.mxu1 %v3503_v19  ;;  %5247 = vmatprep.subr.mxu0 %v3635_v14  ;;  %v3715_v0 = vld [vmem:[#allocation14 + $0x7d8] sm:$0xff]  ;;  %v3582_v19 = vld [vmem:[#allocation14 + $0x3b0] sm:$0xff] }
 0x96d   :  { %5179 = vmatpush1.msra.mxu1 %v3502_v29  ;;  %5248 = vmatpush1.msra.mxu0 %v3634_v41  ;;  %v3714_v14 = vld [vmem:[#allocation14 + $0x7d0] sm:$0xff]  ;;  %v3579_v29 = vld [vmem:[#allocation14 + $0x398] sm:$0xff] }
 0x96e   :  { %5180 = vmatprep.subr.mxu1 %v3499_v3  ;;  %5249 = vmatprep.subr.mxu0 %v3631_v18  ;;  %v3711_v41 = vld [vmem:[#allocation14 + $0x7b8] sm:$0xff]  ;;  %v3578_v3 = vld [vmem:[#allocation14 + $0x390] sm:$0xff] }
 0x96f   :  { %5181 = vmatpush1.msra.mxu1 %v3498_v49  ;;  %5250 = vmatpush1.msra.mxu0 %v3630_v25  ;;  %v3710_v18 = vld [vmem:[#allocation14 + $0x7b0] sm:$0xff]  ;;  %v3575_v49 = vld [vmem:[#allocation14 + $0x378] sm:$0xff] }
 0x970   :  { %5182 = vmatprep.subr.mxu1 %v3495_v24  ;;  %5251 = vmatprep.subr.mxu0 %v3627_v63  ;;  %v3707_v25 = vld [vmem:[#allocation14 + $0x798] sm:$0xff]  ;;  %v3574_v24 = vld [vmem:[#allocation14 + $0x370] sm:$0xff] }
 0x971   :  { %5183 = vmatpush1.msra.mxu1 %v3494_v31  ;;  %5252 = vmatpush1.msra.mxu0 %v3626_v8  ;;  %v3706_v63 = vld [vmem:[#allocation14 + $0x790] sm:$0xff]  ;;  %v3571_v31 = vld [vmem:[#allocation14 + $0x358] sm:$0xff] }
 0x972   :  { %5184 = vmatprep.subr.mxu1 %v3491_v17  ;;  %5253 = vmatprep.subr.mxu0 %v3623_v46  ;;  %v3703_v8 = vld [vmem:[#allocation14 + $0x778] sm:$0xff]  ;;  %v3570_v17 = vld [vmem:[#allocation14 + $0x350] sm:$0xff] }
 0x973   :  { %5185 = vmatpush1.msra.mxu1 %v3490_v35  ;;  %5254 = vmatpush1.msra.mxu0 %v3622_v5  ;;  %v3702_v46 = vld [vmem:[#allocation14 + $0x770] sm:$0xff]  ;;  %v3567_v35 = vld [vmem:[#allocation14 + $0x338] sm:$0xff] }
 0x974   :  { %5186 = vmatprep.subr.mxu1 %v3487_v38  ;;  %5255 = vmatprep.subr.mxu0 %v3619_v57  ;;  %v3699_v5 = vld [vmem:[#allocation14 + $0x758] sm:$0xff]  ;;  %v3566_v38 = vld [vmem:[#allocation14 + $0x330] sm:$0xff] }
 0x975   :  { %5187 = vmatpush1.msra.mxu1 %v3486_v60  ;;  %5256 = vmatpush1.msra.mxu0 %v3618_v20  ;;  %v3698_v57 = vld [vmem:[#allocation14 + $0x750] sm:$0xff]  ;;  %v3563_v60 = vld [vmem:[#allocation14 + $0x318] sm:$0xff] }
 0x976   :  { %5188 = vmatprep.subr.mxu1 %v3483_v28  ;;  %5257 = vmatprep.subr.mxu0 %v3615_v62  ;;  %v3695_v20 = vld [vmem:[#allocation14 + $0x738] sm:$0xff]  ;;  %v3562_v28 = vld [vmem:[#allocation14 + $0x310] sm:$0xff] }
 0x977   :  { %5189 = vmatpush1.msra.mxu1 %v3482_v9  ;;  %5258 = vmatpush1.msra.mxu0 %v3614_v44  ;;  %v3694_v62 = vld [vmem:[#allocation14 + $0x730] sm:$0xff]  ;;  %v3559_v9 = vld [vmem:[#allocation14 + $0x2f8] sm:$0xff] }
 0x978   :  { %5190 = vmatprep.subr.mxu1 %v3479_v1  ;;  %5259 = vmatprep.subr.mxu0 %v3611_v51  ;;  %v3691_v44 = vld [vmem:[#allocation14 + $0x718] sm:$0xff]  ;;  %v3558_v1 = vld [vmem:[#allocation14 + $0x2f0] sm:$0xff] }
 0x979   :  { %5191 = vmatpush1.msra.mxu1 %v3478_v52  ;;  %5260 = vmatpush1.msra.mxu0 %v3610_v26  ;;  %v3690_v51 = vld [vmem:[#allocation14 + $0x710] sm:$0xff]  ;;  %v3555_v52 = vld [vmem:[#allocation14 + $0x2d8] sm:$0xff] }
 0x97a   :  { %5192 = vmatprep.subr.mxu1 %v3475_v43  ;;  %5261 = vmatprep.subr.mxu0 %v3607_v13  ;;  %v3687_v26 = vld [vmem:[#allocation14 + $0x6f8] sm:$0xff]  ;;  %v3554_v43 = vld [vmem:[#allocation14 + $0x2d0] sm:$0xff] }
 0x97b   :  { %5193 = vmatpush1.msra.mxu1 %v3474_v11  ;;  %5262 = vmatpush1.msra.mxu0 %v3606_v2  ;;  %v3686_v13 = vld [vmem:[#allocation14 + $0x6f0] sm:$0xff]  ;;  %v3551_v11 = vld [vmem:[#allocation14 + $0x2b8] sm:$0xff] }
 0x97c   :  { %5194 = vmatprep.subr.mxu1 %v3471_v47  ;;  %5263 = vmatprep.subr.mxu0 %v3603_v45  ;;  %v3683_v2 = vld [vmem:[#allocation14 + $0x6d8] sm:$0xff]  ;;  %v3550_v47 = vld [vmem:[#allocation14 + $0x2b0] sm:$0xff] }
 0x97d   :  { %5195 = vmatpush1.msra.mxu1 %v3470_v30  ;;  %5264 = vmatpush1.msra.mxu0 %v3602_v40  ;;  %v3682_v45 = vld [vmem:[#allocation14 + $0x6d0] sm:$0xff]  ;;  %v3547_v30 = vld [vmem:[#allocation14 + $0x298] sm:$0xff] }
 0x97e   :  { %5196 = vmatprep.subr.mxu1 %v3467_v59  ;;  %5265 = vmatprep.subr.mxu0 %v3599_v54  ;;  %v3679_v40 = vld [vmem:[#allocation14 + $0x6b8] sm:$0xff]  ;;  %v3546_v59 = vld [vmem:[#allocation14 + $0x290] sm:$0xff] }
 0x97f   :  { %5197 = vmatpush1.msra.mxu1 %v3466_v53  ;;  %5266 = vmatpush1.msra.mxu0 %v3598_v36  ;;  %v3678_v54 = vld [vmem:[#allocation14 + $0x6b0] sm:$0xff]  ;;  %v3543_v53 = vld [vmem:[#allocation14 + $0x278] sm:$0xff] }
 0x980   :  { %5198 = vmatprep.subr.mxu1 %v3591_v56  ;;  %5267 = vmatprep.subr.mxu0 %v3595_v27  ;;  %v3675_v36 = vld [vmem:[#allocation14 + $0x698] sm:$0xff]  ;;  %v3542_v56 = vld [vmem:[#allocation14 + $0x270] sm:$0xff] }
 0x981   :  { %5199 = vmatpush2.msra.mxu1 %v3590_v55  ;;  %5268 = vmatpush1.msra.mxu0 %v3594_v37  ;;  %v3674_v27 = vld [vmem:[#allocation14 + $0x690] sm:$0xff]  ;;  %v3539_v55 = vld [vmem:[#allocation14 + $0x258] sm:$0xff] }
 0x982   :  { %5200 = vmatprep.subr.mxu1 %v3587_v22  ;;  %5269 = vmatprep.subr.mxu0 %v3719_v58  ;;  %v3671_v37 = vld [vmem:[#allocation14 + $0x678] sm:$0xff]  ;;  %v3538_v22 = vld [vmem:[#allocation14 + $0x250] sm:$0xff] }
 0x983   :  { %5201 = vmatpush2.msra.mxu1 %v3586_v6  ;;  %5270 = vmatpush2.msra.mxu0 %v3718_v23  ;;  %v3670_v58 = vld [vmem:[#allocation14 + $0x670] sm:$0xff]  ;;  %v3535_v6 = vld [vmem:[#allocation14 + $0x238] sm:$0xff] }
 0x984   :  { %5202 = vmatprep.subr.mxu1 %v3583_v50  ;;  %5271 = vmatprep.subr.mxu0 %v3715_v0  ;;  %v3667_v23 = vld [vmem:[#allocation14 + $0x658] sm:$0xff]  ;;  %v3534_v50 = vld [vmem:[#allocation14 + $0x230] sm:$0xff] }
 0x985   :  { %5203 = vmatpush2.msra.mxu1 %v3582_v19  ;;  %5272 = vmatpush2.msra.mxu0 %v3714_v14  ;;  %v3666_v0 = vld [vmem:[#allocation14 + $0x650] sm:$0xff]  ;;  %v3531_v19 = vld [vmem:[#allocation14 + $0x218] sm:$0xff] }
 0x986   :  { %5204 = vmatprep.subr.mxu1 %v3579_v29  ;;  %5273 = vmatprep.subr.mxu0 %v3711_v41  ;;  %v3663_v14 = vld [vmem:[#allocation14 + $0x638] sm:$0xff]  ;;  %v3530_v29 = vld [vmem:[#allocation14 + $0x210] sm:$0xff] }
 0x987   :  { %5205 = vmatpush2.msra.mxu1 %v3578_v3  ;;  %5274 = vmatpush2.msra.mxu0 %v3710_v18  ;;  %v3662_v41 = vld [vmem:[#allocation14 + $0x630] sm:$0xff]  ;;  %v3659_v3 = vld [vmem:[#allocation14 + $0x618] sm:$0xff] }
 0x988   :  { %5206 = vmatprep.subr.mxu1 %v3575_v49  ;;  %5275 = vmatprep.subr.mxu0 %v3707_v25  ;;  %v3783_v18 = vld [vmem:[#allocation14 + $0x9f8] sm:$0xff]  ;;  %v3658_v49 = vld [vmem:[#allocation14 + $0x610] sm:$0xff] }
 0x989   :  { %5207 = vmatpush2.msra.mxu1 %v3574_v24  ;;  %5276 = vmatpush2.msra.mxu0 %v3706_v63  ;;  %v3782_v25 = vld [vmem:[#allocation14 + $0x9f0] sm:$0xff]  ;;  %v3779_v24 = vld [vmem:[#allocation14 + $0x9d8] sm:$0xff] }
 0x98a   :  { %5208 = vmatprep.subr.mxu1 %v3571_v31  ;;  %5277 = vmatprep.subr.mxu0 %v3703_v8  ;;  %v3911_v63 = vld [vmem:[#allocation14 + $0xdf8] sm:$0xff]  ;;  %v3778_v31 = vld [vmem:[#allocation14 + $0x9d0] sm:$0xff] }
 0x98b   :  { %5209 = vmatpush2.msra.mxu1 %v3570_v17  ;;  %5278 = vmatpush2.msra.mxu0 %v3702_v46  ;;  %v3910_v8 = vld [vmem:[#allocation14 + $0xdf0] sm:$0xff]  ;;  %v3775_v17 = vld [vmem:[#allocation14 + $0x9b8] sm:$0xff] }
 0x98c   :  { %5210 = vmatprep.subr.mxu1 %v3567_v35  ;;  %5279 = vmatprep.subr.mxu0 %v3699_v5  ;;  %v3907_v46 = vld [vmem:[#allocation14 + $0xdd8] sm:$0xff]  ;;  %v3774_v35 = vld [vmem:[#allocation14 + $0x9b0] sm:$0xff] }
 0x98d   :  { %5211 = vmatpush2.msra.mxu1 %v3566_v38  ;;  %5280 = vmatpush2.msra.mxu0 %v3698_v57  ;;  %v3906_v5 = vld [vmem:[#allocation14 + $0xdd0] sm:$0xff]  ;;  %v3903_v38 = vld [vmem:[#allocation14 + $0xdb8] sm:$0xff] }
 0x98e   :  { %5212 = vmatprep.subr.mxu1 %v3563_v60  ;;  %5281 = vmatprep.subr.mxu0 %v3695_v20  ;;  %v3770_v57 = vld [vmem:[#allocation14 + $0x990] sm:$0xff] }
 0x98f   :  { %5213 = vmatpush2.msra.mxu1 %v3562_v28  ;;  %5282 = vmatpush2.msra.mxu0 %v3694_v62  ;;  %v3902_v60 = vld [vmem:[#allocation14 + $0xdb0] sm:$0xff]  ;;  %v3763_v62 = vld [vmem:[#allocation14 + $0x958] sm:$0xff] }
 0x990   :  { %5214 = vmatprep.subr.mxu1 %v3559_v9  ;;  %5283 = vmatprep.subr.mxu0 %v3691_v44  ;;  %v3766_v20 = vld [vmem:[#allocation14 + $0x970] sm:$0xff]  ;;  %v3895_v9 = vld [vmem:[#allocation14 + $0xd78] sm:$0xff] }
 0x991   :  { %5215 = vmatpush2.msra.mxu1 %v3558_v1  ;;  %5284 = vmatpush2.msra.mxu0 %v3690_v51  ;;  %v3898_v28 = vld [vmem:[#allocation14 + $0xd90] sm:$0xff]  ;;  %v3759_v1 = vld [vmem:[#allocation14 + $0x938] sm:$0xff] }
 0x992   :  { %5216 = vmatprep.subr.mxu1 %v3555_v52  ;;  %5285 = vmatprep.subr.mxu0 %v3687_v26  ;;  %v3894_v44 = vld [vmem:[#allocation14 + $0xd70] sm:$0xff]  ;;  %v3891_v51 = vld [vmem:[#allocation14 + $0xd58] sm:$0xff] }
 0x993   :  { %5217 = vmatpush2.msra.mxu1 %v3554_v43  ;;  %5286 = vmatpush2.msra.mxu0 %v3686_v13  ;;  %v3758_v52 = vld [vmem:[#allocation14 + $0x930] sm:$0xff]  ;;  %v3755_v43 = vld [vmem:[#allocation14 + $0x918] sm:$0xff] }
 0x994   :  { %5218 = vmatprep.subr.mxu1 %v3551_v11  ;;  %5287 = vmatprep.subr.mxu0 %v3683_v2  ;;  %v3890_v26 = vld [vmem:[#allocation14 + $0xd50] sm:$0xff]  ;;  %v3887_v13 = vld [vmem:[#allocation14 + $0xd38] sm:$0xff] }
 0x995   :  { %5219 = vmatpush2.msra.mxu1 %v3550_v47  ;;  %5288 = vmatpush2.msra.mxu0 %v3682_v45  ;;  %v3754_v11 = vld [vmem:[#allocation14 + $0x910] sm:$0xff]  ;;  %v3751_v47 = vld [vmem:[#allocation14 + $0x8f8] sm:$0xff] }
 0x996   :  { %5220 = vmatprep.subr.mxu1 %v3547_v30  ;;  %5289 = vmatprep.subr.mxu0 %v3679_v40  ;;  %v3886_v2 = vld [vmem:[#allocation14 + $0xd30] sm:$0xff]  ;;  %v3883_v45 = vld [vmem:[#allocation14 + $0xd18] sm:$0xff] }
 0x997   :  { %5221 = vmatpush2.msra.mxu1 %v3546_v59  ;;  %5290 = vmatpush2.msra.mxu0 %v3678_v54  ;;  %v3750_v30 = vld [vmem:[#allocation14 + $0x8f0] sm:$0xff]  ;;  %v3747_v59 = vld [vmem:[#allocation14 + $0x8d8] sm:$0xff] }
 0x998   :  { %5222 = vmatprep.subr.mxu1 %v3543_v53  ;;  %5291 = vmatprep.subr.mxu0 %v3675_v36  ;;  %v3882_v40 = vld [vmem:[#allocation14 + $0xd10] sm:$0xff]  ;;  %v3879_v54 = vld [vmem:[#allocation14 + $0xcf8] sm:$0xff] }
 0x999   :  { %5223 = vmatpush2.msra.mxu1 %v3542_v56  ;;  %5292 = vmatpush2.msra.mxu0 %v3674_v27  ;;  %v3746_v53 = vld [vmem:[#allocation14 + $0x8d0] sm:$0xff]  ;;  %v3743_v56 = vld [vmem:[#allocation14 + $0x8b8] sm:$0xff] }
 0x99a   :  { %5224 = vmatprep.subr.mxu1 %v3539_v55  ;;  %5293 = vmatprep.subr.mxu0 %v3671_v37  ;;  %v3878_v36 = vld [vmem:[#allocation14 + $0xcf0] sm:$0xff]  ;;  %v3875_v27 = vld [vmem:[#allocation14 + $0xcd8] sm:$0xff] }
 0x99b   :  { %5225 = vmatpush2.msra.mxu1 %v3538_v22  ;;  %5294 = vmatpush2.msra.mxu0 %v3670_v58  ;;  %v3742_v55 = vld [vmem:[#allocation14 + $0x8b0] sm:$0xff]  ;;  %v3739_v22 = vld [vmem:[#allocation14 + $0x898] sm:$0xff] }
 0x99c   :  { %5226 = vmatprep.subr.mxu1 %v3535_v6  ;;  %5295 = vmatprep.subr.mxu0 %v3667_v23  ;;  %v3874_v37 = vld [vmem:[#allocation14 + $0xcd0] sm:$0xff]  ;;  %v3871_v58 = vld [vmem:[#allocation14 + $0xcb8] sm:$0xff] }
 0x99d   :  { %5227 = vmatpush2.msra.mxu1 %v3534_v50  ;;  %5296 = vmatpush2.msra.mxu0 %v3666_v0  ;;  %v3738_v6 = vld [vmem:[#allocation14 + $0x890] sm:$0xff]  ;;  %v3735_v50 = vld [vmem:[#allocation14 + $0x878] sm:$0xff] }
 0x99e   :  { %5228 = vmatprep.subr.mxu1 %v3531_v19  ;;  %5297 = vmatprep.subr.mxu0 %v3663_v14  ;;  %v3870_v23 = vld [vmem:[#allocation14 + $0xcb0] sm:$0xff]  ;;  %v3867_v0 = vld [vmem:[#allocation14 + $0xc98] sm:$0xff] }
 0x99f   :  { %5229 = vmatpush2.msra.mxu1 %v3530_v29  ;;  %5298 = vmatpush2.msra.mxu0 %v3662_v41  ;;  %v3734_v19 = vld [vmem:[#allocation14 + $0x870] sm:$0xff]  ;;  %v3731_v29 = vld [vmem:[#allocation14 + $0x858] sm:$0xff] }
 0x9a0   :  { %5231 = vmatmul.mubr.f32.vlgmr.msra.gmra.mxu1 %v9551_v39  ;;  %5299 = vmatprep.subr.mxu0 %v3659_v3  ;;  %v3771_v39 = vld [vmem:[#allocation14 + $0x998] sm:$0xff]  ;;  %v3866_v14 = vld [vmem:[#allocation14 + $0xc90] sm:$0xff] }
 0x9a1   :  { %5308 = vmatprep.subr.mxu1 %v3783_v18  ;;  %5300 = vmatpush2.msra.mxu0 %v3658_v49  ;;  %v3863_v41 = vld [vmem:[#allocation14 + $0xc78] sm:$0xff]  ;;  %v3730_v3 = vld [vmem:[#allocation14 + $0x850] sm:$0xff] }
 0x9a2   :  { %5309 = vmatpush1.msra.mxu1 %v3782_v25  ;;  %5372 = vmatprep.mubr.f32.mxu1 %v9575_v61  ;;  %v3767_v61 = vld [vmem:[#allocation14 + $0x978] sm:$0xff]  ;;  %v3862_v18 = vld [vmem:[#allocation14 + $0xc70] sm:$0xff] }
 0x9a3   :  { %5302 = vmatmul.mubr.f32.vlgmr.msra.gmra.mxu0 %v9562_v34  ;;  %5310 = vmatprep.subr.mxu1 %v3779_v24  ;;  %v3899_v34 = vld [vmem:[#allocation14 + $0xd98] sm:$0xff]  ;;  %v3726_v24 = vld [vmem:[#allocation14 + $0x830] sm:$0xff] }
 0x9a4   :  { %5379 = vmatprep.subr.mxu0 %v3911_v63  ;;  %5311 = vmatpush1.msra.mxu1 %v3778_v31  ;;  %v3727_v49 = vld [vmem:[#allocation14 + $0x838] sm:$0xff]  ;;  %v3858_v63 = vld [vmem:[#allocation14 + $0xc50] sm:$0xff] }
 0x9a5   :  { %5380 = vmatpush1.msra.mxu0 %v3910_v8  ;;  %5443 = vmatprep.mubr.f32.mxu0 %v9582_v21  ;;  %v3762_v21 = vld [vmem:[#allocation14 + $0x950] sm:$0xff]  ;;  %v3859_v25 = vld [vmem:[#allocation14 + $0xc58] sm:$0xff] }
 0x9a6   :  { %5312 = vmatprep.subr.mxu1 %v3775_v17  ;;  %5381 = vmatprep.subr.mxu0 %v3907_v46  ;;  %v3723_v31 = vld [vmem:[#allocation14 + $0x818] sm:$0xff]  ;;  %v3722_v17 = vld [vmem:[#allocation14 + $0x810] sm:$0xff] }
 0x9a7   :  { %5313 = vmatpush1.msra.mxu1 %v3774_v35  ;;  %5382 = vmatpush1.msra.mxu0 %v3906_v5  ;;  %v3855_v8 = vld [vmem:[#allocation14 + $0xc38] sm:$0xff]  ;;  %v3854_v46 = vld [vmem:[#allocation14 + $0xc30] sm:$0xff] }
 0x9a8   :  { %5314 = vmatprep.subr.mxu1 %v3771_v39  ;;  %5383 = vmatprep.subr.mxu0 %v3903_v38  ;;  %v3847_v35 = vld [vmem:[#allocation14 + $0xbf8] sm:$0xff]  ;;  %v3846_v39 = vld [vmem:[#allocation14 + $0xbf0] sm:$0xff] }
 0x9a9   :  { %5315 = vmatpush1.msra.mxu1 %v3770_v57  ;;  %5384 = vmatpush1.msra.mxu0 %v3902_v60  ;;  %v3851_v5 = vld [vmem:[#allocation14 + $0xc18] sm:$0xff]  ;;  %v3850_v38 = vld [vmem:[#allocation14 + $0xc10] sm:$0xff] }
 0x9aa   :  { %5316 = vmatprep.subr.mxu1 %v3767_v61  ;;  %5385 = vmatprep.subr.mxu0 %v3899_v34  ;;  %v3843_v57 = vld [vmem:[#allocation14 + $0xbd8] sm:$0xff]  ;;  %v3842_v61 = vld [vmem:[#allocation14 + $0xbd0] sm:$0xff] }
 0x9ab   :  { %5317 = vmatpush1.msra.mxu1 %v3766_v20  ;;  %5386 = vmatpush1.msra.mxu0 %v3898_v28  ;;  %v3975_v60 = vld [vmem:[#allocation14 + $0xff8] sm:$0xff]  ;;  %v3974_v34 = vld [vmem:[#allocation14 + $0xff0] sm:$0xff] }
 0x9ac   :  { %5318 = vmatprep.subr.mxu1 %v3763_v62  ;;  %5387 = vmatprep.subr.mxu0 %v3895_v9  ;;  %v3839_v20 = vld [vmem:[#allocation14 + $0xbb8] sm:$0xff]  ;;  %v3838_v62 = vld [vmem:[#allocation14 + $0xbb0] sm:$0xff] }
 0x9ad   :  { %5319 = vmatpush1.msra.mxu1 %v3762_v21  ;;  %5388 = vmatpush1.msra.mxu0 %v3894_v44  ;;  %v3971_v28 = vld [vmem:[#allocation14 + $0xfd8] sm:$0xff]  ;;  %v3970_v9 = vld [vmem:[#allocation14 + $0xfd0] sm:$0xff] }
 0x9ae   :  { %5320 = vmatprep.subr.mxu1 %v3759_v1  ;;  %5389 = vmatprep.subr.mxu0 %v3891_v51  ;;  %v3835_v21 = vld [vmem:[#allocation14 + $0xb98] sm:$0xff]  ;;  %v3834_v1 = vld [vmem:[#allocation14 + $0xb90] sm:$0xff] }
 0x9af   :  { %5321 = vmatpush1.msra.mxu1 %v3758_v52  ;;  %5390 = vmatpush1.msra.mxu0 %v3890_v26  ;;  %v3967_v44 = vld [vmem:[#allocation14 + $0xfb8] sm:$0xff]  ;;  %v3966_v51 = vld [vmem:[#allocation14 + $0xfb0] sm:$0xff] }
 0x9b0   :  { %5322 = vmatprep.subr.mxu1 %v3755_v43  ;;  %5391 = vmatprep.subr.mxu0 %v3887_v13  ;;  %v3831_v52 = vld [vmem:[#allocation14 + $0xb78] sm:$0xff]  ;;  %v3830_v43 = vld [vmem:[#allocation14 + $0xb70] sm:$0xff] }
 0x9b1   :  { %5323 = vmatpush1.msra.mxu1 %v3754_v11  ;;  %5392 = vmatpush1.msra.mxu0 %v3886_v2  ;;  %v3963_v26 = vld [vmem:[#allocation14 + $0xf98] sm:$0xff]  ;;  %v3962_v13 = vld [vmem:[#allocation14 + $0xf90] sm:$0xff] }
 0x9b2   :  { %5324 = vmatprep.subr.mxu1 %v3751_v47  ;;  %5393 = vmatprep.subr.mxu0 %v3883_v45  ;;  %v3827_v11 = vld [vmem:[#allocation14 + $0xb58] sm:$0xff]  ;;  %v3826_v47 = vld [vmem:[#allocation14 + $0xb50] sm:$0xff] }
 0x9b3   :  { %5325 = vmatpush1.msra.mxu1 %v3750_v30  ;;  %5394 = vmatpush1.msra.mxu0 %v3882_v40  ;;  %v3959_v2 = vld [vmem:[#allocation14 + $0xf78] sm:$0xff]  ;;  %v3958_v45 = vld [vmem:[#allocation14 + $0xf70] sm:$0xff] }
 0x9b4   :  { %5326 = vmatprep.subr.mxu1 %v3747_v59  ;;  %5395 = vmatprep.subr.mxu0 %v3879_v54  ;;  %v3823_v30 = vld [vmem:[#allocation14 + $0xb38] sm:$0xff]  ;;  %v3822_v59 = vld [vmem:[#allocation14 + $0xb30] sm:$0xff] }
 0x9b5   :  { %5327 = vmatpush1.msra.mxu1 %v3746_v53  ;;  %5396 = vmatpush1.msra.mxu0 %v3878_v36  ;;  %v3955_v40 = vld [vmem:[#allocation14 + $0xf58] sm:$0xff]  ;;  %v3954_v54 = vld [vmem:[#allocation14 + $0xf50] sm:$0xff] }
 0x9b6   :  { %5328 = vmatprep.subr.mxu1 %v3743_v56  ;;  %5397 = vmatprep.subr.mxu0 %v3875_v27  ;;  %v3819_v53 = vld [vmem:[#allocation14 + $0xb18] sm:$0xff]  ;;  %v3818_v56 = vld [vmem:[#allocation14 + $0xb10] sm:$0xff] }
 0x9b7   :  { %5329 = vmatpush1.msra.mxu1 %v3742_v55  ;;  %5398 = vmatpush1.msra.mxu0 %v3874_v37  ;;  %v3951_v36 = vld [vmem:[#allocation14 + $0xf38] sm:$0xff]  ;;  %v3950_v27 = vld [vmem:[#allocation14 + $0xf30] sm:$0xff] }
 0x9b8   :  { %5330 = vmatprep.subr.mxu1 %v3739_v22  ;;  %5399 = vmatprep.subr.mxu0 %v3871_v58  ;;  %v3815_v55 = vld [vmem:[#allocation14 + $0xaf8] sm:$0xff]  ;;  %v3814_v22 = vld [vmem:[#allocation14 + $0xaf0] sm:$0xff] }
 0x9b9   :  { %5331 = vmatpush1.msra.mxu1 %v3738_v6  ;;  %5400 = vmatpush1.msra.mxu0 %v3870_v23  ;;  %v3947_v37 = vld [vmem:[#allocation14 + $0xf18] sm:$0xff]  ;;  %v3946_v58 = vld [vmem:[#allocation14 + $0xf10] sm:$0xff] }
 0x9ba   :  { %5332 = vmatprep.subr.mxu1 %v3735_v50  ;;  %5401 = vmatprep.subr.mxu0 %v3867_v0  ;;  %v3811_v6 = vld [vmem:[#allocation14 + $0xad8] sm:$0xff]  ;;  %v3810_v50 = vld [vmem:[#allocation14 + $0xad0] sm:$0xff] }
 0x9bb   :  { %5333 = vmatpush1.msra.mxu1 %v3734_v19  ;;  %5402 = vmatpush1.msra.mxu0 %v3866_v14  ;;  %v3943_v23 = vld [vmem:[#allocation14 + $0xef8] sm:$0xff]  ;;  %v3942_v0 = vld [vmem:[#allocation14 + $0xef0] sm:$0xff] }
 0x9bc   :  { %5334 = vmatprep.subr.mxu1 %v3731_v29  ;;  %5403 = vmatprep.subr.mxu0 %v3863_v41  ;;  %v3807_v19 = vld [vmem:[#allocation14 + $0xab8] sm:$0xff]  ;;  %v3806_v29 = vld [vmem:[#allocation14 + $0xab0] sm:$0xff] }
 0x9bd   :  { %5335 = vmatpush1.msra.mxu1 %v3730_v3  ;;  %5404 = vmatpush1.msra.mxu0 %v3862_v18  ;;  %v3939_v14 = vld [vmem:[#allocation14 + $0xed8] sm:$0xff]  ;;  %v3938_v41 = vld [vmem:[#allocation14 + $0xed0] sm:$0xff] }
 0x9be   :  { %5336 = vmatprep.subr.mxu1 %v3727_v49  ;;  %5405 = vmatprep.subr.mxu0 %v3859_v25  ;;  %v3803_v3 = vld [vmem:[#allocation14 + $0xa98] sm:$0xff]  ;;  %v3802_v49 = vld [vmem:[#allocation14 + $0xa90] sm:$0xff] }
 0x9bf   :  { %5337 = vmatpush1.msra.mxu1 %v3726_v24  ;;  %5406 = vmatpush1.msra.mxu0 %v3858_v63  ;;  %v3935_v18 = vld [vmem:[#allocation14 + $0xeb8] sm:$0xff]  ;;  %v3934_v25 = vld [vmem:[#allocation14 + $0xeb0] sm:$0xff] }
 0x9c0   :  { %5338 = vmatprep.subr.mxu1 %v3723_v31  ;;  %5407 = vmatprep.subr.mxu0 %v3855_v8  ;;  %v3799_v24 = vld [vmem:[#allocation14 + $0xa78] sm:$0xff]  ;;  %v3798_v31 = vld [vmem:[#allocation14 + $0xa70] sm:$0xff] }
 0x9c1   :  { %5339 = vmatpush1.msra.mxu1 %v3722_v17  ;;  %5408 = vmatpush1.msra.mxu0 %v3854_v46  ;;  %v3931_v63 = vld [vmem:[#allocation14 + $0xe98] sm:$0xff]  ;;  %v3930_v8 = vld [vmem:[#allocation14 + $0xe90] sm:$0xff] }
 0x9c2   :  { %5340 = vmatprep.subr.mxu1 %v3847_v35  ;;  %5409 = vmatprep.subr.mxu0 %v3851_v5  ;;  %v3795_v17 = vld [vmem:[#allocation14 + $0xa58] sm:$0xff]  ;;  %v3794_v35 = vld [vmem:[#allocation14 + $0xa50] sm:$0xff] }
 0x9c3   :  { %5341 = vmatpush2.msra.mxu1 %v3846_v39  ;;  %5410 = vmatpush1.msra.mxu0 %v3850_v38  ;;  %v3927_v46 = vld [vmem:[#allocation14 + $0xe78] sm:$0xff]  ;;  %v3926_v5 = vld [vmem:[#allocation14 + $0xe70] sm:$0xff] }
 0x9c4   :  { %5342 = vmatprep.subr.mxu1 %v3843_v57  ;;  %5411 = vmatprep.subr.mxu0 %v3975_v60  ;;  %v3791_v39 = vld [vmem:[#allocation14 + $0xa38] sm:$0xff]  ;;  %v3790_v57 = vld [vmem:[#allocation14 + $0xa30] sm:$0xff] }
 0x9c5   :  { %5343 = vmatpush2.msra.mxu1 %v3842_v61  ;;  %5412 = vmatpush2.msra.mxu0 %v3974_v34  ;;  %v3923_v38 = vld [vmem:[#allocation14 + $0xe58] sm:$0xff]  ;;  %v3922_v60 = vld [vmem:[#allocation14 + $0xe50] sm:$0xff] }
 0x9c6   :  { %5344 = vmatprep.subr.mxu1 %v3839_v20  ;;  %5413 = vmatprep.subr.mxu0 %v3971_v28  ;;  %v3787_v61 = vld [vmem:[#allocation14 + $0xa18] sm:$0xff]  ;;  %v3786_v20 = vld [vmem:[#allocation14 + $0xa10] sm:$0xff] }
 0x9c7   :  { %5345 = vmatpush2.msra.mxu1 %v3838_v62  ;;  %5414 = vmatpush2.msra.mxu0 %v3970_v9  ;;  %v3919_v34 = vld [vmem:[#allocation14 + $0xe38] sm:$0xff]  ;;  %v3918_v28 = vld [vmem:[#allocation14 + $0xe30] sm:$0xff] }
 0x9c8   :  { %5346 = vmatprep.subr.mxu1 %v3835_v21  ;;  %5415 = vmatprep.subr.mxu0 %v3967_v44  ;;  %v3915_v62 = vld [vmem:[#allocation14 + $0xe18] sm:$0xff]  ;;  %v3914_v21 = vld [vmem:[#allocation14 + $0xe10] sm:$0xff] }
 0x9c9   :  { %5347 = vmatpush2.msra.mxu1 %v3834_v1  ;;  %5416 = vmatpush2.msra.mxu0 %v3966_v51  ;;  %v4039_v9 = vld [vmem:[#allocation14 + $0x11f8] sm:$0xff]  ;;  %v4038_v44 = vld [vmem:[#allocation14 + $0x11f0] sm:$0xff] }
 0x9ca   :  { %5348 = vmatprep.subr.mxu1 %v3831_v52  ;;  %5417 = vmatprep.subr.mxu0 %v3963_v26  ;;  %v4035_v1 = vld [vmem:[#allocation14 + $0x11d8] sm:$0xff]  ;;  %v4034_v52 = vld [vmem:[#allocation14 + $0x11d0] sm:$0xff] }
 0x9cb   :  { %5349 = vmatpush2.msra.mxu1 %v3830_v43  ;;  %5418 = vmatpush2.msra.mxu0 %v3962_v13  ;;  %v4167_v51 = vld [vmem:[#allocation14 + $0x15f8] sm:$0xff]  ;;  %v4166_v26 = vld [vmem:[#allocation14 + $0x15f0] sm:$0xff] }
 0x9cc   :  { %5350 = vmatprep.subr.mxu1 %v3827_v11  ;;  %5419 = vmatprep.subr.mxu0 %v3959_v2  ;;  %v4031_v43 = vld [vmem:[#allocation14 + $0x11b8] sm:$0xff]  ;;  %v4030_v11 = vld [vmem:[#allocation14 + $0x11b0] sm:$0xff] }
 0x9cd   :  { %5351 = vmatpush2.msra.mxu1 %v3826_v47  ;;  %5420 = vmatpush2.msra.mxu0 %v3958_v45  ;;  %v4163_v13 = vld [vmem:[#allocation14 + $0x15d8] sm:$0xff]  ;;  %v4162_v2 = vld [vmem:[#allocation14 + $0x15d0] sm:$0xff] }
 0x9ce   :  { %5352 = vmatprep.subr.mxu1 %v3823_v30  ;;  %5421 = vmatprep.subr.mxu0 %v3955_v40  ;;  %v4159_v47 = vld [vmem:[#allocation14 + $0x15b8] sm:$0xff]  ;;  %v4026_v45 = vld [vmem:[#allocation14 + $0x1190] sm:$0xff] }
 0x9cf   :  { %5353 = vmatpush2.msra.mxu1 %v3822_v59  ;;  %5422 = vmatpush2.msra.mxu0 %v3954_v54  ;;  %v4158_v30 = vld [vmem:[#allocation14 + $0x15b0] sm:$0xff]  ;;  %v4019_v54 = vld [vmem:[#allocation14 + $0x1158] sm:$0xff] }
 0x9d0   :  { %5354 = vmatprep.subr.mxu1 %v3819_v53  ;;  %5423 = vmatprep.subr.mxu0 %v3951_v36  ;;  %v4022_v40 = vld [vmem:[#allocation14 + $0x1170] sm:$0xff]  ;;  %v4151_v53 = vld [vmem:[#allocation14 + $0x1578] sm:$0xff] }
 0x9d1   :  { %5355 = vmatpush2.msra.mxu1 %v3818_v56  ;;  %5424 = vmatpush2.msra.mxu0 %v3950_v27  ;;  %v4154_v59 = vld [vmem:[#allocation14 + $0x1590] sm:$0xff]  ;;  %v4015_v56 = vld [vmem:[#allocation14 + $0x1138] sm:$0xff] }
 0x9d2   :  { %5356 = vmatprep.subr.mxu1 %v3815_v55  ;;  %5425 = vmatprep.subr.mxu0 %v3947_v37  ;;  %v4150_v36 = vld [vmem:[#allocation14 + $0x1570] sm:$0xff]  ;;  %v4147_v27 = vld [vmem:[#allocation14 + $0x1558] sm:$0xff] }
 0x9d3   :  { %5357 = vmatpush2.msra.mxu1 %v3814_v22  ;;  %5426 = vmatpush2.msra.mxu0 %v3946_v58  ;;  %v4014_v55 = vld [vmem:[#allocation14 + $0x1130] sm:$0xff]  ;;  %v4011_v22 = vld [vmem:[#allocation14 + $0x1118] sm:$0xff] }
 0x9d4   :  { %5358 = vmatprep.subr.mxu1 %v3811_v6  ;;  %5427 = vmatprep.subr.mxu0 %v3943_v23  ;;  %v4146_v37 = vld [vmem:[#allocation14 + $0x1550] sm:$0xff]  ;;  %v4143_v58 = vld [vmem:[#allocation14 + $0x1538] sm:$0xff] }
 0x9d5   :  { %5359 = vmatpush2.msra.mxu1 %v3810_v50  ;;  %5428 = vmatpush2.msra.mxu0 %v3942_v0  ;;  %v4010_v6 = vld [vmem:[#allocation14 + $0x1110] sm:$0xff]  ;;  %v4007_v50 = vld [vmem:[#allocation14 + $0x10f8] sm:$0xff] }
 0x9d6   :  { %5360 = vmatprep.subr.mxu1 %v3807_v19  ;;  %5429 = vmatprep.subr.mxu0 %v3939_v14  ;;  %v4142_v23 = vld [vmem:[#allocation14 + $0x1530] sm:$0xff]  ;;  %v4139_v0 = vld [vmem:[#allocation14 + $0x1518] sm:$0xff] }
 0x9d7   :  { %5361 = vmatpush2.msra.mxu1 %v3806_v29  ;;  %5430 = vmatpush2.msra.mxu0 %v3938_v41  ;;  %v4006_v19 = vld [vmem:[#allocation14 + $0x10f0] sm:$0xff]  ;;  %v4003_v29 = vld [vmem:[#allocation14 + $0x10d8] sm:$0xff] }
 0x9d8   :  { %5362 = vmatprep.subr.mxu1 %v3803_v3  ;;  %5431 = vmatprep.subr.mxu0 %v3935_v18  ;;  %v4138_v14 = vld [vmem:[#allocation14 + $0x1510] sm:$0xff]  ;;  %v4135_v41 = vld [vmem:[#allocation14 + $0x14f8] sm:$0xff] }
 0x9d9   :  { %5363 = vmatpush2.msra.mxu1 %v3802_v49  ;;  %5432 = vmatpush2.msra.mxu0 %v3934_v25  ;;  %v4002_v3 = vld [vmem:[#allocation14 + $0x10d0] sm:$0xff]  ;;  %v3999_v49 = vld [vmem:[#allocation14 + $0x10b8] sm:$0xff] }
 0x9da   :  { %5364 = vmatprep.subr.mxu1 %v3799_v24  ;;  %5433 = vmatprep.subr.mxu0 %v3931_v63  ;;  %v4134_v18 = vld [vmem:[#allocation14 + $0x14f0] sm:$0xff]  ;;  %v4131_v25 = vld [vmem:[#allocation14 + $0x14d8] sm:$0xff] }
 0x9db   :  { %5365 = vmatpush2.msra.mxu1 %v3798_v31  ;;  %5434 = vmatpush2.msra.mxu0 %v3930_v8  ;;  %v3998_v24 = vld [vmem:[#allocation14 + $0x10b0] sm:$0xff]  ;;  %v3995_v31 = vld [vmem:[#allocation14 + $0x1098] sm:$0xff] }
 0x9dc   :  { %5366 = vmatprep.subr.mxu1 %v3795_v17  ;;  %5435 = vmatprep.subr.mxu0 %v3927_v46  ;;  %v4130_v63 = vld [vmem:[#allocation14 + $0x14d0] sm:$0xff]  ;;  %v4127_v8 = vld [vmem:[#allocation14 + $0x14b8] sm:$0xff] }
 0x9dd   :  { %5367 = vmatpush2.msra.mxu1 %v3794_v35  ;;  %5436 = vmatpush2.msra.mxu0 %v3926_v5  ;;  %v3994_v17 = vld [vmem:[#allocation14 + $0x1090] sm:$0xff]  ;;  %v3991_v35 = vld [vmem:[#allocation14 + $0x1078] sm:$0xff] }
 0x9de   :  { %5368 = vmatprep.subr.mxu1 %v3791_v39  ;;  %5437 = vmatprep.subr.mxu0 %v3923_v38  ;;  %v4126_v46 = vld [vmem:[#allocation14 + $0x14b0] sm:$0xff]  ;;  %v4123_v5 = vld [vmem:[#allocation14 + $0x1498] sm:$0xff] }
 0x9df   :  { %5369 = vmatpush2.msra.mxu1 %v3790_v57  ;;  %5438 = vmatpush2.msra.mxu0 %v3922_v60  ;;  %v3990_v39 = vld [vmem:[#allocation14 + $0x1070] sm:$0xff]  ;;  %v3987_v57 = vld [vmem:[#allocation14 + $0x1058] sm:$0xff] }
 0x9e0   :  { %5370 = vmatprep.subr.mxu1 %v3787_v61  ;;  %5439 = vmatprep.subr.mxu0 %v3919_v34  ;;  %v4122_v38 = vld [vmem:[#allocation14 + $0x1490] sm:$0xff]  ;;  %v4119_v60 = vld [vmem:[#allocation14 + $0x1478] sm:$0xff] }
 0x9e1   :  { %5371 = vmatpush2.msra.mxu1 %v3786_v20  ;;  %5440 = vmatpush2.msra.mxu0 %v3918_v28  ;;  %v3986_v61 = vld [vmem:[#allocation14 + $0x1050] sm:$0xff]  ;;  %v3983_v20 = vld [vmem:[#allocation14 + $0x1038] sm:$0xff] }
 0x9e2   :  { %5373 = vmatmul.mubr.f32.vlgmr.msra.gmra.mxu1 %v9555_v33  ;;  %5441 = vmatprep.subr.mxu0 %v3915_v62  ;;  %v4027_v33 = vld [vmem:[#allocation14 + $0x1198] sm:$0xff]  ;;  %v4118_v34 = vld [vmem:[#allocation14 + $0x1470] sm:$0xff] }
 0x9e3   :  { %5450 = vmatprep.subr.mxu1 %v4039_v9  ;;  %5442 = vmatpush2.msra.mxu0 %v3914_v21  ;;  %v4115_v28 = vld [vmem:[#allocation14 + $0x1458] sm:$0xff]  ;;  %v3982_v62 = vld [vmem:[#allocation14 + $0x1030] sm:$0xff] }
 0x9e4   :  { %5451 = vmatpush1.msra.mxu1 %v4038_v44  ;;  %5514 = vmatprep.mubr.f32.mxu1 %v9595_v48  ;;  %v4023_v48 = vld [vmem:[#allocation14 + $0x1178] sm:$0xff]  ;;  %v4114_v9 = vld [vmem:[#allocation14 + $0x1450] sm:$0xff] }
 0x9e5   :  { %5444 = vmatmul.mubr.f32.vlgmr.msra.gmra.mxu0 %v9570_v7  ;;  %5452 = vmatprep.subr.mxu1 %v4035_v1  ;;  %v4155_v7 = vld [vmem:[#allocation14 + $0x1598] sm:$0xff]  ;;  %v3978_v1 = vld [vmem:[#allocation14 + $0x1010] sm:$0xff] }
 0x9e6   :  { %5521 = vmatprep.subr.mxu0 %v4167_v51  ;;  %5453 = vmatpush1.msra.mxu1 %v4034_v52  ;;  %v3979_v21 = vld [vmem:[#allocation14 + $0x1018] sm:$0xff]  ;;  %v4110_v51 = vld [vmem:[#allocation14 + $0x1430] sm:$0xff] }
 0x9e7   :  { %5522 = vmatpush1.msra.mxu0 %v4166_v26  ;;  %5585 = vmatprep.mubr.f32.mxu0 %v9601_v10  ;;  %v4018_v10 = vld [vmem:[#allocation14 + $0x1150] sm:$0xff]  ;;  %v4111_v44 = vld [vmem:[#allocation14 + $0x1438] sm:$0xff] }
 0x9e8   :  { %5454 = vmatprep.subr.mxu1 %v4031_v43  ;;  %5523 = vmatprep.subr.mxu0 %v4163_v13  ;;  %v4103_v52 = vld [vmem:[#allocation14 + $0x13f8] sm:$0xff]  ;;  %v4102_v43 = vld [vmem:[#allocation14 + $0x13f0] sm:$0xff] }
 0x9e9   :  { %5455 = vmatpush1.msra.mxu1 %v4030_v11  ;;  %5524 = vmatpush1.msra.mxu0 %v4162_v2  ;;  %v4107_v26 = vld [vmem:[#allocation14 + $0x1418] sm:$0xff]  ;;  %v4106_v13 = vld [vmem:[#allocation14 + $0x1410] sm:$0xff] }
 0x9ea   :  { %5456 = vmatprep.subr.mxu1 %v4027_v33  ;;  %5525 = vmatprep.subr.mxu0 %v4159_v47  ;;  %v4099_v11 = vld [vmem:[#allocation14 + $0x13d8] sm:$0xff]  ;;  %v4098_v33 = vld [vmem:[#allocation14 + $0x13d0] sm:$0xff] }
 0x9eb   :  { %5457 = vmatpush1.msra.mxu1 %v4026_v45  ;;  %5526 = vmatpush1.msra.mxu0 %v4158_v30  ;;  %v4231_v2 = vld [vmem:[#allocation14 + $0x17f8] sm:$0xff]  ;;  %v4230_v47 = vld [vmem:[#allocation14 + $0x17f0] sm:$0xff] }
 0x9ec   :  { %5458 = vmatprep.subr.mxu1 %v4023_v48  ;;  %5527 = vmatprep.subr.mxu0 %v4155_v7  ;;  %v4095_v45 = vld [vmem:[#allocation14 + $0x13b8] sm:$0xff]  ;;  %v4094_v48 = vld [vmem:[#allocation14 + $0x13b0] sm:$0xff] }
 0x9ed   :  { %5459 = vmatpush1.msra.mxu1 %v4022_v40  ;;  %5528 = vmatpush1.msra.mxu0 %v4154_v59  ;;  %v4227_v30 = vld [vmem:[#allocation14 + $0x17d8] sm:$0xff]  ;;  %v4226_v7 = vld [vmem:[#allocation14 + $0x17d0] sm:$0xff] }
 0x9ee   :  { %5460 = vmatprep.subr.mxu1 %v4019_v54  ;;  %5529 = vmatprep.subr.mxu0 %v4151_v53  ;;  %v4091_v40 = vld [vmem:[#allocation14 + $0x1398] sm:$0xff]  ;;  %v4090_v54 = vld [vmem:[#allocation14 + $0x1390] sm:$0xff] }
 0x9ef   :  { %5461 = vmatpush1.msra.mxu1 %v4018_v10  ;;  %5530 = vmatpush1.msra.mxu0 %v4150_v36  ;;  %v4223_v59 = vld [vmem:[#allocation14 + $0x17b8] sm:$0xff]  ;;  %v4222_v53 = vld [vmem:[#allocation14 + $0x17b0] sm:$0xff] }
 0x9f0   :  { %5462 = vmatprep.subr.mxu1 %v4015_v56  ;;  %5531 = vmatprep.subr.mxu0 %v4147_v27  ;;  %v4087_v10 = vld [vmem:[#allocation14 + $0x1378] sm:$0xff]  ;;  %v4086_v56 = vld [vmem:[#allocation14 + $0x1370] sm:$0xff] }
 0x9f1   :  { %5463 = vmatpush1.msra.mxu1 %v4014_v55  ;;  %5532 = vmatpush1.msra.mxu0 %v4146_v37  ;;  %v4219_v36 = vld [vmem:[#allocation14 + $0x1798] sm:$0xff]  ;;  %v4218_v27 = vld [vmem:[#allocation14 + $0x1790] sm:$0xff] }
 0x9f2   :  { %5464 = vmatprep.subr.mxu1 %v4011_v22  ;;  %5533 = vmatprep.subr.mxu0 %v4143_v58  ;;  %v4083_v55 = vld [vmem:[#allocation14 + $0x1358] sm:$0xff]  ;;  %v4082_v22 = vld [vmem:[#allocation14 + $0x1350] sm:$0xff] }
 0x9f3   :  { %5465 = vmatpush1.msra.mxu1 %v4010_v6  ;;  %5534 = vmatpush1.msra.mxu0 %v4142_v23  ;;  %v4215_v37 = vld [vmem:[#allocation14 + $0x1778] sm:$0xff]  ;;  %v4214_v58 = vld [vmem:[#allocation14 + $0x1770] sm:$0xff] }
 0x9f4   :  { %5466 = vmatprep.subr.mxu1 %v4007_v50  ;;  %5535 = vmatprep.subr.mxu0 %v4139_v0  ;;  %v4079_v6 = vld [vmem:[#allocation14 + $0x1338] sm:$0xff]  ;;  %v4078_v50 = vld [vmem:[#allocation14 + $0x1330] sm:$0xff] }
 0x9f5   :  { %5467 = vmatpush1.msra.mxu1 %v4006_v19  ;;  %5536 = vmatpush1.msra.mxu0 %v4138_v14  ;;  %v4211_v23 = vld [vmem:[#allocation14 + $0x1758] sm:$0xff]  ;;  %v4210_v0 = vld [vmem:[#allocation14 + $0x1750] sm:$0xff] }
 0x9f6   :  { %5468 = vmatprep.subr.mxu1 %v4003_v29  ;;  %5537 = vmatprep.subr.mxu0 %v4135_v41  ;;  %v4075_v19 = vld [vmem:[#allocation14 + $0x1318] sm:$0xff]  ;;  %v4074_v29 = vld [vmem:[#allocation14 + $0x1310] sm:$0xff] }
 0x9f7   :  { %5469 = vmatpush1.msra.mxu1 %v4002_v3  ;;  %5538 = vmatpush1.msra.mxu0 %v4134_v18  ;;  %v4207_v14 = vld [vmem:[#allocation14 + $0x1738] sm:$0xff]  ;;  %v4206_v41 = vld [vmem:[#allocation14 + $0x1730] sm:$0xff] }
 0x9f8   :  { %5470 = vmatprep.subr.mxu1 %v3999_v49  ;;  %5539 = vmatprep.subr.mxu0 %v4131_v25  ;;  %v4071_v3 = vld [vmem:[#allocation14 + $0x12f8] sm:$0xff]  ;;  %v4070_v49 = vld [vmem:[#allocation14 + $0x12f0] sm:$0xff] }
 0x9f9   :  { %5471 = vmatpush1.msra.mxu1 %v3998_v24  ;;  %5540 = vmatpush1.msra.mxu0 %v4130_v63  ;;  %v4203_v18 = vld [vmem:[#allocation14 + $0x1718] sm:$0xff]  ;;  %v4202_v25 = vld [vmem:[#allocation14 + $0x1710] sm:$0xff] }
 0x9fa   :  { %5472 = vmatprep.subr.mxu1 %v3995_v31  ;;  %5541 = vmatprep.subr.mxu0 %v4127_v8  ;;  %v4067_v24 = vld [vmem:[#allocation14 + $0x12d8] sm:$0xff]  ;;  %v4066_v31 = vld [vmem:[#allocation14 + $0x12d0] sm:$0xff] }
 0x9fb   :  { %5473 = vmatpush1.msra.mxu1 %v3994_v17  ;;  %5542 = vmatpush1.msra.mxu0 %v4126_v46  ;;  %v4199_v63 = vld [vmem:[#allocation14 + $0x16f8] sm:$0xff]  ;;  %v4198_v8 = vld [vmem:[#allocation14 + $0x16f0] sm:$0xff] }
 0x9fc   :  { %5474 = vmatprep.subr.mxu1 %v3991_v35  ;;  %5543 = vmatprep.subr.mxu0 %v4123_v5  ;;  %v4063_v17 = vld [vmem:[#allocation14 + $0x12b8] sm:$0xff]  ;;  %v4062_v35 = vld [vmem:[#allocation14 + $0x12b0] sm:$0xff] }
 0x9fd   :  { %5475 = vmatpush1.msra.mxu1 %v3990_v39  ;;  %5544 = vmatpush1.msra.mxu0 %v4122_v38  ;;  %v4195_v46 = vld [vmem:[#allocation14 + $0x16d8] sm:$0xff]  ;;  %v4194_v5 = vld [vmem:[#allocation14 + $0x16d0] sm:$0xff] }
 0x9fe   :  { %5476 = vmatprep.subr.mxu1 %v3987_v57  ;;  %5545 = vmatprep.subr.mxu0 %v4119_v60  ;;  %v4059_v39 = vld [vmem:[#allocation14 + $0x1298] sm:$0xff]  ;;  %v4058_v57 = vld [vmem:[#allocation14 + $0x1290] sm:$0xff] }
 0x9ff   :  { %5477 = vmatpush1.msra.mxu1 %v3986_v61  ;;  %5546 = vmatpush1.msra.mxu0 %v4118_v34  ;;  %v4191_v38 = vld [vmem:[#allocation14 + $0x16b8] sm:$0xff]  ;;  %v4190_v60 = vld [vmem:[#allocation14 + $0x16b0] sm:$0xff] }
 0xa00   :  { %5478 = vmatprep.subr.mxu1 %v3983_v20  ;;  %5547 = vmatprep.subr.mxu0 %v4115_v28  ;;  %v4055_v61 = vld [vmem:[#allocation14 + $0x1278] sm:$0xff]  ;;  %v4054_v20 = vld [vmem:[#allocation14 + $0x1270] sm:$0xff] }
 0xa01   :  { %5479 = vmatpush1.msra.mxu1 %v3982_v62  ;;  %5548 = vmatpush1.msra.mxu0 %v4114_v9  ;;  %v4187_v34 = vld [vmem:[#allocation14 + $0x1698] sm:$0xff]  ;;  %v4186_v28 = vld [vmem:[#allocation14 + $0x1690] sm:$0xff] }
 0xa02   :  { %5480 = vmatprep.subr.mxu1 %v3979_v21  ;;  %5549 = vmatprep.subr.mxu0 %v4111_v44  ;;  %v4051_v62 = vld [vmem:[#allocation14 + $0x1258] sm:$0xff]  ;;  %v4050_v21 = vld [vmem:[#allocation14 + $0x1250] sm:$0xff] }
 0xa03   :  { %5481 = vmatpush1.msra.mxu1 %v3978_v1  ;;  %5550 = vmatpush1.msra.mxu0 %v4110_v51  ;;  %v4183_v9 = vld [vmem:[#allocation14 + $0x1678] sm:$0xff]  ;;  %v4182_v44 = vld [vmem:[#allocation14 + $0x1670] sm:$0xff] }
 0xa04   :  { %5482 = vmatprep.subr.mxu1 %v4103_v52  ;;  %5551 = vmatprep.subr.mxu0 %v4107_v26  ;;  %v4047_v1 = vld [vmem:[#allocation14 + $0x1238] sm:$0xff]  ;;  %v4046_v52 = vld [vmem:[#allocation14 + $0x1230] sm:$0xff] }
 0xa05   :  { %5483 = vmatpush2.msra.mxu1 %v4102_v43  ;;  %5552 = vmatpush1.msra.mxu0 %v4106_v13  ;;  %v4179_v51 = vld [vmem:[#allocation14 + $0x1658] sm:$0xff]  ;;  %v4178_v26 = vld [vmem:[#allocation14 + $0x1650] sm:$0xff] }
 0xa06   :  { %5484 = vmatprep.subr.mxu1 %v4099_v11  ;;  %5553 = vmatprep.subr.mxu0 %v4231_v2  ;;  %v4043_v43 = vld [vmem:[#allocation14 + $0x1218] sm:$0xff]  ;;  %v4042_v11 = vld [vmem:[#allocation14 + $0x1210] sm:$0xff] }
 0xa07   :  { %5485 = vmatpush2.msra.mxu1 %v4098_v33  ;;  %5554 = vmatpush2.msra.mxu0 %v4230_v47  ;;  %v4175_v13 = vld [vmem:[#allocation14 + $0x1638] sm:$0xff]  ;;  %v4174_v2 = vld [vmem:[#allocation14 + $0x1630] sm:$0xff] }
 0xa08   :  { %5486 = vmatprep.subr.mxu1 %v4095_v45  ;;  %5555 = vmatprep.subr.mxu0 %v4227_v30  ;;  %v4171_v33 = vld [vmem:[#allocation14 + $0x1618] sm:$0xff]  ;;  %v4170_v45 = vld [vmem:[#allocation14 + $0x1610] sm:$0xff] }
 0xa09   :  { %5487 = vmatpush2.msra.mxu1 %v4094_v48  ;;  %5556 = vmatpush2.msra.mxu0 %v4226_v7  ;;  %v4295_v47 = vld [vmem:[#allocation14 + $0x19f8] sm:$0xff]  ;;  %v4294_v30 = vld [vmem:[#allocation14 + $0x19f0] sm:$0xff] }
 0xa0a   :  { %5488 = vmatprep.subr.mxu1 %v4091_v40  ;;  %5557 = vmatprep.subr.mxu0 %v4223_v59  ;;  %v4291_v48 = vld [vmem:[#allocation14 + $0x19d8] sm:$0xff]  ;;  %v4290_v40 = vld [vmem:[#allocation14 + $0x19d0] sm:$0xff] }
 0xa0b   :  { %5489 = vmatpush2.msra.mxu1 %v4090_v54  ;;  %5558 = vmatpush2.msra.mxu0 %v4222_v53  ;;  %v4423_v7 = vld [vmem:[#allocation14 + $0x1df8] sm:$0xff]  ;;  %v4422_v59 = vld [vmem:[#allocation14 + $0x1df0] sm:$0xff] }
 0xa0c   :  { %5490 = vmatprep.subr.mxu1 %v4087_v10  ;;  %5559 = vmatprep.subr.mxu0 %v4219_v36  ;;  %v4287_v54 = vld [vmem:[#allocation14 + $0x19b8] sm:$0xff]  ;;  %v4286_v10 = vld [vmem:[#allocation14 + $0x19b0] sm:$0xff] }
 0xa0d   :  { %5491 = vmatpush2.msra.mxu1 %v4086_v56  ;;  %5560 = vmatpush2.msra.mxu0 %v4218_v27  ;;  %v4419_v53 = vld [vmem:[#allocation14 + $0x1dd8] sm:$0xff]  ;;  %v4418_v36 = vld [vmem:[#allocation14 + $0x1dd0] sm:$0xff] }
 0xa0e   :  { %5492 = vmatprep.subr.mxu1 %v4083_v55  ;;  %5561 = vmatprep.subr.mxu0 %v4215_v37  ;;  %v4415_v56 = vld [vmem:[#allocation14 + $0x1db8] sm:$0xff]  ;;  %v4282_v27 = vld [vmem:[#allocation14 + $0x1990] sm:$0xff] }
 0xa0f   :  { %5493 = vmatpush2.msra.mxu1 %v4082_v22  ;;  %5562 = vmatpush2.msra.mxu0 %v4214_v58  ;;  %v4414_v55 = vld [vmem:[#allocation14 + $0x1db0] sm:$0xff]  ;;  %v4275_v58 = vld [vmem:[#allocation14 + $0x1958] sm:$0xff] }
 0xa10   :  { %5494 = vmatprep.subr.mxu1 %v4079_v6  ;;  %5563 = vmatprep.subr.mxu0 %v4211_v23  ;;  %v4278_v37 = vld [vmem:[#allocation14 + $0x1970] sm:$0xff]  ;;  %v4407_v6 = vld [vmem:[#allocation14 + $0x1d78] sm:$0xff] }
 0xa11   :  { %5495 = vmatpush2.msra.mxu1 %v4078_v50  ;;  %5564 = vmatpush2.msra.mxu0 %v4210_v0  ;;  %v4410_v22 = vld [vmem:[#allocation14 + $0x1d90] sm:$0xff]  ;;  %v4271_v50 = vld [vmem:[#allocation14 + $0x1938] sm:$0xff] }
 0xa12   :  { %5496 = vmatprep.subr.mxu1 %v4075_v19  ;;  %5565 = vmatprep.subr.mxu0 %v4207_v14  ;;  %v4406_v23 = vld [vmem:[#allocation14 + $0x1d70] sm:$0xff]  ;;  %v4403_v0 = vld [vmem:[#allocation14 + $0x1d58] sm:$0xff] }
 0xa13   :  { %5497 = vmatpush2.msra.mxu1 %v4074_v29  ;;  %5566 = vmatpush2.msra.mxu0 %v4206_v41  ;;  %v4270_v19 = vld [vmem:[#allocation14 + $0x1930] sm:$0xff]  ;;  %v4267_v29 = vld [vmem:[#allocation14 + $0x1918] sm:$0xff] }
 0xa14   :  { %5498 = vmatprep.subr.mxu1 %v4071_v3  ;;  %5567 = vmatprep.subr.mxu0 %v4203_v18  ;;  %v4402_v14 = vld [vmem:[#allocation14 + $0x1d50] sm:$0xff]  ;;  %v4399_v41 = vld [vmem:[#allocation14 + $0x1d38] sm:$0xff] }
 0xa15   :  { %5499 = vmatpush2.msra.mxu1 %v4070_v49  ;;  %5568 = vmatpush2.msra.mxu0 %v4202_v25  ;;  %v4266_v3 = vld [vmem:[#allocation14 + $0x1910] sm:$0xff]  ;;  %v4263_v49 = vld [vmem:[#allocation14 + $0x18f8] sm:$0xff] }
 0xa16   :  { %5500 = vmatprep.subr.mxu1 %v4067_v24  ;;  %5569 = vmatprep.subr.mxu0 %v4199_v63  ;;  %v4398_v18 = vld [vmem:[#allocation14 + $0x1d30] sm:$0xff]  ;;  %v4395_v25 = vld [vmem:[#allocation14 + $0x1d18] sm:$0xff] }
 0xa17   :  { %5501 = vmatpush2.msra.mxu1 %v4066_v31  ;;  %5570 = vmatpush2.msra.mxu0 %v4198_v8  ;;  %v4262_v24 = vld [vmem:[#allocation14 + $0x18f0] sm:$0xff]  ;;  %v4259_v31 = vld [vmem:[#allocation14 + $0x18d8] sm:$0xff] }
 0xa18   :  { %5502 = vmatprep.subr.mxu1 %v4063_v17  ;;  %5571 = vmatprep.subr.mxu0 %v4195_v46  ;;  %v4394_v63 = vld [vmem:[#allocation14 + $0x1d10] sm:$0xff]  ;;  %v4391_v8 = vld [vmem:[#allocation14 + $0x1cf8] sm:$0xff] }
 0xa19   :  { %5503 = vmatpush2.msra.mxu1 %v4062_v35  ;;  %5572 = vmatpush2.msra.mxu0 %v4194_v5  ;;  %v4258_v17 = vld [vmem:[#allocation14 + $0x18d0] sm:$0xff]  ;;  %v4255_v35 = vld [vmem:[#allocation14 + $0x18b8] sm:$0xff] }
 0xa1a   :  { %5504 = vmatprep.subr.mxu1 %v4059_v39  ;;  %5573 = vmatprep.subr.mxu0 %v4191_v38  ;;  %v4390_v46 = vld [vmem:[#allocation14 + $0x1cf0] sm:$0xff]  ;;  %v4387_v5 = vld [vmem:[#allocation14 + $0x1cd8] sm:$0xff] }
 0xa1b   :  { %5505 = vmatpush2.msra.mxu1 %v4058_v57  ;;  %5574 = vmatpush2.msra.mxu0 %v4190_v60  ;;  %v4254_v39 = vld [vmem:[#allocation14 + $0x18b0] sm:$0xff]  ;;  %v4251_v57 = vld [vmem:[#allocation14 + $0x1898] sm:$0xff] }
 0xa1c   :  { %5506 = vmatprep.subr.mxu1 %v4055_v61  ;;  %5575 = vmatprep.subr.mxu0 %v4187_v34  ;;  %v4386_v38 = vld [vmem:[#allocation14 + $0x1cd0] sm:$0xff]  ;;  %v4383_v60 = vld [vmem:[#allocation14 + $0x1cb8] sm:$0xff] }
 0xa1d   :  { %5507 = vmatpush2.msra.mxu1 %v4054_v20  ;;  %5576 = vmatpush2.msra.mxu0 %v4186_v28  ;;  %v4250_v61 = vld [vmem:[#allocation14 + $0x1890] sm:$0xff]  ;;  %v4247_v20 = vld [vmem:[#allocation14 + $0x1878] sm:$0xff] }
 0xa1e   :  { %5508 = vmatprep.subr.mxu1 %v4051_v62  ;;  %5577 = vmatprep.subr.mxu0 %v4183_v9  ;;  %v4382_v34 = vld [vmem:[#allocation14 + $0x1cb0] sm:$0xff]  ;;  %v4379_v28 = vld [vmem:[#allocation14 + $0x1c98] sm:$0xff] }
 0xa1f   :  { %5509 = vmatpush2.msra.mxu1 %v4050_v21  ;;  %5578 = vmatpush2.msra.mxu0 %v4182_v44  ;;  %v4246_v62 = vld [vmem:[#allocation14 + $0x1870] sm:$0xff]  ;;  %v4243_v21 = vld [vmem:[#allocation14 + $0x1858] sm:$0xff] }
 0xa20   :  { %5510 = vmatprep.subr.mxu1 %v4047_v1  ;;  %5579 = vmatprep.subr.mxu0 %v4179_v51  ;;  %v4378_v9 = vld [vmem:[#allocation14 + $0x1c90] sm:$0xff]  ;;  %v4375_v44 = vld [vmem:[#allocation14 + $0x1c78] sm:$0xff] }
 0xa21   :  { %5511 = vmatpush2.msra.mxu1 %v4046_v52  ;;  %5580 = vmatpush2.msra.mxu0 %v4178_v26  ;;  %v4242_v1 = vld [vmem:[#allocation14 + $0x1850] sm:$0xff]  ;;  %v4239_v52 = vld [vmem:[#allocation14 + $0x1838] sm:$0xff] }
 0xa22   :  { %5512 = vmatprep.subr.mxu1 %v4043_v43  ;;  %5581 = vmatprep.subr.mxu0 %v4175_v13  ;;  %v4374_v51 = vld [vmem:[#allocation14 + $0x1c70] sm:$0xff]  ;;  %v4371_v26 = vld [vmem:[#allocation14 + $0x1c58] sm:$0xff] }
 0xa23   :  { %5513 = vmatpush2.msra.mxu1 %v4042_v11  ;;  %5582 = vmatpush2.msra.mxu0 %v4174_v2  ;;  %v4238_v43 = vld [vmem:[#allocation14 + $0x1830] sm:$0xff]  ;;  %v4235_v11 = vld [vmem:[#allocation14 + $0x1818] sm:$0xff] }
 0xa24   :  { %5515 = vmatmul.mubr.f32.vlgmr.msra.gmra.mxu1 %v9587_v12  ;;  %5583 = vmatprep.subr.mxu0 %v4171_v33  ;;  %v4283_v12 = vld [vmem:[#allocation14 + $0x1998] sm:$0xff]  ;;  %v4370_v13 = vld [vmem:[#allocation14 + $0x1c50] sm:$0xff] }
 0xa25   :  { %5592 = vmatprep.subr.mxu1 %v4295_v47  ;;  %5584 = vmatpush2.msra.mxu0 %v4170_v45  ;;  %v4367_v2 = vld [vmem:[#allocation14 + $0x1c38] sm:$0xff]  ;;  %v4234_v33 = vld [vmem:[#allocation14 + $0x1810] sm:$0xff] }
 0xa26   :  { %5593 = vmatpush1.msra.mxu1 %v4294_v30  ;;  %5656 = vmatprep.mubr.f32.mxu1 %v9613_v16  ;;  %v4279_v16 = vld [vmem:[#allocation14 + $0x1978] sm:$0xff]  ;;  %v4366_v47 = vld [vmem:[#allocation14 + $0x1c30] sm:$0xff] }
 0xa27   :  { %5586 = vmatmul.mubr.f32.vlgmr.msra.gmra.mxu0 %v9590_v15  ;;  %5594 = vmatprep.subr.mxu1 %v4291_v48  ;;  %v4411_v15 = vld [vmem:[#allocation14 + $0x1d98] sm:$0xff]  ;;  %v4358_v48 = vld [vmem:[#allocation14 + $0x1bf0] sm:$0xff] }
 0xa28   :  { %5663 = vmatprep.subr.mxu0 %v4423_v7  ;;  %5595 = vmatpush1.msra.mxu1 %v4290_v40  ;;  %v4359_v45 = vld [vmem:[#allocation14 + $0x1bf8] sm:$0xff]  ;;  %v4362_v7 = vld [vmem:[#allocation14 + $0x1c10] sm:$0xff]  ;;  %v9638_v40 = vpop.f32.mrf.mxu1 }
 0xa29   :  { %5664 = vmatpush1.msra.mxu0 %v4422_v59  ;;  %5727 = vmatprep.mubr.f32.mxu0 %v9619_v42  ;;  %v4274_v42 = vld [vmem:[#allocation14 + $0x1950] sm:$0xff]  ;;  %v4363_v30 = vld [vmem:[#allocation14 + $0x1c18] sm:$0xff] }
 0xa2a   :  { %5596 = vmatprep.subr.mxu1 %v4287_v54  ;;  %5665 = vmatprep.subr.mxu0 %v4419_v53  ;;  %v4355_v59 = vld [vmem:[#allocation14 + $0x1bd8] sm:$0xff]  ;;  %v4354_v53 = vld [vmem:[#allocation14 + $0x1bd0] sm:$0xff] }
 0xa2b   :  { %5597 = vmatpush1.msra.mxu1 %v4286_v10  ;;  %5666 = vmatpush1.msra.mxu0 %v4418_v36  ;;  %v4487_v54 = vld [vmem:[#allocation14 + $0x1ff8] sm:$0xff]  ;;  %v4486_v10 = vld [vmem:[#allocation14 + $0x1ff0] sm:$0xff]  ;;  %v9640_v36 = vld [vmem:[#allocation15] sm:$0xf] }
 0xa2c   :  { %5598 = vmatprep.subr.mxu1 %v4283_v12  ;;  %5667 = vmatprep.subr.mxu0 %v4415_v56  ;;  %v4351_v12 = vld [vmem:[#allocation14 + $0x1bb8] sm:$0xff] }
 0xa2d   :  { %5599 = vmatpush1.msra.mxu1 %v4282_v27  ;;  %5668 = vmatpush1.msra.mxu0 %v4414_v55  ;;  %v4483_v56 = vld [vmem:[#allocation14 + $0x1fd8] sm:$0xff] }
 0xa2e   :  { %5600 = vmatprep.subr.mxu1 %v4279_v16  ;;  %5669 = vmatprep.subr.mxu0 %v4411_v15  ;;  %v10620_v27 = vld [vmem:[#allocation95_spill] sm:$0xff]  ;;  %v4350_v16 = vld [vmem:[#allocation14 + $0x1bb0] sm:$0xff] }
 0xa2f   :  { %5601 = vmatpush1.msra.mxu1 %v4278_v37  ;;  %5670 = vmatpush1.msra.mxu0 %v4410_v22  ;;  %v4497_v55 = vrot.slane %v9640_v36, %v10620_v27  ;;  %v4482_v15 = vld [vmem:[#allocation14 + $0x1fd0] sm:$0xff]  ;;  %v4666_v37 = vpop.f32.mrf.mxu1  ;;  %v9644_v22 = vpop.f32.mrf.mxu0  ;;  %v4443_v27 = vld [vmem:[#allocation14 + $0x1e98] sm:$0xff] }
 0xa30   :  { %5602 = vmatprep.subr.mxu1 %v4275_v58  ;;  %5671 = vmatprep.subr.mxu0 %v4407_v6  ;;  %v4347_v58 = vld [vmem:[#allocation14 + $0x1b98] sm:$0xff] }
 0xa31   :  { %5603 = vmatpush1.msra.mxu1 %v4274_v42  ;;  %5672 = vmatpush1.msra.mxu0 %v4406_v23  ;;  %v4479_v6 = vld [vmem:[#allocation14 + $0x1fb8] sm:$0xff]  ;;  %v4346_v42 = vld [vmem:[#allocation14 + $0x1b90] sm:$0xff] }
 0xa32   :  { %5604 = vmatprep.subr.mxu1 %v4271_v50  ;;  %5673 = vmatprep.subr.mxu0 %v4403_v0  ;;  %v4478_v23 = vld [vmem:[#allocation14 + $0x1fb0] sm:$0xff]  ;;  %v9646_v50 = vpop.f32.mrf.mxu1  ;;  %v4343_v0 = vld [vmem:[#allocation14 + $0x1b78] sm:$0xff] }
 0xa33   :  { %5605 = vmatpush1.msra.mxu1 %v4270_v19  ;;  %5674 = vmatpush1.msra.mxu0 %v4402_v14  ;;  %v4475_v19 = vld [vmem:[#allocation14 + $0x1f98] sm:$0xff]  ;;  %v4667_v14 = vadd.f32 %v4666_v37, %v4497_v55 }
 0xa34   :  { %5606 = vmatprep.subr.mxu1 %v4267_v29  ;;  %5675 = vmatprep.subr.mxu0 %v4399_v41  ;;  %v4342_v29 = vld [vmem:[#allocation14 + $0x1b70] sm:$0xff]  ;;  %v4307_v37 = vld [vmem:[#allocation14 + $0x1a58] sm:$0xff] }
 0xa35   :  { %5607 = vmatpush1.msra.mxu1 %v4266_v3  ;;  %5676 = vmatpush1.msra.mxu0 %v4398_v18  ;;  %v4474_v41 = vld [vmem:[#allocation14 + $0x1f90] sm:$0xff]  ;;  %v4737_v3 = vpop.f32.mrf.mxu0  ;;  %v4339_v18 = vld [vmem:[#allocation14 + $0x1b58] sm:$0xff] }
 0xa36   :  { %5608 = vmatprep.subr.mxu1 %v4263_v49  ;;  %5677 = vmatprep.subr.mxu0 %v4395_v25  ;;  %v4471_v49 = vld [vmem:[#allocation14 + $0x1f78] sm:$0xff]  ;;  %v4338_v25 = vld [vmem:[#allocation14 + $0x1b50] sm:$0xff] }
 0xa37   :  { %5609 = vmatpush1.msra.mxu1 %v4262_v24  ;;  %5678 = vmatpush1.msra.mxu0 %v4394_v63  ;;  %v4470_v24 = vld [vmem:[#allocation14 + $0x1f70] sm:$0xff]  ;;  %v4808_v63 = vpop.f32.mrf.mxu1 }
 0xa38   :  { %5610 = vmatprep.subr.mxu1 %v4259_v31  ;;  %5679 = vmatprep.subr.mxu0 %v4391_v8  ;;  %v9648_v31 = vpop.f32.mrf.mxu0  ;;  %v4335_v8 = vld [vmem:[#allocation14 + $0x1b38] sm:$0xff] }
 0xa39   :  { %5611 = vmatpush1.msra.mxu1 %v4258_v17  ;;  %5680 = vmatpush1.msra.mxu0 %v4390_v46  ;;  %v4467_v17 = vld [vmem:[#allocation14 + $0x1f58] sm:$0xff]  ;;  %v4738_v46 = vadd.f32 %v4737_v3, %v4667_v14 }
 0xa3a   :  { %5612 = vmatprep.subr.mxu1 %v4255_v35  ;;  %5681 = vmatprep.subr.mxu0 %v4387_v5  ;;  %v4334_v35 = vld [vmem:[#allocation14 + $0x1b30] sm:$0xff]  ;;  %v4435_v14 = vld [vmem:[#allocation14 + $0x1e58] sm:$0xff] }
 0xa3b   :  { %5613 = vmatpush1.msra.mxu1 %v4254_v39  ;;  %5682 = vmatpush1.msra.mxu0 %v4386_v38  ;;  %v4466_v5 = vld [vmem:[#allocation14 + $0x1f50] sm:$0xff]  ;;  %v9650_v39 = vpop.f32.mrf.mxu1  ;;  %v4331_v38 = vld [vmem:[#allocation14 + $0x1b18] sm:$0xff] }
 0xa3c   :  { %5614 = vmatprep.subr.mxu1 %v4251_v57  ;;  %5683 = vmatprep.subr.mxu0 %v4383_v60  ;;  %v4463_v57 = vld [vmem:[#allocation14 + $0x1f38] sm:$0xff]  ;;  %v4809_v60 = vadd.f32 %v4808_v63, %v4738_v46 }
 0xa3d   :  { %5615 = vmatpush1.msra.mxu1 %v4250_v61  ;;  %5684 = vmatpush1.msra.mxu0 %v4382_v34  ;;  %v4330_v61 = vld [vmem:[#allocation14 + $0x1b10] sm:$0xff]  ;;  %v4299_v3 = vld [vmem:[#allocation14 + $0x1a18] sm:$0xff] }
 0xa3e   :  { %5616 = vmatprep.subr.mxu1 %v4247_v20  ;;  %5685 = vmatprep.subr.mxu0 %v4379_v28  ;;  %v4462_v34 = vld [vmem:[#allocation14 + $0x1f30] sm:$0xff]  ;;  %v4879_v20 = vpop.f32.mrf.mxu0  ;;  %v4327_v28 = vld [vmem:[#allocation14 + $0x1af8] sm:$0xff] }
 0xa3f   :  { %5617 = vmatpush1.msra.mxu1 %v4246_v62  ;;  %5686 = vmatpush1.msra.mxu0 %v4378_v9  ;;  %v4459_v62 = vld [vmem:[#allocation14 + $0x1f18] sm:$0xff]  ;;  %v4326_v9 = vld [vmem:[#allocation14 + $0x1af0] sm:$0xff] }
 0xa40   :  { %5618 = vmatprep.subr.mxu1 %v4243_v21  ;;  %5687 = vmatprep.subr.mxu0 %v4375_v44  ;;  %v4458_v21 = vld [vmem:[#allocation14 + $0x1f10] sm:$0xff]  ;;  %v4950_v44 = vpop.f32.mrf.mxu1  ;;  %v4427_v63 = vld [vmem:[#allocation14 + $0x1e18] sm:$0xff] }
 0xa41   :  { %5619 = vmatpush1.msra.mxu1 %v4242_v1  ;;  %5688 = vmatpush1.msra.mxu0 %v4374_v51  ;;  %v9652_v1 = vpop.f32.mrf.mxu0  ;;  %v4323_v51 = vld [vmem:[#allocation14 + $0x1ad8] sm:$0xff] }
 0xa42   :  { %5620 = vmatprep.subr.mxu1 %v4239_v52  ;;  %5689 = vmatprep.subr.mxu0 %v4371_v26  ;;  %v4455_v52 = vld [vmem:[#allocation14 + $0x1ef8] sm:$0xff]  ;;  %v4880_v26 = vadd.f32 %v4879_v20, %v4809_v60  ;;  %v5752_v60 = vld [vmem:[%s9879_s9 + $0x70] sm:$0xff] }
 0xa43   :  { %5621 = vmatpush1.msra.mxu1 %v4238_v43  ;;  %5690 = vmatpush1.msra.mxu0 %v4370_v13  ;;  %v4322_v43 = vld [vmem:[#allocation14 + $0x1ad0] sm:$0xff] }
 0xa44   :  { %5622 = vmatprep.subr.mxu1 %v4235_v11  ;;  %5691 = vmatprep.subr.mxu0 %v4367_v2  ;;  %v4454_v13 = vld [vmem:[#allocation14 + $0x1ef0] sm:$0xff]  ;;  %v9654_v11 = vpop.f32.mrf.mxu1  ;;  %v4319_v2 = vld [vmem:[#allocation14 + $0x1ab8] sm:$0xff] }
 0xa45   :  { %5623 = vmatpush1.msra.mxu1 %v4234_v33  ;;  %5692 = vmatpush1.msra.mxu0 %v4366_v47  ;;  %v4451_v33 = vld [vmem:[#allocation14 + $0x1ed8] sm:$0xff]  ;;  %v4951_v47 = vadd.f32 %v4950_v44, %v4880_v26  ;;  %v5764_v26 = vld [vmem:[%s9879_s9 + $0xd0] sm:$0xff] }
 0xa46   :  { %5624 = vmatprep.subr.mxu1 %v4359_v45  ;;  %5693 = vmatprep.subr.mxu0 %v4363_v30  ;;  %v4318_v45 = vld [vmem:[#allocation14 + $0x1ab0] sm:$0xff] }
 0xa47   :  { %5625 = vmatpush2.msra.mxu1 %v4358_v48  ;;  %5694 = vmatpush1.msra.mxu0 %v4362_v7  ;;  %v4450_v30 = vld [vmem:[#allocation14 + $0x1ed0] sm:$0xff]  ;;  %v5021_v48 = vpop.f32.mrf.mxu0  ;;  %v4315_v7 = vld [vmem:[#allocation14 + $0x1a98] sm:$0xff] }
 0xa48   :  { %5626 = vmatprep.subr.mxu1 %v4355_v59  ;;  %5695 = vmatprep.subr.mxu0 %v4487_v54  ;;  %v4447_v59 = vld [vmem:[#allocation14 + $0x1eb8] sm:$0xff]  ;;  %v4314_v54 = vld [vmem:[#allocation14 + $0x1a90] sm:$0xff]  ;;  %v5022_v55 = vadd.f32 %v5021_v48, %v4951_v47  ;;  %v5763_v47 = vld [vmem:[%s9879_s9 + $0xc8] sm:$0xff] }
 0xa49   :  { %5627 = vmatpush2.msra.mxu1 %v4354_v53  ;;  %5696 = vmatpush2.msra.mxu0 %v4486_v10  ;;  %v4446_v53 = vld [vmem:[#allocation14 + $0x1eb0] sm:$0xff]  ;;  %v5092_v10 = vpop.f32.mrf.mxu1 }
 0xa4a   :  { %5628 = vmatprep.subr.mxu1 %v4351_v12  ;;  %5697 = vmatprep.subr.mxu0 %v4483_v56  ;;  %v9656_v12 = vpop.f32.mrf.mxu0  ;;  %v4311_v56 = vld [vmem:[#allocation14 + $0x1a78] sm:$0xff] }
 0xa4b   :  { %5629 = vmatpush2.msra.mxu1 %v4350_v16  ;;  %5698 = vmatpush2.msra.mxu0 %v4482_v15  ;;  %v4310_v16 = vld [vmem:[#allocation14 + $0x1a70] sm:$0xff] }
 0xa4c   :  { %5630 = vmatprep.subr.mxu1 %v4347_v58  ;;  %5699 = vmatprep.subr.mxu0 %v4479_v6  ;;  %v4442_v15 = vld [vmem:[#allocation14 + $0x1e90] sm:$0xff]  ;;  %v4439_v58 = vld [vmem:[#allocation14 + $0x1e78] sm:$0xff]  ;;  %v5093_v6 = vadd.f32 %v5092_v10, %v5022_v55  ;;  %v5795_v10 = vld [vmem:[%s9879_s9 + $0x1c8] sm:$0xff] }
 0xa4d   :  { %5631 = vmatpush2.msra.mxu1 %v4346_v42  ;;  %5700 = vmatpush2.msra.mxu0 %v4478_v23  ;;  %v4306_v42 = vld [vmem:[#allocation14 + $0x1a50] sm:$0xff]  ;;  %v5779_v55 = vld [vmem:[%s9879_s9 + $0x148] sm:$0xff] }
 0xa4e   :  { %5632 = vmatprep.subr.mxu1 %v4343_v0  ;;  %5701 = vmatprep.subr.mxu0 %v4475_v19  ;;  %v4438_v23 = vld [vmem:[#allocation14 + $0x1e70] sm:$0xff]  ;;  %v5163_v0 = vpop.f32.mrf.mxu0  ;;  %v4303_v19 = vld [vmem:[#allocation14 + $0x1a38] sm:$0xff] }
 0xa4f   :  { %5633 = vmatpush2.msra.mxu1 %v4342_v29  ;;  %5702 = vmatpush2.msra.mxu0 %v4474_v41  ;;  %v4302_v29 = vld [vmem:[#allocation14 + $0x1a30] sm:$0xff] }
 0xa50   :  { %5634 = vmatprep.subr.mxu1 %v4339_v18  ;;  %5703 = vmatprep.subr.mxu0 %v4471_v49  ;;  %v4434_v41 = vld [vmem:[#allocation14 + $0x1e50] sm:$0xff]  ;;  %v4431_v18 = vld [vmem:[#allocation14 + $0x1e38] sm:$0xff]  ;;  %v5164_v49 = vadd.f32 %v5163_v0, %v5093_v6  ;;  %v5759_v6 = vld [vmem:[%s9879_s9 + $0xa8] sm:$0xff] }
 0xa51   :  { %5635 = vmatpush2.msra.mxu1 %v4338_v25  ;;  %5704 = vmatpush2.msra.mxu0 %v4470_v24  ;;  %v4298_v25 = vld [vmem:[#allocation14 + $0x1a10] sm:$0xff]  ;;  %v5758_v0 = vld [vmem:[%s9879_s9 + $0xa0] sm:$0xff] }
 0xa52   :  { %5636 = vmatprep.subr.mxu1 %v4335_v8  ;;  %5705 = vmatprep.subr.mxu0 %v4467_v17  ;;  %v4430_v24 = vld [vmem:[#allocation14 + $0x1e30] sm:$0xff] }
 0xa53   :  { %5637 = vmatpush2.msra.mxu1 %v4334_v35  ;;  %5706 = vmatpush2.msra.mxu0 %v4466_v5  ;;  %v5769_v8 = vld [vmem:[%s9879_s9 + $0xf8] sm:$0xff]  ;;  %v5735_v35 = vmax.f32 %v5164_v49, 0.0  ;;  %v5768_v5 = vld [vmem:[%s9879_s9 + $0xf0] sm:$0xff] }
 0xa54   :  { %5638 = vmatprep.subr.mxu1 %v4331_v38  ;;  %5707 = vmatprep.subr.mxu0 %v4463_v57  ;;  %v4426_v17 = vld [vmem:[#allocation14 + $0x1e10] sm:$0xff] }
 0xa55   :  { %5639 = vmatpush2.msra.mxu1 %v4330_v61  ;;  %5708 = vmatpush2.msra.mxu0 %v4462_v34  ;;  %v5753_v46 = vld [vmem:[%s9879_s9 + $0x78] sm:$0xff]  ;;  %v5751_v61 = vld [vmem:[%s9879_s9 + $0x68] sm:$0xff]  ;;  %v5766_v34 = vld [vmem:[%s9879_s9 + $0xe0] sm:$0xff] }
 0xa56   :  { %5640 = vmatprep.subr.mxu1 %v4327_v28  ;;  %5709 = vmatprep.subr.mxu0 %v4459_v62  ;;  %v10621_v38 = vld [vmem:[#allocation94_spill] sm:$0xff] }
 0xa57   :  { %5641 = vmatpush2.msra.mxu1 %v4326_v9  ;;  %5710 = vmatpush2.msra.mxu0 %v4458_v21  ;;  %v4493_v57 = vrot.slane %v9640_v36, %v10621_v38  ;;  %v5801_v20 = vld [vmem:[%s9879_s9 + $0x1f8] sm:$0xff]  ;;  %v5750_v9 = vld [vmem:[%s9879_s9 + $0x60] sm:$0xff]  ;;  %v5784_v21 = vld [vmem:[%s9879_s9 + $0x170] sm:$0xff] }
 0xa58   :  { %5642 = vmatprep.subr.mxu1 %v4323_v51  ;;  %5711 = vmatprep.subr.mxu0 %v4455_v52  ;;  %v5785_v28 = vld [vmem:[%s9879_s9 + $0x178] sm:$0xff]  ;;  %v5783_v52 = vld [vmem:[%s9879_s9 + $0x168] sm:$0xff]  ;;  %v5774_v38 = vld [vmem:[%s9879_s9 + $0x120] sm:$0xff] }
 0xa59   :  { %5643 = vmatpush2.msra.mxu1 %v4322_v43  ;;  %5712 = vmatpush2.msra.mxu0 %v4454_v13  ;;  %v4665_v62 = vadd.f32 %v9638_v40, %v4493_v57  ;;  %v5765_v44 = vld [vmem:[%s9879_s9 + $0xd8] sm:$0xff]  ;;  %v5799_v40 = vld [vmem:[%s9879_s9 + $0x1e8] sm:$0xff]  ;;  %v5798_v43 = vld [vmem:[%s9879_s9 + $0x1e0] sm:$0xff] }
 0xa5a   :  { %5644 = vmatprep.subr.mxu1 %v4319_v2  ;;  %5713 = vmatprep.subr.mxu0 %v4451_v33  ;;  %v5749_v51 = vld [vmem:[%s9879_s9 + $0x58] sm:$0xff]  ;;  %v5748_v2 = vld [vmem:[%s9879_s9 + $0x50] sm:$0xff]  ;;  %v5782_v33 = vld [vmem:[%s9879_s9 + $0x160] sm:$0xff] }
 0xa5b   :  { %5645 = vmatpush2.msra.mxu1 %v4318_v45  ;;  %5714 = vmatpush2.msra.mxu0 %v4450_v30  ;;  %v4736_v13 = vadd.f32 %v9644_v22, %v4665_v62  ;;  %v5797_v22 = vld [vmem:[%s9879_s9 + $0x1d8] sm:$0xff]  ;;  %v5747_v30 = vld [vmem:[%s9879_s9 + $0x48] sm:$0xff] }
 0xa5c   :  { %5646 = vmatprep.subr.mxu1 %v4315_v7  ;;  %5715 = vmatprep.subr.mxu0 %v4447_v59  ;;  %v5781_v48 = vld [vmem:[%s9879_s9 + $0x158] sm:$0xff]  ;;  %v5762_v7 = vld [vmem:[%s9879_s9 + $0xc0] sm:$0xff] }
 0xa5d   :  { %5647 = vmatpush2.msra.mxu1 %v4314_v54  ;;  %5716 = vmatpush2.msra.mxu0 %v4446_v53  ;;  %v4807_v45 = vadd.f32 %v9646_v50, %v4736_v13  ;;  %v5796_v50 = vld [vmem:[%s9879_s9 + $0x1d0] sm:$0xff]  ;;  %v5746_v59 = vld [vmem:[%s9879_s9 + $0x40] sm:$0xff]  ;;  %v5761_v53 = vld [vmem:[%s9879_s9 + $0xb8] sm:$0xff] }
 0xa5e   :  { %5648 = vmatprep.subr.mxu1 %v4311_v56  ;;  %5717 = vmatprep.subr.mxu0 %v4443_v27  ;;  %v5780_v54 = vld [vmem:[%s9879_s9 + $0x150] sm:$0xff]  ;;  %v5745_v27 = vld [vmem:[%s9879_s9 + $0x38] sm:$0xff] }
 0xa5f   :  { %5649 = vmatpush2.msra.mxu1 %v4310_v16  ;;  %5718 = vmatpush2.msra.mxu0 %v4442_v15  ;;  %v4878_v56 = vadd.f32 %v9648_v31, %v4807_v45  ;;  %v5760_v16 = vld [vmem:[%s9879_s9 + $0xb0] sm:$0xff]  ;;  %v5794_v31 = vld [vmem:[%s9879_s9 + $0x1c0] sm:$0xff]  ;;  %v5741_v49 = vld [vmem:[%s9879_s9 + $0x18] sm:$0xff] }
 0xa60   :  { %5650 = vmatprep.subr.mxu1 %v4307_v37  ;;  %5719 = vmatprep.subr.mxu0 %v4439_v58  ;;  %v5744_v37 = vld [vmem:[%s9879_s9 + $0x30] sm:$0xff]  ;;  %v5778_v58 = vld [vmem:[%s9879_s9 + $0x140] sm:$0xff]  ;;  %v5789_v57 = vld [vmem:[%s9879_s9 + $0x198] sm:$0xff]  ;;  %v5232_v62 = vpop.f32.mrf.mxu1 }
 0xa61   :  { %5651 = vmatpush2.msra.mxu1 %v4306_v42  ;;  %5720 = vmatpush2.msra.mxu0 %v4438_v23  ;;  %v4949_v15 = vadd.f32 %v9650_v39, %v4878_v56  ;;  %v5793_v39 = vld [vmem:[%s9879_s9 + $0x1b8] sm:$0xff]  ;;  %v5743_v42 = vld [vmem:[%s9879_s9 + $0x28] sm:$0xff] }
 0xa62   :  { %5652 = vmatprep.subr.mxu1 %v4303_v19  ;;  %5721 = vmatprep.subr.mxu0 %v4435_v14  ;;  %v5777_v23 = vld [vmem:[%s9879_s9 + $0x138] sm:$0xff]  ;;  %v5792_v19 = vld [vmem:[%s9879_s9 + $0x1b0] sm:$0xff] }
 0xa63   :  { %5653 = vmatpush2.msra.mxu1 %v4302_v29  ;;  %5722 = vmatpush2.msra.mxu0 %v4434_v41  ;;  %v5020_v14 = vadd.f32 %v9652_v1, %v4949_v15  ;;  %v5742_v29 = vld [vmem:[%s9879_s9 + $0x20] sm:$0xff]  ;;  %v5776_v41 = vld [vmem:[%s9879_s9 + $0x130] sm:$0xff]  ;;  %v5791_v1 = vld [vmem:[%s9879_s9 + $0x1a8] sm:$0xff] }
 0xa64   :  { %5654 = vmatprep.subr.mxu1 %v4299_v3  ;;  %5723 = vmatprep.subr.mxu0 %v4431_v18  ;;  %v5757_v3 = vld [vmem:[%s9879_s9 + $0x98] sm:$0xff] }
 0xa65   :  { %5655 = vmatpush2.msra.mxu1 %v4298_v25  ;;  %5724 = vmatpush2.msra.mxu0 %v4430_v24  ;;  %v5091_v18 = vadd.f32 %v9654_v11, %v5020_v14  ;;  %v5775_v25 = vld [vmem:[%s9879_s9 + $0x128] sm:$0xff]  ;;  %v5756_v24 = vld [vmem:[%s9879_s9 + $0x90] sm:$0xff] }
 0xa66   :  { %5657 = vmatmul.mubr.f32.vlgmr.msra.gmra.mxu1 %v9605_v32  ;;  %5725 = vmatprep.subr.mxu0 %v4427_v63  ;;  %v5767_v32 = vld [vmem:[%s9879_s9 + $0xe8] sm:$0xff]  ;;  %v5740_v11 = vld [vmem:[%s9879_s9 + $0x10] sm:$0xff] }
 0xa67   :  { %6291 = vmatprep.subr.mxu1 %v5769_v8  ;;  %5726 = vmatpush2.msra.mxu0 %v4426_v17  ;;  %v5755_v63 = vld [vmem:[%s9879_s9 + $0x88] sm:$0xff]  ;;  %v5162_v8 = vadd.f32 %v9656_v12, %v5091_v18  ;;  %v5790_v12 = vld [vmem:[%s9879_s9 + $0x1a0] sm:$0xff] }
 0xa68   :  { %6292 = vmatpush3.msra.mxu1 %v5753_v46  ;;  %5873 = vmatprep.mubr.f32.mxu1 %v5735_v35  ;;  %v5739_v17 = vld [vmem:[%s9879_s9 + $0x8] sm:$0xff]  ;;  %v5754_v46 = vld [vmem:[%s9879_s9 + $0x80] sm:$0xff] }
 0xa69   :  { %5728 = vmatmul.mubr.f32.vlgmr.msra.gmra.mxu0 %v9608_v4  ;;  %6293 = vmatprep.subr.mxu1 %v5768_v5  ;;  %v5800_v4 = vld [vmem:[%s9879_s9 + $0x1f0] sm:$0xff]  ;;  %v5738_v35 = vld [vmem:[%s9879_s9] sm:$0xff]  ;;  %v5734_v5 = vmax.f32 %v5162_v8, 0.0 }
 0xa6a   :  { %6294 = vmatpush3.msra.mxu1 %v5752_v60  ;;  %6326 = vmatprep.subr.mxu0 %v5801_v20  ;;  %v5773_v60 = vld [vmem:[%s9879_s9 + $0x118] sm:$0xff]  ;;  %v5771_v20 = vld [vmem:[%s9879_s9 + $0x108] sm:$0xff] }
 0xa6b   :  { %6295 = vmatprep.subr.mxu1 %v5767_v32  ;;  %6327 = vmatpush3.msra.mxu0 %v5785_v28  ;;  %v5788_v32 = vld [vmem:[%s9879_s9 + $0x190] sm:$0xff]  ;;  %v5786_v28 = vld [vmem:[%s9879_s9 + $0x180] sm:$0xff] }
 0xa6c   :  { %6296 = vmatpush3.msra.mxu1 %v5751_v61  ;;  %6328 = vmatprep.subr.mxu0 %v5800_v4  ;;  %v5772_v61 = vld [vmem:[%s9879_s9 + $0x110] sm:$0xff]  ;;  %v5770_v4 = vld [vmem:[%s9879_s9 + $0x100] sm:$0xff] }
 0xa6d   :  { %6297 = vmatprep.subr.mxu1 %v5766_v34  ;;  %6329 = vmatpush3.msra.mxu0 %v5784_v21  ;;  %v5787_v34 = vld [vmem:[%s9879_s9 + $0x188] sm:$0xff]  ;;  %s7527_s9 = smov [#allocation18]  }
 0xa6e   :  { %6298 = vmatpush3.msra.mxu1 %v5750_v9  ;;  %6330 = vmatprep.subr.mxu0 %v5799_v40  ;;  %v10622_v9 = vld [vmem:[#allocation98_spill] sm:$0xff]  ;;  %s5957_s13 = sshll.u32 %s7527_s9, 4  ;;  %s5958_s13 = int_to_ptr.vmem [resolvable:$true] %s5957_s13 }
 0xa6f   :  { %6299 = vmatprep.subr.mxu1 %v5765_v44  ;;  %6331 = vmatpush3.msra.mxu0 %v5783_v52  ;;  %v4501_v21 = vrot.slane %v9640_v36, %v10622_v9  ;;  %v10623_v44 = vld [vmem:[#allocation93_spill] sm:$0xff]  ;;  %v5234_v52 = vpop.f32.mrf.mxu1  ;;  %s7479_s2 = scalar_lea.vmem %s5958_s13, 32  ;;  %p7484_p4 = scmp.lt.s32.totalorder %s5958_s13, %s5958_s13 }
 0xa70   :  { %6300 = vmatpush3.msra.mxu1 %v5749_v51  ;;  %6332 = vmatprep.subr.mxu0 %v5798_v43  ;;  %v10624_v40 = vsub.s32 3, %v10623_v44  ;;  %p7480_p3 = scmp.ne.s32.totalorder %s5958_s13, %s7479_s2  ;;  %p7485_p5 = scmp.lt.s32.totalorder %s7479_s2, %s7479_s2 }
 0xa71   :  { %6301 = vmatprep.subr.mxu1 %v5764_v26  ;;  %6333 = vmatpush3.msra.mxu0 %v5782_v33  ;;  %v5303_v26 = vpop.f32.mrf.mxu0  ;;  %v5233_v43 = vadd.f32 %v5232_v62, %v4501_v21 }
 0xa72   :  { %6302 = vmatpush3.msra.mxu1 %v5748_v2  ;;  %6334 = vmatprep.subr.mxu0 %v5797_v22  ;;  %v4505_v51 = vrot.slane %v9640_v36, %v10624_v40  ;;  %p7486_p6 = por %p7485_p5, %p7484_p4 }
 0xa73   :  { %6303 = vmatprep.subr.mxu1 %v5763_v47  ;;  %6335 = vmatpush3.msra.mxu0 %v5781_v48  ;;  %v5305_v33 = vpop.f32.mrf.mxu0  ;;  %v5304_v47 = vadd.f32 %v5303_v26, %v5233_v43 }
 0xa74   :  { %6304 = vmatpush3.msra.mxu1 %v5747_v30  ;;  %6336 = vmatprep.subr.mxu0 %v5796_v50  ;;  %v5235_v2 = vadd.f32 %v5234_v52, %v4505_v51  ;;  %p7487_p7 = pnand %p7486_p6, %p7480_p3 }
 0xa75   :  { %6305 = vmatprep.subr.mxu1 %v5762_v7  ;;  %6337 = vmatpush3.msra.mxu0 %v5780_v54 }
 0xa76   :  { %6306 = vmatpush3.msra.mxu1 %v5746_v59  ;;  %6338 = vmatprep.subr.mxu0 %v5795_v10  ;;  %v5306_v30 = vadd.f32 %v5305_v33, %v5235_v2 }
 0xa77   :  { %6307 = vmatprep.subr.mxu1 %v5761_v53  ;;  %6339 = vmatpush3.msra.mxu0 %v5779_v55 }
 0xa78   :  { %6308 = vmatpush3.msra.mxu1 %v5745_v27  ;;  %6340 = vmatprep.subr.mxu0 %v5794_v31 }
 0xa79   :  { %6309 = vmatprep.subr.mxu1 %v5760_v16  ;;  %6341 = vmatpush3.msra.mxu0 %v5778_v58 }
 0xa7a   :  { %6310 = vmatpush3.msra.mxu1 %v5744_v37  ;;  %6342 = vmatprep.subr.mxu0 %v5793_v39 }
 0xa7b   :  { %6311 = vmatprep.subr.mxu1 %v5759_v6  ;;  %6343 = vmatpush3.msra.mxu0 %v5777_v23 }
 0xa7c   :  { %6312 = vmatpush3.msra.mxu1 %v5743_v42  ;;  %6344 = vmatprep.subr.mxu0 %v5792_v19 }
 0xa7d   :  { %6313 = vmatprep.subr.mxu1 %v5758_v0  ;;  %6345 = vmatpush3.msra.mxu0 %v5776_v41 }
 0xa7e   :  { %6314 = vmatpush3.msra.mxu1 %v5742_v29  ;;  %6346 = vmatprep.subr.mxu0 %v5791_v1  ;;  %v6018_v1 = vld [vmem:[#allocation17] ss:$0 sm:$0xff] }
 0xa7f   :  { %6315 = vmatprep.subr.mxu1 %v5757_v3  ;;  %6347 = vmatpush3.msra.mxu0 %v5775_v25 }
 0xa80   :  { %6316 = vmatpush3.msra.mxu1 %v5741_v49  ;;  %6348 = vmatprep.subr.mxu0 %v5790_v12 }
 0xa81   :  { %6317 = vmatprep.subr.mxu1 %v5756_v24  ;;  %6349 = vmatpush3.msra.mxu0 %v5774_v38 }
 0xa82   :  { %6318 = vmatpush3.msra.mxu1 %v5740_v11  ;;  %6350 = vmatprep.subr.mxu0 %v5789_v57 }
 0xa83   :  { %6319 = vmatprep.subr.mxu1 %v5755_v63  ;;  %6351 = vmatpush3.msra.mxu0 %v5773_v60 }
 0xa84   :  { %6320 = vmatpush3.msra.mxu1 %v5739_v17  ;;  %6352 = vmatprep.subr.mxu0 %v5788_v32 }
 0xa85   :  { %6321 = vmatprep.subr.mxu1 %v5754_v46  ;;  %6353 = vmatpush3.msra.mxu0 %v5772_v61 }
 0xa86   :  { %6322 = vmatpush3.msra.mxu1 %v5738_v35  ;;  %6354 = vmatprep.subr.mxu0 %v5787_v34 }
 0xa87   :  { %5874 = vmatmul.mubr.f32.vlgmr.msra.gmra.mxu1 %v5734_v5  ;;  %6355 = vmatpush3.msra.mxu0 %v5771_v20 }
 0xa88   :  { %6356 = vmatprep.subr.mxu0 %v5786_v28 }
 0xa89   :  { %6357 = vmatpush3.msra.mxu0 %v5770_v4 }
 0xaa2   :  { %v5374_v13 = vpop.f32.mrf.mxu1 }
 0xaa3   :  { %v5375_v48 = vadd.f32 %v5374_v13, %v5304_v47 }
 0xaa4   :  { %v5376_v22 = vpop.f32.mrf.mxu1 }
 0xaa5   :  { %v5445_v45 = vpop.f32.mrf.mxu0  ;;  %v5377_v50 = vadd.f32 %v5376_v22, %v5306_v30 }
 0xaa6   :  { %v5446_v54 = vadd.f32 %v5445_v45, %v5375_v48 }
 0xaa7   :  { %v5447_v59 = vpop.f32.mrf.mxu0 }
 0xaa8   :  { %v5448_v56 = vadd.f32 %v5447_v59, %v5377_v50 }
 0xae4   :  { %v5516_v7 = vpop.f32.mrf.mxu1 }
 0xae5   :  { %v5517_v27 = vadd.f32 %v5516_v7, %v5446_v54 }
 0xae6   :  { %v5518_v53 = vpop.f32.mrf.mxu1 }
 0xae7   :  { %v5587_v10 = vpop.f32.mrf.mxu0  ;;  %v5519_v36 = vadd.f32 %v5518_v53, %v5448_v56 }
 0xae8   :  { %v5588_v16 = vadd.f32 %v5587_v10, %v5517_v27 }
 0xae9   :  { %v5589_v55 = vpop.f32.mrf.mxu0 }
 0xaea   :  { %v5590_v15 = vadd.f32 %v5589_v55, %v5519_v36 }
 0xb26   :  { %v5658_v31 = vpop.f32.mrf.mxu1 }
 0xb27   :  { %v5659_v37 = vadd.f32 %v5658_v31, %v5588_v16 }
 0xb28   :  { %v5660_v58 = vpop.f32.mrf.mxu1 }
 0xb29   :  { %v5661_v6 = vadd.f32 %v5660_v58, %v5590_v15  ;;  %v5729_v39 = vpop.f32.mrf.mxu0 }
 0xb2a   :  { %v5730_v42 = vadd.f32 %v5729_v39, %v5659_v37 }
 0xb2b   :  { %v5731_v23 = vpop.f32.mrf.mxu0 }
 0xb2c   :  { %v5732_v0 = vadd.f32 %v5731_v23, %v5661_v6  ;;  %v5736_v14 = vmax.f32 %v5730_v42, 0.0 }
 0xb2e   :  { %v5737_v19 = vmax.f32 %v5732_v0, 0.0 }
 0xb30   :  { %5943 = vmatprep.mubr.f32.mxu0 %v5737_v19 }
 0xb31   :  { %5944 = vmatmul.mubr.f32.vlgmr.msra.gmra.mxu0 %v5736_v14 }
 0xb47   :  { %v6323_v29 = vpop.f32.mrf.mxu1 }
 0xb49   :  { %v6324_v41 = vpop.f32.mrf.mxu1 }
 0xb4a   :  { %v6325_v3 = vadd.f32 %v6324_v41, %v6323_v29 }
 0xb4c   :  { %v5876_v25 = vadd.f32 %v6325_v3, %v6018_v1 }
 0xbf1   :  { %v6358_v18 = vpop.f32.mrf.mxu0 }
 0xbf3   :  { %v6359_v49 = vpop.f32.mrf.mxu0 }
 0xbf4   :  { %v6360_v24 = vadd.f32 %v6359_v49, %v6358_v18 }
 0xbf6   :  { %v5946_v11 = vadd.f32 %v6360_v24, %v5876_v25 }
 0xbf8   :  { %5950 = vst.msk [vmem:[#allocation18] sm:$0x3] %vm5949_vm3, %v5946_v11 }
 0xbf9   :  { %7490 = shalt.err (!%p7487_p7)
}
 0xbfa   :  { %5960 = dma.vmem_to_hbm [thread:$0]  %s5958_s13, 32, %s9881_s11, [#allocation5]  }
 0xbfb   :  { %7509 = dma.done.wait [#allocation5], 32  }
 0xbfc   :  { %7510 = vsyncadd [#allocation5], 4294967264 }
 0xbfd   :  { %5964 = vsyncpa [#allocation4], 1 }
 0xbfe   :  { %5965 = vsyncpa [#allocation7], 1 }
 0xbff   :  { %5966 = vsyncpa [#allocation10], 1 }
 0xc00   :  { %5967 = vsyncpa [#allocation13], 1 }
 0xc01   :  { %5968 = vsyncpa [#allocation16], 1 }
 0xc02   :  { %5969 = vsyncpa [#allocation5], 1 }

</bundles_post_ra>
